<compile_context>
chip_gen: v6e
topology: v6e:2x2x1
jax: 0.10.0
libtpu: 0.0.40
codegen_flags: <defaults>
</compile_context>

<pallas_src>
import functools

import jax
import jax.numpy as jnp
from jax import lax
from jax.experimental import pallas as pl
from jax.experimental.pallas import tpu as pltpu

KH = KW = 5          # gabor kernel size
PAD = 2              # gabor padding (= kernel radius)
CIN = 3              # input channels
CMID = 16            # gabor output channels (folded away by the fusion)
COUT = 3             # output channels
HALO = 8             # sublane-aligned halo fetch block (rows)
RC = 8               # output rows per register-resident chunk
LANE = 128           # lane width
MAX_TILE_ROWS = 128  # bounds the unrolled chunk loop (<= 16 chunks per tile)


def _round_up(x, m):
    return ((x + m - 1) // m) * m


def _geo_fused_kernel(x_ref, top_ref, bot_ref, w_ref, b_ref, o_ref, *, tH, Wp, W):
    # x_ref  : (1, CIN, tH, Wp)    body rows of the tile (lane-dense, zero-padded to Wp)
    # top_ref: (1, CIN, HALO, Wp)  8-row block just above the tile (clamped at the top)
    # bot_ref: (1, CIN, HALO, Wp)  8-row block just below the tile (zeros below image)
    # w_ref  : (COUT*CIN*KH*KW,)   fused 5x5 conv weights (SMEM)
    # b_ref  : (COUT,)             fused bias (SMEM)
    # o_ref  : (1, COUT, tH, Wp)
    i = pl.program_id(1)
    n_chunks = tH // RC

    # Hoist all scalar weight / bias reads once (reused by every row chunk).
    w = [w_ref[k] for k in range(COUT * CIN * KH * KW)]
    bias = [b_ref[c] for c in range(COUT)]

    # 2 halo rows above / below the tile.  Top rows are zeroed with a select at the
    # image top edge (true zero padding; no NaN/Inf propagation from unused halo
    # rows).  The bottom halo always reads valid rows because the wrapper zero-pads
    # HALO extra rows below the image.
    top2 = jnp.where(i > 0, top_ref[0, :, HALO - PAD:, :], 0.0)    # (CIN, PAD, Wp)
    bot2 = bot_ref[0, :, :PAD, :]                                  # (CIN, PAD, Wp)

    # Horizontal edge masks are only needed if the lane padding (Wp - W) is smaller
    # than the kernel radius; with Wp >= W + PAD the roll wrap-around only lands in
    # discarded padding columns (and padded columns are already zero).
    need_col_mask = (Wp - W) < PAD
    col = (lax.broadcasted_iota(jnp.int32, (RC + 2 * PAD, Wp), 1)
           if need_col_mask else None)

    for c in range(n_chunks):                      # static unroll: acc stays in vregs
        r0 = c * RC
        acc = [None] * COUT
        for ci in range(CIN):
            # 12-row slab covering input rows [r0 - 2, r0 + RC + 2) for channel ci.
            lo = max(r0 - PAD, 0)
            hi = min(r0 + RC + PAD, tH)
            parts = []
            if c == 0:
                parts.append(top2[ci])
            parts.append(x_ref[0, ci, lo:hi, :])
            if c == n_chunks - 1:
                parts.append(bot2[ci])
            slab = parts[0] if len(parts) == 1 else jnp.concatenate(parts, axis=0)
            # slab: (RC + 2*PAD, Wp); slab row s == tile input row (r0 - 2 + s).

            for kx in range(KW):
                dx = kx - PAD
                if dx == 0:
                    sl = slab
                else:
                    # sl[.., j] = slab[.., j + dx]  (lane roll on a 128-aligned plane)
                    sl = pltpu.roll(slab, shift=(-dx) % Wp, axis=1)
                    if need_col_mask:
                        if dx < 0 and (Wp - W) < -dx:
                            sl = jnp.where(col >= -dx, sl, 0.0)
                        if dx > 0 and (Wp - W) < dx:
                            sl = jnp.where(col < Wp - dx, sl, 0.0)
                for ky in range(KH):
                    patch = sl[ky:ky + RC, :]      # (RC, Wp) sublane-only slice
                    for co in range(COUT):
                        widx = ((co * CIN + ci) * KH + ky) * KW + kx
                        term = w[widx] * patch
                        acc[co] = term if acc[co] is None else acc[co] + term

        for co in range(COUT):                     # one aligned lane-dense store each
            o_ref[0, co, r0:r0 + RC, :] = acc[co] + bias[co]


def _pick_tile_rows(H, Wp):
    """Row-tile height: multiple of 8, ~4 MiB f32 body block, capped at
    MAX_TILE_ROWS so the unrolled in-kernel chunk loop stays small."""
    budget_rows = max(RC, (4 * 1024 * 1024) // (CIN * Wp * 4))
    t = min(_round_up(H, RC), (budget_rows // RC) * RC, MAX_TILE_ROWS)
    return max(t, RC)


def geo_statistical_layer(x_nchw, w_gabor, b_gabor, w_reduce, b_reduce):
    """GeoStatisticalLayer forward.  x_nchw: (B, 3, H, W).  PyTorch weight layouts:
       w_gabor (16,3,5,5), b_gabor (16,), w_reduce (3,19,1,1), b_reduce (3,)."""
    B, C, H, W = x_nchw.shape
    assert C == CIN

    xf = x_nchw.astype(jnp.float32)

    # --- exact algebraic fusion: conv5x5(3->16) + concat + conv1x1(19->3) ---------
    #   reduce(cat[x, gabor(x)]) == conv5x5(x, W_eff) + b_eff   with
    #   W_eff[o,i,ky,kx] = sum_m wr_t[o,m] * wg[m,i,ky,kx]  (+ wr_x[o,i] on centre tap)
    wr = w_reduce.reshape(COUT, CIN + CMID).astype(jnp.float32)   # rows: [x(3)|tex(16)]
    wr_x, wr_t = wr[:, :CIN], wr[:, CIN:]
    w_eff = jnp.einsum('om,mikl->oikl', wr_t, w_gabor.astype(jnp.float32))  # (3,3,5,5)
    w_eff = w_eff.at[:, :, PAD, PAD].add(wr_x)
    b_eff = b_reduce.astype(jnp.float32) + wr_t @ b_gabor.astype(jnp.float32)
    w_flat = w_eff.reshape(-1)                                    # (225,) -> SMEM

    # --- lane-dense layout + row tiling -------------------------------------------
    Wp = _round_up(W, LANE)                    # lane-dense width (zeros beyond W)
    tH = _pick_tile_rows(H, Wp)
    nH = pl.cdiv(H, tH)
    Hp = nH * tH                               # body rows, multiple of tH
    # Zero padding: right to Wp (doubles as horizontal conv zero padding), bottom to
    # Hp + HALO (removes the divisibility constraint and provides a correct all-zero
    # bottom halo for the last tile).
    xpad = jnp.pad(xf, ((0, 0), (0, 0), (0, Hp - H + HALO), (0, Wp - W)))

    hb = tH // HALO                            # row-tile height in 8-row halo blocks
    kernel = functools.partial(_geo_fused_kernel, tH=tH, Wp=Wp, W=W)

    out = pl.pallas_call(
        kernel,
        out_shape=jax.ShapeDtypeStruct((B, COUT, Hp, Wp), jnp.float32),
        grid=(B, nH),
        in_specs=[
            # body rows of the tile
            pl.BlockSpec((1, CIN, tH, Wp), lambda b, i: (b, 0, i, 0)),
            # 8-row block above the tile (clamped to block 0 at the top edge;
            # masked in-kernel)
            pl.BlockSpec((1, CIN, HALO, Wp),
                         lambda b, i: (b, 0, jnp.maximum(i * hb - 1, 0), 0)),
            # 8-row block below the tile (always in range thanks to the bottom pad)
            pl.BlockSpec((1, CIN, HALO, Wp),
                         lambda b, i: (b, 0, (i + 1) * hb, 0)),
            # fused weights / bias as SMEM scalars
            pl.BlockSpec(memory_space=pltpu.MemorySpace.SMEM),
            pl.BlockSpec(memory_space=pltpu.MemorySpace.SMEM),
        ],
        out_specs=pl.BlockSpec((1, COUT, tH, Wp), lambda b, i: (b, 0, i, 0)),
        compiler_params=pltpu.CompilerParams(
            dimension_semantics=("parallel", "parallel"),
            vmem_limit_bytes=32 * 1024 * 1024),
    )(xpad, xpad, xpad, w_flat, b_eff)

    return out[:, :, :H, :W]                   # NCHW, original spatial size


def _reference(x_nchw, w_gabor, b_gabor, w_reduce, b_reduce):
    """Pure-JAX reference (lax conv) mirroring the PyTorch forward."""
    dn = lax.conv_dimension_numbers(x_nchw.shape, w_gabor.shape, ("NCHW", "OIHW", "NCHW"))
    texture = lax.conv_general_dilated(x_nchw, w_gabor, (1, 1), ((PAD, PAD), (PAD, PAD)),
                                       dimension_numbers=dn) + b_gabor[None, :, None, None]
    cat = jnp.concatenate([x_nchw, texture], axis=1)
    dn2 = lax.conv_dimension_numbers(cat.shape, w_reduce.shape, ("NCHW", "OIHW", "NCHW"))
    out = lax.conv_general_dilated(cat, w_reduce, (1, 1), ((0, 0), (0, 0)),
                                   dimension_numbers=dn2) + b_reduce[None, :, None, None]
    return out


if __name__ == "__main__":
    key = jax.random.PRNGKey(0)
    kx_, kw1, kb1, kw2, kb2 = jax.random.split(key, 5)

    B, H, W = 2, 16, 16
    x = jax.random.normal(kx_, (B, CIN, H, W), jnp.float32)

    # deterministic parameter init (module __init__ shapes, PyTorch layouts)
    w_gabor = 0.05 * jax.random.normal(kw1, (CMID, CIN, KH, KW), jnp.float32)
    b_gabor = 0.05 * jax.random.normal(kb1, (CMID,), jnp.float32)
    w_reduce = 0.05 * jax.random.normal(kw2, (COUT, CIN + CMID, 1, 1), jnp.float32)
    b_reduce = 0.05 * jax.random.normal(kb2, (COUT,), jnp.float32)

    out = geo_statistical_layer(x, w_gabor, b_gabor, w_reduce, b_reduce)
    out = jax.block_until_ready(out)
    assert out.shape == (B, COUT, H, W)

    ref = _reference(x, w_gabor, b_gabor, w_reduce, b_reduce)
    err = float(jnp.max(jnp.abs(out - ref)))
    assert err < 5e-4, f"max abs err {err}"
    print("KERNEL_OK")
</pallas_src>

<mosaic_0001>
module attributes {stable_mosaic.version = 11 : i64} {
  func.func @_geo_fused_kernel(%arg0: i32, %arg1: i32, %arg2: memref<1x3x16x128xf32, #tpu.memory_space<vmem>>, %arg3: memref<1x3x8x128xf32, #tpu.memory_space<vmem>>, %arg4: memref<1x3x8x128xf32, #tpu.memory_space<vmem>>, %arg5: memref<225xf32, #tpu.memory_space<smem>>, %arg6: memref<3xf32, #tpu.memory_space<smem>>, %arg7: memref<1x3x16x128xf32, #tpu.memory_space<vmem>>) attributes {dimension_semantics = [#tpu.dimension_semantics<parallel>, #tpu.dimension_semantics<parallel>], iteration_bounds = array<i64: 2, 1>, scalar_prefetch = 0 : i64, scratch_operands = 0 : i64, tpu.core_type = #tpu.core_type<tc>, window_params = [{transform_indices = @transform_0, window_bounds = array<i64: 1, 3, 16, 128>}, {transform_indices = @transform_1, window_bounds = array<i64: 1, 3, 8, 128>}, {transform_indices = @transform_2, window_bounds = array<i64: 1, 3, 8, 128>}, {transform_indices = @transform_3, window_bounds = array<i64: 225>}, {transform_indices = @transform_4, window_bounds = array<i64: 3>}, {transform_indices = @transform_5, window_bounds = array<i64: 1, 3, 16, 128>}]} {
    %c0 = arith.constant 0 : index
    %0 = memref.load %arg5[%c0] : memref<225xf32, #tpu.memory_space<smem>>
    %c1 = arith.constant 1 : index
    %1 = memref.load %arg5[%c1] : memref<225xf32, #tpu.memory_space<smem>>
    %c2 = arith.constant 2 : index
    %2 = memref.load %arg5[%c2] : memref<225xf32, #tpu.memory_space<smem>>
    %c3 = arith.constant 3 : index
    %3 = memref.load %arg5[%c3] : memref<225xf32, #tpu.memory_space<smem>>
    %c4 = arith.constant 4 : index
    %4 = memref.load %arg5[%c4] : memref<225xf32, #tpu.memory_space<smem>>
    %c5 = arith.constant 5 : index
    %5 = memref.load %arg5[%c5] : memref<225xf32, #tpu.memory_space<smem>>
    %c6 = arith.constant 6 : index
    %6 = memref.load %arg5[%c6] : memref<225xf32, #tpu.memory_space<smem>>
    %c7 = arith.constant 7 : index
    %7 = memref.load %arg5[%c7] : memref<225xf32, #tpu.memory_space<smem>>
    %c8 = arith.constant 8 : index
    %8 = memref.load %arg5[%c8] : memref<225xf32, #tpu.memory_space<smem>>
    %c9 = arith.constant 9 : index
    %9 = memref.load %arg5[%c9] : memref<225xf32, #tpu.memory_space<smem>>
    %c10 = arith.constant 10 : index
    %10 = memref.load %arg5[%c10] : memref<225xf32, #tpu.memory_space<smem>>
    %c11 = arith.constant 11 : index
    %11 = memref.load %arg5[%c11] : memref<225xf32, #tpu.memory_space<smem>>
    %c12 = arith.constant 12 : index
    %12 = memref.load %arg5[%c12] : memref<225xf32, #tpu.memory_space<smem>>
    %c13 = arith.constant 13 : index
    %13 = memref.load %arg5[%c13] : memref<225xf32, #tpu.memory_space<smem>>
    %c14 = arith.constant 14 : index
    %14 = memref.load %arg5[%c14] : memref<225xf32, #tpu.memory_space<smem>>
    %c15 = arith.constant 15 : index
    %15 = memref.load %arg5[%c15] : memref<225xf32, #tpu.memory_space<smem>>
    %c16 = arith.constant 16 : index
    %16 = memref.load %arg5[%c16] : memref<225xf32, #tpu.memory_space<smem>>
    %c17 = arith.constant 17 : index
    %17 = memref.load %arg5[%c17] : memref<225xf32, #tpu.memory_space<smem>>
    %c18 = arith.constant 18 : index
    %18 = memref.load %arg5[%c18] : memref<225xf32, #tpu.memory_space<smem>>
    %c19 = arith.constant 19 : index
    %19 = memref.load %arg5[%c19] : memref<225xf32, #tpu.memory_space<smem>>
    %c20 = arith.constant 20 : index
    %20 = memref.load %arg5[%c20] : memref<225xf32, #tpu.memory_space<smem>>
    %c21 = arith.constant 21 : index
    %21 = memref.load %arg5[%c21] : memref<225xf32, #tpu.memory_space<smem>>
    %c22 = arith.constant 22 : index
    %22 = memref.load %arg5[%c22] : memref<225xf32, #tpu.memory_space<smem>>
    %c23 = arith.constant 23 : index
    %23 = memref.load %arg5[%c23] : memref<225xf32, #tpu.memory_space<smem>>
    %c24 = arith.constant 24 : index
    %24 = memref.load %arg5[%c24] : memref<225xf32, #tpu.memory_space<smem>>
    %c25 = arith.constant 25 : index
    %25 = memref.load %arg5[%c25] : memref<225xf32, #tpu.memory_space<smem>>
    %c26 = arith.constant 26 : index
    %26 = memref.load %arg5[%c26] : memref<225xf32, #tpu.memory_space<smem>>
    %c27 = arith.constant 27 : index
    %27 = memref.load %arg5[%c27] : memref<225xf32, #tpu.memory_space<smem>>
    %c28 = arith.constant 28 : index
    %28 = memref.load %arg5[%c28] : memref<225xf32, #tpu.memory_space<smem>>
    %c29 = arith.constant 29 : index
    %29 = memref.load %arg5[%c29] : memref<225xf32, #tpu.memory_space<smem>>
    %c30 = arith.constant 30 : index
    %30 = memref.load %arg5[%c30] : memref<225xf32, #tpu.memory_space<smem>>
    %c31 = arith.constant 31 : index
    %31 = memref.load %arg5[%c31] : memref<225xf32, #tpu.memory_space<smem>>
    %c32 = arith.constant 32 : index
    %32 = memref.load %arg5[%c32] : memref<225xf32, #tpu.memory_space<smem>>
    %c33 = arith.constant 33 : index
    %33 = memref.load %arg5[%c33] : memref<225xf32, #tpu.memory_space<smem>>
    %c34 = arith.constant 34 : index
    %34 = memref.load %arg5[%c34] : memref<225xf32, #tpu.memory_space<smem>>
    %c35 = arith.constant 35 : index
    %35 = memref.load %arg5[%c35] : memref<225xf32, #tpu.memory_space<smem>>
    %c36 = arith.constant 36 : index
    %36 = memref.load %arg5[%c36] : memref<225xf32, #tpu.memory_space<smem>>
    %c37 = arith.constant 37 : index
    %37 = memref.load %arg5[%c37] : memref<225xf32, #tpu.memory_space<smem>>
    %c38 = arith.constant 38 : index
    %38 = memref.load %arg5[%c38] : memref<225xf32, #tpu.memory_space<smem>>
    %c39 = arith.constant 39 : index
    %39 = memref.load %arg5[%c39] : memref<225xf32, #tpu.memory_space<smem>>
    %c40 = arith.constant 40 : index
    %40 = memref.load %arg5[%c40] : memref<225xf32, #tpu.memory_space<smem>>
    %c41 = arith.constant 41 : index
    %41 = memref.load %arg5[%c41] : memref<225xf32, #tpu.memory_space<smem>>
    %c42 = arith.constant 42 : index
    %42 = memref.load %arg5[%c42] : memref<225xf32, #tpu.memory_space<smem>>
    %c43 = arith.constant 43 : index
    %43 = memref.load %arg5[%c43] : memref<225xf32, #tpu.memory_space<smem>>
    %c44 = arith.constant 44 : index
    %44 = memref.load %arg5[%c44] : memref<225xf32, #tpu.memory_space<smem>>
    %c45 = arith.constant 45 : index
    %45 = memref.load %arg5[%c45] : memref<225xf32, #tpu.memory_space<smem>>
    %c46 = arith.constant 46 : index
    %46 = memref.load %arg5[%c46] : memref<225xf32, #tpu.memory_space<smem>>
    %c47 = arith.constant 47 : index
    %47 = memref.load %arg5[%c47] : memref<225xf32, #tpu.memory_space<smem>>
    %c48 = arith.constant 48 : index
    %48 = memref.load %arg5[%c48] : memref<225xf32, #tpu.memory_space<smem>>
    %c49 = arith.constant 49 : index
    %49 = memref.load %arg5[%c49] : memref<225xf32, #tpu.memory_space<smem>>
    %c50 = arith.constant 50 : index
    %50 = memref.load %arg5[%c50] : memref<225xf32, #tpu.memory_space<smem>>
    %c51 = arith.constant 51 : index
    %51 = memref.load %arg5[%c51] : memref<225xf32, #tpu.memory_space<smem>>
    %c52 = arith.constant 52 : index
    %52 = memref.load %arg5[%c52] : memref<225xf32, #tpu.memory_space<smem>>
    %c53 = arith.constant 53 : index
    %53 = memref.load %arg5[%c53] : memref<225xf32, #tpu.memory_space<smem>>
    %c54 = arith.constant 54 : index
    %54 = memref.load %arg5[%c54] : memref<225xf32, #tpu.memory_space<smem>>
    %c55 = arith.constant 55 : index
    %55 = memref.load %arg5[%c55] : memref<225xf32, #tpu.memory_space<smem>>
    %c56 = arith.constant 56 : index
    %56 = memref.load %arg5[%c56] : memref<225xf32, #tpu.memory_space<smem>>
    %c57 = arith.constant 57 : index
    %57 = memref.load %arg5[%c57] : memref<225xf32, #tpu.memory_space<smem>>
    %c58 = arith.constant 58 : index
    %58 = memref.load %arg5[%c58] : memref<225xf32, #tpu.memory_space<smem>>
    %c59 = arith.constant 59 : index
    %59 = memref.load %arg5[%c59] : memref<225xf32, #tpu.memory_space<smem>>
    %c60 = arith.constant 60 : index
    %60 = memref.load %arg5[%c60] : memref<225xf32, #tpu.memory_space<smem>>
    %c61 = arith.constant 61 : index
    %61 = memref.load %arg5[%c61] : memref<225xf32, #tpu.memory_space<smem>>
    %c62 = arith.constant 62 : index
    %62 = memref.load %arg5[%c62] : memref<225xf32, #tpu.memory_space<smem>>
    %c63 = arith.constant 63 : index
    %63 = memref.load %arg5[%c63] : memref<225xf32, #tpu.memory_space<smem>>
    %c64 = arith.constant 64 : index
    %64 = memref.load %arg5[%c64] : memref<225xf32, #tpu.memory_space<smem>>
    %c65 = arith.constant 65 : index
    %65 = memref.load %arg5[%c65] : memref<225xf32, #tpu.memory_space<smem>>
    %c66 = arith.constant 66 : index
    %66 = memref.load %arg5[%c66] : memref<225xf32, #tpu.memory_space<smem>>
    %c67 = arith.constant 67 : index
    %67 = memref.load %arg5[%c67] : memref<225xf32, #tpu.memory_space<smem>>
    %c68 = arith.constant 68 : index
    %68 = memref.load %arg5[%c68] : memref<225xf32, #tpu.memory_space<smem>>
    %c69 = arith.constant 69 : index
    %69 = memref.load %arg5[%c69] : memref<225xf32, #tpu.memory_space<smem>>
    %c70 = arith.constant 70 : index
    %70 = memref.load %arg5[%c70] : memref<225xf32, #tpu.memory_space<smem>>
    %c71 = arith.constant 71 : index
    %71 = memref.load %arg5[%c71] : memref<225xf32, #tpu.memory_space<smem>>
    %c72 = arith.constant 72 : index
    %72 = memref.load %arg5[%c72] : memref<225xf32, #tpu.memory_space<smem>>
    %c73 = arith.constant 73 : index
    %73 = memref.load %arg5[%c73] : memref<225xf32, #tpu.memory_space<smem>>
    %c74 = arith.constant 74 : index
    %74 = memref.load %arg5[%c74] : memref<225xf32, #tpu.memory_space<smem>>
    %c75 = arith.constant 75 : index
    %75 = memref.load %arg5[%c75] : memref<225xf32, #tpu.memory_space<smem>>
    %c76 = arith.constant 76 : index
    %76 = memref.load %arg5[%c76] : memref<225xf32, #tpu.memory_space<smem>>
    %c77 = arith.constant 77 : index
    %77 = memref.load %arg5[%c77] : memref<225xf32, #tpu.memory_space<smem>>
    %c78 = arith.constant 78 : index
    %78 = memref.load %arg5[%c78] : memref<225xf32, #tpu.memory_space<smem>>
    %c79 = arith.constant 79 : index
    %79 = memref.load %arg5[%c79] : memref<225xf32, #tpu.memory_space<smem>>
    %c80 = arith.constant 80 : index
    %80 = memref.load %arg5[%c80] : memref<225xf32, #tpu.memory_space<smem>>
    %c81 = arith.constant 81 : index
    %81 = memref.load %arg5[%c81] : memref<225xf32, #tpu.memory_space<smem>>
    %c82 = arith.constant 82 : index
    %82 = memref.load %arg5[%c82] : memref<225xf32, #tpu.memory_space<smem>>
    %c83 = arith.constant 83 : index
    %83 = memref.load %arg5[%c83] : memref<225xf32, #tpu.memory_space<smem>>
    %c84 = arith.constant 84 : index
    %84 = memref.load %arg5[%c84] : memref<225xf32, #tpu.memory_space<smem>>
    %c85 = arith.constant 85 : index
    %85 = memref.load %arg5[%c85] : memref<225xf32, #tpu.memory_space<smem>>
    %c86 = arith.constant 86 : index
    %86 = memref.load %arg5[%c86] : memref<225xf32, #tpu.memory_space<smem>>
    %c87 = arith.constant 87 : index
    %87 = memref.load %arg5[%c87] : memref<225xf32, #tpu.memory_space<smem>>
    %c88 = arith.constant 88 : index
    %88 = memref.load %arg5[%c88] : memref<225xf32, #tpu.memory_space<smem>>
    %c89 = arith.constant 89 : index
    %89 = memref.load %arg5[%c89] : memref<225xf32, #tpu.memory_space<smem>>
    %c90 = arith.constant 90 : index
    %90 = memref.load %arg5[%c90] : memref<225xf32, #tpu.memory_space<smem>>
    %c91 = arith.constant 91 : index
    %91 = memref.load %arg5[%c91] : memref<225xf32, #tpu.memory_space<smem>>
    %c92 = arith.constant 92 : index
    %92 = memref.load %arg5[%c92] : memref<225xf32, #tpu.memory_space<smem>>
    %c93 = arith.constant 93 : index
    %93 = memref.load %arg5[%c93] : memref<225xf32, #tpu.memory_space<smem>>
    %c94 = arith.constant 94 : index
    %94 = memref.load %arg5[%c94] : memref<225xf32, #tpu.memory_space<smem>>
    %c95 = arith.constant 95 : index
    %95 = memref.load %arg5[%c95] : memref<225xf32, #tpu.memory_space<smem>>
    %c96 = arith.constant 96 : index
    %96 = memref.load %arg5[%c96] : memref<225xf32, #tpu.memory_space<smem>>
    %c97 = arith.constant 97 : index
    %97 = memref.load %arg5[%c97] : memref<225xf32, #tpu.memory_space<smem>>
    %c98 = arith.constant 98 : index
    %98 = memref.load %arg5[%c98] : memref<225xf32, #tpu.memory_space<smem>>
    %c99 = arith.constant 99 : index
    %99 = memref.load %arg5[%c99] : memref<225xf32, #tpu.memory_space<smem>>
    %c100 = arith.constant 100 : index
    %100 = memref.load %arg5[%c100] : memref<225xf32, #tpu.memory_space<smem>>
    %c101 = arith.constant 101 : index
    %101 = memref.load %arg5[%c101] : memref<225xf32, #tpu.memory_space<smem>>
    %c102 = arith.constant 102 : index
    %102 = memref.load %arg5[%c102] : memref<225xf32, #tpu.memory_space<smem>>
    %c103 = arith.constant 103 : index
    %103 = memref.load %arg5[%c103] : memref<225xf32, #tpu.memory_space<smem>>
    %c104 = arith.constant 104 : index
    %104 = memref.load %arg5[%c104] : memref<225xf32, #tpu.memory_space<smem>>
    %c105 = arith.constant 105 : index
    %105 = memref.load %arg5[%c105] : memref<225xf32, #tpu.memory_space<smem>>
    %c106 = arith.constant 106 : index
    %106 = memref.load %arg5[%c106] : memref<225xf32, #tpu.memory_space<smem>>
    %c107 = arith.constant 107 : index
    %107 = memref.load %arg5[%c107] : memref<225xf32, #tpu.memory_space<smem>>
    %c108 = arith.constant 108 : index
    %108 = memref.load %arg5[%c108] : memref<225xf32, #tpu.memory_space<smem>>
    %c109 = arith.constant 109 : index
    %109 = memref.load %arg5[%c109] : memref<225xf32, #tpu.memory_space<smem>>
    %c110 = arith.constant 110 : index
    %110 = memref.load %arg5[%c110] : memref<225xf32, #tpu.memory_space<smem>>
    %c111 = arith.constant 111 : index
    %111 = memref.load %arg5[%c111] : memref<225xf32, #tpu.memory_space<smem>>
    %c112 = arith.constant 112 : index
    %112 = memref.load %arg5[%c112] : memref<225xf32, #tpu.memory_space<smem>>
    %c113 = arith.constant 113 : index
    %113 = memref.load %arg5[%c113] : memref<225xf32, #tpu.memory_space<smem>>
    %c114 = arith.constant 114 : index
    %114 = memref.load %arg5[%c114] : memref<225xf32, #tpu.memory_space<smem>>
    %c115 = arith.constant 115 : index
    %115 = memref.load %arg5[%c115] : memref<225xf32, #tpu.memory_space<smem>>
    %c116 = arith.constant 116 : index
    %116 = memref.load %arg5[%c116] : memref<225xf32, #tpu.memory_space<smem>>
    %c117 = arith.constant 117 : index
    %117 = memref.load %arg5[%c117] : memref<225xf32, #tpu.memory_space<smem>>
    %c118 = arith.constant 118 : index
    %118 = memref.load %arg5[%c118] : memref<225xf32, #tpu.memory_space<smem>>
    %c119 = arith.constant 119 : index
    %119 = memref.load %arg5[%c119] : memref<225xf32, #tpu.memory_space<smem>>
    %c120 = arith.constant 120 : index
    %120 = memref.load %arg5[%c120] : memref<225xf32, #tpu.memory_space<smem>>
    %c121 = arith.constant 121 : index
    %121 = memref.load %arg5[%c121] : memref<225xf32, #tpu.memory_space<smem>>
    %c122 = arith.constant 122 : index
    %122 = memref.load %arg5[%c122] : memref<225xf32, #tpu.memory_space<smem>>
    %c123 = arith.constant 123 : index
    %123 = memref.load %arg5[%c123] : memref<225xf32, #tpu.memory_space<smem>>
    %c124 = arith.constant 124 : index
    %124 = memref.load %arg5[%c124] : memref<225xf32, #tpu.memory_space<smem>>
    %c125 = arith.constant 125 : index
    %125 = memref.load %arg5[%c125] : memref<225xf32, #tpu.memory_space<smem>>
    %c126 = arith.constant 126 : index
    %126 = memref.load %arg5[%c126] : memref<225xf32, #tpu.memory_space<smem>>
    %c127 = arith.constant 127 : index
    %127 = memref.load %arg5[%c127] : memref<225xf32, #tpu.memory_space<smem>>
    %c128 = arith.constant 128 : index
    %128 = memref.load %arg5[%c128] : memref<225xf32, #tpu.memory_space<smem>>
    %c129 = arith.constant 129 : index
    %129 = memref.load %arg5[%c129] : memref<225xf32, #tpu.memory_space<smem>>
    %c130 = arith.constant 130 : index
    %130 = memref.load %arg5[%c130] : memref<225xf32, #tpu.memory_space<smem>>
    %c131 = arith.constant 131 : index
    %131 = memref.load %arg5[%c131] : memref<225xf32, #tpu.memory_space<smem>>
    %c132 = arith.constant 132 : index
    %132 = memref.load %arg5[%c132] : memref<225xf32, #tpu.memory_space<smem>>
    %c133 = arith.constant 133 : index
    %133 = memref.load %arg5[%c133] : memref<225xf32, #tpu.memory_space<smem>>
    %c134 = arith.constant 134 : index
    %134 = memref.load %arg5[%c134] : memref<225xf32, #tpu.memory_space<smem>>
    %c135 = arith.constant 135 : index
    %135 = memref.load %arg5[%c135] : memref<225xf32, #tpu.memory_space<smem>>
    %c136 = arith.constant 136 : index
    %136 = memref.load %arg5[%c136] : memref<225xf32, #tpu.memory_space<smem>>
    %c137 = arith.constant 137 : index
    %137 = memref.load %arg5[%c137] : memref<225xf32, #tpu.memory_space<smem>>
    %c138 = arith.constant 138 : index
    %138 = memref.load %arg5[%c138] : memref<225xf32, #tpu.memory_space<smem>>
    %c139 = arith.constant 139 : index
    %139 = memref.load %arg5[%c139] : memref<225xf32, #tpu.memory_space<smem>>
    %c140 = arith.constant 140 : index
    %140 = memref.load %arg5[%c140] : memref<225xf32, #tpu.memory_space<smem>>
    %c141 = arith.constant 141 : index
    %141 = memref.load %arg5[%c141] : memref<225xf32, #tpu.memory_space<smem>>
    %c142 = arith.constant 142 : index
    %142 = memref.load %arg5[%c142] : memref<225xf32, #tpu.memory_space<smem>>
    %c143 = arith.constant 143 : index
    %143 = memref.load %arg5[%c143] : memref<225xf32, #tpu.memory_space<smem>>
    %c144 = arith.constant 144 : index
    %144 = memref.load %arg5[%c144] : memref<225xf32, #tpu.memory_space<smem>>
    %c145 = arith.constant 145 : index
    %145 = memref.load %arg5[%c145] : memref<225xf32, #tpu.memory_space<smem>>
    %c146 = arith.constant 146 : index
    %146 = memref.load %arg5[%c146] : memref<225xf32, #tpu.memory_space<smem>>
    %c147 = arith.constant 147 : index
    %147 = memref.load %arg5[%c147] : memref<225xf32, #tpu.memory_space<smem>>
    %c148 = arith.constant 148 : index
    %148 = memref.load %arg5[%c148] : memref<225xf32, #tpu.memory_space<smem>>
    %c149 = arith.constant 149 : index
    %149 = memref.load %arg5[%c149] : memref<225xf32, #tpu.memory_space<smem>>
    %c150 = arith.constant 150 : index
    %150 = memref.load %arg5[%c150] : memref<225xf32, #tpu.memory_space<smem>>
    %c151 = arith.constant 151 : index
    %151 = memref.load %arg5[%c151] : memref<225xf32, #tpu.memory_space<smem>>
    %c152 = arith.constant 152 : index
    %152 = memref.load %arg5[%c152] : memref<225xf32, #tpu.memory_space<smem>>
    %c153 = arith.constant 153 : index
    %153 = memref.load %arg5[%c153] : memref<225xf32, #tpu.memory_space<smem>>
    %c154 = arith.constant 154 : index
    %154 = memref.load %arg5[%c154] : memref<225xf32, #tpu.memory_space<smem>>
    %c155 = arith.constant 155 : index
    %155 = memref.load %arg5[%c155] : memref<225xf32, #tpu.memory_space<smem>>
    %c156 = arith.constant 156 : index
    %156 = memref.load %arg5[%c156] : memref<225xf32, #tpu.memory_space<smem>>
    %c157 = arith.constant 157 : index
    %157 = memref.load %arg5[%c157] : memref<225xf32, #tpu.memory_space<smem>>
    %c158 = arith.constant 158 : index
    %158 = memref.load %arg5[%c158] : memref<225xf32, #tpu.memory_space<smem>>
    %c159 = arith.constant 159 : index
    %159 = memref.load %arg5[%c159] : memref<225xf32, #tpu.memory_space<smem>>
    %c160 = arith.constant 160 : index
    %160 = memref.load %arg5[%c160] : memref<225xf32, #tpu.memory_space<smem>>
    %c161 = arith.constant 161 : index
    %161 = memref.load %arg5[%c161] : memref<225xf32, #tpu.memory_space<smem>>
    %c162 = arith.constant 162 : index
    %162 = memref.load %arg5[%c162] : memref<225xf32, #tpu.memory_space<smem>>
    %c163 = arith.constant 163 : index
    %163 = memref.load %arg5[%c163] : memref<225xf32, #tpu.memory_space<smem>>
    %c164 = arith.constant 164 : index
    %164 = memref.load %arg5[%c164] : memref<225xf32, #tpu.memory_space<smem>>
    %c165 = arith.constant 165 : index
    %165 = memref.load %arg5[%c165] : memref<225xf32, #tpu.memory_space<smem>>
    %c166 = arith.constant 166 : index
    %166 = memref.load %arg5[%c166] : memref<225xf32, #tpu.memory_space<smem>>
    %c167 = arith.constant 167 : index
    %167 = memref.load %arg5[%c167] : memref<225xf32, #tpu.memory_space<smem>>
    %c168 = arith.constant 168 : index
    %168 = memref.load %arg5[%c168] : memref<225xf32, #tpu.memory_space<smem>>
    %c169 = arith.constant 169 : index
    %169 = memref.load %arg5[%c169] : memref<225xf32, #tpu.memory_space<smem>>
    %c170 = arith.constant 170 : index
    %170 = memref.load %arg5[%c170] : memref<225xf32, #tpu.memory_space<smem>>
    %c171 = arith.constant 171 : index
    %171 = memref.load %arg5[%c171] : memref<225xf32, #tpu.memory_space<smem>>
    %c172 = arith.constant 172 : index
    %172 = memref.load %arg5[%c172] : memref<225xf32, #tpu.memory_space<smem>>
    %c173 = arith.constant 173 : index
    %173 = memref.load %arg5[%c173] : memref<225xf32, #tpu.memory_space<smem>>
    %c174 = arith.constant 174 : index
    %174 = memref.load %arg5[%c174] : memref<225xf32, #tpu.memory_space<smem>>
    %c175 = arith.constant 175 : index
    %175 = memref.load %arg5[%c175] : memref<225xf32, #tpu.memory_space<smem>>
    %c176 = arith.constant 176 : index
    %176 = memref.load %arg5[%c176] : memref<225xf32, #tpu.memory_space<smem>>
    %c177 = arith.constant 177 : index
    %177 = memref.load %arg5[%c177] : memref<225xf32, #tpu.memory_space<smem>>
    %c178 = arith.constant 178 : index
    %178 = memref.load %arg5[%c178] : memref<225xf32, #tpu.memory_space<smem>>
    %c179 = arith.constant 179 : index
    %179 = memref.load %arg5[%c179] : memref<225xf32, #tpu.memory_space<smem>>
    %c180 = arith.constant 180 : index
    %180 = memref.load %arg5[%c180] : memref<225xf32, #tpu.memory_space<smem>>
    %c181 = arith.constant 181 : index
    %181 = memref.load %arg5[%c181] : memref<225xf32, #tpu.memory_space<smem>>
    %c182 = arith.constant 182 : index
    %182 = memref.load %arg5[%c182] : memref<225xf32, #tpu.memory_space<smem>>
    %c183 = arith.constant 183 : index
    %183 = memref.load %arg5[%c183] : memref<225xf32, #tpu.memory_space<smem>>
    %c184 = arith.constant 184 : index
    %184 = memref.load %arg5[%c184] : memref<225xf32, #tpu.memory_space<smem>>
    %c185 = arith.constant 185 : index
    %185 = memref.load %arg5[%c185] : memref<225xf32, #tpu.memory_space<smem>>
    %c186 = arith.constant 186 : index
    %186 = memref.load %arg5[%c186] : memref<225xf32, #tpu.memory_space<smem>>
    %c187 = arith.constant 187 : index
    %187 = memref.load %arg5[%c187] : memref<225xf32, #tpu.memory_space<smem>>
    %c188 = arith.constant 188 : index
    %188 = memref.load %arg5[%c188] : memref<225xf32, #tpu.memory_space<smem>>
    %c189 = arith.constant 189 : index
    %189 = memref.load %arg5[%c189] : memref<225xf32, #tpu.memory_space<smem>>
    %c190 = arith.constant 190 : index
    %190 = memref.load %arg5[%c190] : memref<225xf32, #tpu.memory_space<smem>>
    %c191 = arith.constant 191 : index
    %191 = memref.load %arg5[%c191] : memref<225xf32, #tpu.memory_space<smem>>
    %c192 = arith.constant 192 : index
    %192 = memref.load %arg5[%c192] : memref<225xf32, #tpu.memory_space<smem>>
    %c193 = arith.constant 193 : index
    %193 = memref.load %arg5[%c193] : memref<225xf32, #tpu.memory_space<smem>>
    %c194 = arith.constant 194 : index
    %194 = memref.load %arg5[%c194] : memref<225xf32, #tpu.memory_space<smem>>
    %c195 = arith.constant 195 : index
    %195 = memref.load %arg5[%c195] : memref<225xf32, #tpu.memory_space<smem>>
    %c196 = arith.constant 196 : index
    %196 = memref.load %arg5[%c196] : memref<225xf32, #tpu.memory_space<smem>>
    %c197 = arith.constant 197 : index
    %197 = memref.load %arg5[%c197] : memref<225xf32, #tpu.memory_space<smem>>
    %c198 = arith.constant 198 : index
    %198 = memref.load %arg5[%c198] : memref<225xf32, #tpu.memory_space<smem>>
    %c199 = arith.constant 199 : index
    %199 = memref.load %arg5[%c199] : memref<225xf32, #tpu.memory_space<smem>>
    %c200 = arith.constant 200 : index
    %200 = memref.load %arg5[%c200] : memref<225xf32, #tpu.memory_space<smem>>
    %c201 = arith.constant 201 : index
    %201 = memref.load %arg5[%c201] : memref<225xf32, #tpu.memory_space<smem>>
    %c202 = arith.constant 202 : index
    %202 = memref.load %arg5[%c202] : memref<225xf32, #tpu.memory_space<smem>>
    %c203 = arith.constant 203 : index
    %203 = memref.load %arg5[%c203] : memref<225xf32, #tpu.memory_space<smem>>
    %c204 = arith.constant 204 : index
    %204 = memref.load %arg5[%c204] : memref<225xf32, #tpu.memory_space<smem>>
    %c205 = arith.constant 205 : index
    %205 = memref.load %arg5[%c205] : memref<225xf32, #tpu.memory_space<smem>>
    %c206 = arith.constant 206 : index
    %206 = memref.load %arg5[%c206] : memref<225xf32, #tpu.memory_space<smem>>
    %c207 = arith.constant 207 : index
    %207 = memref.load %arg5[%c207] : memref<225xf32, #tpu.memory_space<smem>>
    %c208 = arith.constant 208 : index
    %208 = memref.load %arg5[%c208] : memref<225xf32, #tpu.memory_space<smem>>
    %c209 = arith.constant 209 : index
    %209 = memref.load %arg5[%c209] : memref<225xf32, #tpu.memory_space<smem>>
    %c210 = arith.constant 210 : index
    %210 = memref.load %arg5[%c210] : memref<225xf32, #tpu.memory_space<smem>>
    %c211 = arith.constant 211 : index
    %211 = memref.load %arg5[%c211] : memref<225xf32, #tpu.memory_space<smem>>
    %c212 = arith.constant 212 : index
    %212 = memref.load %arg5[%c212] : memref<225xf32, #tpu.memory_space<smem>>
    %c213 = arith.constant 213 : index
    %213 = memref.load %arg5[%c213] : memref<225xf32, #tpu.memory_space<smem>>
    %c214 = arith.constant 214 : index
    %214 = memref.load %arg5[%c214] : memref<225xf32, #tpu.memory_space<smem>>
    %c215 = arith.constant 215 : index
    %215 = memref.load %arg5[%c215] : memref<225xf32, #tpu.memory_space<smem>>
    %c216 = arith.constant 216 : index
    %216 = memref.load %arg5[%c216] : memref<225xf32, #tpu.memory_space<smem>>
    %c217 = arith.constant 217 : index
    %217 = memref.load %arg5[%c217] : memref<225xf32, #tpu.memory_space<smem>>
    %c218 = arith.constant 218 : index
    %218 = memref.load %arg5[%c218] : memref<225xf32, #tpu.memory_space<smem>>
    %c219 = arith.constant 219 : index
    %219 = memref.load %arg5[%c219] : memref<225xf32, #tpu.memory_space<smem>>
    %c220 = arith.constant 220 : index
    %220 = memref.load %arg5[%c220] : memref<225xf32, #tpu.memory_space<smem>>
    %c221 = arith.constant 221 : index
    %221 = memref.load %arg5[%c221] : memref<225xf32, #tpu.memory_space<smem>>
    %c222 = arith.constant 222 : index
    %222 = memref.load %arg5[%c222] : memref<225xf32, #tpu.memory_space<smem>>
    %c223 = arith.constant 223 : index
    %223 = memref.load %arg5[%c223] : memref<225xf32, #tpu.memory_space<smem>>
    %c224 = arith.constant 224 : index
    %224 = memref.load %arg5[%c224] : memref<225xf32, #tpu.memory_space<smem>>
    %c0_0 = arith.constant 0 : index
    %225 = memref.load %arg6[%c0_0] : memref<3xf32, #tpu.memory_space<smem>>
    %c1_1 = arith.constant 1 : index
    %226 = memref.load %arg6[%c1_1] : memref<3xf32, #tpu.memory_space<smem>>
    %c2_2 = arith.constant 2 : index
    %227 = memref.load %arg6[%c2_2] : memref<3xf32, #tpu.memory_space<smem>>
    %c0_i32 = arith.constant 0 : i32
    %228 = arith.cmpi sgt, %arg1, %c0_i32 : i32
    %c0_3 = arith.constant 0 : index
    %c0_4 = arith.constant 0 : index
    %c6_5 = arith.constant 6 : index
    %c0_6 = arith.constant 0 : index
    %229 = vector.load %arg3[%c0_3, %c0_4, %c6_5, %c0_6] : memref<1x3x8x128xf32, #tpu.memory_space<vmem>>, vector<1x3x2x128xf32>
    %230 = vector.shape_cast %229 : vector<1x3x2x128xf32> to vector<3x2x128xf32>
    %cst = arith.constant 0.000000e+00 : f32
    %231 = vector.broadcast %cst : f32 to vector<3x2x128xf32>
    %232 = arith.select %228, %230, %231 : vector<3x2x128xf32>
    %c0_7 = arith.constant 0 : index
    %c0_8 = arith.constant 0 : index
    %c0_9 = arith.constant 0 : index
    %c0_10 = arith.constant 0 : index
    %233 = vector.load %arg4[%c0_7, %c0_8, %c0_9, %c0_10] : memref<1x3x8x128xf32, #tpu.memory_space<vmem>>, vector<1x3x2x128xf32>
    %234 = vector.shape_cast %233 : vector<1x3x2x128xf32> to vector<3x2x128xf32>
    %235 = vector.extract_strided_slice %232 {offsets = [0, 0, 0], sizes = [1, 2, 128], strides = [1, 1, 1]} : vector<3x2x128xf32> to vector<1x2x128xf32>
    %236 = vector.shape_cast %235 : vector<1x2x128xf32> to vector<2x128xf32>
    %c0_11 = arith.constant 0 : index
    %c0_12 = arith.constant 0 : index
    %c0_13 = arith.constant 0 : index
    %c0_14 = arith.constant 0 : index
    %237 = vector.load %arg2[%c0_11, %c0_12, %c0_13, %c0_14] : memref<1x3x16x128xf32, #tpu.memory_space<vmem>>, vector<1x1x10x128xf32>
    %238 = vector.shape_cast %237 : vector<1x1x10x128xf32> to vector<10x128xf32>
    %239 = tpu.concatenate %236, %238 in 0 : vector<2x128xf32>, vector<10x128xf32> -> vector<12x128xf32>
    %c2_i32 = arith.constant 2 : i32
    %240 = tpu.dynamic_rotate %239 by %c2_i32 dim 1 : vector<12x128xf32>, i32 -> vector<12x128xf32>
    %241 = vector.extract_strided_slice %240 {offsets = [0, 0], sizes = [8, 128], strides = [1, 1]} : vector<12x128xf32> to vector<8x128xf32>
    %242 = vector.broadcast %0 : f32 to vector<8x128xf32>
    %243 = arith.mulf %242, %241 : vector<8x128xf32>
    %244 = vector.broadcast %75 : f32 to vector<8x128xf32>
    %245 = arith.mulf %244, %241 : vector<8x128xf32>
    %246 = vector.broadcast %150 : f32 to vector<8x128xf32>
    %247 = arith.mulf %246, %241 : vector<8x128xf32>
    %248 = vector.extract_strided_slice %240 {offsets = [1, 0], sizes = [8, 128], strides = [1, 1]} : vector<12x128xf32> to vector<8x128xf32>
    %249 = vector.broadcast %5 : f32 to vector<8x128xf32>
    %250 = arith.mulf %249, %248 : vector<8x128xf32>
    %251 = arith.addf %243, %250 : vector<8x128xf32>
    %252 = vector.broadcast %80 : f32 to vector<8x128xf32>
    %253 = arith.mulf %252, %248 : vector<8x128xf32>
    %254 = arith.addf %245, %253 : vector<8x128xf32>
    %255 = vector.broadcast %155 : f32 to vector<8x128xf32>
    %256 = arith.mulf %255, %248 : vector<8x128xf32>
    %257 = arith.addf %247, %256 : vector<8x128xf32>
    %258 = vector.extract_strided_slice %240 {offsets = [2, 0], sizes = [8, 128], strides = [1, 1]} : vector<12x128xf32> to vector<8x128xf32>
    %259 = vector.broadcast %10 : f32 to vector<8x128xf32>
    %260 = arith.mulf %259, %258 : vector<8x128xf32>
    %261 = arith.addf %251, %260 : vector<8x128xf32>
    %262 = vector.broadcast %85 : f32 to vector<8x128xf32>
    %263 = arith.mulf %262, %258 : vector<8x128xf32>
    %264 = arith.addf %254, %263 : vector<8x128xf32>
    %265 = vector.broadcast %160 : f32 to vector<8x128xf32>
    %266 = arith.mulf %265, %258 : vector<8x128xf32>
    %267 = arith.addf %257, %266 : vector<8x128xf32>
    %268 = vector.extract_strided_slice %240 {offsets = [3, 0], sizes = [8, 128], strides = [1, 1]} : vector<12x128xf32> to vector<8x128xf32>
    %269 = vector.broadcast %15 : f32 to vector<8x128xf32>
    %270 = arith.mulf %269, %268 : vector<8x128xf32>
    %271 = arith.addf %261, %270 : vector<8x128xf32>
    %272 = vector.broadcast %90 : f32 to vector<8x128xf32>
    %273 = arith.mulf %272, %268 : vector<8x128xf32>
    %274 = arith.addf %264, %273 : vector<8x128xf32>
    %275 = vector.broadcast %165 : f32 to vector<8x128xf32>
    %276 = arith.mulf %275, %268 : vector<8x128xf32>
    %277 = arith.addf %267, %276 : vector<8x128xf32>
    %278 = vector.extract_strided_slice %240 {offsets = [4, 0], sizes = [8, 128], strides = [1, 1]} : vector<12x128xf32> to vector<8x128xf32>
    %279 = vector.broadcast %20 : f32 to vector<8x128xf32>
    %280 = arith.mulf %279, %278 : vector<8x128xf32>
    %281 = arith.addf %271, %280 : vector<8x128xf32>
    %282 = vector.broadcast %95 : f32 to vector<8x128xf32>
    %283 = arith.mulf %282, %278 : vector<8x128xf32>
    %284 = arith.addf %274, %283 : vector<8x128xf32>
    %285 = vector.broadcast %170 : f32 to vector<8x128xf32>
    %286 = arith.mulf %285, %278 : vector<8x128xf32>
    %287 = arith.addf %277, %286 : vector<8x128xf32>
    %c1_i32 = arith.constant 1 : i32
    %288 = tpu.dynamic_rotate %239 by %c1_i32 dim 1 : vector<12x128xf32>, i32 -> vector<12x128xf32>
    %289 = vector.extract_strided_slice %288 {offsets = [0, 0], sizes = [8, 128], strides = [1, 1]} : vector<12x128xf32> to vector<8x128xf32>
    %290 = vector.broadcast %1 : f32 to vector<8x128xf32>
    %291 = arith.mulf %290, %289 : vector<8x128xf32>
    %292 = arith.addf %281, %291 : vector<8x128xf32>
    %293 = vector.broadcast %76 : f32 to vector<8x128xf32>
    %294 = arith.mulf %293, %289 : vector<8x128xf32>
    %295 = arith.addf %284, %294 : vector<8x128xf32>
    %296 = vector.broadcast %151 : f32 to vector<8x128xf32>
    %297 = arith.mulf %296, %289 : vector<8x128xf32>
    %298 = arith.addf %287, %297 : vector<8x128xf32>
    %299 = vector.extract_strided_slice %288 {offsets = [1, 0], sizes = [8, 128], strides = [1, 1]} : vector<12x128xf32> to vector<8x128xf32>
    %300 = vector.broadcast %6 : f32 to vector<8x128xf32>
    %301 = arith.mulf %300, %299 : vector<8x128xf32>
    %302 = arith.addf %292, %301 : vector<8x128xf32>
    %303 = vector.broadcast %81 : f32 to vector<8x128xf32>
    %304 = arith.mulf %303, %299 : vector<8x128xf32>
    %305 = arith.addf %295, %304 : vector<8x128xf32>
    %306 = vector.broadcast %156 : f32 to vector<8x128xf32>
    %307 = arith.mulf %306, %299 : vector<8x128xf32>
    %308 = arith.addf %298, %307 : vector<8x128xf32>
    %309 = vector.extract_strided_slice %288 {offsets = [2, 0], sizes = [8, 128], strides = [1, 1]} : vector<12x128xf32> to vector<8x128xf32>
    %310 = vector.broadcast %11 : f32 to vector<8x128xf32>
    %311 = arith.mulf %310, %309 : vector<8x128xf32>
    %312 = arith.addf %302, %311 : vector<8x128xf32>
    %313 = vector.broadcast %86 : f32 to vector<8x128xf32>
    %314 = arith.mulf %313, %309 : vector<8x128xf32>
    %315 = arith.addf %305, %314 : vector<8x128xf32>
    %316 = vector.broadcast %161 : f32 to vector<8x128xf32>
    %317 = arith.mulf %316, %309 : vector<8x128xf32>
    %318 = arith.addf %308, %317 : vector<8x128xf32>
    %319 = vector.extract_strided_slice %288 {offsets = [3, 0], sizes = [8, 128], strides = [1, 1]} : vector<12x128xf32> to vector<8x128xf32>
    %320 = vector.broadcast %16 : f32 to vector<8x128xf32>
    %321 = arith.mulf %320, %319 : vector<8x128xf32>
    %322 = arith.addf %312, %321 : vector<8x128xf32>
    %323 = vector.broadcast %91 : f32 to vector<8x128xf32>
    %324 = arith.mulf %323, %319 : vector<8x128xf32>
    %325 = arith.addf %315, %324 : vector<8x128xf32>
    %326 = vector.broadcast %166 : f32 to vector<8x128xf32>
    %327 = arith.mulf %326, %319 : vector<8x128xf32>
    %328 = arith.addf %318, %327 : vector<8x128xf32>
    %329 = vector.extract_strided_slice %288 {offsets = [4, 0], sizes = [8, 128], strides = [1, 1]} : vector<12x128xf32> to vector<8x128xf32>
    %330 = vector.broadcast %21 : f32 to vector<8x128xf32>
    %331 = arith.mulf %330, %329 : vector<8x128xf32>
    %332 = arith.addf %322, %331 : vector<8x128xf32>
    %333 = vector.broadcast %96 : f32 to vector<8x128xf32>
    %334 = arith.mulf %333, %329 : vector<8x128xf32>
    %335 = arith.addf %325, %334 : vector<8x128xf32>
    %336 = vector.broadcast %171 : f32 to vector<8x128xf32>
    %337 = arith.mulf %336, %329 : vector<8x128xf32>
    %338 = arith.addf %328, %337 : vector<8x128xf32>
    %339 = vector.extract_strided_slice %239 {offsets = [0, 0], sizes = [8, 128], strides = [1, 1]} : vector<12x128xf32> to vector<8x128xf32>
    %340 = vector.broadcast %2 : f32 to vector<8x128xf32>
    %341 = arith.mulf %340, %339 : vector<8x128xf32>
    %342 = arith.addf %332, %341 : vector<8x128xf32>
    %343 = vector.broadcast %77 : f32 to vector<8x128xf32>
    %344 = arith.mulf %343, %339 : vector<8x128xf32>
    %345 = arith.addf %335, %344 : vector<8x128xf32>
    %346 = vector.broadcast %152 : f32 to vector<8x128xf32>
    %347 = arith.mulf %346, %339 : vector<8x128xf32>
    %348 = arith.addf %338, %347 : vector<8x128xf32>
    %349 = vector.extract_strided_slice %239 {offsets = [1, 0], sizes = [8, 128], strides = [1, 1]} : vector<12x128xf32> to vector<8x128xf32>
    %350 = vector.broadcast %7 : f32 to vector<8x128xf32>
    %351 = arith.mulf %350, %349 : vector<8x128xf32>
    %352 = arith.addf %342, %351 : vector<8x128xf32>
    %353 = vector.broadcast %82 : f32 to vector<8x128xf32>
    %354 = arith.mulf %353, %349 : vector<8x128xf32>
    %355 = arith.addf %345, %354 : vector<8x128xf32>
    %356 = vector.broadcast %157 : f32 to vector<8x128xf32>
    %357 = arith.mulf %356, %349 : vector<8x128xf32>
    %358 = arith.addf %348, %357 : vector<8x128xf32>
    %359 = vector.extract_strided_slice %239 {offsets = [2, 0], sizes = [8, 128], strides = [1, 1]} : vector<12x128xf32> to vector<8x128xf32>
    %360 = vector.broadcast %12 : f32 to vector<8x128xf32>
    %361 = arith.mulf %360, %359 : vector<8x128xf32>
    %362 = arith.addf %352, %361 : vector<8x128xf32>
    %363 = vector.broadcast %87 : f32 to vector<8x128xf32>
    %364 = arith.mulf %363, %359 : vector<8x128xf32>
    %365 = arith.addf %355, %364 : vector<8x128xf32>
    %366 = vector.broadcast %162 : f32 to vector<8x128xf32>
    %367 = arith.mulf %366, %359 : vector<8x128xf32>
    %368 = arith.addf %358, %367 : vector<8x128xf32>
    %369 = vector.extract_strided_slice %239 {offsets = [3, 0], sizes = [8, 128], strides = [1, 1]} : vector<12x128xf32> to vector<8x128xf32>
    %370 = vector.broadcast %17 : f32 to vector<8x128xf32>
    %371 = arith.mulf %370, %369 : vector<8x128xf32>
    %372 = arith.addf %362, %371 : vector<8x128xf32>
    %373 = vector.broadcast %92 : f32 to vector<8x128xf32>
    %374 = arith.mulf %373, %369 : vector<8x128xf32>
    %375 = arith.addf %365, %374 : vector<8x128xf32>
    %376 = vector.broadcast %167 : f32 to vector<8x128xf32>
    %377 = arith.mulf %376, %369 : vector<8x128xf32>
    %378 = arith.addf %368, %377 : vector<8x128xf32>
    %379 = vector.extract_strided_slice %239 {offsets = [4, 0], sizes = [8, 128], strides = [1, 1]} : vector<12x128xf32> to vector<8x128xf32>
    %380 = vector.broadcast %22 : f32 to vector<8x128xf32>
    %381 = arith.mulf %380, %379 : vector<8x128xf32>
    %382 = arith.addf %372, %381 : vector<8x128xf32>
    %383 = vector.broadcast %97 : f32 to vector<8x128xf32>
    %384 = arith.mulf %383, %379 : vector<8x128xf32>
    %385 = arith.addf %375, %384 : vector<8x128xf32>
    %386 = vector.broadcast %172 : f32 to vector<8x128xf32>
    %387 = arith.mulf %386, %379 : vector<8x128xf32>
    %388 = arith.addf %378, %387 : vector<8x128xf32>
    %c127_i32 = arith.constant 127 : i32
    %389 = tpu.dynamic_rotate %239 by %c127_i32 dim 1 : vector<12x128xf32>, i32 -> vector<12x128xf32>
    %390 = vector.extract_strided_slice %389 {offsets = [0, 0], sizes = [8, 128], strides = [1, 1]} : vector<12x128xf32> to vector<8x128xf32>
    %391 = vector.broadcast %3 : f32 to vector<8x128xf32>
    %392 = arith.mulf %391, %390 : vector<8x128xf32>
    %393 = arith.addf %382, %392 : vector<8x128xf32>
    %394 = vector.broadcast %78 : f32 to vector<8x128xf32>
    %395 = arith.mulf %394, %390 : vector<8x128xf32>
    %396 = arith.addf %385, %395 : vector<8x128xf32>
    %397 = vector.broadcast %153 : f32 to vector<8x128xf32>
    %398 = arith.mulf %397, %390 : vector<8x128xf32>
    %399 = arith.addf %388, %398 : vector<8x128xf32>
    %400 = vector.extract_strided_slice %389 {offsets = [1, 0], sizes = [8, 128], strides = [1, 1]} : vector<12x128xf32> to vector<8x128xf32>
    %401 = vector.broadcast %8 : f32 to vector<8x128xf32>
    %402 = arith.mulf %401, %400 : vector<8x128xf32>
    %403 = arith.addf %393, %402 : vector<8x128xf32>
    %404 = vector.broadcast %83 : f32 to vector<8x128xf32>
    %405 = arith.mulf %404, %400 : vector<8x128xf32>
    %406 = arith.addf %396, %405 : vector<8x128xf32>
    %407 = vector.broadcast %158 : f32 to vector<8x128xf32>
    %408 = arith.mulf %407, %400 : vector<8x128xf32>
    %409 = arith.addf %399, %408 : vector<8x128xf32>
    %410 = vector.extract_strided_slice %389 {offsets = [2, 0], sizes = [8, 128], strides = [1, 1]} : vector<12x128xf32> to vector<8x128xf32>
    %411 = vector.broadcast %13 : f32 to vector<8x128xf32>
    %412 = arith.mulf %411, %410 : vector<8x128xf32>
    %413 = arith.addf %403, %412 : vector<8x128xf32>
    %414 = vector.broadcast %88 : f32 to vector<8x128xf32>
    %415 = arith.mulf %414, %410 : vector<8x128xf32>
    %416 = arith.addf %406, %415 : vector<8x128xf32>
    %417 = vector.broadcast %163 : f32 to vector<8x128xf32>
    %418 = arith.mulf %417, %410 : vector<8x128xf32>
    %419 = arith.addf %409, %418 : vector<8x128xf32>
    %420 = vector.extract_strided_slice %389 {offsets = [3, 0], sizes = [8, 128], strides = [1, 1]} : vector<12x128xf32> to vector<8x128xf32>
    %421 = vector.broadcast %18 : f32 to vector<8x128xf32>
    %422 = arith.mulf %421, %420 : vector<8x128xf32>
    %423 = arith.addf %413, %422 : vector<8x128xf32>
    %424 = vector.broadcast %93 : f32 to vector<8x128xf32>
    %425 = arith.mulf %424, %420 : vector<8x128xf32>
    %426 = arith.addf %416, %425 : vector<8x128xf32>
    %427 = vector.broadcast %168 : f32 to vector<8x128xf32>
    %428 = arith.mulf %427, %420 : vector<8x128xf32>
    %429 = arith.addf %419, %428 : vector<8x128xf32>
    %430 = vector.extract_strided_slice %389 {offsets = [4, 0], sizes = [8, 128], strides = [1, 1]} : vector<12x128xf32> to vector<8x128xf32>
    %431 = vector.broadcast %23 : f32 to vector<8x128xf32>
    %432 = arith.mulf %431, %430 : vector<8x128xf32>
    %433 = arith.addf %423, %432 : vector<8x128xf32>
    %434 = vector.broadcast %98 : f32 to vector<8x128xf32>
    %435 = arith.mulf %434, %430 : vector<8x128xf32>
    %436 = arith.addf %426, %435 : vector<8x128xf32>
    %437 = vector.broadcast %173 : f32 to vector<8x128xf32>
    %438 = arith.mulf %437, %430 : vector<8x128xf32>
    %439 = arith.addf %429, %438 : vector<8x128xf32>
    %c126_i32 = arith.constant 126 : i32
    %440 = tpu.dynamic_rotate %239 by %c126_i32 dim 1 : vector<12x128xf32>, i32 -> vector<12x128xf32>
    %441 = vector.extract_strided_slice %440 {offsets = [0, 0], sizes = [8, 128], strides = [1, 1]} : vector<12x128xf32> to vector<8x128xf32>
    %442 = vector.broadcast %4 : f32 to vector<8x128xf32>
    %443 = arith.mulf %442, %441 : vector<8x128xf32>
    %444 = arith.addf %433, %443 : vector<8x128xf32>
    %445 = vector.broadcast %79 : f32 to vector<8x128xf32>
    %446 = arith.mulf %445, %441 : vector<8x128xf32>
    %447 = arith.addf %436, %446 : vector<8x128xf32>
    %448 = vector.broadcast %154 : f32 to vector<8x128xf32>
    %449 = arith.mulf %448, %441 : vector<8x128xf32>
    %450 = arith.addf %439, %449 : vector<8x128xf32>
    %451 = vector.extract_strided_slice %440 {offsets = [1, 0], sizes = [8, 128], strides = [1, 1]} : vector<12x128xf32> to vector<8x128xf32>
    %452 = vector.broadcast %9 : f32 to vector<8x128xf32>
    %453 = arith.mulf %452, %451 : vector<8x128xf32>
    %454 = arith.addf %444, %453 : vector<8x128xf32>
    %455 = vector.broadcast %84 : f32 to vector<8x128xf32>
    %456 = arith.mulf %455, %451 : vector<8x128xf32>
    %457 = arith.addf %447, %456 : vector<8x128xf32>
    %458 = vector.broadcast %159 : f32 to vector<8x128xf32>
    %459 = arith.mulf %458, %451 : vector<8x128xf32>
    %460 = arith.addf %450, %459 : vector<8x128xf32>
    %461 = vector.extract_strided_slice %440 {offsets = [2, 0], sizes = [8, 128], strides = [1, 1]} : vector<12x128xf32> to vector<8x128xf32>
    %462 = vector.broadcast %14 : f32 to vector<8x128xf32>
    %463 = arith.mulf %462, %461 : vector<8x128xf32>
    %464 = arith.addf %454, %463 : vector<8x128xf32>
    %465 = vector.broadcast %89 : f32 to vector<8x128xf32>
    %466 = arith.mulf %465, %461 : vector<8x128xf32>
    %467 = arith.addf %457, %466 : vector<8x128xf32>
    %468 = vector.broadcast %164 : f32 to vector<8x128xf32>
    %469 = arith.mulf %468, %461 : vector<8x128xf32>
    %470 = arith.addf %460, %469 : vector<8x128xf32>
    %471 = vector.extract_strided_slice %440 {offsets = [3, 0], sizes = [8, 128], strides = [1, 1]} : vector<12x128xf32> to vector<8x128xf32>
    %472 = vector.broadcast %19 : f32 to vector<8x128xf32>
    %473 = arith.mulf %472, %471 : vector<8x128xf32>
    %474 = arith.addf %464, %473 : vector<8x128xf32>
    %475 = vector.broadcast %94 : f32 to vector<8x128xf32>
    %476 = arith.mulf %475, %471 : vector<8x128xf32>
    %477 = arith.addf %467, %476 : vector<8x128xf32>
    %478 = vector.broadcast %169 : f32 to vector<8x128xf32>
    %479 = arith.mulf %478, %471 : vector<8x128xf32>
    %480 = arith.addf %470, %479 : vector<8x128xf32>
    %481 = vector.extract_strided_slice %440 {offsets = [4, 0], sizes = [8, 128], strides = [1, 1]} : vector<12x128xf32> to vector<8x128xf32>
    %482 = vector.broadcast %24 : f32 to vector<8x128xf32>
    %483 = arith.mulf %482, %481 : vector<8x128xf32>
    %484 = arith.addf %474, %483 : vector<8x128xf32>
    %485 = vector.broadcast %99 : f32 to vector<8x128xf32>
    %486 = arith.mulf %485, %481 : vector<8x128xf32>
    %487 = arith.addf %477, %486 : vector<8x128xf32>
    %488 = vector.broadcast %174 : f32 to vector<8x128xf32>
    %489 = arith.mulf %488, %481 : vector<8x128xf32>
    %490 = arith.addf %480, %489 : vector<8x128xf32>
    %491 = vector.extract_strided_slice %232 {offsets = [1, 0, 0], sizes = [1, 2, 128], strides = [1, 1, 1]} : vector<3x2x128xf32> to vector<1x2x128xf32>
    %492 = vector.shape_cast %491 : vector<1x2x128xf32> to vector<2x128xf32>
    %c0_15 = arith.constant 0 : index
    %c1_16 = arith.constant 1 : index
    %c0_17 = arith.constant 0 : index
    %c0_18 = arith.constant 0 : index
    %493 = vector.load %arg2[%c0_15, %c1_16, %c0_17, %c0_18] : memref<1x3x16x128xf32, #tpu.memory_space<vmem>>, vector<1x1x10x128xf32>
    %494 = vector.shape_cast %493 : vector<1x1x10x128xf32> to vector<10x128xf32>
    %495 = tpu.concatenate %492, %494 in 0 : vector<2x128xf32>, vector<10x128xf32> -> vector<12x128xf32>
    %c2_i32_19 = arith.constant 2 : i32
    %496 = tpu.dynamic_rotate %495 by %c2_i32_19 dim 1 : vector<12x128xf32>, i32 -> vector<12x128xf32>
    %497 = vector.extract_strided_slice %496 {offsets = [0, 0], sizes = [8, 128], strides = [1, 1]} : vector<12x128xf32> to vector<8x128xf32>
    %498 = vector.broadcast %25 : f32 to vector<8x128xf32>
    %499 = arith.mulf %498, %497 : vector<8x128xf32>
    %500 = arith.addf %484, %499 : vector<8x128xf32>
    %501 = vector.broadcast %100 : f32 to vector<8x128xf32>
    %502 = arith.mulf %501, %497 : vector<8x128xf32>
    %503 = arith.addf %487, %502 : vector<8x128xf32>
    %504 = vector.broadcast %175 : f32 to vector<8x128xf32>
    %505 = arith.mulf %504, %497 : vector<8x128xf32>
    %506 = arith.addf %490, %505 : vector<8x128xf32>
    %507 = vector.extract_strided_slice %496 {offsets = [1, 0], sizes = [8, 128], strides = [1, 1]} : vector<12x128xf32> to vector<8x128xf32>
    %508 = vector.broadcast %30 : f32 to vector<8x128xf32>
    %509 = arith.mulf %508, %507 : vector<8x128xf32>
    %510 = arith.addf %500, %509 : vector<8x128xf32>
    %511 = vector.broadcast %105 : f32 to vector<8x128xf32>
    %512 = arith.mulf %511, %507 : vector<8x128xf32>
    %513 = arith.addf %503, %512 : vector<8x128xf32>
    %514 = vector.broadcast %180 : f32 to vector<8x128xf32>
    %515 = arith.mulf %514, %507 : vector<8x128xf32>
    %516 = arith.addf %506, %515 : vector<8x128xf32>
    %517 = vector.extract_strided_slice %496 {offsets = [2, 0], sizes = [8, 128], strides = [1, 1]} : vector<12x128xf32> to vector<8x128xf32>
    %518 = vector.broadcast %35 : f32 to vector<8x128xf32>
    %519 = arith.mulf %518, %517 : vector<8x128xf32>
    %520 = arith.addf %510, %519 : vector<8x128xf32>
    %521 = vector.broadcast %110 : f32 to vector<8x128xf32>
    %522 = arith.mulf %521, %517 : vector<8x128xf32>
    %523 = arith.addf %513, %522 : vector<8x128xf32>
    %524 = vector.broadcast %185 : f32 to vector<8x128xf32>
    %525 = arith.mulf %524, %517 : vector<8x128xf32>
    %526 = arith.addf %516, %525 : vector<8x128xf32>
    %527 = vector.extract_strided_slice %496 {offsets = [3, 0], sizes = [8, 128], strides = [1, 1]} : vector<12x128xf32> to vector<8x128xf32>
    %528 = vector.broadcast %40 : f32 to vector<8x128xf32>
    %529 = arith.mulf %528, %527 : vector<8x128xf32>
    %530 = arith.addf %520, %529 : vector<8x128xf32>
    %531 = vector.broadcast %115 : f32 to vector<8x128xf32>
    %532 = arith.mulf %531, %527 : vector<8x128xf32>
    %533 = arith.addf %523, %532 : vector<8x128xf32>
    %534 = vector.broadcast %190 : f32 to vector<8x128xf32>
    %535 = arith.mulf %534, %527 : vector<8x128xf32>
    %536 = arith.addf %526, %535 : vector<8x128xf32>
    %537 = vector.extract_strided_slice %496 {offsets = [4, 0], sizes = [8, 128], strides = [1, 1]} : vector<12x128xf32> to vector<8x128xf32>
    %538 = vector.broadcast %45 : f32 to vector<8x128xf32>
    %539 = arith.mulf %538, %537 : vector<8x128xf32>
    %540 = arith.addf %530, %539 : vector<8x128xf32>
    %541 = vector.broadcast %120 : f32 to vector<8x128xf32>
    %542 = arith.mulf %541, %537 : vector<8x128xf32>
    %543 = arith.addf %533, %542 : vector<8x128xf32>
    %544 = vector.broadcast %195 : f32 to vector<8x128xf32>
    %545 = arith.mulf %544, %537 : vector<8x128xf32>
    %546 = arith.addf %536, %545 : vector<8x128xf32>
    %c1_i32_20 = arith.constant 1 : i32
    %547 = tpu.dynamic_rotate %495 by %c1_i32_20 dim 1 : vector<12x128xf32>, i32 -> vector<12x128xf32>
    %548 = vector.extract_strided_slice %547 {offsets = [0, 0], sizes = [8, 128], strides = [1, 1]} : vector<12x128xf32> to vector<8x128xf32>
    %549 = vector.broadcast %26 : f32 to vector<8x128xf32>
    %550 = arith.mulf %549, %548 : vector<8x128xf32>
    %551 = arith.addf %540, %550 : vector<8x128xf32>
    %552 = vector.broadcast %101 : f32 to vector<8x128xf32>
    %553 = arith.mulf %552, %548 : vector<8x128xf32>
    %554 = arith.addf %543, %553 : vector<8x128xf32>
    %555 = vector.broadcast %176 : f32 to vector<8x128xf32>
    %556 = arith.mulf %555, %548 : vector<8x128xf32>
    %557 = arith.addf %546, %556 : vector<8x128xf32>
    %558 = vector.extract_strided_slice %547 {offsets = [1, 0], sizes = [8, 128], strides = [1, 1]} : vector<12x128xf32> to vector<8x128xf32>
    %559 = vector.broadcast %31 : f32 to vector<8x128xf32>
    %560 = arith.mulf %559, %558 : vector<8x128xf32>
    %561 = arith.addf %551, %560 : vector<8x128xf32>
    %562 = vector.broadcast %106 : f32 to vector<8x128xf32>
    %563 = arith.mulf %562, %558 : vector<8x128xf32>
    %564 = arith.addf %554, %563 : vector<8x128xf32>
    %565 = vector.broadcast %181 : f32 to vector<8x128xf32>
    %566 = arith.mulf %565, %558 : vector<8x128xf32>
    %567 = arith.addf %557, %566 : vector<8x128xf32>
    %568 = vector.extract_strided_slice %547 {offsets = [2, 0], sizes = [8, 128], strides = [1, 1]} : vector<12x128xf32> to vector<8x128xf32>
    %569 = vector.broadcast %36 : f32 to vector<8x128xf32>
    %570 = arith.mulf %569, %568 : vector<8x128xf32>
    %571 = arith.addf %561, %570 : vector<8x128xf32>
    %572 = vector.broadcast %111 : f32 to vector<8x128xf32>
    %573 = arith.mulf %572, %568 : vector<8x128xf32>
    %574 = arith.addf %564, %573 : vector<8x128xf32>
    %575 = vector.broadcast %186 : f32 to vector<8x128xf32>
    %576 = arith.mulf %575, %568 : vector<8x128xf32>
    %577 = arith.addf %567, %576 : vector<8x128xf32>
    %578 = vector.extract_strided_slice %547 {offsets = [3, 0], sizes = [8, 128], strides = [1, 1]} : vector<12x128xf32> to vector<8x128xf32>
    %579 = vector.broadcast %41 : f32 to vector<8x128xf32>
    %580 = arith.mulf %579, %578 : vector<8x128xf32>
    %581 = arith.addf %571, %580 : vector<8x128xf32>
    %582 = vector.broadcast %116 : f32 to vector<8x128xf32>
    %583 = arith.mulf %582, %578 : vector<8x128xf32>
    %584 = arith.addf %574, %583 : vector<8x128xf32>
    %585 = vector.broadcast %191 : f32 to vector<8x128xf32>
    %586 = arith.mulf %585, %578 : vector<8x128xf32>
    %587 = arith.addf %577, %586 : vector<8x128xf32>
    %588 = vector.extract_strided_slice %547 {offsets = [4, 0], sizes = [8, 128], strides = [1, 1]} : vector<12x128xf32> to vector<8x128xf32>
    %589 = vector.broadcast %46 : f32 to vector<8x128xf32>
    %590 = arith.mulf %589, %588 : vector<8x128xf32>
    %591 = arith.addf %581, %590 : vector<8x128xf32>
    %592 = vector.broadcast %121 : f32 to vector<8x128xf32>
    %593 = arith.mulf %592, %588 : vector<8x128xf32>
    %594 = arith.addf %584, %593 : vector<8x128xf32>
    %595 = vector.broadcast %196 : f32 to vector<8x128xf32>
    %596 = arith.mulf %595, %588 : vector<8x128xf32>
    %597 = arith.addf %587, %596 : vector<8x128xf32>
    %598 = vector.extract_strided_slice %495 {offsets = [0, 0], sizes = [8, 128], strides = [1, 1]} : vector<12x128xf32> to vector<8x128xf32>
    %599 = vector.broadcast %27 : f32 to vector<8x128xf32>
    %600 = arith.mulf %599, %598 : vector<8x128xf32>
    %601 = arith.addf %591, %600 : vector<8x128xf32>
    %602 = vector.broadcast %102 : f32 to vector<8x128xf32>
    %603 = arith.mulf %602, %598 : vector<8x128xf32>
    %604 = arith.addf %594, %603 : vector<8x128xf32>
    %605 = vector.broadcast %177 : f32 to vector<8x128xf32>
    %606 = arith.mulf %605, %598 : vector<8x128xf32>
    %607 = arith.addf %597, %606 : vector<8x128xf32>
    %608 = vector.extract_strided_slice %495 {offsets = [1, 0], sizes = [8, 128], strides = [1, 1]} : vector<12x128xf32> to vector<8x128xf32>
    %609 = vector.broadcast %32 : f32 to vector<8x128xf32>
    %610 = arith.mulf %609, %608 : vector<8x128xf32>
    %611 = arith.addf %601, %610 : vector<8x128xf32>
    %612 = vector.broadcast %107 : f32 to vector<8x128xf32>
    %613 = arith.mulf %612, %608 : vector<8x128xf32>
    %614 = arith.addf %604, %613 : vector<8x128xf32>
    %615 = vector.broadcast %182 : f32 to vector<8x128xf32>
    %616 = arith.mulf %615, %608 : vector<8x128xf32>
    %617 = arith.addf %607, %616 : vector<8x128xf32>
    %618 = vector.extract_strided_slice %495 {offsets = [2, 0], sizes = [8, 128], strides = [1, 1]} : vector<12x128xf32> to vector<8x128xf32>
    %619 = vector.broadcast %37 : f32 to vector<8x128xf32>
    %620 = arith.mulf %619, %618 : vector<8x128xf32>
    %621 = arith.addf %611, %620 : vector<8x128xf32>
    %622 = vector.broadcast %112 : f32 to vector<8x128xf32>
    %623 = arith.mulf %622, %618 : vector<8x128xf32>
    %624 = arith.addf %614, %623 : vector<8x128xf32>
    %625 = vector.broadcast %187 : f32 to vector<8x128xf32>
    %626 = arith.mulf %625, %618 : vector<8x128xf32>
    %627 = arith.addf %617, %626 : vector<8x128xf32>
    %628 = vector.extract_strided_slice %495 {offsets = [3, 0], sizes = [8, 128], strides = [1, 1]} : vector<12x128xf32> to vector<8x128xf32>
    %629 = vector.broadcast %42 : f32 to vector<8x128xf32>
    %630 = arith.mulf %629, %628 : vector<8x128xf32>
    %631 = arith.addf %621, %630 : vector<8x128xf32>
    %632 = vector.broadcast %117 : f32 to vector<8x128xf32>
    %633 = arith.mulf %632, %628 : vector<8x128xf32>
    %634 = arith.addf %624, %633 : vector<8x128xf32>
    %635 = vector.broadcast %192 : f32 to vector<8x128xf32>
    %636 = arith.mulf %635, %628 : vector<8x128xf32>
    %637 = arith.addf %627, %636 : vector<8x128xf32>
    %638 = vector.extract_strided_slice %495 {offsets = [4, 0], sizes = [8, 128], strides = [1, 1]} : vector<12x128xf32> to vector<8x128xf32>
    %639 = vector.broadcast %47 : f32 to vector<8x128xf32>
    %640 = arith.mulf %639, %638 : vector<8x128xf32>
    %641 = arith.addf %631, %640 : vector<8x128xf32>
    %642 = vector.broadcast %122 : f32 to vector<8x128xf32>
    %643 = arith.mulf %642, %638 : vector<8x128xf32>
    %644 = arith.addf %634, %643 : vector<8x128xf32>
    %645 = vector.broadcast %197 : f32 to vector<8x128xf32>
    %646 = arith.mulf %645, %638 : vector<8x128xf32>
    %647 = arith.addf %637, %646 : vector<8x128xf32>
    %c127_i32_21 = arith.constant 127 : i32
    %648 = tpu.dynamic_rotate %495 by %c127_i32_21 dim 1 : vector<12x128xf32>, i32 -> vector<12x128xf32>
    %649 = vector.extract_strided_slice %648 {offsets = [0, 0], sizes = [8, 128], strides = [1, 1]} : vector<12x128xf32> to vector<8x128xf32>
    %650 = vector.broadcast %28 : f32 to vector<8x128xf32>
    %651 = arith.mulf %650, %649 : vector<8x128xf32>
    %652 = arith.addf %641, %651 : vector<8x128xf32>
    %653 = vector.broadcast %103 : f32 to vector<8x128xf32>
    %654 = arith.mulf %653, %649 : vector<8x128xf32>
    %655 = arith.addf %644, %654 : vector<8x128xf32>
    %656 = vector.broadcast %178 : f32 to vector<8x128xf32>
    %657 = arith.mulf %656, %649 : vector<8x128xf32>
    %658 = arith.addf %647, %657 : vector<8x128xf32>
    %659 = vector.extract_strided_slice %648 {offsets = [1, 0], sizes = [8, 128], strides = [1, 1]} : vector<12x128xf32> to vector<8x128xf32>
    %660 = vector.broadcast %33 : f32 to vector<8x128xf32>
    %661 = arith.mulf %660, %659 : vector<8x128xf32>
    %662 = arith.addf %652, %661 : vector<8x128xf32>
    %663 = vector.broadcast %108 : f32 to vector<8x128xf32>
    %664 = arith.mulf %663, %659 : vector<8x128xf32>
    %665 = arith.addf %655, %664 : vector<8x128xf32>
    %666 = vector.broadcast %183 : f32 to vector<8x128xf32>
    %667 = arith.mulf %666, %659 : vector<8x128xf32>
    %668 = arith.addf %658, %667 : vector<8x128xf32>
    %669 = vector.extract_strided_slice %648 {offsets = [2, 0], sizes = [8, 128], strides = [1, 1]} : vector<12x128xf32> to vector<8x128xf32>
    %670 = vector.broadcast %38 : f32 to vector<8x128xf32>
    %671 = arith.mulf %670, %669 : vector<8x128xf32>
    %672 = arith.addf %662, %671 : vector<8x128xf32>
    %673 = vector.broadcast %113 : f32 to vector<8x128xf32>
    %674 = arith.mulf %673, %669 : vector<8x128xf32>
    %675 = arith.addf %665, %674 : vector<8x128xf32>
    %676 = vector.broadcast %188 : f32 to vector<8x128xf32>
    %677 = arith.mulf %676, %669 : vector<8x128xf32>
    %678 = arith.addf %668, %677 : vector<8x128xf32>
    %679 = vector.extract_strided_slice %648 {offsets = [3, 0], sizes = [8, 128], strides = [1, 1]} : vector<12x128xf32> to vector<8x128xf32>
    %680 = vector.broadcast %43 : f32 to vector<8x128xf32>
    %681 = arith.mulf %680, %679 : vector<8x128xf32>
    %682 = arith.addf %672, %681 : vector<8x128xf32>
    %683 = vector.broadcast %118 : f32 to vector<8x128xf32>
    %684 = arith.mulf %683, %679 : vector<8x128xf32>
    %685 = arith.addf %675, %684 : vector<8x128xf32>
    %686 = vector.broadcast %193 : f32 to vector<8x128xf32>
    %687 = arith.mulf %686, %679 : vector<8x128xf32>
    %688 = arith.addf %678, %687 : vector<8x128xf32>
    %689 = vector.extract_strided_slice %648 {offsets = [4, 0], sizes = [8, 128], strides = [1, 1]} : vector<12x128xf32> to vector<8x128xf32>
    %690 = vector.broadcast %48 : f32 to vector<8x128xf32>
    %691 = arith.mulf %690, %689 : vector<8x128xf32>
    %692 = arith.addf %682, %691 : vector<8x128xf32>
    %693 = vector.broadcast %123 : f32 to vector<8x128xf32>
    %694 = arith.mulf %693, %689 : vector<8x128xf32>
    %695 = arith.addf %685, %694 : vector<8x128xf32>
    %696 = vector.broadcast %198 : f32 to vector<8x128xf32>
    %697 = arith.mulf %696, %689 : vector<8x128xf32>
    %698 = arith.addf %688, %697 : vector<8x128xf32>
    %c126_i32_22 = arith.constant 126 : i32
    %699 = tpu.dynamic_rotate %495 by %c126_i32_22 dim 1 : vector<12x128xf32>, i32 -> vector<12x128xf32>
    %700 = vector.extract_strided_slice %699 {offsets = [0, 0], sizes = [8, 128], strides = [1, 1]} : vector<12x128xf32> to vector<8x128xf32>
    %701 = vector.broadcast %29 : f32 to vector<8x128xf32>
    %702 = arith.mulf %701, %700 : vector<8x128xf32>
    %703 = arith.addf %692, %702 : vector<8x128xf32>
    %704 = vector.broadcast %104 : f32 to vector<8x128xf32>
    %705 = arith.mulf %704, %700 : vector<8x128xf32>
    %706 = arith.addf %695, %705 : vector<8x128xf32>
    %707 = vector.broadcast %179 : f32 to vector<8x128xf32>
    %708 = arith.mulf %707, %700 : vector<8x128xf32>
    %709 = arith.addf %698, %708 : vector<8x128xf32>
    %710 = vector.extract_strided_slice %699 {offsets = [1, 0], sizes = [8, 128], strides = [1, 1]} : vector<12x128xf32> to vector<8x128xf32>
    %711 = vector.broadcast %34 : f32 to vector<8x128xf32>
    %712 = arith.mulf %711, %710 : vector<8x128xf32>
    %713 = arith.addf %703, %712 : vector<8x128xf32>
    %714 = vector.broadcast %109 : f32 to vector<8x128xf32>
    %715 = arith.mulf %714, %710 : vector<8x128xf32>
    %716 = arith.addf %706, %715 : vector<8x128xf32>
    %717 = vector.broadcast %184 : f32 to vector<8x128xf32>
    %718 = arith.mulf %717, %710 : vector<8x128xf32>
    %719 = arith.addf %709, %718 : vector<8x128xf32>
    %720 = vector.extract_strided_slice %699 {offsets = [2, 0], sizes = [8, 128], strides = [1, 1]} : vector<12x128xf32> to vector<8x128xf32>
    %721 = vector.broadcast %39 : f32 to vector<8x128xf32>
    %722 = arith.mulf %721, %720 : vector<8x128xf32>
    %723 = arith.addf %713, %722 : vector<8x128xf32>
    %724 = vector.broadcast %114 : f32 to vector<8x128xf32>
    %725 = arith.mulf %724, %720 : vector<8x128xf32>
    %726 = arith.addf %716, %725 : vector<8x128xf32>
    %727 = vector.broadcast %189 : f32 to vector<8x128xf32>
    %728 = arith.mulf %727, %720 : vector<8x128xf32>
    %729 = arith.addf %719, %728 : vector<8x128xf32>
    %730 = vector.extract_strided_slice %699 {offsets = [3, 0], sizes = [8, 128], strides = [1, 1]} : vector<12x128xf32> to vector<8x128xf32>
    %731 = vector.broadcast %44 : f32 to vector<8x128xf32>
    %732 = arith.mulf %731, %730 : vector<8x128xf32>
    %733 = arith.addf %723, %732 : vector<8x128xf32>
    %734 = vector.broadcast %119 : f32 to vector<8x128xf32>
    %735 = arith.mulf %734, %730 : vector<8x128xf32>
    %736 = arith.addf %726, %735 : vector<8x128xf32>
    %737 = vector.broadcast %194 : f32 to vector<8x128xf32>
    %738 = arith.mulf %737, %730 : vector<8x128xf32>
    %739 = arith.addf %729, %738 : vector<8x128xf32>
    %740 = vector.extract_strided_slice %699 {offsets = [4, 0], sizes = [8, 128], strides = [1, 1]} : vector<12x128xf32> to vector<8x128xf32>
    %741 = vector.broadcast %49 : f32 to vector<8x128xf32>
    %742 = arith.mulf %741, %740 : vector<8x128xf32>
    %743 = arith.addf %733, %742 : vector<8x128xf32>
    %744 = vector.broadcast %124 : f32 to vector<8x128xf32>
    %745 = arith.mulf %744, %740 : vector<8x128xf32>
    %746 = arith.addf %736, %745 : vector<8x128xf32>
    %747 = vector.broadcast %199 : f32 to vector<8x128xf32>
    %748 = arith.mulf %747, %740 : vector<8x128xf32>
    %749 = arith.addf %739, %748 : vector<8x128xf32>
    %750 = vector.extract_strided_slice %232 {offsets = [2, 0, 0], sizes = [1, 2, 128], strides = [1, 1, 1]} : vector<3x2x128xf32> to vector<1x2x128xf32>
    %751 = vector.shape_cast %750 : vector<1x2x128xf32> to vector<2x128xf32>
    %c0_23 = arith.constant 0 : index
    %c2_24 = arith.constant 2 : index
    %c0_25 = arith.constant 0 : index
    %c0_26 = arith.constant 0 : index
    %752 = vector.load %arg2[%c0_23, %c2_24, %c0_25, %c0_26] : memref<1x3x16x128xf32, #tpu.memory_space<vmem>>, vector<1x1x10x128xf32>
    %753 = vector.shape_cast %752 : vector<1x1x10x128xf32> to vector<10x128xf32>
    %754 = tpu.concatenate %751, %753 in 0 : vector<2x128xf32>, vector<10x128xf32> -> vector<12x128xf32>
    %c2_i32_27 = arith.constant 2 : i32
    %755 = tpu.dynamic_rotate %754 by %c2_i32_27 dim 1 : vector<12x128xf32>, i32 -> vector<12x128xf32>
    %756 = vector.extract_strided_slice %755 {offsets = [0, 0], sizes = [8, 128], strides = [1, 1]} : vector<12x128xf32> to vector<8x128xf32>
    %757 = vector.broadcast %50 : f32 to vector<8x128xf32>
    %758 = arith.mulf %757, %756 : vector<8x128xf32>
    %759 = arith.addf %743, %758 : vector<8x128xf32>
    %760 = vector.broadcast %125 : f32 to vector<8x128xf32>
    %761 = arith.mulf %760, %756 : vector<8x128xf32>
    %762 = arith.addf %746, %761 : vector<8x128xf32>
    %763 = vector.broadcast %200 : f32 to vector<8x128xf32>
    %764 = arith.mulf %763, %756 : vector<8x128xf32>
    %765 = arith.addf %749, %764 : vector<8x128xf32>
    %766 = vector.extract_strided_slice %755 {offsets = [1, 0], sizes = [8, 128], strides = [1, 1]} : vector<12x128xf32> to vector<8x128xf32>
    %767 = vector.broadcast %55 : f32 to vector<8x128xf32>
    %768 = arith.mulf %767, %766 : vector<8x128xf32>
    %769 = arith.addf %759, %768 : vector<8x128xf32>
    %770 = vector.broadcast %130 : f32 to vector<8x128xf32>
    %771 = arith.mulf %770, %766 : vector<8x128xf32>
    %772 = arith.addf %762, %771 : vector<8x128xf32>
    %773 = vector.broadcast %205 : f32 to vector<8x128xf32>
    %774 = arith.mulf %773, %766 : vector<8x128xf32>
    %775 = arith.addf %765, %774 : vector<8x128xf32>
    %776 = vector.extract_strided_slice %755 {offsets = [2, 0], sizes = [8, 128], strides = [1, 1]} : vector<12x128xf32> to vector<8x128xf32>
    %777 = vector.broadcast %60 : f32 to vector<8x128xf32>
    %778 = arith.mulf %777, %776 : vector<8x128xf32>
    %779 = arith.addf %769, %778 : vector<8x128xf32>
    %780 = vector.broadcast %135 : f32 to vector<8x128xf32>
    %781 = arith.mulf %780, %776 : vector<8x128xf32>
    %782 = arith.addf %772, %781 : vector<8x128xf32>
    %783 = vector.broadcast %210 : f32 to vector<8x128xf32>
    %784 = arith.mulf %783, %776 : vector<8x128xf32>
    %785 = arith.addf %775, %784 : vector<8x128xf32>
    %786 = vector.extract_strided_slice %755 {offsets = [3, 0], sizes = [8, 128], strides = [1, 1]} : vector<12x128xf32> to vector<8x128xf32>
    %787 = vector.broadcast %65 : f32 to vector<8x128xf32>
    %788 = arith.mulf %787, %786 : vector<8x128xf32>
    %789 = arith.addf %779, %788 : vector<8x128xf32>
    %790 = vector.broadcast %140 : f32 to vector<8x128xf32>
    %791 = arith.mulf %790, %786 : vector<8x128xf32>
    %792 = arith.addf %782, %791 : vector<8x128xf32>
    %793 = vector.broadcast %215 : f32 to vector<8x128xf32>
    %794 = arith.mulf %793, %786 : vector<8x128xf32>
    %795 = arith.addf %785, %794 : vector<8x128xf32>
    %796 = vector.extract_strided_slice %755 {offsets = [4, 0], sizes = [8, 128], strides = [1, 1]} : vector<12x128xf32> to vector<8x128xf32>
    %797 = vector.broadcast %70 : f32 to vector<8x128xf32>
    %798 = arith.mulf %797, %796 : vector<8x128xf32>
    %799 = arith.addf %789, %798 : vector<8x128xf32>
    %800 = vector.broadcast %145 : f32 to vector<8x128xf32>
    %801 = arith.mulf %800, %796 : vector<8x128xf32>
    %802 = arith.addf %792, %801 : vector<8x128xf32>
    %803 = vector.broadcast %220 : f32 to vector<8x128xf32>
    %804 = arith.mulf %803, %796 : vector<8x128xf32>
    %805 = arith.addf %795, %804 : vector<8x128xf32>
    %c1_i32_28 = arith.constant 1 : i32
    %806 = tpu.dynamic_rotate %754 by %c1_i32_28 dim 1 : vector<12x128xf32>, i32 -> vector<12x128xf32>
    %807 = vector.extract_strided_slice %806 {offsets = [0, 0], sizes = [8, 128], strides = [1, 1]} : vector<12x128xf32> to vector<8x128xf32>
    %808 = vector.broadcast %51 : f32 to vector<8x128xf32>
    %809 = arith.mulf %808, %807 : vector<8x128xf32>
    %810 = arith.addf %799, %809 : vector<8x128xf32>
    %811 = vector.broadcast %126 : f32 to vector<8x128xf32>
    %812 = arith.mulf %811, %807 : vector<8x128xf32>
    %813 = arith.addf %802, %812 : vector<8x128xf32>
    %814 = vector.broadcast %201 : f32 to vector<8x128xf32>
    %815 = arith.mulf %814, %807 : vector<8x128xf32>
    %816 = arith.addf %805, %815 : vector<8x128xf32>
    %817 = vector.extract_strided_slice %806 {offsets = [1, 0], sizes = [8, 128], strides = [1, 1]} : vector<12x128xf32> to vector<8x128xf32>
    %818 = vector.broadcast %56 : f32 to vector<8x128xf32>
    %819 = arith.mulf %818, %817 : vector<8x128xf32>
    %820 = arith.addf %810, %819 : vector<8x128xf32>
    %821 = vector.broadcast %131 : f32 to vector<8x128xf32>
    %822 = arith.mulf %821, %817 : vector<8x128xf32>
    %823 = arith.addf %813, %822 : vector<8x128xf32>
    %824 = vector.broadcast %206 : f32 to vector<8x128xf32>
    %825 = arith.mulf %824, %817 : vector<8x128xf32>
    %826 = arith.addf %816, %825 : vector<8x128xf32>
    %827 = vector.extract_strided_slice %806 {offsets = [2, 0], sizes = [8, 128], strides = [1, 1]} : vector<12x128xf32> to vector<8x128xf32>
    %828 = vector.broadcast %61 : f32 to vector<8x128xf32>
    %829 = arith.mulf %828, %827 : vector<8x128xf32>
    %830 = arith.addf %820, %829 : vector<8x128xf32>
    %831 = vector.broadcast %136 : f32 to vector<8x128xf32>
    %832 = arith.mulf %831, %827 : vector<8x128xf32>
    %833 = arith.addf %823, %832 : vector<8x128xf32>
    %834 = vector.broadcast %211 : f32 to vector<8x128xf32>
    %835 = arith.mulf %834, %827 : vector<8x128xf32>
    %836 = arith.addf %826, %835 : vector<8x128xf32>
    %837 = vector.extract_strided_slice %806 {offsets = [3, 0], sizes = [8, 128], strides = [1, 1]} : vector<12x128xf32> to vector<8x128xf32>
    %838 = vector.broadcast %66 : f32 to vector<8x128xf32>
    %839 = arith.mulf %838, %837 : vector<8x128xf32>
    %840 = arith.addf %830, %839 : vector<8x128xf32>
    %841 = vector.broadcast %141 : f32 to vector<8x128xf32>
    %842 = arith.mulf %841, %837 : vector<8x128xf32>
    %843 = arith.addf %833, %842 : vector<8x128xf32>
    %844 = vector.broadcast %216 : f32 to vector<8x128xf32>
    %845 = arith.mulf %844, %837 : vector<8x128xf32>
    %846 = arith.addf %836, %845 : vector<8x128xf32>
    %847 = vector.extract_strided_slice %806 {offsets = [4, 0], sizes = [8, 128], strides = [1, 1]} : vector<12x128xf32> to vector<8x128xf32>
    %848 = vector.broadcast %71 : f32 to vector<8x128xf32>
    %849 = arith.mulf %848, %847 : vector<8x128xf32>
    %850 = arith.addf %840, %849 : vector<8x128xf32>
    %851 = vector.broadcast %146 : f32 to vector<8x128xf32>
    %852 = arith.mulf %851, %847 : vector<8x128xf32>
    %853 = arith.addf %843, %852 : vector<8x128xf32>
    %854 = vector.broadcast %221 : f32 to vector<8x128xf32>
    %855 = arith.mulf %854, %847 : vector<8x128xf32>
    %856 = arith.addf %846, %855 : vector<8x128xf32>
    %857 = vector.extract_strided_slice %754 {offsets = [0, 0], sizes = [8, 128], strides = [1, 1]} : vector<12x128xf32> to vector<8x128xf32>
    %858 = vector.broadcast %52 : f32 to vector<8x128xf32>
    %859 = arith.mulf %858, %857 : vector<8x128xf32>
    %860 = arith.addf %850, %859 : vector<8x128xf32>
    %861 = vector.broadcast %127 : f32 to vector<8x128xf32>
    %862 = arith.mulf %861, %857 : vector<8x128xf32>
    %863 = arith.addf %853, %862 : vector<8x128xf32>
    %864 = vector.broadcast %202 : f32 to vector<8x128xf32>
    %865 = arith.mulf %864, %857 : vector<8x128xf32>
    %866 = arith.addf %856, %865 : vector<8x128xf32>
    %867 = vector.extract_strided_slice %754 {offsets = [1, 0], sizes = [8, 128], strides = [1, 1]} : vector<12x128xf32> to vector<8x128xf32>
    %868 = vector.broadcast %57 : f32 to vector<8x128xf32>
    %869 = arith.mulf %868, %867 : vector<8x128xf32>
    %870 = arith.addf %860, %869 : vector<8x128xf32>
    %871 = vector.broadcast %132 : f32 to vector<8x128xf32>
    %872 = arith.mulf %871, %867 : vector<8x128xf32>
    %873 = arith.addf %863, %872 : vector<8x128xf32>
    %874 = vector.broadcast %207 : f32 to vector<8x128xf32>
    %875 = arith.mulf %874, %867 : vector<8x128xf32>
    %876 = arith.addf %866, %875 : vector<8x128xf32>
    %877 = vector.extract_strided_slice %754 {offsets = [2, 0], sizes = [8, 128], strides = [1, 1]} : vector<12x128xf32> to vector<8x128xf32>
    %878 = vector.broadcast %62 : f32 to vector<8x128xf32>
    %879 = arith.mulf %878, %877 : vector<8x128xf32>
    %880 = arith.addf %870, %879 : vector<8x128xf32>
    %881 = vector.broadcast %137 : f32 to vector<8x128xf32>
    %882 = arith.mulf %881, %877 : vector<8x128xf32>
    %883 = arith.addf %873, %882 : vector<8x128xf32>
    %884 = vector.broadcast %212 : f32 to vector<8x128xf32>
    %885 = arith.mulf %884, %877 : vector<8x128xf32>
    %886 = arith.addf %876, %885 : vector<8x128xf32>
    %887 = vector.extract_strided_slice %754 {offsets = [3, 0], sizes = [8, 128], strides = [1, 1]} : vector<12x128xf32> to vector<8x128xf32>
    %888 = vector.broadcast %67 : f32 to vector<8x128xf32>
    %889 = arith.mulf %888, %887 : vector<8x128xf32>
    %890 = arith.addf %880, %889 : vector<8x128xf32>
    %891 = vector.broadcast %142 : f32 to vector<8x128xf32>
    %892 = arith.mulf %891, %887 : vector<8x128xf32>
    %893 = arith.addf %883, %892 : vector<8x128xf32>
    %894 = vector.broadcast %217 : f32 to vector<8x128xf32>
    %895 = arith.mulf %894, %887 : vector<8x128xf32>
    %896 = arith.addf %886, %895 : vector<8x128xf32>
    %897 = vector.extract_strided_slice %754 {offsets = [4, 0], sizes = [8, 128], strides = [1, 1]} : vector<12x128xf32> to vector<8x128xf32>
    %898 = vector.broadcast %72 : f32 to vector<8x128xf32>
    %899 = arith.mulf %898, %897 : vector<8x128xf32>
    %900 = arith.addf %890, %899 : vector<8x128xf32>
    %901 = vector.broadcast %147 : f32 to vector<8x128xf32>
    %902 = arith.mulf %901, %897 : vector<8x128xf32>
    %903 = arith.addf %893, %902 : vector<8x128xf32>
    %904 = vector.broadcast %222 : f32 to vector<8x128xf32>
    %905 = arith.mulf %904, %897 : vector<8x128xf32>
    %906 = arith.addf %896, %905 : vector<8x128xf32>
    %c127_i32_29 = arith.constant 127 : i32
    %907 = tpu.dynamic_rotate %754 by %c127_i32_29 dim 1 : vector<12x128xf32>, i32 -> vector<12x128xf32>
    %908 = vector.extract_strided_slice %907 {offsets = [0, 0], sizes = [8, 128], strides = [1, 1]} : vector<12x128xf32> to vector<8x128xf32>
    %909 = vector.broadcast %53 : f32 to vector<8x128xf32>
    %910 = arith.mulf %909, %908 : vector<8x128xf32>
    %911 = arith.addf %900, %910 : vector<8x128xf32>
    %912 = vector.broadcast %128 : f32 to vector<8x128xf32>
    %913 = arith.mulf %912, %908 : vector<8x128xf32>
    %914 = arith.addf %903, %913 : vector<8x128xf32>
    %915 = vector.broadcast %203 : f32 to vector<8x128xf32>
    %916 = arith.mulf %915, %908 : vector<8x128xf32>
    %917 = arith.addf %906, %916 : vector<8x128xf32>
    %918 = vector.extract_strided_slice %907 {offsets = [1, 0], sizes = [8, 128], strides = [1, 1]} : vector<12x128xf32> to vector<8x128xf32>
    %919 = vector.broadcast %58 : f32 to vector<8x128xf32>
    %920 = arith.mulf %919, %918 : vector<8x128xf32>
    %921 = arith.addf %911, %920 : vector<8x128xf32>
    %922 = vector.broadcast %133 : f32 to vector<8x128xf32>
    %923 = arith.mulf %922, %918 : vector<8x128xf32>
    %924 = arith.addf %914, %923 : vector<8x128xf32>
    %925 = vector.broadcast %208 : f32 to vector<8x128xf32>
    %926 = arith.mulf %925, %918 : vector<8x128xf32>
    %927 = arith.addf %917, %926 : vector<8x128xf32>
    %928 = vector.extract_strided_slice %907 {offsets = [2, 0], sizes = [8, 128], strides = [1, 1]} : vector<12x128xf32> to vector<8x128xf32>
    %929 = vector.broadcast %63 : f32 to vector<8x128xf32>
    %930 = arith.mulf %929, %928 : vector<8x128xf32>
    %931 = arith.addf %921, %930 : vector<8x128xf32>
    %932 = vector.broadcast %138 : f32 to vector<8x128xf32>
    %933 = arith.mulf %932, %928 : vector<8x128xf32>
    %934 = arith.addf %924, %933 : vector<8x128xf32>
    %935 = vector.broadcast %213 : f32 to vector<8x128xf32>
    %936 = arith.mulf %935, %928 : vector<8x128xf32>
    %937 = arith.addf %927, %936 : vector<8x128xf32>
    %938 = vector.extract_strided_slice %907 {offsets = [3, 0], sizes = [8, 128], strides = [1, 1]} : vector<12x128xf32> to vector<8x128xf32>
    %939 = vector.broadcast %68 : f32 to vector<8x128xf32>
    %940 = arith.mulf %939, %938 : vector<8x128xf32>
    %941 = arith.addf %931, %940 : vector<8x128xf32>
    %942 = vector.broadcast %143 : f32 to vector<8x128xf32>
    %943 = arith.mulf %942, %938 : vector<8x128xf32>
    %944 = arith.addf %934, %943 : vector<8x128xf32>
    %945 = vector.broadcast %218 : f32 to vector<8x128xf32>
    %946 = arith.mulf %945, %938 : vector<8x128xf32>
    %947 = arith.addf %937, %946 : vector<8x128xf32>
    %948 = vector.extract_strided_slice %907 {offsets = [4, 0], sizes = [8, 128], strides = [1, 1]} : vector<12x128xf32> to vector<8x128xf32>
    %949 = vector.broadcast %73 : f32 to vector<8x128xf32>
    %950 = arith.mulf %949, %948 : vector<8x128xf32>
    %951 = arith.addf %941, %950 : vector<8x128xf32>
    %952 = vector.broadcast %148 : f32 to vector<8x128xf32>
    %953 = arith.mulf %952, %948 : vector<8x128xf32>
    %954 = arith.addf %944, %953 : vector<8x128xf32>
    %955 = vector.broadcast %223 : f32 to vector<8x128xf32>
    %956 = arith.mulf %955, %948 : vector<8x128xf32>
    %957 = arith.addf %947, %956 : vector<8x128xf32>
    %c126_i32_30 = arith.constant 126 : i32
    %958 = tpu.dynamic_rotate %754 by %c126_i32_30 dim 1 : vector<12x128xf32>, i32 -> vector<12x128xf32>
    %959 = vector.extract_strided_slice %958 {offsets = [0, 0], sizes = [8, 128], strides = [1, 1]} : vector<12x128xf32> to vector<8x128xf32>
    %960 = vector.broadcast %54 : f32 to vector<8x128xf32>
    %961 = arith.mulf %960, %959 : vector<8x128xf32>
    %962 = arith.addf %951, %961 : vector<8x128xf32>
    %963 = vector.broadcast %129 : f32 to vector<8x128xf32>
    %964 = arith.mulf %963, %959 : vector<8x128xf32>
    %965 = arith.addf %954, %964 : vector<8x128xf32>
    %966 = vector.broadcast %204 : f32 to vector<8x128xf32>
    %967 = arith.mulf %966, %959 : vector<8x128xf32>
    %968 = arith.addf %957, %967 : vector<8x128xf32>
    %969 = vector.extract_strided_slice %958 {offsets = [1, 0], sizes = [8, 128], strides = [1, 1]} : vector<12x128xf32> to vector<8x128xf32>
    %970 = vector.broadcast %59 : f32 to vector<8x128xf32>
    %971 = arith.mulf %970, %969 : vector<8x128xf32>
    %972 = arith.addf %962, %971 : vector<8x128xf32>
    %973 = vector.broadcast %134 : f32 to vector<8x128xf32>
    %974 = arith.mulf %973, %969 : vector<8x128xf32>
    %975 = arith.addf %965, %974 : vector<8x128xf32>
    %976 = vector.broadcast %209 : f32 to vector<8x128xf32>
    %977 = arith.mulf %976, %969 : vector<8x128xf32>
    %978 = arith.addf %968, %977 : vector<8x128xf32>
    %979 = vector.extract_strided_slice %958 {offsets = [2, 0], sizes = [8, 128], strides = [1, 1]} : vector<12x128xf32> to vector<8x128xf32>
    %980 = vector.broadcast %64 : f32 to vector<8x128xf32>
    %981 = arith.mulf %980, %979 : vector<8x128xf32>
    %982 = arith.addf %972, %981 : vector<8x128xf32>
    %983 = vector.broadcast %139 : f32 to vector<8x128xf32>
    %984 = arith.mulf %983, %979 : vector<8x128xf32>
    %985 = arith.addf %975, %984 : vector<8x128xf32>
    %986 = vector.broadcast %214 : f32 to vector<8x128xf32>
    %987 = arith.mulf %986, %979 : vector<8x128xf32>
    %988 = arith.addf %978, %987 : vector<8x128xf32>
    %989 = vector.extract_strided_slice %958 {offsets = [3, 0], sizes = [8, 128], strides = [1, 1]} : vector<12x128xf32> to vector<8x128xf32>
    %990 = vector.broadcast %69 : f32 to vector<8x128xf32>
    %991 = arith.mulf %990, %989 : vector<8x128xf32>
    %992 = arith.addf %982, %991 : vector<8x128xf32>
    %993 = vector.broadcast %144 : f32 to vector<8x128xf32>
    %994 = arith.mulf %993, %989 : vector<8x128xf32>
    %995 = arith.addf %985, %994 : vector<8x128xf32>
    %996 = vector.broadcast %219 : f32 to vector<8x128xf32>
    %997 = arith.mulf %996, %989 : vector<8x128xf32>
    %998 = arith.addf %988, %997 : vector<8x128xf32>
    %999 = vector.extract_strided_slice %958 {offsets = [4, 0], sizes = [8, 128], strides = [1, 1]} : vector<12x128xf32> to vector<8x128xf32>
    %1000 = vector.broadcast %74 : f32 to vector<8x128xf32>
    %1001 = arith.mulf %1000, %999 : vector<8x128xf32>
    %1002 = arith.addf %992, %1001 : vector<8x128xf32>
    %1003 = vector.broadcast %149 : f32 to vector<8x128xf32>
    %1004 = arith.mulf %1003, %999 : vector<8x128xf32>
    %1005 = arith.addf %995, %1004 : vector<8x128xf32>
    %1006 = vector.broadcast %224 : f32 to vector<8x128xf32>
    %1007 = arith.mulf %1006, %999 : vector<8x128xf32>
    %1008 = arith.addf %998, %1007 : vector<8x128xf32>
    %1009 = vector.broadcast %225 : f32 to vector<8x128xf32>
    %1010 = arith.addf %1002, %1009 : vector<8x128xf32>
    %c0_31 = arith.constant 0 : index
    %c0_32 = arith.constant 0 : index
    %c0_33 = arith.constant 0 : index
    %c0_34 = arith.constant 0 : index
    %1011 = vector.load %arg7[%c0_31, %c0_32, %c0_33, %c0_34] : memref<1x3x16x128xf32, #tpu.memory_space<vmem>>, vector<1x1x8x128xf32>
    %1012 = vector.shape_cast %1011 : vector<1x1x8x128xf32> to vector<8x128xf32>
    %1013 = vector.shape_cast %1010 : vector<8x128xf32> to vector<1x1x8x128xf32>
    tpu.vector_store %arg7[%c0_31, %c0_32, %c0_33, %c0_34], %1013 {strides = array<i32>} : memref<1x3x16x128xf32, #tpu.memory_space<vmem>>, vector<1x1x8x128xf32>,
    %1014 = vector.broadcast %226 : f32 to vector<8x128xf32>
    %1015 = arith.addf %1005, %1014 : vector<8x128xf32>
    %c0_35 = arith.constant 0 : index
    %c1_36 = arith.constant 1 : index
    %c0_37 = arith.constant 0 : index
    %c0_38 = arith.constant 0 : index
    %1016 = vector.load %arg7[%c0_35, %c1_36, %c0_37, %c0_38] : memref<1x3x16x128xf32, #tpu.memory_space<vmem>>, vector<1x1x8x128xf32>
    %1017 = vector.shape_cast %1016 : vector<1x1x8x128xf32> to vector<8x128xf32>
    %1018 = vector.shape_cast %1015 : vector<8x128xf32> to vector<1x1x8x128xf32>
    tpu.vector_store %arg7[%c0_35, %c1_36, %c0_37, %c0_38], %1018 {strides = array<i32>} : memref<1x3x16x128xf32, #tpu.memory_space<vmem>>, vector<1x1x8x128xf32>,
    %1019 = vector.broadcast %227 : f32 to vector<8x128xf32>
    %1020 = arith.addf %1008, %1019 : vector<8x128xf32>
    %c0_39 = arith.constant 0 : index
    %c2_40 = arith.constant 2 : index
    %c0_41 = arith.constant 0 : index
    %c0_42 = arith.constant 0 : index
    %1021 = vector.load %arg7[%c0_39, %c2_40, %c0_41, %c0_42] : memref<1x3x16x128xf32, #tpu.memory_space<vmem>>, vector<1x1x8x128xf32>
    %1022 = vector.shape_cast %1021 : vector<1x1x8x128xf32> to vector<8x128xf32>
    %1023 = vector.shape_cast %1020 : vector<8x128xf32> to vector<1x1x8x128xf32>
    tpu.vector_store %arg7[%c0_39, %c2_40, %c0_41, %c0_42], %1023 {strides = array<i32>} : memref<1x3x16x128xf32, #tpu.memory_space<vmem>>, vector<1x1x8x128xf32>,
    %c0_43 = arith.constant 0 : index
    %c0_44 = arith.constant 0 : index
    %c6_45 = arith.constant 6 : index
    %c0_46 = arith.constant 0 : index
    %1024 = vector.load %arg2[%c0_43, %c0_44, %c6_45, %c0_46] : memref<1x3x16x128xf32, #tpu.memory_space<vmem>>, vector<1x1x10x128xf32>
    %1025 = vector.shape_cast %1024 : vector<1x1x10x128xf32> to vector<10x128xf32>
    %1026 = vector.extract_strided_slice %234 {offsets = [0, 0, 0], sizes = [1, 2, 128], strides = [1, 1, 1]} : vector<3x2x128xf32> to vector<1x2x128xf32>
    %1027 = vector.shape_cast %1026 : vector<1x2x128xf32> to vector<2x128xf32>
    %1028 = tpu.concatenate %1025, %1027 in 0 : vector<10x128xf32>, vector<2x128xf32> -> vector<12x128xf32>
    %c2_i32_47 = arith.constant 2 : i32
    %1029 = tpu.dynamic_rotate %1028 by %c2_i32_47 dim 1 : vector<12x128xf32>, i32 -> vector<12x128xf32>
    %1030 = vector.extract_strided_slice %1029 {offsets = [0, 0], sizes = [8, 128], strides = [1, 1]} : vector<12x128xf32> to vector<8x128xf32>
    %1031 = vector.broadcast %0 : f32 to vector<8x128xf32>
    %1032 = arith.mulf %1031, %1030 : vector<8x128xf32>
    %1033 = vector.broadcast %75 : f32 to vector<8x128xf32>
    %1034 = arith.mulf %1033, %1030 : vector<8x128xf32>
    %1035 = vector.broadcast %150 : f32 to vector<8x128xf32>
    %1036 = arith.mulf %1035, %1030 : vector<8x128xf32>
    %1037 = vector.extract_strided_slice %1029 {offsets = [1, 0], sizes = [8, 128], strides = [1, 1]} : vector<12x128xf32> to vector<8x128xf32>
    %1038 = vector.broadcast %5 : f32 to vector<8x128xf32>
    %1039 = arith.mulf %1038, %1037 : vector<8x128xf32>
    %1040 = arith.addf %1032, %1039 : vector<8x128xf32>
    %1041 = vector.broadcast %80 : f32 to vector<8x128xf32>
    %1042 = arith.mulf %1041, %1037 : vector<8x128xf32>
    %1043 = arith.addf %1034, %1042 : vector<8x128xf32>
    %1044 = vector.broadcast %155 : f32 to vector<8x128xf32>
    %1045 = arith.mulf %1044, %1037 : vector<8x128xf32>
    %1046 = arith.addf %1036, %1045 : vector<8x128xf32>
    %1047 = vector.extract_strided_slice %1029 {offsets = [2, 0], sizes = [8, 128], strides = [1, 1]} : vector<12x128xf32> to vector<8x128xf32>
    %1048 = vector.broadcast %10 : f32 to vector<8x128xf32>
    %1049 = arith.mulf %1048, %1047 : vector<8x128xf32>
    %1050 = arith.addf %1040, %1049 : vector<8x128xf32>
    %1051 = vector.broadcast %85 : f32 to vector<8x128xf32>
    %1052 = arith.mulf %1051, %1047 : vector<8x128xf32>
    %1053 = arith.addf %1043, %1052 : vector<8x128xf32>
    %1054 = vector.broadcast %160 : f32 to vector<8x128xf32>
    %1055 = arith.mulf %1054, %1047 : vector<8x128xf32>
    %1056 = arith.addf %1046, %1055 : vector<8x128xf32>
    %1057 = vector.extract_strided_slice %1029 {offsets = [3, 0], sizes = [8, 128], strides = [1, 1]} : vector<12x128xf32> to vector<8x128xf32>
    %1058 = vector.broadcast %15 : f32 to vector<8x128xf32>
    %1059 = arith.mulf %1058, %1057 : vector<8x128xf32>
    %1060 = arith.addf %1050, %1059 : vector<8x128xf32>
    %1061 = vector.broadcast %90 : f32 to vector<8x128xf32>
    %1062 = arith.mulf %1061, %1057 : vector<8x128xf32>
    %1063 = arith.addf %1053, %1062 : vector<8x128xf32>
    %1064 = vector.broadcast %165 : f32 to vector<8x128xf32>
    %1065 = arith.mulf %1064, %1057 : vector<8x128xf32>
    %1066 = arith.addf %1056, %1065 : vector<8x128xf32>
    %1067 = vector.extract_strided_slice %1029 {offsets = [4, 0], sizes = [8, 128], strides = [1, 1]} : vector<12x128xf32> to vector<8x128xf32>
    %1068 = vector.broadcast %20 : f32 to vector<8x128xf32>
    %1069 = arith.mulf %1068, %1067 : vector<8x128xf32>
    %1070 = arith.addf %1060, %1069 : vector<8x128xf32>
    %1071 = vector.broadcast %95 : f32 to vector<8x128xf32>
    %1072 = arith.mulf %1071, %1067 : vector<8x128xf32>
    %1073 = arith.addf %1063, %1072 : vector<8x128xf32>
    %1074 = vector.broadcast %170 : f32 to vector<8x128xf32>
    %1075 = arith.mulf %1074, %1067 : vector<8x128xf32>
    %1076 = arith.addf %1066, %1075 : vector<8x128xf32>
    %c1_i32_48 = arith.constant 1 : i32
    %1077 = tpu.dynamic_rotate %1028 by %c1_i32_48 dim 1 : vector<12x128xf32>, i32 -> vector<12x128xf32>
    %1078 = vector.extract_strided_slice %1077 {offsets = [0, 0], sizes = [8, 128], strides = [1, 1]} : vector<12x128xf32> to vector<8x128xf32>
    %1079 = vector.broadcast %1 : f32 to vector<8x128xf32>
    %1080 = arith.mulf %1079, %1078 : vector<8x128xf32>
    %1081 = arith.addf %1070, %1080 : vector<8x128xf32>
    %1082 = vector.broadcast %76 : f32 to vector<8x128xf32>
    %1083 = arith.mulf %1082, %1078 : vector<8x128xf32>
    %1084 = arith.addf %1073, %1083 : vector<8x128xf32>
    %1085 = vector.broadcast %151 : f32 to vector<8x128xf32>
    %1086 = arith.mulf %1085, %1078 : vector<8x128xf32>
    %1087 = arith.addf %1076, %1086 : vector<8x128xf32>
    %1088 = vector.extract_strided_slice %1077 {offsets = [1, 0], sizes = [8, 128], strides = [1, 1]} : vector<12x128xf32> to vector<8x128xf32>
    %1089 = vector.broadcast %6 : f32 to vector<8x128xf32>
    %1090 = arith.mulf %1089, %1088 : vector<8x128xf32>
    %1091 = arith.addf %1081, %1090 : vector<8x128xf32>
    %1092 = vector.broadcast %81 : f32 to vector<8x128xf32>
    %1093 = arith.mulf %1092, %1088 : vector<8x128xf32>
    %1094 = arith.addf %1084, %1093 : vector<8x128xf32>
    %1095 = vector.broadcast %156 : f32 to vector<8x128xf32>
    %1096 = arith.mulf %1095, %1088 : vector<8x128xf32>
    %1097 = arith.addf %1087, %1096 : vector<8x128xf32>
    %1098 = vector.extract_strided_slice %1077 {offsets = [2, 0], sizes = [8, 128], strides = [1, 1]} : vector<12x128xf32> to vector<8x128xf32>
    %1099 = vector.broadcast %11 : f32 to vector<8x128xf32>
    %1100 = arith.mulf %1099, %1098 : vector<8x128xf32>
    %1101 = arith.addf %1091, %1100 : vector<8x128xf32>
    %1102 = vector.broadcast %86 : f32 to vector<8x128xf32>
    %1103 = arith.mulf %1102, %1098 : vector<8x128xf32>
    %1104 = arith.addf %1094, %1103 : vector<8x128xf32>
    %1105 = vector.broadcast %161 : f32 to vector<8x128xf32>
    %1106 = arith.mulf %1105, %1098 : vector<8x128xf32>
    %1107 = arith.addf %1097, %1106 : vector<8x128xf32>
    %1108 = vector.extract_strided_slice %1077 {offsets = [3, 0], sizes = [8, 128], strides = [1, 1]} : vector<12x128xf32> to vector<8x128xf32>
    %1109 = vector.broadcast %16 : f32 to vector<8x128xf32>
    %1110 = arith.mulf %1109, %1108 : vector<8x128xf32>
    %1111 = arith.addf %1101, %1110 : vector<8x128xf32>
    %1112 = vector.broadcast %91 : f32 to vector<8x128xf32>
    %1113 = arith.mulf %1112, %1108 : vector<8x128xf32>
    %1114 = arith.addf %1104, %1113 : vector<8x128xf32>
    %1115 = vector.broadcast %166 : f32 to vector<8x128xf32>
    %1116 = arith.mulf %1115, %1108 : vector<8x128xf32>
    %1117 = arith.addf %1107, %1116 : vector<8x128xf32>
    %1118 = vector.extract_strided_slice %1077 {offsets = [4, 0], sizes = [8, 128], strides = [1, 1]} : vector<12x128xf32> to vector<8x128xf32>
    %1119 = vector.broadcast %21 : f32 to vector<8x128xf32>
    %1120 = arith.mulf %1119, %1118 : vector<8x128xf32>
    %1121 = arith.addf %1111, %1120 : vector<8x128xf32>
    %1122 = vector.broadcast %96 : f32 to vector<8x128xf32>
    %1123 = arith.mulf %1122, %1118 : vector<8x128xf32>
    %1124 = arith.addf %1114, %1123 : vector<8x128xf32>
    %1125 = vector.broadcast %171 : f32 to vector<8x128xf32>
    %1126 = arith.mulf %1125, %1118 : vector<8x128xf32>
    %1127 = arith.addf %1117, %1126 : vector<8x128xf32>
    %1128 = vector.extract_strided_slice %1028 {offsets = [0, 0], sizes = [8, 128], strides = [1, 1]} : vector<12x128xf32> to vector<8x128xf32>
    %1129 = vector.broadcast %2 : f32 to vector<8x128xf32>
    %1130 = arith.mulf %1129, %1128 : vector<8x128xf32>
    %1131 = arith.addf %1121, %1130 : vector<8x128xf32>
    %1132 = vector.broadcast %77 : f32 to vector<8x128xf32>
    %1133 = arith.mulf %1132, %1128 : vector<8x128xf32>
    %1134 = arith.addf %1124, %1133 : vector<8x128xf32>
    %1135 = vector.broadcast %152 : f32 to vector<8x128xf32>
    %1136 = arith.mulf %1135, %1128 : vector<8x128xf32>
    %1137 = arith.addf %1127, %1136 : vector<8x128xf32>
    %1138 = vector.extract_strided_slice %1028 {offsets = [1, 0], sizes = [8, 128], strides = [1, 1]} : vector<12x128xf32> to vector<8x128xf32>
    %1139 = vector.broadcast %7 : f32 to vector<8x128xf32>
    %1140 = arith.mulf %1139, %1138 : vector<8x128xf32>
    %1141 = arith.addf %1131, %1140 : vector<8x128xf32>
    %1142 = vector.broadcast %82 : f32 to vector<8x128xf32>
    %1143 = arith.mulf %1142, %1138 : vector<8x128xf32>
    %1144 = arith.addf %1134, %1143 : vector<8x128xf32>
    %1145 = vector.broadcast %157 : f32 to vector<8x128xf32>
    %1146 = arith.mulf %1145, %1138 : vector<8x128xf32>
    %1147 = arith.addf %1137, %1146 : vector<8x128xf32>
    %1148 = vector.extract_strided_slice %1028 {offsets = [2, 0], sizes = [8, 128], strides = [1, 1]} : vector<12x128xf32> to vector<8x128xf32>
    %1149 = vector.broadcast %12 : f32 to vector<8x128xf32>
    %1150 = arith.mulf %1149, %1148 : vector<8x128xf32>
    %1151 = arith.addf %1141, %1150 : vector<8x128xf32>
    %1152 = vector.broadcast %87 : f32 to vector<8x128xf32>
    %1153 = arith.mulf %1152, %1148 : vector<8x128xf32>
    %1154 = arith.addf %1144, %1153 : vector<8x128xf32>
    %1155 = vector.broadcast %162 : f32 to vector<8x128xf32>
    %1156 = arith.mulf %1155, %1148 : vector<8x128xf32>
    %1157 = arith.addf %1147, %1156 : vector<8x128xf32>
    %1158 = vector.extract_strided_slice %1028 {offsets = [3, 0], sizes = [8, 128], strides = [1, 1]} : vector<12x128xf32> to vector<8x128xf32>
    %1159 = vector.broadcast %17 : f32 to vector<8x128xf32>
    %1160 = arith.mulf %1159, %1158 : vector<8x128xf32>
    %1161 = arith.addf %1151, %1160 : vector<8x128xf32>
    %1162 = vector.broadcast %92 : f32 to vector<8x128xf32>
    %1163 = arith.mulf %1162, %1158 : vector<8x128xf32>
    %1164 = arith.addf %1154, %1163 : vector<8x128xf32>
    %1165 = vector.broadcast %167 : f32 to vector<8x128xf32>
    %1166 = arith.mulf %1165, %1158 : vector<8x128xf32>
    %1167 = arith.addf %1157, %1166 : vector<8x128xf32>
    %1168 = vector.extract_strided_slice %1028 {offsets = [4, 0], sizes = [8, 128], strides = [1, 1]} : vector<12x128xf32> to vector<8x128xf32>
    %1169 = vector.broadcast %22 : f32 to vector<8x128xf32>
    %1170 = arith.mulf %1169, %1168 : vector<8x128xf32>
    %1171 = arith.addf %1161, %1170 : vector<8x128xf32>
    %1172 = vector.broadcast %97 : f32 to vector<8x128xf32>
    %1173 = arith.mulf %1172, %1168 : vector<8x128xf32>
    %1174 = arith.addf %1164, %1173 : vector<8x128xf32>
    %1175 = vector.broadcast %172 : f32 to vector<8x128xf32>
    %1176 = arith.mulf %1175, %1168 : vector<8x128xf32>
    %1177 = arith.addf %1167, %1176 : vector<8x128xf32>
    %c127_i32_49 = arith.constant 127 : i32
    %1178 = tpu.dynamic_rotate %1028 by %c127_i32_49 dim 1 : vector<12x128xf32>, i32 -> vector<12x128xf32>
    %1179 = vector.extract_strided_slice %1178 {offsets = [0, 0], sizes = [8, 128], strides = [1, 1]} : vector<12x128xf32> to vector<8x128xf32>
    %1180 = vector.broadcast %3 : f32 to vector<8x128xf32>
    %1181 = arith.mulf %1180, %1179 : vector<8x128xf32>
    %1182 = arith.addf %1171, %1181 : vector<8x128xf32>
    %1183 = vector.broadcast %78 : f32 to vector<8x128xf32>
    %1184 = arith.mulf %1183, %1179 : vector<8x128xf32>
    %1185 = arith.addf %1174, %1184 : vector<8x128xf32>
    %1186 = vector.broadcast %153 : f32 to vector<8x128xf32>
    %1187 = arith.mulf %1186, %1179 : vector<8x128xf32>
    %1188 = arith.addf %1177, %1187 : vector<8x128xf32>
    %1189 = vector.extract_strided_slice %1178 {offsets = [1, 0], sizes = [8, 128], strides = [1, 1]} : vector<12x128xf32> to vector<8x128xf32>
    %1190 = vector.broadcast %8 : f32 to vector<8x128xf32>
    %1191 = arith.mulf %1190, %1189 : vector<8x128xf32>
    %1192 = arith.addf %1182, %1191 : vector<8x128xf32>
    %1193 = vector.broadcast %83 : f32 to vector<8x128xf32>
    %1194 = arith.mulf %1193, %1189 : vector<8x128xf32>
    %1195 = arith.addf %1185, %1194 : vector<8x128xf32>
    %1196 = vector.broadcast %158 : f32 to vector<8x128xf32>
    %1197 = arith.mulf %1196, %1189 : vector<8x128xf32>
    %1198 = arith.addf %1188, %1197 : vector<8x128xf32>
    %1199 = vector.extract_strided_slice %1178 {offsets = [2, 0], sizes = [8, 128], strides = [1, 1]} : vector<12x128xf32> to vector<8x128xf32>
    %1200 = vector.broadcast %13 : f32 to vector<8x128xf32>
    %1201 = arith.mulf %1200, %1199 : vector<8x128xf32>
    %1202 = arith.addf %1192, %1201 : vector<8x128xf32>
    %1203 = vector.broadcast %88 : f32 to vector<8x128xf32>
    %1204 = arith.mulf %1203, %1199 : vector<8x128xf32>
    %1205 = arith.addf %1195, %1204 : vector<8x128xf32>
    %1206 = vector.broadcast %163 : f32 to vector<8x128xf32>
    %1207 = arith.mulf %1206, %1199 : vector<8x128xf32>
    %1208 = arith.addf %1198, %1207 : vector<8x128xf32>
    %1209 = vector.extract_strided_slice %1178 {offsets = [3, 0], sizes = [8, 128], strides = [1, 1]} : vector<12x128xf32> to vector<8x128xf32>
    %1210 = vector.broadcast %18 : f32 to vector<8x128xf32>
    %1211 = arith.mulf %1210, %1209 : vector<8x128xf32>
    %1212 = arith.addf %1202, %1211 : vector<8x128xf32>
    %1213 = vector.broadcast %93 : f32 to vector<8x128xf32>
    %1214 = arith.mulf %1213, %1209 : vector<8x128xf32>
    %1215 = arith.addf %1205, %1214 : vector<8x128xf32>
    %1216 = vector.broadcast %168 : f32 to vector<8x128xf32>
    %1217 = arith.mulf %1216, %1209 : vector<8x128xf32>
    %1218 = arith.addf %1208, %1217 : vector<8x128xf32>
    %1219 = vector.extract_strided_slice %1178 {offsets = [4, 0], sizes = [8, 128], strides = [1, 1]} : vector<12x128xf32> to vector<8x128xf32>
    %1220 = vector.broadcast %23 : f32 to vector<8x128xf32>
    %1221 = arith.mulf %1220, %1219 : vector<8x128xf32>
    %1222 = arith.addf %1212, %1221 : vector<8x128xf32>
    %1223 = vector.broadcast %98 : f32 to vector<8x128xf32>
    %1224 = arith.mulf %1223, %1219 : vector<8x128xf32>
    %1225 = arith.addf %1215, %1224 : vector<8x128xf32>
    %1226 = vector.broadcast %173 : f32 to vector<8x128xf32>
    %1227 = arith.mulf %1226, %1219 : vector<8x128xf32>
    %1228 = arith.addf %1218, %1227 : vector<8x128xf32>
    %c126_i32_50 = arith.constant 126 : i32
    %1229 = tpu.dynamic_rotate %1028 by %c126_i32_50 dim 1 : vector<12x128xf32>, i32 -> vector<12x128xf32>
    %1230 = vector.extract_strided_slice %1229 {offsets = [0, 0], sizes = [8, 128], strides = [1, 1]} : vector<12x128xf32> to vector<8x128xf32>
    %1231 = vector.broadcast %4 : f32 to vector<8x128xf32>
    %1232 = arith.mulf %1231, %1230 : vector<8x128xf32>
    %1233 = arith.addf %1222, %1232 : vector<8x128xf32>
    %1234 = vector.broadcast %79 : f32 to vector<8x128xf32>
    %1235 = arith.mulf %1234, %1230 : vector<8x128xf32>
    %1236 = arith.addf %1225, %1235 : vector<8x128xf32>
    %1237 = vector.broadcast %154 : f32 to vector<8x128xf32>
    %1238 = arith.mulf %1237, %1230 : vector<8x128xf32>
    %1239 = arith.addf %1228, %1238 : vector<8x128xf32>
    %1240 = vector.extract_strided_slice %1229 {offsets = [1, 0], sizes = [8, 128], strides = [1, 1]} : vector<12x128xf32> to vector<8x128xf32>
    %1241 = vector.broadcast %9 : f32 to vector<8x128xf32>
    %1242 = arith.mulf %1241, %1240 : vector<8x128xf32>
    %1243 = arith.addf %1233, %1242 : vector<8x128xf32>
    %1244 = vector.broadcast %84 : f32 to vector<8x128xf32>
    %1245 = arith.mulf %1244, %1240 : vector<8x128xf32>
    %1246 = arith.addf %1236, %1245 : vector<8x128xf32>
    %1247 = vector.broadcast %159 : f32 to vector<8x128xf32>
    %1248 = arith.mulf %1247, %1240 : vector<8x128xf32>
    %1249 = arith.addf %1239, %1248 : vector<8x128xf32>
    %1250 = vector.extract_strided_slice %1229 {offsets = [2, 0], sizes = [8, 128], strides = [1, 1]} : vector<12x128xf32> to vector<8x128xf32>
    %1251 = vector.broadcast %14 : f32 to vector<8x128xf32>
    %1252 = arith.mulf %1251, %1250 : vector<8x128xf32>
    %1253 = arith.addf %1243, %1252 : vector<8x128xf32>
    %1254 = vector.broadcast %89 : f32 to vector<8x128xf32>
    %1255 = arith.mulf %1254, %1250 : vector<8x128xf32>
    %1256 = arith.addf %1246, %1255 : vector<8x128xf32>
    %1257 = vector.broadcast %164 : f32 to vector<8x128xf32>
    %1258 = arith.mulf %1257, %1250 : vector<8x128xf32>
    %1259 = arith.addf %1249, %1258 : vector<8x128xf32>
    %1260 = vector.extract_strided_slice %1229 {offsets = [3, 0], sizes = [8, 128], strides = [1, 1]} : vector<12x128xf32> to vector<8x128xf32>
    %1261 = vector.broadcast %19 : f32 to vector<8x128xf32>
    %1262 = arith.mulf %1261, %1260 : vector<8x128xf32>
    %1263 = arith.addf %1253, %1262 : vector<8x128xf32>
    %1264 = vector.broadcast %94 : f32 to vector<8x128xf32>
    %1265 = arith.mulf %1264, %1260 : vector<8x128xf32>
    %1266 = arith.addf %1256, %1265 : vector<8x128xf32>
    %1267 = vector.broadcast %169 : f32 to vector<8x128xf32>
    %1268 = arith.mulf %1267, %1260 : vector<8x128xf32>
    %1269 = arith.addf %1259, %1268 : vector<8x128xf32>
    %1270 = vector.extract_strided_slice %1229 {offsets = [4, 0], sizes = [8, 128], strides = [1, 1]} : vector<12x128xf32> to vector<8x128xf32>
    %1271 = vector.broadcast %24 : f32 to vector<8x128xf32>
    %1272 = arith.mulf %1271, %1270 : vector<8x128xf32>
    %1273 = arith.addf %1263, %1272 : vector<8x128xf32>
    %1274 = vector.broadcast %99 : f32 to vector<8x128xf32>
    %1275 = arith.mulf %1274, %1270 : vector<8x128xf32>
    %1276 = arith.addf %1266, %1275 : vector<8x128xf32>
    %1277 = vector.broadcast %174 : f32 to vector<8x128xf32>
    %1278 = arith.mulf %1277, %1270 : vector<8x128xf32>
    %1279 = arith.addf %1269, %1278 : vector<8x128xf32>
    %c0_51 = arith.constant 0 : index
    %c1_52 = arith.constant 1 : index
    %c6_53 = arith.constant 6 : index
    %c0_54 = arith.constant 0 : index
    %1280 = vector.load %arg2[%c0_51, %c1_52, %c6_53, %c0_54] : memref<1x3x16x128xf32, #tpu.memory_space<vmem>>, vector<1x1x10x128xf32>
    %1281 = vector.shape_cast %1280 : vector<1x1x10x128xf32> to vector<10x128xf32>
    %1282 = vector.extract_strided_slice %234 {offsets = [1, 0, 0], sizes = [1, 2, 128], strides = [1, 1, 1]} : vector<3x2x128xf32> to vector<1x2x128xf32>
    %1283 = vector.shape_cast %1282 : vector<1x2x128xf32> to vector<2x128xf32>
    %1284 = tpu.concatenate %1281, %1283 in 0 : vector<10x128xf32>, vector<2x128xf32> -> vector<12x128xf32>
    %c2_i32_55 = arith.constant 2 : i32
    %1285 = tpu.dynamic_rotate %1284 by %c2_i32_55 dim 1 : vector<12x128xf32>, i32 -> vector<12x128xf32>
    %1286 = vector.extract_strided_slice %1285 {offsets = [0, 0], sizes = [8, 128], strides = [1, 1]} : vector<12x128xf32> to vector<8x128xf32>
    %1287 = vector.broadcast %25 : f32 to vector<8x128xf32>
    %1288 = arith.mulf %1287, %1286 : vector<8x128xf32>
    %1289 = arith.addf %1273, %1288 : vector<8x128xf32>
    %1290 = vector.broadcast %100 : f32 to vector<8x128xf32>
    %1291 = arith.mulf %1290, %1286 : vector<8x128xf32>
    %1292 = arith.addf %1276, %1291 : vector<8x128xf32>
    %1293 = vector.broadcast %175 : f32 to vector<8x128xf32>
    %1294 = arith.mulf %1293, %1286 : vector<8x128xf32>
    %1295 = arith.addf %1279, %1294 : vector<8x128xf32>
    %1296 = vector.extract_strided_slice %1285 {offsets = [1, 0], sizes = [8, 128], strides = [1, 1]} : vector<12x128xf32> to vector<8x128xf32>
    %1297 = vector.broadcast %30 : f32 to vector<8x128xf32>
    %1298 = arith.mulf %1297, %1296 : vector<8x128xf32>
    %1299 = arith.addf %1289, %1298 : vector<8x128xf32>
    %1300 = vector.broadcast %105 : f32 to vector<8x128xf32>
    %1301 = arith.mulf %1300, %1296 : vector<8x128xf32>
    %1302 = arith.addf %1292, %1301 : vector<8x128xf32>
    %1303 = vector.broadcast %180 : f32 to vector<8x128xf32>
    %1304 = arith.mulf %1303, %1296 : vector<8x128xf32>
    %1305 = arith.addf %1295, %1304 : vector<8x128xf32>
    %1306 = vector.extract_strided_slice %1285 {offsets = [2, 0], sizes = [8, 128], strides = [1, 1]} : vector<12x128xf32> to vector<8x128xf32>
    %1307 = vector.broadcast %35 : f32 to vector<8x128xf32>
    %1308 = arith.mulf %1307, %1306 : vector<8x128xf32>
    %1309 = arith.addf %1299, %1308 : vector<8x128xf32>
    %1310 = vector.broadcast %110 : f32 to vector<8x128xf32>
    %1311 = arith.mulf %1310, %1306 : vector<8x128xf32>
    %1312 = arith.addf %1302, %1311 : vector<8x128xf32>
    %1313 = vector.broadcast %185 : f32 to vector<8x128xf32>
    %1314 = arith.mulf %1313, %1306 : vector<8x128xf32>
    %1315 = arith.addf %1305, %1314 : vector<8x128xf32>
    %1316 = vector.extract_strided_slice %1285 {offsets = [3, 0], sizes = [8, 128], strides = [1, 1]} : vector<12x128xf32> to vector<8x128xf32>
    %1317 = vector.broadcast %40 : f32 to vector<8x128xf32>
    %1318 = arith.mulf %1317, %1316 : vector<8x128xf32>
    %1319 = arith.addf %1309, %1318 : vector<8x128xf32>
    %1320 = vector.broadcast %115 : f32 to vector<8x128xf32>
    %1321 = arith.mulf %1320, %1316 : vector<8x128xf32>
    %1322 = arith.addf %1312, %1321 : vector<8x128xf32>
    %1323 = vector.broadcast %190 : f32 to vector<8x128xf32>
    %1324 = arith.mulf %1323, %1316 : vector<8x128xf32>
    %1325 = arith.addf %1315, %1324 : vector<8x128xf32>
    %1326 = vector.extract_strided_slice %1285 {offsets = [4, 0], sizes = [8, 128], strides = [1, 1]} : vector<12x128xf32> to vector<8x128xf32>
    %1327 = vector.broadcast %45 : f32 to vector<8x128xf32>
    %1328 = arith.mulf %1327, %1326 : vector<8x128xf32>
    %1329 = arith.addf %1319, %1328 : vector<8x128xf32>
    %1330 = vector.broadcast %120 : f32 to vector<8x128xf32>
    %1331 = arith.mulf %1330, %1326 : vector<8x128xf32>
    %1332 = arith.addf %1322, %1331 : vector<8x128xf32>
    %1333 = vector.broadcast %195 : f32 to vector<8x128xf32>
    %1334 = arith.mulf %1333, %1326 : vector<8x128xf32>
    %1335 = arith.addf %1325, %1334 : vector<8x128xf32>
    %c1_i32_56 = arith.constant 1 : i32
    %1336 = tpu.dynamic_rotate %1284 by %c1_i32_56 dim 1 : vector<12x128xf32>, i32 -> vector<12x128xf32>
    %1337 = vector.extract_strided_slice %1336 {offsets = [0, 0], sizes = [8, 128], strides = [1, 1]} : vector<12x128xf32> to vector<8x128xf32>
    %1338 = vector.broadcast %26 : f32 to vector<8x128xf32>
    %1339 = arith.mulf %1338, %1337 : vector<8x128xf32>
    %1340 = arith.addf %1329, %1339 : vector<8x128xf32>
    %1341 = vector.broadcast %101 : f32 to vector<8x128xf32>
    %1342 = arith.mulf %1341, %1337 : vector<8x128xf32>
    %1343 = arith.addf %1332, %1342 : vector<8x128xf32>
    %1344 = vector.broadcast %176 : f32 to vector<8x128xf32>
    %1345 = arith.mulf %1344, %1337 : vector<8x128xf32>
    %1346 = arith.addf %1335, %1345 : vector<8x128xf32>
    %1347 = vector.extract_strided_slice %1336 {offsets = [1, 0], sizes = [8, 128], strides = [1, 1]} : vector<12x128xf32> to vector<8x128xf32>
    %1348 = vector.broadcast %31 : f32 to vector<8x128xf32>
    %1349 = arith.mulf %1348, %1347 : vector<8x128xf32>
    %1350 = arith.addf %1340, %1349 : vector<8x128xf32>
    %1351 = vector.broadcast %106 : f32 to vector<8x128xf32>
    %1352 = arith.mulf %1351, %1347 : vector<8x128xf32>
    %1353 = arith.addf %1343, %1352 : vector<8x128xf32>
    %1354 = vector.broadcast %181 : f32 to vector<8x128xf32>
    %1355 = arith.mulf %1354, %1347 : vector<8x128xf32>
    %1356 = arith.addf %1346, %1355 : vector<8x128xf32>
    %1357 = vector.extract_strided_slice %1336 {offsets = [2, 0], sizes = [8, 128], strides = [1, 1]} : vector<12x128xf32> to vector<8x128xf32>
    %1358 = vector.broadcast %36 : f32 to vector<8x128xf32>
    %1359 = arith.mulf %1358, %1357 : vector<8x128xf32>
    %1360 = arith.addf %1350, %1359 : vector<8x128xf32>
    %1361 = vector.broadcast %111 : f32 to vector<8x128xf32>
    %1362 = arith.mulf %1361, %1357 : vector<8x128xf32>
    %1363 = arith.addf %1353, %1362 : vector<8x128xf32>
    %1364 = vector.broadcast %186 : f32 to vector<8x128xf32>
    %1365 = arith.mulf %1364, %1357 : vector<8x128xf32>
    %1366 = arith.addf %1356, %1365 : vector<8x128xf32>
    %1367 = vector.extract_strided_slice %1336 {offsets = [3, 0], sizes = [8, 128], strides = [1, 1]} : vector<12x128xf32> to vector<8x128xf32>
    %1368 = vector.broadcast %41 : f32 to vector<8x128xf32>
    %1369 = arith.mulf %1368, %1367 : vector<8x128xf32>
    %1370 = arith.addf %1360, %1369 : vector<8x128xf32>
    %1371 = vector.broadcast %116 : f32 to vector<8x128xf32>
    %1372 = arith.mulf %1371, %1367 : vector<8x128xf32>
    %1373 = arith.addf %1363, %1372 : vector<8x128xf32>
    %1374 = vector.broadcast %191 : f32 to vector<8x128xf32>
    %1375 = arith.mulf %1374, %1367 : vector<8x128xf32>
    %1376 = arith.addf %1366, %1375 : vector<8x128xf32>
    %1377 = vector.extract_strided_slice %1336 {offsets = [4, 0], sizes = [8, 128], strides = [1, 1]} : vector<12x128xf32> to vector<8x128xf32>
    %1378 = vector.broadcast %46 : f32 to vector<8x128xf32>
    %1379 = arith.mulf %1378, %1377 : vector<8x128xf32>
    %1380 = arith.addf %1370, %1379 : vector<8x128xf32>
    %1381 = vector.broadcast %121 : f32 to vector<8x128xf32>
    %1382 = arith.mulf %1381, %1377 : vector<8x128xf32>
    %1383 = arith.addf %1373, %1382 : vector<8x128xf32>
    %1384 = vector.broadcast %196 : f32 to vector<8x128xf32>
    %1385 = arith.mulf %1384, %1377 : vector<8x128xf32>
    %1386 = arith.addf %1376, %1385 : vector<8x128xf32>
    %1387 = vector.extract_strided_slice %1284 {offsets = [0, 0], sizes = [8, 128], strides = [1, 1]} : vector<12x128xf32> to vector<8x128xf32>
    %1388 = vector.broadcast %27 : f32 to vector<8x128xf32>
    %1389 = arith.mulf %1388, %1387 : vector<8x128xf32>
    %1390 = arith.addf %1380, %1389 : vector<8x128xf32>
    %1391 = vector.broadcast %102 : f32 to vector<8x128xf32>
    %1392 = arith.mulf %1391, %1387 : vector<8x128xf32>
    %1393 = arith.addf %1383, %1392 : vector<8x128xf32>
    %1394 = vector.broadcast %177 : f32 to vector<8x128xf32>
    %1395 = arith.mulf %1394, %1387 : vector<8x128xf32>
    %1396 = arith.addf %1386, %1395 : vector<8x128xf32>
    %1397 = vector.extract_strided_slice %1284 {offsets = [1, 0], sizes = [8, 128], strides = [1, 1]} : vector<12x128xf32> to vector<8x128xf32>
    %1398 = vector.broadcast %32 : f32 to vector<8x128xf32>
    %1399 = arith.mulf %1398, %1397 : vector<8x128xf32>
    %1400 = arith.addf %1390, %1399 : vector<8x128xf32>
    %1401 = vector.broadcast %107 : f32 to vector<8x128xf32>
    %1402 = arith.mulf %1401, %1397 : vector<8x128xf32>
    %1403 = arith.addf %1393, %1402 : vector<8x128xf32>
    %1404 = vector.broadcast %182 : f32 to vector<8x128xf32>
    %1405 = arith.mulf %1404, %1397 : vector<8x128xf32>
    %1406 = arith.addf %1396, %1405 : vector<8x128xf32>
    %1407 = vector.extract_strided_slice %1284 {offsets = [2, 0], sizes = [8, 128], strides = [1, 1]} : vector<12x128xf32> to vector<8x128xf32>
    %1408 = vector.broadcast %37 : f32 to vector<8x128xf32>
    %1409 = arith.mulf %1408, %1407 : vector<8x128xf32>
    %1410 = arith.addf %1400, %1409 : vector<8x128xf32>
    %1411 = vector.broadcast %112 : f32 to vector<8x128xf32>
    %1412 = arith.mulf %1411, %1407 : vector<8x128xf32>
    %1413 = arith.addf %1403, %1412 : vector<8x128xf32>
    %1414 = vector.broadcast %187 : f32 to vector<8x128xf32>
    %1415 = arith.mulf %1414, %1407 : vector<8x128xf32>
    %1416 = arith.addf %1406, %1415 : vector<8x128xf32>
    %1417 = vector.extract_strided_slice %1284 {offsets = [3, 0], sizes = [8, 128], strides = [1, 1]} : vector<12x128xf32> to vector<8x128xf32>
    %1418 = vector.broadcast %42 : f32 to vector<8x128xf32>
    %1419 = arith.mulf %1418, %1417 : vector<8x128xf32>
    %1420 = arith.addf %1410, %1419 : vector<8x128xf32>
    %1421 = vector.broadcast %117 : f32 to vector<8x128xf32>
    %1422 = arith.mulf %1421, %1417 : vector<8x128xf32>
    %1423 = arith.addf %1413, %1422 : vector<8x128xf32>
    %1424 = vector.broadcast %192 : f32 to vector<8x128xf32>
    %1425 = arith.mulf %1424, %1417 : vector<8x128xf32>
    %1426 = arith.addf %1416, %1425 : vector<8x128xf32>
    %1427 = vector.extract_strided_slice %1284 {offsets = [4, 0], sizes = [8, 128], strides = [1, 1]} : vector<12x128xf32> to vector<8x128xf32>
    %1428 = vector.broadcast %47 : f32 to vector<8x128xf32>
    %1429 = arith.mulf %1428, %1427 : vector<8x128xf32>
    %1430 = arith.addf %1420, %1429 : vector<8x128xf32>
    %1431 = vector.broadcast %122 : f32 to vector<8x128xf32>
    %1432 = arith.mulf %1431, %1427 : vector<8x128xf32>
    %1433 = arith.addf %1423, %1432 : vector<8x128xf32>
    %1434 = vector.broadcast %197 : f32 to vector<8x128xf32>
    %1435 = arith.mulf %1434, %1427 : vector<8x128xf32>
    %1436 = arith.addf %1426, %1435 : vector<8x128xf32>
    %c127_i32_57 = arith.constant 127 : i32
    %1437 = tpu.dynamic_rotate %1284 by %c127_i32_57 dim 1 : vector<12x128xf32>, i32 -> vector<12x128xf32>
    %1438 = vector.extract_strided_slice %1437 {offsets = [0, 0], sizes = [8, 128], strides = [1, 1]} : vector<12x128xf32> to vector<8x128xf32>
    %1439 = vector.broadcast %28 : f32 to vector<8x128xf32>
    %1440 = arith.mulf %1439, %1438 : vector<8x128xf32>
    %1441 = arith.addf %1430, %1440 : vector<8x128xf32>
    %1442 = vector.broadcast %103 : f32 to vector<8x128xf32>
    %1443 = arith.mulf %1442, %1438 : vector<8x128xf32>
    %1444 = arith.addf %1433, %1443 : vector<8x128xf32>
    %1445 = vector.broadcast %178 : f32 to vector<8x128xf32>
    %1446 = arith.mulf %1445, %1438 : vector<8x128xf32>
    %1447 = arith.addf %1436, %1446 : vector<8x128xf32>
    %1448 = vector.extract_strided_slice %1437 {offsets = [1, 0], sizes = [8, 128], strides = [1, 1]} : vector<12x128xf32> to vector<8x128xf32>
    %1449 = vector.broadcast %33 : f32 to vector<8x128xf32>
    %1450 = arith.mulf %1449, %1448 : vector<8x128xf32>
    %1451 = arith.addf %1441, %1450 : vector<8x128xf32>
    %1452 = vector.broadcast %108 : f32 to vector<8x128xf32>
    %1453 = arith.mulf %1452, %1448 : vector<8x128xf32>
    %1454 = arith.addf %1444, %1453 : vector<8x128xf32>
    %1455 = vector.broadcast %183 : f32 to vector<8x128xf32>
    %1456 = arith.mulf %1455, %1448 : vector<8x128xf32>
    %1457 = arith.addf %1447, %1456 : vector<8x128xf32>
    %1458 = vector.extract_strided_slice %1437 {offsets = [2, 0], sizes = [8, 128], strides = [1, 1]} : vector<12x128xf32> to vector<8x128xf32>
    %1459 = vector.broadcast %38 : f32 to vector<8x128xf32>
    %1460 = arith.mulf %1459, %1458 : vector<8x128xf32>
    %1461 = arith.addf %1451, %1460 : vector<8x128xf32>
    %1462 = vector.broadcast %113 : f32 to vector<8x128xf32>
    %1463 = arith.mulf %1462, %1458 : vector<8x128xf32>
    %1464 = arith.addf %1454, %1463 : vector<8x128xf32>
    %1465 = vector.broadcast %188 : f32 to vector<8x128xf32>
    %1466 = arith.mulf %1465, %1458 : vector<8x128xf32>
    %1467 = arith.addf %1457, %1466 : vector<8x128xf32>
    %1468 = vector.extract_strided_slice %1437 {offsets = [3, 0], sizes = [8, 128], strides = [1, 1]} : vector<12x128xf32> to vector<8x128xf32>
    %1469 = vector.broadcast %43 : f32 to vector<8x128xf32>
    %1470 = arith.mulf %1469, %1468 : vector<8x128xf32>
    %1471 = arith.addf %1461, %1470 : vector<8x128xf32>
    %1472 = vector.broadcast %118 : f32 to vector<8x128xf32>
    %1473 = arith.mulf %1472, %1468 : vector<8x128xf32>
    %1474 = arith.addf %1464, %1473 : vector<8x128xf32>
    %1475 = vector.broadcast %193 : f32 to vector<8x128xf32>
    %1476 = arith.mulf %1475, %1468 : vector<8x128xf32>
    %1477 = arith.addf %1467, %1476 : vector<8x128xf32>
    %1478 = vector.extract_strided_slice %1437 {offsets = [4, 0], sizes = [8, 128], strides = [1, 1]} : vector<12x128xf32> to vector<8x128xf32>
    %1479 = vector.broadcast %48 : f32 to vector<8x128xf32>
    %1480 = arith.mulf %1479, %1478 : vector<8x128xf32>
    %1481 = arith.addf %1471, %1480 : vector<8x128xf32>
    %1482 = vector.broadcast %123 : f32 to vector<8x128xf32>
    %1483 = arith.mulf %1482, %1478 : vector<8x128xf32>
    %1484 = arith.addf %1474, %1483 : vector<8x128xf32>
    %1485 = vector.broadcast %198 : f32 to vector<8x128xf32>
    %1486 = arith.mulf %1485, %1478 : vector<8x128xf32>
    %1487 = arith.addf %1477, %1486 : vector<8x128xf32>
    %c126_i32_58 = arith.constant 126 : i32
    %1488 = tpu.dynamic_rotate %1284 by %c126_i32_58 dim 1 : vector<12x128xf32>, i32 -> vector<12x128xf32>
    %1489 = vector.extract_strided_slice %1488 {offsets = [0, 0], sizes = [8, 128], strides = [1, 1]} : vector<12x128xf32> to vector<8x128xf32>
    %1490 = vector.broadcast %29 : f32 to vector<8x128xf32>
    %1491 = arith.mulf %1490, %1489 : vector<8x128xf32>
    %1492 = arith.addf %1481, %1491 : vector<8x128xf32>
    %1493 = vector.broadcast %104 : f32 to vector<8x128xf32>
    %1494 = arith.mulf %1493, %1489 : vector<8x128xf32>
    %1495 = arith.addf %1484, %1494 : vector<8x128xf32>
    %1496 = vector.broadcast %179 : f32 to vector<8x128xf32>
    %1497 = arith.mulf %1496, %1489 : vector<8x128xf32>
    %1498 = arith.addf %1487, %1497 : vector<8x128xf32>
    %1499 = vector.extract_strided_slice %1488 {offsets = [1, 0], sizes = [8, 128], strides = [1, 1]} : vector<12x128xf32> to vector<8x128xf32>
    %1500 = vector.broadcast %34 : f32 to vector<8x128xf32>
    %1501 = arith.mulf %1500, %1499 : vector<8x128xf32>
    %1502 = arith.addf %1492, %1501 : vector<8x128xf32>
    %1503 = vector.broadcast %109 : f32 to vector<8x128xf32>
    %1504 = arith.mulf %1503, %1499 : vector<8x128xf32>
    %1505 = arith.addf %1495, %1504 : vector<8x128xf32>
    %1506 = vector.broadcast %184 : f32 to vector<8x128xf32>
    %1507 = arith.mulf %1506, %1499 : vector<8x128xf32>
    %1508 = arith.addf %1498, %1507 : vector<8x128xf32>
    %1509 = vector.extract_strided_slice %1488 {offsets = [2, 0], sizes = [8, 128], strides = [1, 1]} : vector<12x128xf32> to vector<8x128xf32>
    %1510 = vector.broadcast %39 : f32 to vector<8x128xf32>
    %1511 = arith.mulf %1510, %1509 : vector<8x128xf32>
    %1512 = arith.addf %1502, %1511 : vector<8x128xf32>
    %1513 = vector.broadcast %114 : f32 to vector<8x128xf32>
    %1514 = arith.mulf %1513, %1509 : vector<8x128xf32>
    %1515 = arith.addf %1505, %1514 : vector<8x128xf32>
    %1516 = vector.broadcast %189 : f32 to vector<8x128xf32>
    %1517 = arith.mulf %1516, %1509 : vector<8x128xf32>
    %1518 = arith.addf %1508, %1517 : vector<8x128xf32>
    %1519 = vector.extract_strided_slice %1488 {offsets = [3, 0], sizes = [8, 128], strides = [1, 1]} : vector<12x128xf32> to vector<8x128xf32>
    %1520 = vector.broadcast %44 : f32 to vector<8x128xf32>
    %1521 = arith.mulf %1520, %1519 : vector<8x128xf32>
    %1522 = arith.addf %1512, %1521 : vector<8x128xf32>
    %1523 = vector.broadcast %119 : f32 to vector<8x128xf32>
    %1524 = arith.mulf %1523, %1519 : vector<8x128xf32>
    %1525 = arith.addf %1515, %1524 : vector<8x128xf32>
    %1526 = vector.broadcast %194 : f32 to vector<8x128xf32>
    %1527 = arith.mulf %1526, %1519 : vector<8x128xf32>
    %1528 = arith.addf %1518, %1527 : vector<8x128xf32>
    %1529 = vector.extract_strided_slice %1488 {offsets = [4, 0], sizes = [8, 128], strides = [1, 1]} : vector<12x128xf32> to vector<8x128xf32>
    %1530 = vector.broadcast %49 : f32 to vector<8x128xf32>
    %1531 = arith.mulf %1530, %1529 : vector<8x128xf32>
    %1532 = arith.addf %1522, %1531 : vector<8x128xf32>
    %1533 = vector.broadcast %124 : f32 to vector<8x128xf32>
    %1534 = arith.mulf %1533, %1529 : vector<8x128xf32>
    %1535 = arith.addf %1525, %1534 : vector<8x128xf32>
    %1536 = vector.broadcast %199 : f32 to vector<8x128xf32>
    %1537 = arith.mulf %1536, %1529 : vector<8x128xf32>
    %1538 = arith.addf %1528, %1537 : vector<8x128xf32>
    %c0_59 = arith.constant 0 : index
    %c2_60 = arith.constant 2 : index
    %c6_61 = arith.constant 6 : index
    %c0_62 = arith.constant 0 : index
    %1539 = vector.load %arg2[%c0_59, %c2_60, %c6_61, %c0_62] : memref<1x3x16x128xf32, #tpu.memory_space<vmem>>, vector<1x1x10x128xf32>
    %1540 = vector.shape_cast %1539 : vector<1x1x10x128xf32> to vector<10x128xf32>
    %1541 = vector.extract_strided_slice %234 {offsets = [2, 0, 0], sizes = [1, 2, 128], strides = [1, 1, 1]} : vector<3x2x128xf32> to vector<1x2x128xf32>
    %1542 = vector.shape_cast %1541 : vector<1x2x128xf32> to vector<2x128xf32>
    %1543 = tpu.concatenate %1540, %1542 in 0 : vector<10x128xf32>, vector<2x128xf32> -> vector<12x128xf32>
    %c2_i32_63 = arith.constant 2 : i32
    %1544 = tpu.dynamic_rotate %1543 by %c2_i32_63 dim 1 : vector<12x128xf32>, i32 -> vector<12x128xf32>
    %1545 = vector.extract_strided_slice %1544 {offsets = [0, 0], sizes = [8, 128], strides = [1, 1]} : vector<12x128xf32> to vector<8x128xf32>
    %1546 = vector.broadcast %50 : f32 to vector<8x128xf32>
    %1547 = arith.mulf %1546, %1545 : vector<8x128xf32>
    %1548 = arith.addf %1532, %1547 : vector<8x128xf32>
    %1549 = vector.broadcast %125 : f32 to vector<8x128xf32>
    %1550 = arith.mulf %1549, %1545 : vector<8x128xf32>
    %1551 = arith.addf %1535, %1550 : vector<8x128xf32>
    %1552 = vector.broadcast %200 : f32 to vector<8x128xf32>
    %1553 = arith.mulf %1552, %1545 : vector<8x128xf32>
    %1554 = arith.addf %1538, %1553 : vector<8x128xf32>
    %1555 = vector.extract_strided_slice %1544 {offsets = [1, 0], sizes = [8, 128], strides = [1, 1]} : vector<12x128xf32> to vector<8x128xf32>
    %1556 = vector.broadcast %55 : f32 to vector<8x128xf32>
    %1557 = arith.mulf %1556, %1555 : vector<8x128xf32>
    %1558 = arith.addf %1548, %1557 : vector<8x128xf32>
    %1559 = vector.broadcast %130 : f32 to vector<8x128xf32>
    %1560 = arith.mulf %1559, %1555 : vector<8x128xf32>
    %1561 = arith.addf %1551, %1560 : vector<8x128xf32>
    %1562 = vector.broadcast %205 : f32 to vector<8x128xf32>
    %1563 = arith.mulf %1562, %1555 : vector<8x128xf32>
    %1564 = arith.addf %1554, %1563 : vector<8x128xf32>
    %1565 = vector.extract_strided_slice %1544 {offsets = [2, 0], sizes = [8, 128], strides = [1, 1]} : vector<12x128xf32> to vector<8x128xf32>
    %1566 = vector.broadcast %60 : f32 to vector<8x128xf32>
    %1567 = arith.mulf %1566, %1565 : vector<8x128xf32>
    %1568 = arith.addf %1558, %1567 : vector<8x128xf32>
    %1569 = vector.broadcast %135 : f32 to vector<8x128xf32>
    %1570 = arith.mulf %1569, %1565 : vector<8x128xf32>
    %1571 = arith.addf %1561, %1570 : vector<8x128xf32>
    %1572 = vector.broadcast %210 : f32 to vector<8x128xf32>
    %1573 = arith.mulf %1572, %1565 : vector<8x128xf32>
    %1574 = arith.addf %1564, %1573 : vector<8x128xf32>
    %1575 = vector.extract_strided_slice %1544 {offsets = [3, 0], sizes = [8, 128], strides = [1, 1]} : vector<12x128xf32> to vector<8x128xf32>
    %1576 = vector.broadcast %65 : f32 to vector<8x128xf32>
    %1577 = arith.mulf %1576, %1575 : vector<8x128xf32>
    %1578 = arith.addf %1568, %1577 : vector<8x128xf32>
    %1579 = vector.broadcast %140 : f32 to vector<8x128xf32>
    %1580 = arith.mulf %1579, %1575 : vector<8x128xf32>
    %1581 = arith.addf %1571, %1580 : vector<8x128xf32>
    %1582 = vector.broadcast %215 : f32 to vector<8x128xf32>
    %1583 = arith.mulf %1582, %1575 : vector<8x128xf32>
    %1584 = arith.addf %1574, %1583 : vector<8x128xf32>
    %1585 = vector.extract_strided_slice %1544 {offsets = [4, 0], sizes = [8, 128], strides = [1, 1]} : vector<12x128xf32> to vector<8x128xf32>
    %1586 = vector.broadcast %70 : f32 to vector<8x128xf32>
    %1587 = arith.mulf %1586, %1585 : vector<8x128xf32>
    %1588 = arith.addf %1578, %1587 : vector<8x128xf32>
    %1589 = vector.broadcast %145 : f32 to vector<8x128xf32>
    %1590 = arith.mulf %1589, %1585 : vector<8x128xf32>
    %1591 = arith.addf %1581, %1590 : vector<8x128xf32>
    %1592 = vector.broadcast %220 : f32 to vector<8x128xf32>
    %1593 = arith.mulf %1592, %1585 : vector<8x128xf32>
    %1594 = arith.addf %1584, %1593 : vector<8x128xf32>
    %c1_i32_64 = arith.constant 1 : i32
    %1595 = tpu.dynamic_rotate %1543 by %c1_i32_64 dim 1 : vector<12x128xf32>, i32 -> vector<12x128xf32>
    %1596 = vector.extract_strided_slice %1595 {offsets = [0, 0], sizes = [8, 128], strides = [1, 1]} : vector<12x128xf32> to vector<8x128xf32>
    %1597 = vector.broadcast %51 : f32 to vector<8x128xf32>
    %1598 = arith.mulf %1597, %1596 : vector<8x128xf32>
    %1599 = arith.addf %1588, %1598 : vector<8x128xf32>
    %1600 = vector.broadcast %126 : f32 to vector<8x128xf32>
    %1601 = arith.mulf %1600, %1596 : vector<8x128xf32>
    %1602 = arith.addf %1591, %1601 : vector<8x128xf32>
    %1603 = vector.broadcast %201 : f32 to vector<8x128xf32>
    %1604 = arith.mulf %1603, %1596 : vector<8x128xf32>
    %1605 = arith.addf %1594, %1604 : vector<8x128xf32>
    %1606 = vector.extract_strided_slice %1595 {offsets = [1, 0], sizes = [8, 128], strides = [1, 1]} : vector<12x128xf32> to vector<8x128xf32>
    %1607 = vector.broadcast %56 : f32 to vector<8x128xf32>
    %1608 = arith.mulf %1607, %1606 : vector<8x128xf32>
    %1609 = arith.addf %1599, %1608 : vector<8x128xf32>
    %1610 = vector.broadcast %131 : f32 to vector<8x128xf32>
    %1611 = arith.mulf %1610, %1606 : vector<8x128xf32>
    %1612 = arith.addf %1602, %1611 : vector<8x128xf32>
    %1613 = vector.broadcast %206 : f32 to vector<8x128xf32>
    %1614 = arith.mulf %1613, %1606 : vector<8x128xf32>
    %1615 = arith.addf %1605, %1614 : vector<8x128xf32>
    %1616 = vector.extract_strided_slice %1595 {offsets = [2, 0], sizes = [8, 128], strides = [1, 1]} : vector<12x128xf32> to vector<8x128xf32>
    %1617 = vector.broadcast %61 : f32 to vector<8x128xf32>
    %1618 = arith.mulf %1617, %1616 : vector<8x128xf32>
    %1619 = arith.addf %1609, %1618 : vector<8x128xf32>
    %1620 = vector.broadcast %136 : f32 to vector<8x128xf32>
    %1621 = arith.mulf %1620, %1616 : vector<8x128xf32>
    %1622 = arith.addf %1612, %1621 : vector<8x128xf32>
    %1623 = vector.broadcast %211 : f32 to vector<8x128xf32>
    %1624 = arith.mulf %1623, %1616 : vector<8x128xf32>
    %1625 = arith.addf %1615, %1624 : vector<8x128xf32>
    %1626 = vector.extract_strided_slice %1595 {offsets = [3, 0], sizes = [8, 128], strides = [1, 1]} : vector<12x128xf32> to vector<8x128xf32>
    %1627 = vector.broadcast %66 : f32 to vector<8x128xf32>
    %1628 = arith.mulf %1627, %1626 : vector<8x128xf32>
    %1629 = arith.addf %1619, %1628 : vector<8x128xf32>
    %1630 = vector.broadcast %141 : f32 to vector<8x128xf32>
    %1631 = arith.mulf %1630, %1626 : vector<8x128xf32>
    %1632 = arith.addf %1622, %1631 : vector<8x128xf32>
    %1633 = vector.broadcast %216 : f32 to vector<8x128xf32>
    %1634 = arith.mulf %1633, %1626 : vector<8x128xf32>
    %1635 = arith.addf %1625, %1634 : vector<8x128xf32>
    %1636 = vector.extract_strided_slice %1595 {offsets = [4, 0], sizes = [8, 128], strides = [1, 1]} : vector<12x128xf32> to vector<8x128xf32>
    %1637 = vector.broadcast %71 : f32 to vector<8x128xf32>
    %1638 = arith.mulf %1637, %1636 : vector<8x128xf32>
    %1639 = arith.addf %1629, %1638 : vector<8x128xf32>
    %1640 = vector.broadcast %146 : f32 to vector<8x128xf32>
    %1641 = arith.mulf %1640, %1636 : vector<8x128xf32>
    %1642 = arith.addf %1632, %1641 : vector<8x128xf32>
    %1643 = vector.broadcast %221 : f32 to vector<8x128xf32>
    %1644 = arith.mulf %1643, %1636 : vector<8x128xf32>
    %1645 = arith.addf %1635, %1644 : vector<8x128xf32>
    %1646 = vector.extract_strided_slice %1543 {offsets = [0, 0], sizes = [8, 128], strides = [1, 1]} : vector<12x128xf32> to vector<8x128xf32>
    %1647 = vector.broadcast %52 : f32 to vector<8x128xf32>
    %1648 = arith.mulf %1647, %1646 : vector<8x128xf32>
    %1649 = arith.addf %1639, %1648 : vector<8x128xf32>
    %1650 = vector.broadcast %127 : f32 to vector<8x128xf32>
    %1651 = arith.mulf %1650, %1646 : vector<8x128xf32>
    %1652 = arith.addf %1642, %1651 : vector<8x128xf32>
    %1653 = vector.broadcast %202 : f32 to vector<8x128xf32>
    %1654 = arith.mulf %1653, %1646 : vector<8x128xf32>
    %1655 = arith.addf %1645, %1654 : vector<8x128xf32>
    %1656 = vector.extract_strided_slice %1543 {offsets = [1, 0], sizes = [8, 128], strides = [1, 1]} : vector<12x128xf32> to vector<8x128xf32>
    %1657 = vector.broadcast %57 : f32 to vector<8x128xf32>
    %1658 = arith.mulf %1657, %1656 : vector<8x128xf32>
    %1659 = arith.addf %1649, %1658 : vector<8x128xf32>
    %1660 = vector.broadcast %132 : f32 to vector<8x128xf32>
    %1661 = arith.mulf %1660, %1656 : vector<8x128xf32>
    %1662 = arith.addf %1652, %1661 : vector<8x128xf32>
    %1663 = vector.broadcast %207 : f32 to vector<8x128xf32>
    %1664 = arith.mulf %1663, %1656 : vector<8x128xf32>
    %1665 = arith.addf %1655, %1664 : vector<8x128xf32>
    %1666 = vector.extract_strided_slice %1543 {offsets = [2, 0], sizes = [8, 128], strides = [1, 1]} : vector<12x128xf32> to vector<8x128xf32>
    %1667 = vector.broadcast %62 : f32 to vector<8x128xf32>
    %1668 = arith.mulf %1667, %1666 : vector<8x128xf32>
    %1669 = arith.addf %1659, %1668 : vector<8x128xf32>
    %1670 = vector.broadcast %137 : f32 to vector<8x128xf32>
    %1671 = arith.mulf %1670, %1666 : vector<8x128xf32>
    %1672 = arith.addf %1662, %1671 : vector<8x128xf32>
    %1673 = vector.broadcast %212 : f32 to vector<8x128xf32>
    %1674 = arith.mulf %1673, %1666 : vector<8x128xf32>
    %1675 = arith.addf %1665, %1674 : vector<8x128xf32>
    %1676 = vector.extract_strided_slice %1543 {offsets = [3, 0], sizes = [8, 128], strides = [1, 1]} : vector<12x128xf32> to vector<8x128xf32>
    %1677 = vector.broadcast %67 : f32 to vector<8x128xf32>
    %1678 = arith.mulf %1677, %1676 : vector<8x128xf32>
    %1679 = arith.addf %1669, %1678 : vector<8x128xf32>
    %1680 = vector.broadcast %142 : f32 to vector<8x128xf32>
    %1681 = arith.mulf %1680, %1676 : vector<8x128xf32>
    %1682 = arith.addf %1672, %1681 : vector<8x128xf32>
    %1683 = vector.broadcast %217 : f32 to vector<8x128xf32>
    %1684 = arith.mulf %1683, %1676 : vector<8x128xf32>
    %1685 = arith.addf %1675, %1684 : vector<8x128xf32>
    %1686 = vector.extract_strided_slice %1543 {offsets = [4, 0], sizes = [8, 128], strides = [1, 1]} : vector<12x128xf32> to vector<8x128xf32>
    %1687 = vector.broadcast %72 : f32 to vector<8x128xf32>
    %1688 = arith.mulf %1687, %1686 : vector<8x128xf32>
    %1689 = arith.addf %1679, %1688 : vector<8x128xf32>
    %1690 = vector.broadcast %147 : f32 to vector<8x128xf32>
    %1691 = arith.mulf %1690, %1686 : vector<8x128xf32>
    %1692 = arith.addf %1682, %1691 : vector<8x128xf32>
    %1693 = vector.broadcast %222 : f32 to vector<8x128xf32>
    %1694 = arith.mulf %1693, %1686 : vector<8x128xf32>
    %1695 = arith.addf %1685, %1694 : vector<8x128xf32>
    %c127_i32_65 = arith.constant 127 : i32
    %1696 = tpu.dynamic_rotate %1543 by %c127_i32_65 dim 1 : vector<12x128xf32>, i32 -> vector<12x128xf32>
    %1697 = vector.extract_strided_slice %1696 {offsets = [0, 0], sizes = [8, 128], strides = [1, 1]} : vector<12x128xf32> to vector<8x128xf32>
    %1698 = vector.broadcast %53 : f32 to vector<8x128xf32>
    %1699 = arith.mulf %1698, %1697 : vector<8x128xf32>
    %1700 = arith.addf %1689, %1699 : vector<8x128xf32>
    %1701 = vector.broadcast %128 : f32 to vector<8x128xf32>
    %1702 = arith.mulf %1701, %1697 : vector<8x128xf32>
    %1703 = arith.addf %1692, %1702 : vector<8x128xf32>
    %1704 = vector.broadcast %203 : f32 to vector<8x128xf32>
    %1705 = arith.mulf %1704, %1697 : vector<8x128xf32>
    %1706 = arith.addf %1695, %1705 : vector<8x128xf32>
    %1707 = vector.extract_strided_slice %1696 {offsets = [1, 0], sizes = [8, 128], strides = [1, 1]} : vector<12x128xf32> to vector<8x128xf32>
    %1708 = vector.broadcast %58 : f32 to vector<8x128xf32>
    %1709 = arith.mulf %1708, %1707 : vector<8x128xf32>
    %1710 = arith.addf %1700, %1709 : vector<8x128xf32>
    %1711 = vector.broadcast %133 : f32 to vector<8x128xf32>
    %1712 = arith.mulf %1711, %1707 : vector<8x128xf32>
    %1713 = arith.addf %1703, %1712 : vector<8x128xf32>
    %1714 = vector.broadcast %208 : f32 to vector<8x128xf32>
    %1715 = arith.mulf %1714, %1707 : vector<8x128xf32>
    %1716 = arith.addf %1706, %1715 : vector<8x128xf32>
    %1717 = vector.extract_strided_slice %1696 {offsets = [2, 0], sizes = [8, 128], strides = [1, 1]} : vector<12x128xf32> to vector<8x128xf32>
    %1718 = vector.broadcast %63 : f32 to vector<8x128xf32>
    %1719 = arith.mulf %1718, %1717 : vector<8x128xf32>
    %1720 = arith.addf %1710, %1719 : vector<8x128xf32>
    %1721 = vector.broadcast %138 : f32 to vector<8x128xf32>
    %1722 = arith.mulf %1721, %1717 : vector<8x128xf32>
    %1723 = arith.addf %1713, %1722 : vector<8x128xf32>
    %1724 = vector.broadcast %213 : f32 to vector<8x128xf32>
    %1725 = arith.mulf %1724, %1717 : vector<8x128xf32>
    %1726 = arith.addf %1716, %1725 : vector<8x128xf32>
    %1727 = vector.extract_strided_slice %1696 {offsets = [3, 0], sizes = [8, 128], strides = [1, 1]} : vector<12x128xf32> to vector<8x128xf32>
    %1728 = vector.broadcast %68 : f32 to vector<8x128xf32>
    %1729 = arith.mulf %1728, %1727 : vector<8x128xf32>
    %1730 = arith.addf %1720, %1729 : vector<8x128xf32>
    %1731 = vector.broadcast %143 : f32 to vector<8x128xf32>
    %1732 = arith.mulf %1731, %1727 : vector<8x128xf32>
    %1733 = arith.addf %1723, %1732 : vector<8x128xf32>
    %1734 = vector.broadcast %218 : f32 to vector<8x128xf32>
    %1735 = arith.mulf %1734, %1727 : vector<8x128xf32>
    %1736 = arith.addf %1726, %1735 : vector<8x128xf32>
    %1737 = vector.extract_strided_slice %1696 {offsets = [4, 0], sizes = [8, 128], strides = [1, 1]} : vector<12x128xf32> to vector<8x128xf32>
    %1738 = vector.broadcast %73 : f32 to vector<8x128xf32>
    %1739 = arith.mulf %1738, %1737 : vector<8x128xf32>
    %1740 = arith.addf %1730, %1739 : vector<8x128xf32>
    %1741 = vector.broadcast %148 : f32 to vector<8x128xf32>
    %1742 = arith.mulf %1741, %1737 : vector<8x128xf32>
    %1743 = arith.addf %1733, %1742 : vector<8x128xf32>
    %1744 = vector.broadcast %223 : f32 to vector<8x128xf32>
    %1745 = arith.mulf %1744, %1737 : vector<8x128xf32>
    %1746 = arith.addf %1736, %1745 : vector<8x128xf32>
    %c126_i32_66 = arith.constant 126 : i32
    %1747 = tpu.dynamic_rotate %1543 by %c126_i32_66 dim 1 : vector<12x128xf32>, i32 -> vector<12x128xf32>
    %1748 = vector.extract_strided_slice %1747 {offsets = [0, 0], sizes = [8, 128], strides = [1, 1]} : vector<12x128xf32> to vector<8x128xf32>
    %1749 = vector.broadcast %54 : f32 to vector<8x128xf32>
    %1750 = arith.mulf %1749, %1748 : vector<8x128xf32>
    %1751 = arith.addf %1740, %1750 : vector<8x128xf32>
    %1752 = vector.broadcast %129 : f32 to vector<8x128xf32>
    %1753 = arith.mulf %1752, %1748 : vector<8x128xf32>
    %1754 = arith.addf %1743, %1753 : vector<8x128xf32>
    %1755 = vector.broadcast %204 : f32 to vector<8x128xf32>
    %1756 = arith.mulf %1755, %1748 : vector<8x128xf32>
    %1757 = arith.addf %1746, %1756 : vector<8x128xf32>
    %1758 = vector.extract_strided_slice %1747 {offsets = [1, 0], sizes = [8, 128], strides = [1, 1]} : vector<12x128xf32> to vector<8x128xf32>
    %1759 = vector.broadcast %59 : f32 to vector<8x128xf32>
    %1760 = arith.mulf %1759, %1758 : vector<8x128xf32>
    %1761 = arith.addf %1751, %1760 : vector<8x128xf32>
    %1762 = vector.broadcast %134 : f32 to vector<8x128xf32>
    %1763 = arith.mulf %1762, %1758 : vector<8x128xf32>
    %1764 = arith.addf %1754, %1763 : vector<8x128xf32>
    %1765 = vector.broadcast %209 : f32 to vector<8x128xf32>
    %1766 = arith.mulf %1765, %1758 : vector<8x128xf32>
    %1767 = arith.addf %1757, %1766 : vector<8x128xf32>
    %1768 = vector.extract_strided_slice %1747 {offsets = [2, 0], sizes = [8, 128], strides = [1, 1]} : vector<12x128xf32> to vector<8x128xf32>
    %1769 = vector.broadcast %64 : f32 to vector<8x128xf32>
    %1770 = arith.mulf %1769, %1768 : vector<8x128xf32>
    %1771 = arith.addf %1761, %1770 : vector<8x128xf32>
    %1772 = vector.broadcast %139 : f32 to vector<8x128xf32>
    %1773 = arith.mulf %1772, %1768 : vector<8x128xf32>
    %1774 = arith.addf %1764, %1773 : vector<8x128xf32>
    %1775 = vector.broadcast %214 : f32 to vector<8x128xf32>
    %1776 = arith.mulf %1775, %1768 : vector<8x128xf32>
    %1777 = arith.addf %1767, %1776 : vector<8x128xf32>
    %1778 = vector.extract_strided_slice %1747 {offsets = [3, 0], sizes = [8, 128], strides = [1, 1]} : vector<12x128xf32> to vector<8x128xf32>
    %1779 = vector.broadcast %69 : f32 to vector<8x128xf32>
    %1780 = arith.mulf %1779, %1778 : vector<8x128xf32>
    %1781 = arith.addf %1771, %1780 : vector<8x128xf32>
    %1782 = vector.broadcast %144 : f32 to vector<8x128xf32>
    %1783 = arith.mulf %1782, %1778 : vector<8x128xf32>
    %1784 = arith.addf %1774, %1783 : vector<8x128xf32>
    %1785 = vector.broadcast %219 : f32 to vector<8x128xf32>
    %1786 = arith.mulf %1785, %1778 : vector<8x128xf32>
    %1787 = arith.addf %1777, %1786 : vector<8x128xf32>
    %1788 = vector.extract_strided_slice %1747 {offsets = [4, 0], sizes = [8, 128], strides = [1, 1]} : vector<12x128xf32> to vector<8x128xf32>
    %1789 = vector.broadcast %74 : f32 to vector<8x128xf32>
    %1790 = arith.mulf %1789, %1788 : vector<8x128xf32>
    %1791 = arith.addf %1781, %1790 : vector<8x128xf32>
    %1792 = vector.broadcast %149 : f32 to vector<8x128xf32>
    %1793 = arith.mulf %1792, %1788 : vector<8x128xf32>
    %1794 = arith.addf %1784, %1793 : vector<8x128xf32>
    %1795 = vector.broadcast %224 : f32 to vector<8x128xf32>
    %1796 = arith.mulf %1795, %1788 : vector<8x128xf32>
    %1797 = arith.addf %1787, %1796 : vector<8x128xf32>
    %1798 = vector.broadcast %225 : f32 to vector<8x128xf32>
    %1799 = arith.addf %1791, %1798 : vector<8x128xf32>
    %c0_67 = arith.constant 0 : index
    %c0_68 = arith.constant 0 : index
    %c8_69 = arith.constant 8 : index
    %c0_70 = arith.constant 0 : index
    %1800 = vector.load %arg7[%c0_67, %c0_68, %c8_69, %c0_70] : memref<1x3x16x128xf32, #tpu.memory_space<vmem>>, vector<1x1x8x128xf32>
    %1801 = vector.shape_cast %1800 : vector<1x1x8x128xf32> to vector<8x128xf32>
    %1802 = vector.shape_cast %1799 : vector<8x128xf32> to vector<1x1x8x128xf32>
    tpu.vector_store %arg7[%c0_67, %c0_68, %c8_69, %c0_70], %1802 {strides = array<i32>} : memref<1x3x16x128xf32, #tpu.memory_space<vmem>>, vector<1x1x8x128xf32>,
    %1803 = vector.broadcast %226 : f32 to vector<8x128xf32>
    %1804 = arith.addf %1794, %1803 : vector<8x128xf32>
    %c0_71 = arith.constant 0 : index
    %c1_72 = arith.constant 1 : index
    %c8_73 = arith.constant 8 : index
    %c0_74 = arith.constant 0 : index
    %1805 = vector.load %arg7[%c0_71, %c1_72, %c8_73, %c0_74] : memref<1x3x16x128xf32, #tpu.memory_space<vmem>>, vector<1x1x8x128xf32>
    %1806 = vector.shape_cast %1805 : vector<1x1x8x128xf32> to vector<8x128xf32>
    %1807 = vector.shape_cast %1804 : vector<8x128xf32> to vector<1x1x8x128xf32>
    tpu.vector_store %arg7[%c0_71, %c1_72, %c8_73, %c0_74], %1807 {strides = array<i32>} : memref<1x3x16x128xf32, #tpu.memory_space<vmem>>, vector<1x1x8x128xf32>,
    %1808 = vector.broadcast %227 : f32 to vector<8x128xf32>
    %1809 = arith.addf %1797, %1808 : vector<8x128xf32>
    %c0_75 = arith.constant 0 : index
    %c2_76 = arith.constant 2 : index
    %c8_77 = arith.constant 8 : index
    %c0_78 = arith.constant 0 : index
    %1810 = vector.load %arg7[%c0_75, %c2_76, %c8_77, %c0_78] : memref<1x3x16x128xf32, #tpu.memory_space<vmem>>, vector<1x1x8x128xf32>
    %1811 = vector.shape_cast %1810 : vector<1x1x8x128xf32> to vector<8x128xf32>
    %1812 = vector.shape_cast %1809 : vector<8x128xf32> to vector<1x1x8x128xf32>
    tpu.vector_store %arg7[%c0_75, %c2_76, %c8_77, %c0_78], %1812 {strides = array<i32>} : memref<1x3x16x128xf32, #tpu.memory_space<vmem>>, vector<1x1x8x128xf32>,
    return
  }
  func.func @transform_0(%arg0: i32, %arg1: i32) -> (i32, i32, i32, i32) {
    %c0_i32 = arith.constant 0 : i32
    %c0_i32_0 = arith.constant 0 : i32
    %c0_i32_1 = arith.constant 0 : i32
    return %arg0, %c0_i32, %arg1, %c0_i32_0 : i32, i32, i32, i32
  }
  func.func @transform_1(%arg0: i32, %arg1: i32) -> (i32, i32, i32, i32) {
    %c2_i32 = arith.constant 2 : i32
    %0 = arith.muli %arg1, %c2_i32 : i32
    %c1_i32 = arith.constant 1 : i32
    %1 = arith.subi %0, %c1_i32 : i32
    %c0_i32 = arith.constant 0 : i32
    %2 = arith.maxsi %1, %c0_i32 : i32
    %c0_i32_0 = arith.constant 0 : i32
    %c0_i32_1 = arith.constant 0 : i32
    %c0_i32_2 = arith.constant 0 : i32
    return %arg0, %c0_i32_0, %2, %c0_i32_1 : i32, i32, i32, i32
  }
  func.func @transform_2(%arg0: i32, %arg1: i32) -> (i32, i32, i32, i32) {
    %c1_i32 = arith.constant 1 : i32
    %0 = arith.addi %arg1, %c1_i32 : i32
    %c2_i32 = arith.constant 2 : i32
    %1 = arith.muli %0, %c2_i32 : i32
    %c0_i32 = arith.constant 0 : i32
    %c0_i32_0 = arith.constant 0 : i32
    %c0_i32_1 = arith.constant 0 : i32
    return %arg0, %c0_i32, %1, %c0_i32_0 : i32, i32, i32, i32
  }
  func.func @transform_3(%arg0: i32, %arg1: i32) -> i32 {
    %c0_i32 = arith.constant 0 : i32
    %c0_i32_0 = arith.constant 0 : i32
    return %c0_i32 : i32
  }
  func.func @transform_4(%arg0: i32, %arg1: i32) -> i32 {
    %c0_i32 = arith.constant 0 : i32
    %c0_i32_0 = arith.constant 0 : i32
    return %c0_i32 : i32
  }
  func.func @transform_5(%arg0: i32, %arg1: i32) -> (i32, i32, i32, i32) {
    %c0_i32 = arith.constant 0 : i32
    %c0_i32_0 = arith.constant 0 : i32
    %c0_i32_1 = arith.constant 0 : i32
    return %arg0, %c0_i32, %arg1, %c0_i32_0 : i32, i32, i32, i32
  }
}

</mosaic_0001>

<bundles_post_ra>
// kernel: tpu_custom_call.1
= control target key start
LH: loop header
LB: loop body
LE: loop exit
PB: predicated region body
PF: predicated region fallthrough
CT: control target
= control target key end

     0   :  { %s9358_s0 = inlined_call_operand.hbm [shape: f32[2,3,24,128], index: 0, kind: input, shape index: {}]   ;;  %s9359_s1 = inlined_call_operand.hbm [shape: f32[2,3,24,128], index: 1, kind: input, shape index: {}]   ;;  %s9360_s2 = inlined_call_operand.hbm [shape: f32[2,3,24,128], index: 2, kind: input, shape index: {}]   ;;  %s9361_s3 = inlined_call_operand.vmem [shape: f32[225], index: 3, kind: input, shape index: {}]   ;;  %s9362_s4 = inlined_call_operand.vmem [shape: f32[3], index: 4, kind: input, shape index: {}]   ;;  %s9363_s5 = inlined_call_operand.hbm [shape: f32[2,3,16,128], index: 5, kind: output, shape index: {}]  }
   0x1   :  { %9434 = sst [smem:[#allocation88_spill]] %s9358_s0 }
   0x2   :  { %9435 = sst [smem:[#allocation89_spill]] %s9359_s1 }
   0x3   :  { %9436 = sst [smem:[#allocation90_spill]] %s9360_s2 }
   0x4   :  { %9437 = sst [smem:[#allocation91_spill]] %s9361_s3 }
   0x5   :  { %9438 = sst [smem:[#allocation92_spill]] %s9362_s4 }
   0x6   :  { %9439 = sst [smem:[#allocation93_spill]] %s9363_s5 }
   0x7   :  { %10 = vsyncpa [#allocation3], 0 }
   0x8   :  { %12 = vsyncpa [#allocation3 + $0x1], 0 }
   0x9   :  { %13 = vsyncpa [#allocation7], 0 }
   0xa   :  { %15 = vsyncpa [#allocation7 + $0x1], 0 }
   0xb   :  { %16 = vsyncpa [#allocation5], 0 }
   0xc   :  { %17 = vsyncpa [#allocation11], 0 }
   0xd   :  { %18 = vsyncpa [#allocation4], 0 }
   0xe   :  { %20 = vsyncpa [#allocation4 + $0x1], 0  ;;  %s5251_s18 = smov 0   ;;  %s5253_s19 = smov 0  }
   0xf   :  { %s5255_s20 = smov 0   ;;  %s5257_s21 = smov 0  }
  0x10   :  { %s5259_s22 = smov 0   ;;  %s5261_s23 = smov 0  }
  0x11 LB: > { %9440 = sst [smem:[#allocation21_spill]] %s5179_s18  ;;  %s5282_s24 = sadd.s32 4294967295, %s5199_s23   ;;  %s5199_s23 = sphi %s5261_s23, %s26_s23   ;;  %s5195_s22 = sphi %s5259_s22, %s9689_s22   ;;  %s5191_s21 = sphi %s5257_s21, %s9688_s21   ;;  %s5187_s20 = sphi %s5255_s20, %s9687_s20   ;;  %s5183_s19 = sphi %s5253_s19, %s9686_s19   ;;  %s5179_s18 = sphi %s5251_s18, %s9685_s18  }
  0x12   : > { %9441 = sst [smem:[#allocation22_spill]] %s5183_s19  ;;  %s4656_s25 = sadd.s32 4294967294, %s5199_s23  }
  0x13   : > { %9442 = sst [smem:[#allocation23_spill]] %s5187_s20  ;;  %s38_s26 = sadd.s32 1, %s5195_s22 }
  0x14   : > { %9443 = sst [smem:[#allocation24_spill]] %s5191_s21  ;;  %s47_s27 = sadd.s32 1, %s5187_s20 }
  0x15   : > { %9444 = sst [smem:[#allocation25_spill]] %s5195_s22  ;;  %p40_p0 = scmp.ge.s32.totalorder %s38_s26, 2 }
  0x16   : > { %9445 = sst [smem:[#allocation26_spill]] %s5199_s23  ;;  %p54_p1 = scmp.ne.s32.totalorder %s5187_s20, %s5183_s19 }
  0x17   : > { %p55_p2 = scmp.eq.s32.totalorder %s5199_s23, 0  ;;  %p60_p3 = scmp.ne.s32.totalorder %s5183_s19, %s5179_s18 }
  0x18   : > { %s9691_s26 = smov (%p40_p0, %s38_s26), 0  ;;  %p9365_p5 = scmp.eq.s32.totalorder %s5282_s24, 0 }
  0x19   : > { %9446 = sst [smem:[#allocation27_spill]] %s9691_s26  ;;  %p5294_p4 = por %p55_p2, %p54_p1 }
  0x1a   : > { %s42_s29 = ssub.s32 %s5195_s22, %s9691_s26  ;;  %p196_p6 = scmp.eq.s32.totalorder %s5282_s24, 1 }
  0x1b   : > { %s9447_s28 = scalar_select %p5294_p4, 1, 0 }
  0x1c   : > { %p45_p7 = scmp.eq.s32.totalorder %s42_s29, 0  ;;  %p5304_p8 = por %p9365_p5, %p60_p3 }
  0x1d   : > { %p5308_p9 = por %p196_p6, %p54_p1  ;;  %p202_p10 = scmp.eq.s32.totalorder %s4656_s25, 1 }
  0x1e   : > { %s9448_s30 = scalar_select %p5304_p8, 1, 0 }
  0x1f   : > { %s9449_s6 = scalar_select %p5308_p9, 1, 0 }
  0x20   : > { %s5313_s7 = scalar_select %p45_p7, %s5187_s20, %s47_s27  }
  0x21   : > { %9450 = sst [smem:[#allocation28_spill]] %s9449_s6  ;;  %p5315_p11 = por %p202_p10, %p60_p3 }
  0x22   : > { %9451 = sst [smem:[#allocation29_spill]] %s5313_s7  ;;  %p4657_p12 = scmp.ge.s32.totalorder %s5199_s23, 1 }
  0x23   : > { %s9452_s8 = scalar_select %p5315_p11, 1, 0 }
  0x24   : > { %p209_p13 = scmp.lt.s32.totalorder %s5199_s23, 3  ;;  %s9455_s3 = sld [smem:[#allocation91_spill]] }
  0x25   : > { %9453 = sst [smem:[#allocation30_spill]] %s9452_s8 }
  0x26   : > { %p5321_p0 = pnand %p4657_p12, %p209_p13  ;;  %s9456_s4 = sld [smem:[#allocation92_spill]] }
  0x28   : > { %s9454_s9 = scalar_select %p5321_p0, 1, 0 }
  0x29   : > { %p4941_p1 = pneg %p5321_p0 }
  0x2a   : > { %s222_s12 = sshll.u32 %s9455_s3, 4  ;;  %s223_s12 = int_to_ptr.vmem [resolvable:$true] %s222_s12 }
  0x2b   : > { %p5335_p2 = pnand %p4941_p1, %p9365_p5  ;;  %s5024_s17 = scalar_lea.vmem %s223_s12, 32 }
  0x2c   : > { %s233_s15 = sshll.u32 %s9456_s4, 4  ;;  %p5025_p3 = scmp.ne.s32.totalorder %s223_s12, %s5024_s17  ;;  %s234_s15 = int_to_ptr.vmem [resolvable:$true] %s233_s15 }
  0x2d   : > { %p5026_p6 = pneg %p5335_p2  ;;  %p5032_p12 = scmp.lt.s32.totalorder %s223_s12, %s223_s12 }
  0x2e   : > { %p5033_p13 = scmp.lt.s32.totalorder %s5024_s17, %s5024_s17 }
  0x2f   : > { %p5027_p7 = pnand %p5026_p6, %p5025_p3 }
  0x30   : > { %p5034_p11 = por %p5033_p13, %p5032_p12 }
  0x31   : > { %p5028_p10 = pneg %p5027_p7 }
  0x33   : > { %p5035_p9 = pnand %p5034_p11, %p5028_p10 }
  0x35   : > { %5038 = shalt.err (!%p5035_p9)
}
  0x36   : > { %s5201_s25 = smov [#allocation9]   ;;  %s5039_s27 = scalar_lea.vmem %s234_s15, 16 }
  0x37   : > { %4944 = dma.vmem_to_smem (!%p5335_p2), %s223_s12, 32, %s5201_s25, [#allocation5]  }
  0x38   : > { %p5040_p1 = scmp.ne.s32.totalorder %s234_s15, %s5039_s27  ;;  %p5047_p0 = scmp.lt.s32.totalorder %s234_s15, %s234_s15 }
  0x39   : > { %p5048_p4 = scmp.lt.s32.totalorder %s5039_s27, %s5039_s27 }
  0x3a   : > { %p5042_p5 = pnand %p5040_p1, %p5026_p6 }
  0x3b   : > { %p5049_p3 = por %p5048_p4, %p5047_p0 }
  0x3c   : > { %p5043_p8 = pneg %p5042_p5 }
  0x3e   : > { %p5050_p7 = pnand %p5049_p3, %p5043_p8 }
  0x40   : > { %5053 = shalt.err (!%p5050_p7)
}
  0x41   : > { %s5202_s29 = smov [#allocation10]   ;;  %p4660_p9 = scmp.ge.s32.totalorder %s5199_s23, 2 }
  0x42   : > { %4947 = dma.vmem_to_smem (!%p5335_p2), %s234_s15, 16, %s5202_s29, [#allocation11]  }
  0x43   : > { %240 = sbr.rel (%p4660_p9) target bundleno = 116 (0x74), region = 24 }
  0x48   : > { %s5349_s10 = sand.u32 1, %s5187_s20   ;;  %s5352_s11 = smul.u32 1152, %s5195_s22 }
  0x49   : > { %s4910_s12 = smul.u32 48, %s5349_s10  ;;  %s5203_s13 = smov 384  }
  0x4a   : > { %p9458_p4 = scmp.ne.s32.totalorder %s9447_s28, 0  ;;  %s9459_s0 = sld [smem:[#allocation88_spill]] }
  0x4b   : > { %s248_s27 = scalar_lea.vmem [#allocation2], %s4910_s12  ;;  %s5204_s3 = smov 256  }
  0x4c   : > { %4923 = sst [smem:[#allocation14]] (%p9458_p4), %s5203_s13  ;;  %s276_s29 = sshll.u32 %s248_s27, 4  ;;  %s277_s29 = int_to_ptr.vmem [resolvable:$true] %s276_s29 }
  0x4d   : > { %s4922_s14 = scalar_select %p9458_p4, [#allocation0], [#allocation15] }
  0x4e   : > { %4924 = sst [smem:[#allocation14 + $0x1]] (%p9458_p4), %s5204_s3  ;;  %s5205_s4 = smov 2  }
  0x4f   : > { %s268_s25 = sld [smem:[%s4922_s14]]   ;;  %s5206_s26 = smov 128  }
  0x50   : > { %s261_s17 = scalar_lea.hbm %s9459_s0, %s5352_s11  ;;  %4925 = sst [smem:[#allocation14 + $0x2]] (%p9458_p4), %s5205_s4 }
  0x51   : > { %4926 = sst [smem:[#allocation14 + $0x3]] (%p9458_p4), %s5206_s26  ;;  %s5207_s13 = smov 8  }
  0x52   : > { %4927 = sst [smem:[#allocation14 + $0x4]] (%p9458_p4), %s5206_s26  ;;  %s245_s12 = scalar_lea.sflag [#allocation3], %s5349_s10 }
  0x53   : > { %4928 = sst [smem:[#allocation14 + $0x5]] (%p9458_p4), %s5207_s13  ;;  %s5208_s16 = smov 131072  }
  0x54   : > { %s299_s3 = sand.u32 1, %s5199_s23   ;;  %s4912_s4 = smul.u32 24, %s5349_s10 }
  0x55   : > { %s4662_s15 = sshll.u32 %s268_s25, 26  ;;  %s5382_s13 = scalar_lea.sflag [#allocation7], %s299_s3 }
  0x56   : > { %s4663_s14 = sadd.s32 134217728, %s4662_s15  ;;  %s303_s26 = scalar_lea.vmem [#allocation6], %s4912_s4 }
  0x57   : > { %4929 = dma.general (%p9458_p4), %s261_s17, 768, %s277_s29, %s245_s12, %s5208_s16, [#allocation14], %s4663_s14, 0  }
  0x58   : > { %s9460_s1 = sld [smem:[#allocation89_spill]]  ;;  %s315_s7 = sshll.u32 %s303_s26, 4  ;;  %s316_s7 = int_to_ptr.vmem [resolvable:$true] %s315_s7 }
  0x59   : > { %s5066_s25 = scalar_lea.vmem %s316_s7, 384  ;;  %s5209_s17 = smov [#allocation6]  }
  0x5a   : > { %p5067_p5 = scmp.ne.s32.totalorder %s316_s7, %s5066_s25  ;;  %s5070_s29 = sshll.u32 %s5209_s17, 4  ;;  %s5071_s29 = int_to_ptr.vmem [resolvable:$false] %s5070_s29 }
  0x5b   : > { %s5072_s15 = scalar_lea.vmem %s5071_s29, 768  ;;  %p5073_p0 = scmp.lt.s32.totalorder %s316_s7, %s5071_s29 }
  0x5c   : > { %p5068_p8 = pnand %p5067_p5, %p9458_p4  ;;  %p5074_p2 = scmp.lt.s32.totalorder %s5072_s15, %s5066_s25 }
  0x5e   : > { %s314_s22 = scalar_lea.hbm %s9460_s1, %s5352_s11  ;;  %p5069_p11 = pneg %p5068_p8 }
  0x5f   : > { %p5075_p6 = por %p5074_p2, %p5073_p0 }
  0x61   : > { %p5076_p10 = pnand %p5075_p6, %p5069_p11 }
  0x63   : > { %5079 = shalt.err (!%p5076_p10)
}
  0x64   : > { %s5210_s0 = smov 384   ;;  %s5211_s10 = smov 128  }
  0x65   : > { %s5212_s14 = smov 8   ;;  %s9461_s2 = sld [smem:[#allocation90_spill]] }
  0x66   : > { %4930 = dma.hbm_to_vmem [thread:$0]  (%p9458_p4), %s314_s22, 384, %s316_s7, %s5382_s13, %s5210_s0, %s5211_s10, %s5212_s14  }
  0x67   : > { %s329_s26 = scalar_lea.vmem [#allocation8], %s4912_s4  ;;  %s5213_s29 = smov [#allocation8]  }
  0x68   : > { %s339_s17 = sshll.u32 %s329_s26, 4  ;;  %s5096_s15 = sshll.u32 %s5213_s29, 4  ;;  %s340_s17 = int_to_ptr.vmem [resolvable:$true] %s339_s17  ;;  %s5097_s15 = int_to_ptr.vmem [resolvable:$false] %s5096_s15 }
  0x69   : > { %s5092_s25 = scalar_lea.vmem %s340_s17, 384  ;;  %s5098_s1 = scalar_lea.vmem %s5097_s15, 768 }
  0x6a   : > { %p5093_p12 = scmp.ne.s32.totalorder %s340_s17, %s5092_s25  ;;  %p5099_p3 = scmp.lt.s32.totalorder %s340_s17, %s5097_s15 }
  0x6b   : > { %s4553_s3 = scalar_lea.hbm %s9461_s2, %s5352_s11  ;;  %p5100_p7 = scmp.lt.s32.totalorder %s5098_s1, %s5092_s25 }
  0x6c   : > { %s4554_s27 = scalar_lea.hbm %s4553_s3, 256  ;;  %p5094_p13 = pnand %p5093_p12, %p9458_p4 }
  0x6d   : > { %p5101_p5 = por %p5100_p7, %p5099_p3 }
  0x6e   : > { %p5095_p1 = pneg %p5094_p13 }
  0x70   : > { %p5102_p8 = pnand %p5101_p5, %p5095_p1 }
  0x72   : > { %5105 = shalt.err (!%p5102_p8)
}
  0x73   : > { %4931 = dma.hbm_to_vmem [thread:$0]  (%p9458_p4), %s4554_s27, 384, %s340_s17, %s5382_s13, %s5210_s0, %s5211_s10, %s5212_s14  }
  0x74 PF: > { %p9462_p11 = scmp.ne.s32.totalorder %s9454_s9, 0 }
  0x76   : > { %351 = sbr.rel (%p9462_p11) target bundleno = 875 (0x36b), region = 40 }
  0x7b   : > { %s5401_s22 = sand.u32 1, %s5183_s19   ;;  %p9465_p0 = scmp.ne.s32.totalorder %s9448_s30, 0 }
  0x7c   : > { %9463 = sst [smem:[#allocation31_spill]] %s5401_s22  ;;  %s9371_s7 = smul.u32 48, %s5401_s22 }
  0x7d   : > { %s354_s1 = scalar_lea.sflag [#allocation3], %s5401_s22 }
  0x7e   : > { %s5407_s11 = scalar_lea.vmem [#allocation2], %s9371_s7 }
  0x7f   : > { %9464 = sst [smem:[#allocation32_spill]] %s5407_s11 }
  0x80   : > { %5158 = dma.done.wait (%p9465_p0), %s354_s1, 768  }
  0x81   : > { %5160 = vsyncadd (%p9465_p0), %s354_s1, 4294966528  ;;  %s362_s28 = sand.u32 1, %s5282_s24  }
  0x82   : > { %s363_s9 = scalar_lea.sflag [#allocation7], %s362_s28 }
  0x83   : > { %5162 = dma.done.wait (%p9465_p0), %s363_s9, 768  }
  0x84   : > { %5164 = vsyncadd (%p9465_p0), %s363_s9, 4294966528  ;;  %s4916_s4 = smul.u32 24, %s5401_s22  ;;  %p9466_p4 = scmp.eq.s32.totalorder %s5282_s24, 0 }
  0x86   : > { %s5419_s13 = scalar_lea.vmem [#allocation8], %s4916_s4 }
  0x87   : > { %5166 = dma.done.wait (%p9466_p4), [#allocation5], 32   ;;  %p9467_p2 = pmov %p9466_p4 }
  0x89   : > { %5168 = vsyncadd (%p9467_p2), [#allocation5], 4294967264  ;;  %p9468_p6 = pmov %p9467_p2 }
  0x8a   : > { %p9469_p10 = pmov %p9467_p2 }
  0x8b   : > { %5170 = dma.done.wait (%p9468_p6), [#allocation11], 16  }
  0x8c   : > { %5172 = vsyncadd (%p9469_p10), [#allocation11], 4294967280 }
  0x8d   : > { %388 = sfence }
  0x8e   : > { %v5430_v0 = vld [vmem:[%s5407_s11 + $0x6] sm:$0xff]  ;;  %vm678_vm0 = vcmask 1041408   ;;  %v671_v2 = vld [vmem:[%s5419_s13] sm:$0x3]  ;;  %s5214_s30 = smov 2   ;;  %s5215_s24 = smov 1  }
  0x8f   : > { %v674_v1 = vld [vmem:[%s5407_s11] sm:$0xff]  ;;  %2708 = vrot.lane.b32.xlu1 %v5430_v0, %s5214_s30  ;;  %v2703_v4 = vld [vmem:[%s5407_s11 + $0xe] sm:$0x3]  ;;  %v2705_v5 = vrot.slane %v671_v2, 6  ;;  %v675_v6 = vld [vmem:[%s5407_s11 + $0x8] sm:$0x3] }
  0x90   : > { %v679_v3 = vrot.slane %v674_v1, 6  ;;  %v680_v7 = vrot.slane %v675_v6, 6  ;;  %s9374_s0 = smov 127   ;;  %v4895_v11 = vld [vmem:[%s5407_s11 + $0x10] sm:$0xff]  ;;  %v4896_v12 = vld [vmem:[%s5407_s11 + $0x18] sm:$0x3] }
  0x91   : > { %v5442_v9 = vsel %vm678_vm0, %v2703_v4, %v2705_v5  ;;  %s9372_s10 = smov 126   ;;  %v1352_v13 = vrot.slane %v4895_v11, 6  ;;  %v1353_v14 = vrot.slane %v4896_v12, 6  ;;  %v672_v15 = vld [vmem:[%s5419_s13 + $0x8] sm:$0x3]  ;;  %s4675_s14 = sld [smem:[#allocation9 + $0x7]] }
  0x92   : > { %v5439_v8 = vsel %vm678_vm0, 0.0, %v679_v3  ;;  %v5449_v10 = vsel %vm678_vm0, %v679_v3, %v680_v7  ;;  %v3294_v17 = vrot.slane %v672_v15, 6  ;;  %v4902_v18 = vld [vmem:[%s5407_s11 + $0x1e] sm:$0x3]  ;;  %v5495_v21 = vld [vmem:[%s5407_s11 + $0x16] sm:$0xff]  ;;  %v4897_v22 = vld [vmem:[%s5407_s11 + $0x20] sm:$0xff] }
  0x93   : > { %685 = vrot.lane.b32.xlu0 %v5439_v8, %s5214_s30  ;;  %2710 = vrot.lane.b32.xlu1 %v5442_v9, %s5214_s30  ;;  %v5479_v16 = vsel %vm678_vm0, %v1352_v13, %v1353_v14  ;;  %v5485_v19 = vsel %vm678_vm0, 0.0, %v1352_v13  ;;  %s4750_s12 = sld [smem:[#allocation9 + $0x52]]  ;;  %v2024_v23 = vrot.slane %v4897_v22, 6  ;;  %v4898_v24 = vld [vmem:[%s5407_s11 + $0x28] sm:$0x3]  ;;  %vm700_vm1 = vcmask 1046528  }
  0x94   : > { %9470 = vst [vmem:[#allocation33_spill] sm:$0xff] %v5479_v16  ;;  %9471 = vst [vmem:[#allocation34_spill] sm:$0xff] %v5485_v19  ;;  %v5490_v20 = vsel %vm678_vm0, %v4902_v18, %v3294_v17  ;;  %s4680_s16 = sld [smem:[#allocation9 + $0xc]]  ;;  %v5510_v25 = vld [vmem:[%s5419_s13 + $0x10] sm:$0x3]  ;;  %v2025_v27 = vrot.slane %v4898_v24, 6 }
  0x95   : > { %9472 = vst [vmem:[#allocation35_spill] sm:$0xff] %v5490_v20  ;;  %s4825_s3 = sld [smem:[#allocation9 + $0x9d]]  ;;  %v5523_v26 = vsel %vm678_vm0, 0.0, %v2024_v23  ;;  %v3886_v28 = vrot.slane %v5510_v25, 6  ;;  %vm731_vm2 = vcmask 1045504   ;;  %vm762_vm3 = vcmask 1044480  }
  0x96   : > { %s5512_s27 = sld [smem:[#allocation9 + $0x11]]  ;;  %9473 = vst [vmem:[#allocation36_spill] sm:$0xff] %v5523_v26  ;;  %v5574_v51 = vsel %vm678_vm0, %v2024_v23, %v2025_v27  ;;  %v4904_v23 = vld [vmem:[%s5407_s11 + $0x2e] sm:$0x3]  ;;  %vm793_vm4 = vcmask 1043456   ;;  %s9489_s5 = smov 127  }
  0x97   : > { %687 = vrot.lane.b32.xlu0 %v5449_v10, %s5214_s30  ;;  %821 = vrot.lane.b32.xlu1 %v5449_v10, %s5215_s24  ;;  %s5514_s26 = sld [smem:[#allocation9 + $0x57]]  ;;  %v5528_v29 = vstv %s4675_s14  ;;  %9476 = vst [vmem:[#allocation39_spill] sm:$0xff] %v5574_v51 }
  0x98   : > { %s5518_s17 = sld [smem:[#allocation9 + $0x5c]]  ;;  %v962_v30 = vmul.f32 %v5528_v29, %v5439_v8  ;;  %v963_v31 = vmul.f32 %v5528_v29, %v5449_v10 }
  0x99   : > { %s5526_s25 = sld [smem:[#allocation9 + $0xa2]]  ;;  %v5534_v32 = vstv %s4750_s12 }
  0x9a   : > { %v972_v33 = vmul.f32 %v5534_v32, %v5439_v8  ;;  %v973_v34 = vmul.f32 %v5534_v32, %v5449_v10  ;;  %s5544_s29 = sld [smem:[#allocation9 + $0xa7]]  ;;  %v966_v36 = vrot.slane %v962_v30, 1  ;;  %v967_v37 = vrot.slane %v963_v31, 1 }
  0x9b   : > { %819 = vrot.lane.b32.xlu0 %v5439_v8, %s5215_s24  ;;  %2825 = vrot.lane.b32.xlu1 %v5442_v9, %s5215_s24  ;;  %v5540_v35 = vstv %s4825_s3  ;;  %v5548_v39 = vstv %s4680_s16  ;;  %s5556_s15 = sld [smem:[#allocation9 + $0x16]] }
  0x9c   : > { %v982_v38 = vmul.f32 %v5540_v35, %v5439_v8  ;;  %v976_v40 = vrot.slane %v972_v33, 1  ;;  %v977_v41 = vrot.slane %v973_v34, 1  ;;  %v983_v42 = vmul.f32 %v5540_v35, %v5449_v10  ;;  %s5563_s1 = sld [smem:[#allocation9]] }
  0x9d   : > { %v992_v43 = vmul.f32 %v5548_v39, %v5439_v8  ;;  %v5559_v44 = vsel %vm700_vm1, %v966_v36, %v967_v37  ;;  %v993_v46 = vmul.f32 %v5548_v39, %v5449_v10  ;;  %v5569_v50 = vstv %s5514_s26  ;;  %s5576_s28 = sld [smem:[#allocation9 + $0x61]] }
  0x9e   : > { %9474 = vst [vmem:[#allocation37_spill] sm:$0xff] %v5559_v44  ;;  %v986_v45 = vrot.slane %v982_v38, 1  ;;  %v5566_v47 = vsel %vm700_vm1, %v976_v40, %v977_v41  ;;  %v987_v48 = vrot.slane %v983_v42, 1  ;;  %v1002_v53 = vmul.f32 %v5569_v50, %v5439_v8  ;;  %s5584_s9 = sld [smem:[#allocation9 + $0x4b]] }
  0x9f   : > { %2823 = vrot.lane.b32.xlu0 %v5430_v0, %s5215_s24  ;;  %1083 = vrot.lane.b32.xlu1 %v5449_v10, %s9374_s0  ;;  %9475 = vst [vmem:[#allocation38_spill] sm:$0xff] %v5566_v47  ;;  %v996_v49 = vrot.slane %v992_v43, 2  ;;  %v997_v52 = vrot.slane %v993_v46, 2  ;;  %v1003_v54 = vmul.f32 %v5569_v50, %v5449_v10  ;;  %v5590_v56 = vstv %s5526_s25  ;;  %s5598_s4 = sld [smem:[#allocation9 + $0xac]] }
  0xa0   : > { %v5587_v55 = vsel %vm700_vm1, %v986_v45, %v987_v48  ;;  %v5593_v57 = vstv %s5512_s27  ;;  %v5596_v58 = vstv %s5518_s17  ;;  %v1006_v60 = vrot.slane %v1002_v53, 2  ;;  %s5605_s13 = sld [smem:[#allocation9 + $0x96]] }
  0xa1   : > { %9478 = vst [vmem:[#allocation41_spill] sm:$0xff] %v5587_v55  ;;  %v5601_v59 = vsel %vm731_vm2, %v996_v49, %v997_v52  ;;  %v1007_v61 = vrot.slane %v1003_v54, 2  ;;  %v1012_v62 = vmul.f32 %v5590_v56, %v5439_v8  ;;  %v1013_v63 = vmul.f32 %v5590_v56, %v5449_v10  ;;  %s5617_s14 = sld [smem:[#allocation9 + $0x5]]  ;;  %v5698_v52 = vld [vmem:[%s5407_s11 + $0x26] sm:$0xff] }
  0xa2   : > { %9479 = vst [vmem:[#allocation42_spill] sm:$0xff] %v5601_v59  ;;  %v1022_v1 = vmul.f32 %v5593_v57, %v5439_v8  ;;  %v1023_v2 = vmul.f32 %v5593_v57, %v5449_v10  ;;  %v1032_v3 = vmul.f32 %v5596_v58, %v5439_v8  ;;  %v1033_v6 = vmul.f32 %v5596_v58, %v5449_v10  ;;  %s5629_s12 = sld [smem:[#allocation9 + $0xa]] }
  0xa3   : > { %1081 = vrot.lane.b32.xlu0 %v5439_v8, %s9374_s0  ;;  %3057 = vrot.lane.b32.xlu1 %v5442_v9, %s9374_s0  ;;  %v5620_v4 = vsel %vm731_vm2, %v1006_v60, %v1007_v61  ;;  %v1016_v5 = vrot.slane %v1012_v62, 2  ;;  %v5625_v7 = vstv %s5544_s29  ;;  %v1017_v11 = vrot.slane %v1013_v63, 2  ;;  %s5631_s16 = sld [smem:[#allocation9 + $0xf]] }
  0xa4   : > { %9477 = sst [smem:[#allocation40_spill]] %s5584_s9  ;;  %9480 = vst [vmem:[#allocation43_spill] sm:$0xff] %v5620_v4  ;;  %v1026_v12 = vrot.slane %v1022_v1, 3  ;;  %v1027_v13 = vrot.slane %v1023_v2, 3  ;;  %v1036_v14 = vrot.slane %v1032_v3, 3  ;;  %v1037_v15 = vrot.slane %v1033_v6, 3 }
  0xa5   : > { %v1042_v17 = vmul.f32 %v5625_v7, %v5439_v8  ;;  %v1043_v18 = vmul.f32 %v5625_v7, %v5449_v10  ;;  %v5638_v22 = vstv %s5556_s15  ;;  %s5641_s3 = sld [smem:[#allocation9 + $0x14]]  ;;  %v5644_v24 = vsel %vm731_vm2, %v1016_v5, %v1017_v11 }
  0xa6   : > { %9481 = vst [vmem:[#allocation44_spill] sm:$0xff] %v5644_v24  ;;  %v5647_v27 = vsel %vm762_vm3, %v1026_v12, %v1027_v13  ;;  %v1052_v30 = vmul.f32 %v5638_v22, %v5439_v8  ;;  %v1053_v31 = vmul.f32 %v5638_v22, %v5449_v10  ;;  %s5655_s27 = sld [smem:[#allocation9 + $0x50]]  ;;  %v5658_v33 = vsel %vm762_vm3, %v1036_v14, %v1037_v15 }
  0xa7   : > { %3055 = vrot.lane.b32.xlu0 %v5430_v0, %s9374_s0  ;;  %1216 = vrot.lane.b32.xlu1 %v5449_v10, %s9372_s10  ;;  %9482 = vst [vmem:[#allocation45_spill] sm:$0xff] %v5647_v27  ;;  %9483 = vst [vmem:[#allocation46_spill] sm:$0xff] %v5658_v33  ;;  %v1046_v34 = vrot.slane %v1042_v17, 3  ;;  %v1047_v36 = vrot.slane %v1043_v18, 3  ;;  %v5661_v37 = vstv %s5576_s28  ;;  %s5665_s26 = sld [smem:[#allocation9 + $0x55]]  ;;  %v5674_v42 = vsel %vm678_vm0, %v4904_v23, %v3886_v28 }
  0xa8   : > { %v1056_v38 = vrot.slane %v1052_v30, 4  ;;  %v1057_v40 = vrot.slane %v1053_v31, 4  ;;  %v1063_v41 = vmul.f32 %v5661_v37, %v5449_v10  ;;  %9484 = vst [vmem:[#allocation47_spill] sm:$0xff] %v5674_v42  ;;  %s5676_s17 = sld [smem:[#allocation9 + $0x5a]]  ;;  %v5682_v45 = vstv %s5598_s4 }
  0xa9   : > { %v5679_v43 = vsel %vm762_vm3, %v1046_v34, %v1047_v36  ;;  %s5684_s25 = sld [smem:[#allocation9 + $0x5f]]  ;;  %v1072_v25 = vmul.f32 %v5682_v45, %v5439_v8  ;;  %v1073_v28 = vmul.f32 %v5682_v45, %v5449_v10  ;;  %v5762_v1 = vstv %s5617_s14 }
  0xaa   : > { %9485 = vst [vmem:[#allocation48_spill] sm:$0xff] %v5679_v43  ;;  %v5687_v46 = vsel %vm793_vm4, %v1056_v38, %v1057_v40  ;;  %v1067_v49 = vrot.slane %v1063_v41, 4  ;;  %s5693_s29 = sld [smem:[#allocation9 + $0x9b]]  ;;  %v5770_v3 = vstv %s5629_s12  ;;  %v5773_v5 = vstv %s5631_s16  ;;  %s9490_s16 = smov 126  }
  0xab   : > { %1214 = vrot.lane.b32.xlu0 %v5439_v8, %s9372_s10  ;;  %3175 = vrot.lane.b32.xlu1 %v5442_v9, %s9372_s10  ;;  %9486 = vst [vmem:[#allocation49_spill] sm:$0xff] %v5687_v46  ;;  %s5702_s15 = sld [smem:[#allocation9 + $0xa0]]  ;;  %v1076_v54 = vrot.slane %v1072_v25, 4  ;;  %v1077_v60 = vrot.slane %v1073_v28, 4  ;;  %v5776_v6 = vstv %s5641_s3  ;;  %v5854_v31 = vmul.f32 %v5430_v0, %v5528_v29 }
  0xac   : > { %s5707_s28 = sld [smem:[#allocation9 + $0xa5]]  ;;  %v5767_v2 = vstv %s5655_s27  ;;  %v5858_v30 = vmul.f32 %v5442_v9, %v5528_v29  ;;  %v5868_v62 = vmul.f32 %v5430_v0, %v5534_v32  ;;  %v5872_v61 = vmul.f32 %v5442_v9, %v5534_v32 }
  0xad   : > { %s5709_s4 = sld [smem:[#allocation9 + $0xaa]]  ;;  %v5716_v10 = vsel %vm793_vm4, %v1076_v54, %v1077_v60  ;;  %v5781_v11 = vstv %s5665_s26  ;;  %v3029_v33 = vmul.f32 %v5442_v9, %v5638_v22  ;;  %v3037_v27 = vmul.f32 %v5430_v0, %v5661_v37 }
  0xae   : > { %s5713_s7 = sld [smem:[#allocation9 + $0x1]]  ;;  %9488 = vst [vmem:[#allocation51_spill] sm:$0xff] %v5716_v10  ;;  %v5784_v12 = vstv %s5676_s17  ;;  %v2952_v10 = vrot.slane %v5858_v30, 1  ;;  %v2961_v43 = vrot.slane %v5872_v61, 1  ;;  %v2993_v30 = vmul.f32 %v5442_v9, %v5590_v56 }
  0xaf   : > { %3173 = vrot.lane.b32.xlu0 %v5430_v0, %s9372_s10  ;;  %1360 = vrot.lane.b32.xlu1 %v5479_v16, %s5214_s30  ;;  %s5724_s2 = sld [smem:[#allocation9 + $0x6]]  ;;  %v5787_v13 = vstv %s5684_s25  ;;  %v3046_v4 = vmul.f32 %v5430_v0, %v5682_v45  ;;  %v3033_v47 = vrot.slane %v3029_v33, 4 }
  0xb0   : > { %s5728_s20 = sld [smem:[#allocation9 + $0xb]]  ;;  %v5794_v14 = vstv %s5693_s29 }
  0xb1   : > { %s5734_s19 = sld [smem:[#allocation9 + $0x2]]  ;;  %v5797_v15 = vstv %s5702_s15 }
  0xb2   : > { %s5736_s23 = sld [smem:[#allocation9 + $0x15]]  ;;  %v5800_v17 = vstv %s5707_s28 }
  0xb3   : > { %1358 = vrot.lane.b32.xlu0 %v5485_v19, %s5214_s30  ;;  %3299 = vrot.lane.b32.xlu1 %v5490_v20, %s5214_s30  ;;  %s5740_s8 = sld [smem:[#allocation9 + $0x4d]]  ;;  %v5807_v18 = vstv %s5709_s4 }
  0xb4   : > { %s5742_s18 = sld [smem:[#allocation9 + $0x51]] }
  0xb5   : > { %s5746_s6 = sld [smem:[#allocation9 + $0x56]]  ;;  %v5813_v34 = vstv %s5724_s2 }
  0xb6   : > { %s5748_s21 = sld [smem:[#allocation9 + $0x5b]]  ;;  %v5816_v36 = vstv %s5728_s20 }
  0xb7   : > { %3297 = vrot.lane.b32.xlu0 %v5495_v21, %s5214_s30  ;;  %1493 = vrot.lane.b32.xlu1 %v5479_v16, %s5215_s24  ;;  %s5750_s22 = sld [smem:[#allocation9 + $0x60]]  ;;  %v952_v25 = vstv %s5734_s19 }
  0xb8   : > { %s5764_s11 = sld [smem:[#allocation9 + $0x9c]]  ;;  %v5822_v40 = vstv %s5736_s23  ;;  %v5847_v54 = vmul.f32 %v952_v25, %v5439_v8 }
  0xb9   : > { %s5778_s9 = sld [smem:[#allocation9 + $0xa1]]  ;;  %9491 = vst [vmem:[#allocation52_spill] sm:$0xff] %v5822_v40  ;;  %v955_v28 = vstv %s5740_s8 }
  0xba   : > { %s5789_s14 = sld [smem:[#allocation9 + $0xa6]]  ;;  %9494 = vst [vmem:[#allocation55_spill] sm:$0xff] %v5847_v54  ;;  %v5850_v60 = vmul.f32 %v955_v28, %v5439_v8 }
  0xbb   : > { %1491 = vrot.lane.b32.xlu0 %v5485_v19, %s5215_s24  ;;  %3417 = vrot.lane.b32.xlu1 %v5490_v20, %s5215_s24  ;;  %s5802_s12 = sld [smem:[#allocation9 + $0xab]]  ;;  %v5828_v41 = vstv %s5746_s6 }
  0xbc   : > { %s5844_s2 = sld [smem:[#allocation9 + $0x8]]  ;;  %9495 = vst [vmem:[#allocation56_spill] sm:$0xff] %v5850_v60 }
  0xbd   : > { %s5874_s19 = sld [smem:[#allocation9 + $0x12]] }
  0xbe   : > { %v5863_v23 = vstv %s5764_s11  ;;  %s5888_s20 = sld [smem:[#allocation9 + $0x17]] }
  0xbf   : > { %3415 = vrot.lane.b32.xlu0 %v5495_v21, %s5215_s24  ;;  %1755 = vrot.lane.b32.xlu1 %v5479_v16, %s9374_s0  ;;  %s5910_s23 = sld [smem:[#allocation9 + $0x53]] }
  0xc0   : > { %v5891_v32 = vstv %s5789_s14  ;;  %s5918_s6 = sld [smem:[#allocation9 + $0x58]] }
  0xc1   : > { %9497 = vst [vmem:[#allocation58_spill] sm:$0xff] %v5891_v32  ;;  %s5924_s8 = sld [smem:[#allocation9 + $0x5d]] }
  0xc2   : > { %s5940_s11 = sld [smem:[#allocation9 + $0x99]] }
  0xc3   : > { %1753 = vrot.lane.b32.xlu0 %v5485_v19, %s9374_s0  ;;  %3649 = vrot.lane.b32.xlu1 %v5490_v20, %s9374_s0  ;;  %s5952_s3 = sld [smem:[#allocation9 + $0xa3]] }
  0xc4   : > { %s5958_s27 = sld [smem:[#allocation9 + $0xa8]] }
  0xc5   : > { %s5960_s26 = sld [smem:[#allocation9 + $0xad]] }
  0xc6   : > { %s5968_s17 = sld [smem:[#allocation9 + $0x4]] }
  0xc7   : > { %3647 = vrot.lane.b32.xlu0 %v5495_v21, %s9374_s0  ;;  %1888 = vrot.lane.b32.xlu1 %v5479_v16, %s9372_s10  ;;  %s5722_s0 = sld [smem:[#allocation9 + $0x97]]  ;;  %v2974_v16 = vmul.f32 %v5430_v0, %v5548_v39 }
  0xc8   : > { %s4677_s25 = sld [smem:[#allocation9 + $0x9]] }
  0xc9   : > { %s9516_s29 = sld [smem:[#allocation40_spill]] }
  0xca   : > { %s6597_s15 = sld [smem:[#allocation9 + $0x59]] }
  0xcb   : > { %1886 = vrot.lane.b32.xlu0 %v5485_v19, %s9372_s10  ;;  %3767 = vrot.lane.b32.xlu1 %v5490_v20, %s9372_s10  ;;  %v5894_v20 = vstv %s5802_s12  ;;  %v5903_v19 = vmul.f32 %v5430_v0, %v952_v25  ;;  %v2984_v25 = vmul.f32 %v5442_v9, %v5569_v50  ;;  %s6609_s28 = sld [smem:[#allocation9 + $0x13]] }
  0xcc   : > { %9498 = vst [vmem:[#allocation59_spill] sm:$0xff] %v5894_v20  ;;  %s6615_s4 = sld [smem:[#allocation9 + $0xa4]] }
  0xcd   : > { %9499 = vst [vmem:[#allocation60_spill] sm:$0xff] %v5903_v19  ;;  %v3001_v19 = vmul.f32 %v5430_v0, %v5593_v57  ;;  %v2988_v46 = vrot.slane %v2984_v25, 2  ;;  %s6651_s14 = sld [smem:[#allocation9 + $0x18]] }
  0xce   : > { %s6659_s12 = sld [smem:[#allocation9 + $0x63]] }
  0xcf   : > { %3765 = vrot.lane.b32.xlu0 %v5495_v21, %s9372_s10  ;;  %2032 = vrot.lane.b32.xlu1 %v5574_v51, %s5214_s30  ;;  %v1062_v21 = vmul.f32 %v5661_v37, %v5439_v8  ;;  %s5720_s10 = sld [smem:[#allocation9 + $0x4c]] }
  0xd1   : > { %v1066_v48 = vrot.slane %v1062_v21, 4  ;;  %v5825_v21 = vstv %s5742_s18  ;;  %s5860_s18 = sld [smem:[#allocation9 + $0xd]] }
  0xd3   : > { %2030 = vrot.lane.b32.xlu0 %v5523_v26, %s5214_s30  ;;  %3891 = vrot.lane.b32.xlu1 %v5674_v42, %s5214_s30  ;;  %v5705_v53 = vsel %vm793_vm4, %v1066_v48, %v1067_v49  ;;  %v5831_v48 = vstv %s5748_s21  ;;  %v5838_v49 = vstv %s5750_s22  ;;  %s5900_s21 = sld [smem:[#allocation9 + $0x4e]] }
  0xd4   : > { %9487 = vst [vmem:[#allocation50_spill] sm:$0xff] %v5705_v53  ;;  %9492 = vst [vmem:[#allocation53_spill] sm:$0xff] %v5831_v48  ;;  %v2960_v53 = vrot.slane %v5868_v62, 1  ;;  %v2978_v62 = vrot.slane %v2974_v16, 2  ;;  %s5930_s22 = sld [smem:[#allocation9 + $0x62]]  ;;  %v3020_v16 = vmul.f32 %v5442_v9, %v5625_v7 }
  0xd5   : > { %9493 = vst [vmem:[#allocation54_spill] sm:$0xff] %v5838_v49 }
  0xd6   : > { %v3024_v59 = vrot.slane %v3020_v16, 3  ;;  %v6024_v16 = vstv %s5888_s20  ;;  %s6807_s20 = sld [smem:[#allocation9 + $0x69]] }
  0xd7   : > { %3889 = vrot.lane.b32.xlu0 %v5698_v52, %s5214_s30  ;;  %2165 = vrot.lane.b32.xlu1 %v5574_v51, %s5215_s24  ;;  %s5732_s30 = sld [smem:[#allocation9 + $0x10]]  ;;  %9521 = vst [vmem:[#allocation81_spill] sm:$0xff] %v6024_v16 }
  0xdb   : > { %2163 = vrot.lane.b32.xlu0 %v5523_v26, %s5215_s24  ;;  %4009 = vrot.lane.b32.xlu1 %v5674_v42, %s5215_s24 }
  0xdd   : > { %v5819_v38 = vstv %s5732_s30  ;;  %s6633_s30 = sld [smem:[#allocation9 + $0x5e]] }
  0xdf   : > { %4007 = vrot.lane.b32.xlu0 %v5698_v52, %s5215_s24  ;;  %2427 = vrot.lane.b32.xlu1 %v5574_v51, %s9489_s5  ;;  %s5754_s24 = sld [smem:[#allocation9 + $0x98]] }
  0xe3   : > { %2425 = vrot.lane.b32.xlu0 %v5523_v26, %s9489_s5  ;;  %4241 = vrot.lane.b32.xlu1 %v5674_v42, %s9489_s5 }
  0xe5   : > { %v958_v63 = vstv %s5754_s24  ;;  %s6638_s24 = sld [smem:[#allocation9 + $0xa9]] }
  0xe6   : > { %v5880_v29 = vmul.f32 %v958_v63, %v5439_v8  ;;  %v2975_v8 = vmul.f32 %v5442_v9, %v5548_v39  ;;  %v2983_v39 = vmul.f32 %v5430_v0, %v5569_v50  ;;  %v3002_v50 = vmul.f32 %v5442_v9, %v5593_v57 }
  0xe7   : > { %4239 = vrot.lane.b32.xlu0 %v5698_v52, %s9489_s5  ;;  %2560 = vrot.lane.b32.xlu1 %v5574_v51, %s9490_s16  ;;  %s5835_s5 = sld [smem:[#allocation9 + $0x3]]  ;;  %v2965_v51 = vmul.f32 %v5430_v0, %v5540_v35  ;;  %v3028_v57 = vmul.f32 %v5430_v0, %v5638_v22  ;;  %v3047_v22 = vmul.f32 %v5442_v9, %v5682_v45 }
  0xe8   : > { %9496 = vst [vmem:[#allocation57_spill] sm:$0xff] %v5880_v29  ;;  %v2979_v61 = vrot.slane %v2975_v8, 2  ;;  %v2987_v8 = vrot.slane %v2983_v39, 2  ;;  %v3005_v39 = vrot.slane %v3001_v19, 3  ;;  %v3006_v25 = vrot.slane %v3002_v50, 3 }
  0xe9   : > { %v3032_v50 = vrot.slane %v3028_v57, 4 }
  0xea   : > { %v5980_v33 = vsel %vm731_vm2, %v2987_v8, %v2988_v46 }
  0xeb   : > { %2558 = vrot.lane.b32.xlu0 %v5523_v26, %s9490_s16  ;;  %4359 = vrot.lane.b32.xlu1 %v5674_v42, %s9490_s16  ;;  %v5877_v42 = vstv %s5778_s9  ;;  %v2966_v26 = vmul.f32 %v5442_v9, %v5540_v35  ;;  %v5906_v35 = vmul.f32 %v5430_v0, %v955_v28  ;;  %v2969_v28 = vrot.slane %v2965_v51, 1  ;;  %s5946_s9 = sld [smem:[#allocation9 + $0x9e]]  ;;  %9506 = vst [vmem:[#allocation67_spill] sm:$0xff] %v5980_v33 }
  0xec   : > { %v3011_v51 = vmul.f32 %v5442_v9, %v5596_v58 }
  0xed   : > { %9500 = vst [vmem:[#allocation61_spill] sm:$0xff] %v5906_v35  ;;  %v2970_v35 = vrot.slane %v2966_v26, 1  ;;  %v3010_v26 = vmul.f32 %v5430_v0, %v5596_v58  ;;  %v2997_v58 = vrot.slane %v2993_v30, 2 }
  0xee   : > { %v3015_v30 = vrot.slane %v3011_v51, 3  ;;  %v6009_v51 = vstv %s5860_s18  ;;  %s6795_s18 = sld [smem:[#allocation9 + $0xaf]] }
  0xef   : > { %4357 = vrot.lane.b32.xlu0 %v5698_v52, %s9490_s16  ;;  %v2951_v52 = vrot.slane %v5854_v31, 1  ;;  %v2992_v31 = vmul.f32 %v5430_v0, %v5590_v56  ;;  %v3019_v56 = vmul.f32 %v5430_v0, %v5625_v7  ;;  %v3038_v7 = vmul.f32 %v5442_v9, %v5661_v37  ;;  %9515 = vst [vmem:[#allocation76_spill] sm:$0xff] %v6009_v51  ;;  %s6674_s16 = sld [smem:[#allocation9 + $0xae]] }
  0xf0   : > { %v5963_v37 = vmul.f32 %v5430_v0, %v958_v63  ;;  %v5971_v9 = vsel %vm700_vm1, %v2960_v53, %v2961_v43  ;;  %v5974_v45 = vsel %vm700_vm1, %v2969_v28, %v2970_v35  ;;  %v3050_v63 = vrot.slane %v3046_v4, 4 }
  0xf1   : > { %v2996_v24 = vrot.slane %v2992_v31, 2  ;;  %v3014_v31 = vrot.slane %v3010_v26, 3  ;;  %v3023_v55 = vrot.slane %v3019_v56, 3  ;;  %v5966_v19 = vsel %vm700_vm1, %v2951_v52, %v2952_v10  ;;  %9503 = vst [vmem:[#allocation64_spill] sm:$0xff] %v5971_v9  ;;  %9504 = vst [vmem:[#allocation65_spill] sm:$0xff] %v5974_v45 }
  0xf2   : > { %9501 = vst [vmem:[#allocation62_spill] sm:$0xff] %v5963_v37  ;;  %9502 = vst [vmem:[#allocation63_spill] sm:$0xff] %v5966_v19  ;;  %v3041_v26 = vrot.slane %v3037_v27, 4  ;;  %v3042_v0 = vrot.slane %v3038_v7, 4  ;;  %v5977_v10 = vsel %vm731_vm2, %v2978_v62, %v2979_v61  ;;  %v3051_v43 = vrot.slane %v3047_v22, 4 }
  0xf3   : > { %9505 = vst [vmem:[#allocation66_spill] sm:$0xff] %v5977_v10  ;;  %v5983_v53 = vsel %vm731_vm2, %v2996_v24, %v2997_v58  ;;  %v5986_v27 = vsel %vm762_vm3, %v3005_v39, %v3006_v25  ;;  %v5989_v35 = vsel %vm762_vm3, %v3014_v31, %v3015_v30  ;;  %v5992_v46 = vsel %vm762_vm3, %v3023_v55, %v3024_v59 }
  0xf4   : > { %9507 = vst [vmem:[#allocation68_spill] sm:$0xff] %v5983_v53  ;;  %9508 = vst [vmem:[#allocation69_spill] sm:$0xff] %v5986_v27  ;;  %v5995_v4 = vsel %vm793_vm4, %v3032_v50, %v3033_v47  ;;  %v6000_v28 = vstv %s5844_s2  ;;  %v6003_v62 = vsel %vm793_vm4, %v3041_v26, %v3042_v0  ;;  %v6006_v61 = vstv %s5910_s23  ;;  %s6792_s2 = sld [smem:[#allocation9 + $0x64]] }
  0xf5   : > { %9509 = vst [vmem:[#allocation70_spill] sm:$0xff] %v5989_v35  ;;  %9510 = vst [vmem:[#allocation71_spill] sm:$0xff] %v5992_v46  ;;  %v6012_v55 = vstv %s5918_s6  ;;  %v6015_v47 = vsel %vm793_vm4, %v3050_v63, %v3051_v43  ;;  %v6018_v59 = vstv %s5874_s19  ;;  %v6021_v56 = vstv %s5924_s8  ;;  %s6800_s19 = sld [smem:[#allocation9 + $0x1e]] }
  0xf6   : > { %9511 = vst [vmem:[#allocation72_spill] sm:$0xff] %v5995_v4  ;;  %9512 = vst [vmem:[#allocation73_spill] sm:$0xff] %v6000_v28  ;;  %v6028_v57 = vstv %s5946_s9  ;;  %v6031_v58 = vstv %s5952_s3  ;;  %v6034_v7 = vstv %s5930_s22  ;;  %v6039_v25 = vstv %s5958_s27  ;;  %s6819_s23 = sld [smem:[#allocation9 + $0x23]] }
  0xf7   : > { %9513 = vst [vmem:[#allocation74_spill] sm:$0xff] %v6003_v62  ;;  %9514 = vst [vmem:[#allocation75_spill] sm:$0xff] %v6006_v61  ;;  %v6042_v22 = vstv %s5960_s26  ;;  %v6045_v30 = vstv %s4677_s25  ;;  %v9528_v50 = vstv %s5563_s1  ;;  %v9529_v0 = vstv %s9516_s29  ;;  %s6822_s6 = sld [smem:[#allocation9 + $0x6e]] }
  0xf8   : > { %9517 = vst [vmem:[#allocation77_spill] sm:$0xff] %v6012_v55  ;;  %9518 = vst [vmem:[#allocation78_spill] sm:$0xff] %v6015_v47  ;;  %v9530_v43 = vstv %s5605_s13  ;;  %v9532_v47 = vstv %s9516_s29  ;;  %s6848_s8 = sld [smem:[#allocation9 + $0xb9]] }
  0xf9   : > { %9519 = vst [vmem:[#allocation79_spill] sm:$0xff] %v6018_v59  ;;  %9520 = vst [vmem:[#allocation80_spill] sm:$0xff] %v6021_v56  ;;  %s6857_s22 = sld [smem:[#allocation9 + $0x28]] }
  0xfa   : > { %9522 = vst [vmem:[#allocation82_spill] sm:$0xff] %v6028_v57  ;;  %9523 = vst [vmem:[#allocation83_spill] sm:$0xff] %v6031_v58  ;;  %v9533_v58 = vstv %s5605_s13  ;;  %s6586_s13 = sld [smem:[#allocation9 + $0x9f]] }
  0xfb   : > { %9524 = vst [vmem:[#allocation84_spill] sm:$0xff] %v6034_v7  ;;  %9525 = vst [vmem:[#allocation85_spill] sm:$0xff] %v6039_v25  ;;  %v9531_v25 = vstv %s5563_s1  ;;  %s6576_s1 = sld [smem:[#allocation9 + $0x54]] }
  0xfc   : > { %9526 = vst [vmem:[#allocation86_spill] sm:$0xff] %v6042_v22  ;;  %9527 = vst [vmem:[#allocation87_spill] sm:$0xff] %v6045_v30  ;;  %s6880_s9 = sld [smem:[#allocation9 + $0x2d]] }
  0xfd   : > { %s6888_s3 = sld [smem:[#allocation9 + $0xbe]] }
  0xfe   : > { %s6898_s27 = sld [smem:[#allocation9 + $0x78]] }
  0xff   : > { %s6903_s26 = sld [smem:[#allocation9 + $0xc3]] }
 0x100   : > { %s7019_s25 = sld [smem:[#allocation9 + $0x65]] }
 0x101   : > { %v6036_v39 = vpop.permute.xlu1 %2708  ;;  %s7028_s29 = sld [smem:[#allocation9 + $0x1f]] }
 0x102   : > { %v2712_v26 = vmul.f32 %v6036_v39, %v9528_v50  ;;  %v2713_v63 = vmul.f32 %v6036_v39, %v9529_v0  ;;  %v2714_v8 = vmul.f32 %v6036_v39, %v9530_v43  ;;  %v2715_v24 = vmul.f32 %v6036_v39, %v5762_v1 }
 0x103   : > { %v2724_v52 = vmul.f32 %v6036_v39, %v5767_v2  ;;  %v2733_v31 = vmul.f32 %v6036_v39, %v5794_v14  ;;  %v2742_v30 = vmul.f32 %v6036_v39, %v5770_v3  ;;  %v2751_v50 = vmul.f32 %v6036_v39, %v5781_v11 }
 0x104   : > { %v2719_v0 = vrot.slane %v2715_v24, 1  ;;  %v6068_v43 = vmul.f32 %v6036_v39, %v5797_v15  ;;  %v6072_v7 = vmul.f32 %v6036_v39, %v5773_v5  ;;  %v6076_v16 = vmul.f32 %v6036_v39, %v5784_v12 }
 0x105   : > { %v686_v22 = vpop.permute.xlu0 %685  ;;  %v2737_v60 = vrot.slane %v2733_v31, 1  ;;  %v2746_v49 = vrot.slane %v2742_v30, 2  ;;  %v2755_v40 = vrot.slane %v2751_v50, 2 }
 0x106   : > { %v6080_v56 = vmul.f32 %v9531_v25, %v686_v22  ;;  %v6084_v59 = vmul.f32 %v9532_v47, %v686_v22  ;;  %v6088_v24 = vmul.f32 %v9533_v58, %v686_v22  ;;  %v6091_v46 = vmul.f32 %v5762_v1, %v686_v22  ;;  %v6105_v47 = vpop.permute.xlu1 %2710 }
 0x107   : > { %v6094_v62 = vmul.f32 %v5767_v2, %v686_v22  ;;  %v6097_v4 = vmul.f32 %v5794_v14, %v686_v22  ;;  %v6100_v53 = vmul.f32 %v5770_v3, %v686_v22  ;;  %v6103_v25 = vmul.f32 %v5781_v11, %v686_v22 }
 0x108   : > { %v6109_v55 = vmul.f32 %v5797_v15, %v686_v22  ;;  %v6112_v51 = vmul.f32 %v5773_v5, %v686_v22  ;;  %v6115_v35 = vmul.f32 %v5784_v12, %v686_v22  ;;  %v6125_v9 = vmul.f32 %v5800_v17, %v686_v22 }
 0x109   : > { %v6128_v19 = vmul.f32 %v5776_v6, %v686_v22  ;;  %v6131_v27 = vmul.f32 %v5787_v13, %v686_v22  ;;  %v6134_v45 = vmul.f32 %v5807_v18, %v686_v22  ;;  %v2716_v10 = vmul.f32 %v6105_v47, %v5762_v1 }
 0x10a   : > { %v2725_v57 = vmul.f32 %v6105_v47, %v5767_v2  ;;  %v2728_v58 = vrot.slane %v2724_v52, 1  ;;  %v2734_v33 = vmul.f32 %v6105_v47, %v5794_v14  ;;  %v2743_v37 = vmul.f32 %v6105_v47, %v5770_v3 }
 0x10b   : > { %v2720_v22 = vrot.slane %v2716_v10, 1  ;;  %v2752_v52 = vmul.f32 %v6105_v47, %v5781_v11  ;;  %v2764_v30 = vrot.slane %v6068_v43, 2  ;;  %v2797_v50 = vmul.f32 %v6105_v47, %v5776_v6 }
 0x10c   : > { %v2729_v44 = vrot.slane %v2725_v57, 1  ;;  %v2738_v54 = vrot.slane %v2734_v33, 1  ;;  %v2747_v29 = vrot.slane %v2743_v37, 2  ;;  %v2761_v33 = vmul.f32 %v6105_v47, %v5797_v15 }
 0x10d   : > { %v2721_v20 = vsel %vm700_vm1, %v2719_v0, %v2720_v22  ;;  %v2756_v31 = vrot.slane %v2752_v52, 2  ;;  %v2770_v0 = vmul.f32 %v6105_v47, %v5773_v5 }
 0x10e   : > { %v2723_v32 = vadd.f32 %v2721_v20, %v2712_v26  ;;  %v2730_v61 = vsel %vm700_vm1, %v2728_v58, %v2729_v44  ;;  %v2739_v28 = vsel %vm700_vm1, %v2737_v60, %v2738_v54  ;;  %v2748_v48 = vsel %vm731_vm2, %v2746_v49, %v2747_v29 }
 0x10f   : > { %v2732_v10 = vadd.f32 %v2730_v61, %v2713_v63  ;;  %v2741_v57 = vadd.f32 %v2739_v28, %v2714_v8  ;;  %v2773_v20 = vrot.slane %v6072_v7, 3  ;;  %v2757_v44 = vsel %vm731_vm2, %v2755_v40, %v2756_v31 }
 0x110   : > { %v2750_v26 = vadd.f32 %v2748_v48, %v2723_v32  ;;  %v2765_v54 = vrot.slane %v2761_v33, 2  ;;  %v2779_v60 = vmul.f32 %v6105_v47, %v5784_v12  ;;  %v2774_v28 = vrot.slane %v2770_v0, 3 }
 0x111   : > { %v2759_v37 = vadd.f32 %v2757_v44, %v2732_v10  ;;  %v2782_v61 = vrot.slane %v6076_v16, 3  ;;  %v2787_v49 = vmul.f32 %v6036_v39, %v5800_v17  ;;  %v2788_v7 = vmul.f32 %v6105_v47, %v5800_v17  ;;  %v688_v16 = vpop.permute.xlu0 %687 }
 0x112   : > { %v2766_v29 = vsel %vm731_vm2, %v2764_v30, %v2765_v54  ;;  %v2783_v8 = vrot.slane %v2779_v60, 3  ;;  %v2796_v40 = vmul.f32 %v6036_v39, %v5776_v6  ;;  %v2775_v32 = vsel %vm762_vm3, %v2773_v20, %v2774_v28 }
 0x113   : > { %v2768_v48 = vadd.f32 %v2766_v29, %v2741_v57  ;;  %v2791_v63 = vrot.slane %v2787_v49, 3  ;;  %v2777_v43 = vadd.f32 %v2775_v32, %v2750_v26  ;;  %v2792_v22 = vrot.slane %v2788_v7, 3 }
 0x114   : > { %v2784_v58 = vsel %vm762_vm3, %v2782_v61, %v2783_v8  ;;  %v2800_v52 = vrot.slane %v2796_v40, 4  ;;  %v2801_v31 = vrot.slane %v2797_v50, 4  ;;  %v2805_v33 = vmul.f32 %v6036_v39, %v5787_v13 }
 0x115   : > { %v2786_v10 = vadd.f32 %v2784_v58, %v2759_v37  ;;  %v2806_v57 = vmul.f32 %v6105_v47, %v5787_v13  ;;  %v2793_v30 = vsel %vm762_vm3, %v2791_v63, %v2792_v22  ;;  %v2814_v0 = vmul.f32 %v6036_v39, %v5807_v18 }
 0x116   : > { %v2815_v20 = vmul.f32 %v6105_v47, %v5807_v18  ;;  %v697_v26 = vmul.f32 %v5762_v1, %v688_v16  ;;  %v2795_v44 = vadd.f32 %v2793_v30, %v2768_v48  ;;  %v2802_v54 = vsel %vm793_vm4, %v2800_v52, %v2801_v31 }
 0x117   : > { %v2809_v60 = vrot.slane %v2805_v33, 4  ;;  %v2810_v37 = vrot.slane %v2806_v57, 4  ;;  %v6186_v28 = vadd.f32 %v2802_v54, %v2777_v43  ;;  %v2818_v61 = vrot.slane %v2814_v0, 4 }
 0x118   : > { %v2819_v49 = vrot.slane %v2815_v20, 4  ;;  %v702_v29 = vrot.slane %v697_v26, 1  ;;  %v708_v7 = vmul.f32 %v5767_v2, %v688_v16  ;;  %v718_v39 = vmul.f32 %v5794_v14, %v688_v16 }
 0x119   : > { %v2811_v8 = vsel %vm793_vm4, %v2809_v60, %v2810_v37  ;;  %v728_v47 = vmul.f32 %v5770_v3, %v688_v16  ;;  %v9534_v48 = vrot.slane %v6091_v46, 1  ;;  %v739_v63 = vmul.f32 %v5781_v11, %v688_v16 }
 0x11a   : > { %v6192_v40 = vadd.f32 %v2811_v8, %v2786_v10  ;;  %v2820_v1 = vsel %vm793_vm4, %v2818_v61, %v2819_v49  ;;  %v712_v58 = vrot.slane %v708_v7, 1  ;;  %v722_v2 = vrot.slane %v718_v39, 1  ;;  %v6235_v7 = vpop.permute.xlu0 %819 }
 0x11b   : > { %v703_v32 = vsel %vm700_vm1, %v9534_v48, %v702_v29  ;;  %v6199_v50 = vadd.f32 %v2820_v1, %v2795_v44  ;;  %v733_v22 = vrot.slane %v728_v47, 2  ;;  %v743_v14 = vrot.slane %v739_v63, 2 }
 0x11c   : > { %v705_v43 = vadd.f32 %v703_v32, %v6080_v56  ;;  %v749_v3 = vmul.f32 %v5797_v15, %v688_v16  ;;  %v759_v52 = vmul.f32 %v5773_v5, %v688_v16  ;;  %v9535_v10 = vrot.slane %v6094_v62, 1 }
 0x11d   : > { %v9536_v31 = vrot.slane %v6097_v4, 1  ;;  %v770_v33 = vmul.f32 %v5784_v12, %v688_v16  ;;  %v780_v56 = vmul.f32 %v5800_v17, %v688_v16  ;;  %v9537_v15 = vrot.slane %v6100_v53, 2 }
 0x11e   : > { %v713_v46 = vsel %vm700_vm1, %v9535_v10, %v712_v58  ;;  %v9538_v62 = vrot.slane %v6103_v25, 2  ;;  %v753_v4 = vrot.slane %v749_v3, 2  ;;  %v764_v26 = vrot.slane %v759_v52, 3 }
 0x11f   : > { %v723_v11 = vsel %vm700_vm1, %v9536_v31, %v722_v2  ;;  %v715_v57 = vadd.f32 %v713_v46, %v6084_v59  ;;  %v734_v5 = vsel %vm731_vm2, %v9537_v15, %v733_v22  ;;  %v774_v44 = vrot.slane %v770_v33, 3 }
 0x120   : > { %v725_v30 = vadd.f32 %v723_v11, %v6088_v24  ;;  %v744_v0 = vsel %vm731_vm2, %v9538_v62, %v743_v14  ;;  %v736_v20 = vadd.f32 %v734_v5, %v705_v43  ;;  %v784_v12 = vrot.slane %v780_v56, 3  ;;  %v6246_v43 = vpop.permute.xlu1 %821 }
 0x121   : > { %v746_v54 = vadd.f32 %v744_v0, %v715_v57  ;;  %v790_v17 = vmul.f32 %v5776_v6, %v688_v16  ;;  %v801_v59 = vmul.f32 %v5787_v13, %v688_v16  ;;  %v9539_v53 = vrot.slane %v6109_v55, 2 }
 0x122   : > { %v9540_v25 = vrot.slane %v6112_v51, 3  ;;  %v9541_v37 = vrot.slane %v6115_v35, 3  ;;  %v811_v49 = vmul.f32 %v5807_v18, %v688_v16  ;;  %v9542_v13 = vrot.slane %v6125_v9, 3 }
 0x123   : > { %v754_v24 = vsel %vm731_vm2, %v9539_v53, %v753_v4  ;;  %v795_v39 = vrot.slane %v790_v17, 4  ;;  %v805_v47 = vrot.slane %v801_v59, 4  ;;  %v9543_v1 = vstv %s5713_s7 }
 0x124   : > { %v765_v60 = vsel %vm762_vm3, %v9540_v25, %v764_v26  ;;  %v775_v61 = vsel %vm762_vm3, %v9541_v37, %v774_v44  ;;  %v756_v29 = vadd.f32 %v754_v24, %v725_v30  ;;  %v785_v55 = vsel %vm762_vm3, %v9542_v13, %v784_v12 }
 0x125   : > { %v767_v6 = vadd.f32 %v765_v60, %v736_v20  ;;  %v777_v8 = vadd.f32 %v775_v61, %v746_v54  ;;  %v815_v51 = vrot.slane %v811_v49, 4  ;;  %v824_v48 = vmul.f32 %v9543_v1, %v6235_v7 }
 0x126   : > { %v787_v35 = vadd.f32 %v785_v55, %v756_v29  ;;  %v9544_v32 = vstv %s5720_s10  ;;  %v9545_v18 = vstv %s5722_s0  ;;  %v833_v9 = vmul.f32 %v5813_v34, %v6235_v7 }
 0x127   : > { %v827_v63 = vmul.f32 %v9544_v32, %v6235_v7  ;;  %v830_v16 = vmul.f32 %v9545_v18, %v6235_v7  ;;  %v9546_v58 = vrot.slane %v6128_v19, 4  ;;  %v9547_v22 = vrot.slane %v6131_v27, 4 }
 0x128   : > { %v9548_v3 = vrot.slane %v6134_v45, 4  ;;  %v834_v10 = vmul.f32 %v5813_v34, %v6246_v43  ;;  %v837_v33 = vrot.slane %v833_v9, 1  ;;  %v843_v19 = vmul.f32 %v5825_v21, %v6235_v7 }
 0x129   : > { %v796_v2 = vsel %vm793_vm4, %v9546_v58, %v795_v39  ;;  %v806_v14 = vsel %vm793_vm4, %v9547_v22, %v805_v47  ;;  %v844_v27 = vmul.f32 %v5825_v21, %v6246_v43  ;;  %v853_v57 = vmul.f32 %v5863_v23, %v6235_v7  ;;  %v9550_v22 = vld [vmem:[#allocation58_spill] sm:$0xff] }
 0x12a   : > { %v816_v52 = vsel %vm793_vm4, %v9548_v3, %v815_v51  ;;  %v798_v46 = vadd.f32 %v796_v2, %v767_v6  ;;  %v808_v31 = vadd.f32 %v806_v14, %v777_v8  ;;  %v838_v56 = vrot.slane %v834_v10, 1 }
 0x12b   : > { %v818_v11 = vadd.f32 %v816_v52, %v787_v35  ;;  %v854_v5 = vmul.f32 %v5863_v23, %v6246_v43  ;;  %v847_v0 = vrot.slane %v843_v19, 1  ;;  %v848_v20 = vrot.slane %v844_v27, 1  ;;  %v9549_v35 = vld [vmem:[#allocation53_spill] sm:$0xff] }
 0x12c   : > { %v825_v45 = vadd.f32 %v824_v48, %v798_v46  ;;  %v828_v30 = vadd.f32 %v827_v63, %v808_v31  ;;  %v839_v62 = vsel %vm700_vm1, %v837_v33, %v838_v56  ;;  %v857_v4 = vrot.slane %v853_v57, 1  ;;  %v9551_v31 = vld [vmem:[#allocation52_spill] sm:$0xff] }
 0x12d   : > { %v831_v15 = vadd.f32 %v830_v16, %v818_v11  ;;  %v858_v44 = vrot.slane %v854_v5, 1  ;;  %v863_v54 = vmul.f32 %v5816_v36, %v6235_v7  ;;  %v864_v12 = vmul.f32 %v5816_v36, %v6246_v43 }
 0x12e   : > { %v841_v26 = vadd.f32 %v839_v62, %v825_v45  ;;  %v849_v17 = vsel %vm700_vm1, %v847_v0, %v848_v20  ;;  %v873_v59 = vmul.f32 %v5828_v41, %v6235_v7  ;;  %v874_v53 = vmul.f32 %v5828_v41, %v6246_v43  ;;  %v6309_v62 = vpop.permute.xlu0 %2823 }
 0x12f   : > { %v883_v24 = vmul.f32 %v5877_v42, %v6235_v7  ;;  %v851_v25 = vadd.f32 %v849_v17, %v828_v30  ;;  %v859_v60 = vsel %vm700_vm1, %v857_v4, %v858_v44  ;;  %v867_v37 = vrot.slane %v863_v54, 2  ;;  %v9552_v30 = vld [vmem:[#allocation54_spill] sm:$0xff] }
 0x130   : > { %v868_v61 = vrot.slane %v864_v12, 2  ;;  %v861_v49 = vadd.f32 %v859_v60, %v831_v15  ;;  %v877_v29 = vrot.slane %v873_v59, 2  ;;  %v878_v6 = vrot.slane %v874_v53, 2 }
 0x131   : > { %v884_v8 = vmul.f32 %v5877_v42, %v6246_v43  ;;  %v887_v55 = vrot.slane %v883_v24, 2  ;;  %v893_v39 = vmul.f32 %v5819_v38, %v6235_v7  ;;  %v894_v47 = vmul.f32 %v5819_v38, %v6246_v43 }
 0x132   : > { %v869_v13 = vsel %vm731_vm2, %v867_v37, %v868_v61  ;;  %v879_v1 = vsel %vm731_vm2, %v877_v29, %v878_v6  ;;  %v903_v32 = vmul.f32 %v9549_v35, %v6235_v7  ;;  %v904_v9 = vmul.f32 %v9549_v35, %v6246_v43 }
 0x133   : > { %v871_v51 = vadd.f32 %v869_v13, %v841_v26  ;;  %v888_v48 = vrot.slane %v884_v8, 2  ;;  %v881_v63 = vadd.f32 %v879_v1, %v851_v25  ;;  %v897_v18 = vrot.slane %v893_v39, 3  ;;  %v9553_v26 = vld [vmem:[#allocation59_spill] sm:$0xff] }
 0x134   : > { %v898_v16 = vrot.slane %v894_v47, 3  ;;  %v907_v2 = vrot.slane %v903_v32, 3  ;;  %v913_v14 = vmul.f32 %v9550_v22, %v6235_v7  ;;  %v914_v3 = vmul.f32 %v9550_v22, %v6246_v43  ;;  %v9557_v1 = vld [vmem:[#allocation55_spill] sm:$0xff] }
 0x135   : > { %v889_v58 = vsel %vm731_vm2, %v887_v55, %v888_v48  ;;  %v908_v46 = vrot.slane %v904_v9, 3  ;;  %v923_v11 = vmul.f32 %v9551_v31, %v6235_v7  ;;  %v924_v27 = vmul.f32 %v9551_v31, %v6246_v43 }
 0x136   : > { %v891_v52 = vadd.f32 %v889_v58, %v861_v49  ;;  %v899_v10 = vsel %vm762_vm3, %v897_v18, %v898_v16  ;;  %v917_v56 = vrot.slane %v913_v14, 3  ;;  %v918_v19 = vrot.slane %v914_v3, 3  ;;  %v6323_v49 = vpop.permute.xlu1 %2825  ;;  %v9558_v16 = vld [vmem:[#allocation56_spill] sm:$0xff] }
 0x137   : > { %v901_v33 = vadd.f32 %v899_v10, %v871_v51  ;;  %v909_v57 = vsel %vm762_vm3, %v907_v2, %v908_v46  ;;  %v927_v45 = vrot.slane %v923_v11, 4  ;;  %v933_v15 = vmul.f32 %v9552_v30, %v6235_v7  ;;  %v9561_v46 = vld [vmem:[#allocation38_spill] sm:$0xff] }
 0x138   : > { %v934_v5 = vmul.f32 %v9552_v30, %v6246_v43  ;;  %v911_v0 = vadd.f32 %v909_v57, %v881_v63  ;;  %v919_v20 = vsel %vm762_vm3, %v917_v56, %v918_v19  ;;  %v928_v4 = vrot.slane %v924_v27, 4  ;;  %v9562_v56 = vld [vmem:[#allocation42_spill] sm:$0xff] }
 0x139   : > { %v943_v44 = vmul.f32 %v9553_v26, %v6235_v7  ;;  %v921_v54 = vadd.f32 %v919_v20, %v891_v52  ;;  %v937_v12 = vrot.slane %v933_v15, 4  ;;  %v944_v59 = vmul.f32 %v9553_v26, %v6246_v43  ;;  %v9563_v15 = vld [vmem:[#allocation41_spill] sm:$0xff] }
 0x13a   : > { %v938_v17 = vrot.slane %v934_v5, 4  ;;  %v929_v53 = vsel %vm793_vm4, %v927_v45, %v928_v4  ;;  %v9554_v25 = vstv %s5713_s7  ;;  %v9555_v37 = vstv %s5720_s10  ;;  %s6377_s7 = sld [smem:[#allocation9 + $0xe]] }
 0x13b   : > { %v947_v24 = vrot.slane %v943_v44, 4  ;;  %v2827_v60 = vmul.f32 %v6309_v62, %v9554_v25  ;;  %v2829_v61 = vmul.f32 %v6309_v62, %v9555_v37  ;;  %v931_v29 = vadd.f32 %v929_v53, %v901_v33  ;;  %v9565_v44 = vld [vmem:[#allocation45_spill] sm:$0xff]  ;;  %s6570_s10 = sld [smem:[#allocation9 + $0x9a]] }
 0x13c   : > { %v939_v7 = vsel %vm793_vm4, %v937_v12, %v938_v17  ;;  %v948_v6 = vrot.slane %v944_v59, 4  ;;  %v9556_v8 = vstv %s5722_s0  ;;  %v2833_v47 = vmul.f32 %v6309_v62, %v5813_v34  ;;  %v9566_v59 = vld [vmem:[#allocation44_spill] sm:$0xff]  ;;  %s6563_s0 = sld [smem:[#allocation9 + $0x4f]] }
 0x13d   : > { %v2831_v13 = vmul.f32 %v6309_v62, %v9556_v8  ;;  %v941_v55 = vadd.f32 %v939_v7, %v911_v0  ;;  %v2828_v43 = vadd.f32 %v2827_v60, %v6186_v28  ;;  %v2830_v39 = vadd.f32 %v2829_v61, %v6192_v40  ;;  %v9559_v40 = vld [vmem:[#allocation37_spill] sm:$0xff]  ;;  %v9568_v61 = vld [vmem:[#allocation49_spill] sm:$0xff] }
 0x13e   : > { %v949_v51 = vsel %vm793_vm4, %v947_v24, %v948_v6  ;;  %v954_v48 = vadd.f32 %v9557_v1, %v931_v29  ;;  %v2834_v63 = vmul.f32 %v6323_v49, %v5813_v34  ;;  %v2837_v58 = vrot.slane %v2833_v47, 1  ;;  %v9567_v24 = vld [vmem:[#allocation46_spill] sm:$0xff] }
 0x13f   : > { %v2832_v32 = vadd.f32 %v2831_v13, %v6199_v50  ;;  %v951_v18 = vadd.f32 %v949_v51, %v921_v54  ;;  %v957_v9 = vadd.f32 %v9558_v16, %v941_v55  ;;  %v2842_v28 = vmul.f32 %v6309_v62, %v5825_v21  ;;  %v9560_v50 = vld [vmem:[#allocation57_spill] sm:$0xff]  ;;  %v9569_v13 = vld [vmem:[#allocation48_spill] sm:$0xff] }
 0x140   : > { %v970_v2 = vadd.f32 %v9559_v40, %v954_v48  ;;  %v2838_v14 = vrot.slane %v2834_v63, 1  ;;  %v2843_v3 = vmul.f32 %v6323_v49, %v5825_v21  ;;  %v2851_v52 = vmul.f32 %v6309_v62, %v5863_v23  ;;  %v9564_v21 = vld [vmem:[#allocation43_spill] sm:$0xff] }
 0x141   : > { %v960_v10 = vadd.f32 %v9560_v50, %v951_v18  ;;  %v980_v34 = vadd.f32 %v9561_v46, %v957_v9  ;;  %v2846_v11 = vrot.slane %v2842_v28, 1  ;;  %v2852_v33 = vmul.f32 %v6323_v49, %v5863_v23  ;;  %v9571_v63 = vld [vmem:[#allocation51_spill] sm:$0xff] }
 0x142   : > { %v1000_v19 = vadd.f32 %v9562_v56, %v970_v2  ;;  %v2839_v27 = vsel %vm700_vm1, %v2837_v58, %v2838_v14  ;;  %v2847_v57 = vrot.slane %v2843_v3, 1  ;;  %v2855_v45 = vrot.slane %v2851_v52, 1 }
 0x143   : > { %v990_v5 = vadd.f32 %v9563_v15, %v960_v10  ;;  %v1010_v0 = vadd.f32 %v9564_v21, %v980_v34  ;;  %v2841_v20 = vadd.f32 %v2839_v27, %v2828_v43  ;;  %v2856_v4 = vrot.slane %v2852_v33, 1  ;;  %v9570_v43 = vld [vmem:[#allocation50_spill] sm:$0xff] }
 0x144   : > { %v1030_v54 = vadd.f32 %v9565_v44, %v1000_v19  ;;  %v2848_v12 = vsel %vm700_vm1, %v2846_v11, %v2847_v57  ;;  %v2860_v17 = vmul.f32 %v6309_v62, %v5816_v36  ;;  %v2861_v23 = vmul.f32 %v6323_v49, %v5816_v36 }
 0x145   : > { %v1020_v53 = vadd.f32 %v9566_v59, %v990_v5  ;;  %v1040_v25 = vadd.f32 %v9567_v24, %v1010_v0  ;;  %v2850_v60 = vadd.f32 %v2848_v12, %v2830_v39  ;;  %v2857_v37 = vsel %vm700_vm1, %v2855_v45, %v2856_v4 }
 0x146   : > { %v1060_v29 = vadd.f32 %v9568_v61, %v1030_v54  ;;  %v2859_v7 = vadd.f32 %v2857_v37, %v2832_v32  ;;  %v2864_v6 = vrot.slane %v2860_v17, 2  ;;  %v2865_v8 = vrot.slane %v2861_v23, 2  ;;  %v6410_v17 = vpop.permute.xlu0 %1081 }
 0x147   : > { %v1050_v55 = vadd.f32 %v9569_v13, %v1020_v53  ;;  %v1070_v47 = vadd.f32 %v9570_v43, %v1040_v25  ;;  %v2869_v51 = vmul.f32 %v6309_v62, %v5828_v41  ;;  %v2870_v36 = vmul.f32 %v6323_v49, %v5828_v41 }
 0x148   : > { %v2866_v1 = vsel %vm731_vm2, %v2864_v6, %v2865_v8  ;;  %v2878_v39 = vmul.f32 %v6309_v62, %v5877_v42  ;;  %v2879_v48 = vmul.f32 %v6323_v49, %v5877_v42  ;;  %v2887_v32 = vmul.f32 %v6309_v62, %v5819_v38  ;;  %v6422_v8 = vpop.permute.xlu1 %1083 }
 0x149   : > { %v6380_v18 = vadd.f32 %v9571_v63, %v1050_v55  ;;  %v2868_v16 = vadd.f32 %v2866_v1, %v2841_v20  ;;  %v2873_v9 = vrot.slane %v2869_v51, 2  ;;  %v2874_v58 = vrot.slane %v2870_v36, 2  ;;  %v9575_v51 = vld [vmem:[#allocation60_spill] sm:$0xff]  ;;  %v9576_v36 = vld [vmem:[#allocation73_spill] sm:$0xff] }
 0x14a   : > { %v2882_v41 = vrot.slane %v2878_v39, 2  ;;  %v2883_v28 = vrot.slane %v2879_v48, 2  ;;  %v2888_v40 = vmul.f32 %v6323_v49, %v5819_v38  ;;  %v2891_v2 = vrot.slane %v2887_v32, 3  ;;  %v9577_v32 = vld [vmem:[#allocation61_spill] sm:$0xff] }
 0x14b   : > { %v2875_v14 = vsel %vm731_vm2, %v2873_v9, %v2874_v58  ;;  %v2896_v42 = vmul.f32 %v6309_v62, %v9549_v35  ;;  %v2897_v3 = vmul.f32 %v6323_v49, %v9549_v35  ;;  %v2905_v52 = vmul.f32 %v6309_v62, %v9550_v22 }
 0x14c   : > { %v2877_v50 = vadd.f32 %v2875_v14, %v2850_v60  ;;  %v2884_v10 = vsel %vm731_vm2, %v2882_v41, %v2883_v28  ;;  %v2892_v46 = vrot.slane %v2888_v40, 3  ;;  %v2906_v34 = vmul.f32 %v6323_v49, %v9550_v22  ;;  %v9579_v41 = vld [vmem:[#allocation63_spill] sm:$0xff] }
 0x14d   : > { %v2886_v38 = vadd.f32 %v2884_v10, %v2859_v7  ;;  %v2900_v11 = vrot.slane %v2896_v42, 3  ;;  %v2901_v33 = vrot.slane %v2897_v3, 3  ;;  %v2909_v56 = vrot.slane %v2905_v52, 3  ;;  %v9581_v52 = vld [vmem:[#allocation82_spill] sm:$0xff] }
 0x14e   : > { %v2893_v19 = vsel %vm762_vm3, %v2891_v2, %v2892_v46  ;;  %v2910_v27 = vrot.slane %v2906_v34, 3  ;;  %v2914_v35 = vmul.f32 %v6309_v62, %v9551_v31  ;;  %v2915_v57 = vmul.f32 %v6323_v49, %v9551_v31  ;;  %v9580_v2 = vld [vmem:[#allocation64_spill] sm:$0xff]  ;;  %v9582_v10 = vld [vmem:[#allocation62_spill] sm:$0xff] }
 0x14f   : > { %v2895_v45 = vadd.f32 %v2893_v19, %v2868_v16  ;;  %v2902_v15 = vsel %vm762_vm3, %v2900_v11, %v2901_v33  ;;  %v2923_v22 = vmul.f32 %v6309_v62, %v9552_v30  ;;  %v2924_v5 = vmul.f32 %v6323_v49, %v9552_v30  ;;  %v9578_v16 = vld [vmem:[#allocation75_spill] sm:$0xff]  ;;  %v9583_v34 = vld [vmem:[#allocation66_spill] sm:$0xff] }
 0x150   : > { %v2904_v21 = vadd.f32 %v2902_v15, %v2877_v50  ;;  %v2918_v0 = vrot.slane %v2914_v35, 4  ;;  %v2919_v20 = vrot.slane %v2915_v57, 4  ;;  %v6405_v4 = vstv %s6377_s7  ;;  %s7033_s7 = sld [smem:[#allocation9 + $0x6a]] }
 0x151   : > { %v2911_v44 = vsel %vm762_vm3, %v2909_v56, %v2910_v27  ;;  %v2927_v54 = vrot.slane %v2923_v22, 4  ;;  %v2928_v31 = vrot.slane %v2924_v5, 4  ;;  %v2932_v12 = vmul.f32 %v6309_v62, %v9553_v26  ;;  %v9584_v56 = vld [vmem:[#allocation67_spill] sm:$0xff]  ;;  %v9586_v22 = vld [vmem:[#allocation69_spill] sm:$0xff] }
 0x152   : > { %v2913_v23 = vadd.f32 %v2911_v44, %v2886_v38  ;;  %v2920_v59 = vsel %vm793_vm4, %v2918_v0, %v2919_v20  ;;  %v2933_v30 = vmul.f32 %v6323_v49, %v9553_v26  ;;  %v9572_v53 = vstv %s5835_s5  ;;  %v9587_v20 = vld [vmem:[#allocation70_spill] sm:$0xff] }
 0x153   : > { %v1086_v24 = vmul.f32 %v9572_v53, %v6410_v17  ;;  %v2922_v25 = vadd.f32 %v2920_v59, %v2895_v45  ;;  %v2929_v60 = vsel %vm793_vm4, %v2927_v54, %v2928_v31  ;;  %v2936_v37 = vrot.slane %v2932_v12, 4  ;;  %v9585_v45 = vld [vmem:[#allocation65_spill] sm:$0xff]  ;;  %v9588_v54 = vld [vmem:[#allocation76_spill] sm:$0xff] }
 0x154   : > { %v9573_v61 = vstv %s5900_s21  ;;  %v2931_v6 = vadd.f32 %v2929_v60, %v2904_v21  ;;  %v2937_v62 = vrot.slane %v2933_v30, 4  ;;  %v9574_v55 = vstv %s5940_s11  ;;  %v9590_v59 = vld [vmem:[#allocation68_spill] sm:$0xff] }
 0x155   : > { %v1089_v7 = vmul.f32 %v9573_v61, %v6410_v17  ;;  %v1087_v13 = vadd.f32 %v1086_v24, %v1060_v29  ;;  %v1092_v43 = vmul.f32 %v9574_v55, %v6410_v17  ;;  %v2942_v26 = vadd.f32 %v9575_v51, %v2922_v25  ;;  %v9591_v53 = vld [vmem:[#allocation72_spill] sm:$0xff] }
 0x156   : > { %v1095_v1 = vmul.f32 %v9576_v36, %v6410_v17  ;;  %v1096_v39 = vmul.f32 %v9576_v36, %v6422_v8  ;;  %v2938_v48 = vsel %vm793_vm4, %v2936_v37, %v2937_v62  ;;  %v2944_v63 = vadd.f32 %v9577_v32, %v2931_v6  ;;  %v9592_v37 = vld [vmem:[#allocation74_spill] sm:$0xff] }
 0x157   : > { %v1090_v49 = vadd.f32 %v1089_v7, %v1070_v47  ;;  %v1105_v9 = vmul.f32 %v9578_v16, %v6410_v17  ;;  %v1106_v29 = vmul.f32 %v9578_v16, %v6422_v8  ;;  %v2940_v58 = vadd.f32 %v2938_v48, %v2913_v23  ;;  %v9589_v23 = vld [vmem:[#allocation77_spill] sm:$0xff]  ;;  %v9595_v48 = vld [vmem:[#allocation79_spill] sm:$0xff] }
 0x158   : > { %v2955_v28 = vadd.f32 %v9579_v41, %v2942_v26  ;;  %v1099_v47 = vrot.slane %v1095_v1, 1  ;;  %v1100_v40 = vrot.slane %v1096_v39, 1  ;;  %v2964_v14 = vadd.f32 %v9580_v2, %v2944_v63  ;;  %v9594_v26 = vld [vmem:[#allocation83_spill] sm:$0xff] }
 0x159   : > { %v1109_v42 = vrot.slane %v1105_v9, 1  ;;  %v1110_v3 = vrot.slane %v1106_v29, 1  ;;  %v1115_v50 = vmul.f32 %v9581_v52, %v6410_v17  ;;  %v2946_v46 = vadd.f32 %v9582_v10, %v2940_v58  ;;  %v9596_v9 = vld [vmem:[#allocation78_spill] sm:$0xff]  ;;  %v9598_v10 = vld [vmem:[#allocation85_spill] sm:$0xff] }
 0x15a   : > { %v2982_v38 = vadd.f32 %v9583_v34, %v2955_v28  ;;  %v1101_v11 = vsel %vm700_vm1, %v1099_v47, %v1100_v40  ;;  %v1116_v33 = vmul.f32 %v9581_v52, %v6422_v8  ;;  %v2991_v19 = vadd.f32 %v9584_v56, %v2964_v14 }
 0x15b   : > { %v1093_v27 = vadd.f32 %v1092_v43, %v6380_v18  ;;  %v1103_v35 = vadd.f32 %v1101_v11, %v1087_v13  ;;  %v1119_v57 = vrot.slane %v1115_v50, 1  ;;  %v2973_v15 = vadd.f32 %v9585_v45, %v2946_v46  ;;  %v9593_v13 = vld [vmem:[#allocation71_spill] sm:$0xff] }
 0x15c   : > { %v3009_v5 = vadd.f32 %v9586_v22, %v2982_v38  ;;  %v1111_v21 = vsel %vm700_vm1, %v1109_v42, %v1110_v3  ;;  %v1120_v0 = vrot.slane %v1116_v33, 1  ;;  %v3018_v44 = vadd.f32 %v9587_v20, %v2991_v19  ;;  %v9597_v42 = vld [vmem:[#allocation80_spill] sm:$0xff]  ;;  %v9599_v33 = vld [vmem:[#allocation81_spill] sm:$0xff] }
 0x15d   : > { %v1125_v31 = vmul.f32 %v9588_v54, %v6410_v17  ;;  %v1126_v12 = vmul.f32 %v9588_v54, %v6422_v8  ;;  %v1135_v18 = vmul.f32 %v9589_v23, %v6410_v17  ;;  %v3000_v30 = vadd.f32 %v9590_v59, %v2973_v15  ;;  %v9600_v20 = vld [vmem:[#allocation84_spill] sm:$0xff]  ;;  %v6500_v59 = vpop.permute.xlu0 %3055 }
 0x15e   : > { %v6461_v24 = vadd.f32 %v9591_v53, %v3009_v5  ;;  %v1113_v25 = vadd.f32 %v1111_v21, %v1090_v49  ;;  %v1136_v60 = vmul.f32 %v9589_v23, %v6422_v8  ;;  %v3045_v61 = vadd.f32 %v9592_v37, %v3018_v44  ;;  %v6505_v37 = vpop.permute.xlu1 %3057 }
 0x15f   : > { %v1121_v7 = vsel %vm700_vm1, %v1119_v57, %v1120_v0  ;;  %v1129_v6 = vrot.slane %v1125_v31, 2  ;;  %v1130_v62 = vrot.slane %v1126_v12, 2  ;;  %v3027_v55 = vadd.f32 %v9593_v13, %v3000_v30  ;;  %v9601_v12 = vld [vmem:[#allocation86_spill] sm:$0xff] }
 0x160   : > { %v1139_v43 = vrot.slane %v1135_v18, 2  ;;  %v1140_v51 = vrot.slane %v1136_v60, 2  ;;  %v1145_v1 = vmul.f32 %v9594_v26, %v6410_v17  ;;  %v1146_v49 = vmul.f32 %v9594_v26, %v6422_v8 }
 0x161   : > { %v1131_v39 = vsel %vm731_vm2, %v1129_v6, %v1130_v62  ;;  %v1155_v32 = vmul.f32 %v9595_v48, %v6410_v17  ;;  %v1156_v63 = vmul.f32 %v9595_v48, %v6422_v8  ;;  %v3054_v29 = vadd.f32 %v9596_v9, %v3027_v55 }
 0x162   : > { %v1123_v58 = vadd.f32 %v1121_v7, %v1093_v27  ;;  %v1133_v41 = vadd.f32 %v1131_v39, %v1103_v35  ;;  %v1149_v28 = vrot.slane %v1145_v1, 2  ;;  %v1141_v47 = vsel %vm731_vm2, %v1139_v43, %v1140_v51 }
 0x163   : > { %v1150_v40 = vrot.slane %v1146_v49, 2  ;;  %v1159_v2 = vrot.slane %v1155_v32, 3  ;;  %v1160_v14 = vrot.slane %v1156_v63, 3  ;;  %v1165_v3 = vmul.f32 %v9597_v42, %v6410_v17 }
 0x164   : > { %v1166_v50 = vmul.f32 %v9597_v42, %v6422_v8  ;;  %v1175_v46 = vmul.f32 %v9598_v10, %v6410_v17  ;;  %v1176_v34 = vmul.f32 %v9598_v10, %v6422_v8  ;;  %v1143_v38 = vadd.f32 %v1141_v47, %v1113_v25 }
 0x165   : > { %v1151_v11 = vsel %vm731_vm2, %v1149_v28, %v1150_v40  ;;  %v1185_v56 = vmul.f32 %v9599_v33, %v6410_v17  ;;  %v1186_v19 = vmul.f32 %v9599_v33, %v6422_v8  ;;  %v1161_v35 = vsel %vm762_vm3, %v1159_v2, %v1160_v14 }
 0x166   : > { %v1153_v27 = vadd.f32 %v1151_v11, %v1123_v58  ;;  %v1169_v57 = vrot.slane %v1165_v3, 3  ;;  %v1170_v45 = vrot.slane %v1166_v50, 3  ;;  %v1179_v15 = vrot.slane %v1175_v46, 3 }
 0x167   : > { %v1180_v22 = vrot.slane %v1176_v34, 3  ;;  %v1189_v5 = vrot.slane %v1185_v56, 4  ;;  %v1190_v21 = vrot.slane %v1186_v19, 4  ;;  %v1195_v44 = vmul.f32 %v9600_v20, %v6410_v17 }
 0x168   : > { %v1171_v0 = vsel %vm762_vm3, %v1169_v57, %v1170_v45  ;;  %v1196_v31 = vmul.f32 %v9600_v20, %v6422_v8  ;;  %v1205_v18 = vmul.f32 %v9601_v12, %v6410_v17  ;;  %v1163_v30 = vadd.f32 %v1161_v35, %v1133_v41 }
 0x169   : > { %v1173_v53 = vadd.f32 %v1171_v0, %v1143_v38  ;;  %v1181_v25 = vsel %vm762_vm3, %v1179_v15, %v1180_v22  ;;  %v1206_v60 = vmul.f32 %v9601_v12, %v6422_v8  ;;  %v1191_v6 = vsel %vm793_vm4, %v1189_v5, %v1190_v21 }
 0x16a   : > { %v6507_v7 = vadd.f32 %v1181_v25, %v1153_v27  ;;  %v1199_v62 = vrot.slane %v1195_v44, 4  ;;  %v1200_v13 = vrot.slane %v1196_v31, 4  ;;  %v1209_v55 = vrot.slane %v1205_v18, 4 }
 0x16b   : > { %v1210_v17 = vrot.slane %v1206_v60, 4  ;;  %v9602_v43 = vstv %s5835_s5  ;;  %v9603_v1 = vstv %s5900_s21  ;;  %v9604_v32 = vstv %s5940_s11  ;;  %s6783_s5 = sld [smem:[#allocation9 + $0x19]] }
 0x16c   : > { %v3059_v51 = vmul.f32 %v6500_v59, %v9602_v43  ;;  %v3061_v39 = vmul.f32 %v6500_v59, %v9603_v1  ;;  %v1201_v49 = vsel %vm793_vm4, %v1199_v62, %v1200_v13  ;;  %v3063_v8 = vmul.f32 %v6500_v59, %v9604_v32  ;;  %s6813_s21 = sld [smem:[#allocation9 + $0xb4]] }
 0x16d   : > { %v3065_v63 = vmul.f32 %v6500_v59, %v9576_v36  ;;  %v3066_v9 = vmul.f32 %v6505_v37, %v9576_v36  ;;  %v6524_v58 = vadd.f32 %v1191_v6, %v1163_v30  ;;  %v6526_v41 = vadd.f32 %v1201_v49, %v1173_v53  ;;  %s6867_s11 = sld [smem:[#allocation9 + $0x73]] }
 0x16e   : > { %v6529_v28 = vsel %vm793_vm4, %v1209_v55, %v1210_v17  ;;  %v3060_v47 = vadd.f32 %v3059_v51, %v6461_v24  ;;  %v3062_v40 = vadd.f32 %v3061_v39, %v3045_v61  ;;  %v3064_v2 = vadd.f32 %v3063_v8, %v3054_v29 }
 0x16f   : > { %v3069_v14 = vrot.slane %v3065_v63, 1  ;;  %v3070_v3 = vrot.slane %v3066_v9, 1  ;;  %v3074_v50 = vmul.f32 %v6500_v59, %v9578_v16  ;;  %v3075_v46 = vmul.f32 %v6505_v37, %v9578_v16 }
 0x170   : > { %v3083_v36 = vmul.f32 %v6500_v59, %v9581_v52  ;;  %v3084_v34 = vmul.f32 %v6505_v37, %v9581_v52  ;;  %v3092_v24 = vmul.f32 %v6500_v59, %v9588_v54  ;;  %v3093_v61 = vmul.f32 %v6505_v37, %v9588_v54 }
 0x171   : > { %v3071_v38 = vsel %vm700_vm1, %v3069_v14, %v3070_v3  ;;  %v3101_v29 = vmul.f32 %v6500_v59, %v9589_v23  ;;  %v3078_v56 = vrot.slane %v3074_v50, 1  ;;  %v3079_v16 = vrot.slane %v3075_v46, 1 }
 0x172   : > { %v3073_v11 = vadd.f32 %v3071_v38, %v3060_v47  ;;  %v3087_v19 = vrot.slane %v3083_v36, 1  ;;  %v3088_v27 = vrot.slane %v3084_v34, 1  ;;  %v3096_v35 = vrot.slane %v3092_v24, 2  ;;  %v6595_v38 = vpop.permute.xlu0 %1214 }
 0x173   : > { %v3097_v57 = vrot.slane %v3093_v61, 2  ;;  %v3102_v52 = vmul.f32 %v6505_v37, %v9589_v23  ;;  %v3080_v45 = vsel %vm700_vm1, %v3078_v56, %v3079_v16  ;;  %v3105_v15 = vrot.slane %v3101_v29, 2  ;;  %v6613_v16 = vpop.permute.xlu1 %1216 }
 0x174   : > { %v3110_v22 = vmul.f32 %v6500_v59, %v9594_v26  ;;  %v3111_v54 = vmul.f32 %v6505_v37, %v9594_v26  ;;  %v3082_v5 = vadd.f32 %v3080_v45, %v3062_v40  ;;  %v3089_v21 = vsel %vm700_vm1, %v3087_v19, %v3088_v27 }
 0x175   : > { %v3098_v0 = vsel %vm731_vm2, %v3096_v35, %v3097_v57  ;;  %v3106_v44 = vrot.slane %v3102_v52, 2  ;;  %v3091_v31 = vadd.f32 %v3089_v21, %v3064_v2  ;;  %v3119_v25 = vmul.f32 %v6500_v59, %v9595_v48  ;;  %v9606_v35 = vld [vmem:[#allocation87_spill] sm:$0xff] }
 0x176   : > { %v3100_v18 = vadd.f32 %v3098_v0, %v3073_v11  ;;  %v3114_v30 = vrot.slane %v3110_v22, 2  ;;  %v3115_v53 = vrot.slane %v3111_v54, 2  ;;  %v3120_v60 = vmul.f32 %v6505_v37, %v9595_v48 }
 0x177   : > { %v3107_v23 = vsel %vm731_vm2, %v3105_v15, %v3106_v44  ;;  %v3128_v26 = vmul.f32 %v6500_v59, %v9597_v42  ;;  %v3129_v13 = vmul.f32 %v6505_v37, %v9597_v42  ;;  %v3137_v55 = vmul.f32 %v6500_v59, %v9598_v10 }
 0x178   : > { %v3109_v6 = vadd.f32 %v3107_v23, %v3082_v5  ;;  %v3116_v62 = vsel %vm731_vm2, %v3114_v30, %v3115_v53  ;;  %v3123_v43 = vrot.slane %v3119_v25, 3  ;;  %v3124_v51 = vrot.slane %v3120_v60, 3 }
 0x179   : > { %v3118_v17 = vadd.f32 %v3116_v62, %v3091_v31  ;;  %v3132_v1 = vrot.slane %v3128_v26, 3  ;;  %v3133_v48 = vrot.slane %v3129_v13, 3  ;;  %v3138_v39 = vmul.f32 %v6505_v37, %v9598_v10 }
 0x17a   : > { %v3141_v49 = vrot.slane %v3137_v55, 3  ;;  %v3146_v32 = vmul.f32 %v6500_v59, %v9599_v33  ;;  %v3125_v42 = vsel %vm762_vm3, %v3123_v43, %v3124_v51  ;;  %v3147_v8 = vmul.f32 %v6505_v37, %v9599_v33 }
 0x17b   : > { %v3155_v63 = vmul.f32 %v6500_v59, %v9600_v20  ;;  %v3156_v9 = vmul.f32 %v6505_v37, %v9600_v20  ;;  %v3127_v47 = vadd.f32 %v3125_v42, %v3100_v18  ;;  %v3134_v10 = vsel %vm762_vm3, %v3132_v1, %v3133_v48 }
 0x17c   : > { %v3142_v40 = vrot.slane %v3138_v39, 3  ;;  %v3150_v2 = vrot.slane %v3146_v32, 4  ;;  %v3136_v14 = vadd.f32 %v3134_v10, %v3109_v6  ;;  %v3151_v3 = vrot.slane %v3147_v8, 4 }
 0x17d   : > { %v3159_v50 = vrot.slane %v3155_v63, 4  ;;  %v3160_v46 = vrot.slane %v3156_v9, 4  ;;  %v1213_v33 = vadd.f32 %v6529_v28, %v6507_v7  ;;  %v3164_v20 = vmul.f32 %v6500_v59, %v9601_v12 }
 0x17e   : > { %v3143_v36 = vsel %vm762_vm3, %v3141_v49, %v3142_v40  ;;  %v3165_v34 = vmul.f32 %v6505_v37, %v9601_v12  ;;  %v3152_v61 = vsel %vm793_vm4, %v3150_v2, %v3151_v3  ;;  %v9605_v7 = vstv %s5968_s17 }
 0x17f   : > { %v6599_v24 = vadd.f32 %v3143_v36, %v3118_v17  ;;  %v1219_v28 = vmul.f32 %v9605_v7, %v6595_v38  ;;  %v1221_v29 = vstv %s6563_s0  ;;  %v6606_v59 = vadd.f32 %v3152_v61, %v3127_v47  ;;  %s7035_s0 = sld [smem:[#allocation9 + $0xb0]] }
 0x180   : > { %v3161_v11 = vsel %vm793_vm4, %v3159_v50, %v3160_v46  ;;  %v3168_v12 = vrot.slane %v3164_v20, 4  ;;  %v3169_v37 = vrot.slane %v3165_v34, 4  ;;  %v1222_v19 = vmul.f32 %v1221_v29, %v6595_v38 }
 0x181   : > { %v6611_v56 = vadd.f32 %v3161_v11, %v3136_v14  ;;  %v1224_v27 = vstv %s6570_s10  ;;  %v1228_v57 = vmul.f32 %v9606_v35, %v6595_v38  ;;  %v1220_v52 = vadd.f32 %v1219_v28, %v6524_v58  ;;  %s7049_s10 = sld [smem:[#allocation9 + $0x24]] }
 0x182   : > { %v1225_v45 = vmul.f32 %v1224_v27, %v6595_v38  ;;  %v1229_v15 = vmul.f32 %v9606_v35, %v6613_v16  ;;  %v6630_v22 = vstv %s6576_s1  ;;  %v3170_v54 = vsel %vm793_vm4, %v3168_v12, %v3169_v37  ;;  %s7051_s1 = sld [smem:[#allocation9 + $0xb5]] }
 0x183   : > { %v1223_v5 = vadd.f32 %v1222_v19, %v6526_v41  ;;  %v1232_v21 = vrot.slane %v1228_v57, 1  ;;  %v1238_v0 = vmul.f32 %v6630_v22, %v6595_v38  ;;  %v1239_v31 = vmul.f32 %v6630_v22, %v6613_v16 }
 0x184   : > { %v1226_v58 = vadd.f32 %v1225_v45, %v1213_v33  ;;  %v1233_v44 = vrot.slane %v1229_v15, 1  ;;  %v6643_v18 = vstv %s6586_s13  ;;  %v1258_v23 = vmul.f32 %v6405_v4, %v6595_v38  ;;  %s7055_s13 = sld [smem:[#allocation9 + $0x6f]] }
 0x185   : > { %v1242_v30 = vrot.slane %v1238_v0, 1  ;;  %v1248_v53 = vmul.f32 %v6643_v18, %v6595_v38  ;;  %v1249_v41 = vmul.f32 %v6643_v18, %v6613_v16  ;;  %v1243_v60 = vrot.slane %v1239_v31, 1 }
 0x186   : > { %v1234_v25 = vsel %vm700_vm1, %v1232_v21, %v1233_v44  ;;  %v1259_v26 = vmul.f32 %v6405_v4, %v6613_v16  ;;  %v6657_v6 = vstv %s6597_s15  ;;  %v1262_v17 = vrot.slane %v1258_v23, 2  ;;  %s7060_s15 = sld [smem:[#allocation9 + $0xba]] }
 0x187   : > { %v1236_v62 = vadd.f32 %v1234_v25, %v1220_v52  ;;  %v1252_v13 = vrot.slane %v1248_v53, 1  ;;  %v1253_v55 = vrot.slane %v1249_v41, 1  ;;  %v1244_v43 = vsel %vm700_vm1, %v1242_v30, %v1243_v60  ;;  %v6717_v41 = vpop.permute.xlu0 %3173 }
 0x188   : > { %v1263_v51 = vrot.slane %v1259_v26, 2  ;;  %v1268_v1 = vmul.f32 %v6657_v6, %v6595_v38  ;;  %v1269_v48 = vmul.f32 %v6657_v6, %v6613_v16  ;;  %v1246_v39 = vadd.f32 %v1244_v43, %v1223_v5 }
 0x189   : > { %v1254_v49 = vsel %vm700_vm1, %v1252_v13, %v1253_v55  ;;  %v6668_v32 = vstv %s6615_s4  ;;  %v6671_v42 = vstv %s6609_s28  ;;  %v6686_v46 = vstv %s6633_s30  ;;  %s7094_s28 = sld [smem:[#allocation9 + $0x29]] }
 0x18a   : > { %v1256_v8 = vadd.f32 %v1254_v49, %v1226_v58  ;;  %v1264_v63 = vsel %vm731_vm2, %v1262_v17, %v1263_v51  ;;  %v1272_v9 = vrot.slane %v1268_v1, 2  ;;  %v1273_v47 = vrot.slane %v1269_v48, 2  ;;  %v6727_v1 = vpop.permute.xlu1 %3175  ;;  %s7101_s4 = sld [smem:[#allocation9 + $0x74]] }
 0x18b   : > { %v1266_v10 = vadd.f32 %v1264_v63, %v1236_v62  ;;  %v1278_v40 = vmul.f32 %v6668_v32, %v6595_v38  ;;  %v1279_v2 = vmul.f32 %v6668_v32, %v6613_v16  ;;  %v1288_v14 = vmul.f32 %v6671_v42, %v6595_v38  ;;  %s7118_s30 = sld [smem:[#allocation9 + $0x2e]] }
 0x18c   : > { %v1274_v3 = vsel %vm731_vm2, %v1272_v9, %v1273_v47  ;;  %v1289_v50 = vmul.f32 %v6671_v42, %v6613_v16  ;;  %v6689_v33 = vstv %s6638_s24  ;;  %v1298_v28 = vmul.f32 %v6686_v46, %v6595_v38  ;;  %s7129_s24 = sld [smem:[#allocation9 + $0xbf]] }
 0x18d   : > { %v1276_v36 = vadd.f32 %v1274_v3, %v1246_v39  ;;  %v1282_v20 = vrot.slane %v1278_v40, 2  ;;  %v1283_v34 = vrot.slane %v1279_v2, 2  ;;  %v1292_v61 = vrot.slane %v1288_v14, 3 }
 0x18e   : > { %v1293_v7 = vrot.slane %v1289_v50, 3  ;;  %v1299_v11 = vmul.f32 %v6686_v46, %v6613_v16  ;;  %v1308_v12 = vmul.f32 %v6689_v33, %v6595_v38  ;;  %v1309_v19 = vmul.f32 %v6689_v33, %v6613_v16 }
 0x18f   : > { %v1284_v37 = vsel %vm731_vm2, %v1282_v20, %v1283_v34  ;;  %v6701_v57 = vstv %s6651_s14  ;;  %v6704_v52 = vstv %s6659_s12  ;;  %v3172_v45 = vadd.f32 %v3170_v54, %v6599_v24  ;;  %s7139_s14 = sld [smem:[#allocation9 + $0x79]] }
 0x190   : > { %v1286_v15 = vadd.f32 %v1284_v37, %v1256_v8  ;;  %v1302_v5 = vrot.slane %v1298_v28, 3  ;;  %v1303_v21 = vrot.slane %v1299_v11, 3  ;;  %v1294_v0 = vsel %vm762_vm3, %v1292_v61, %v1293_v7  ;;  %s7144_s12 = sld [smem:[#allocation9 + $0xc4]] }
 0x191   : > { %v1312_v58 = vrot.slane %v1308_v12, 3  ;;  %v1313_v44 = vrot.slane %v1309_v19, 3  ;;  %v1318_v31 = vmul.f32 %v6701_v57, %v6595_v38  ;;  %v1319_v53 = vmul.f32 %v6701_v57, %v6613_v16 }
 0x192   : > { %v1304_v30 = vsel %vm762_vm3, %v1302_v5, %v1303_v21  ;;  %v1328_v24 = vmul.f32 %v6704_v52, %v6595_v38  ;;  %v1329_v54 = vmul.f32 %v6704_v52, %v6613_v16  ;;  %v1296_v23 = vadd.f32 %v1294_v0, %v1266_v10 }
 0x193   : > { %v1306_v25 = vadd.f32 %v1304_v30, %v1276_v36  ;;  %v1322_v60 = vrot.slane %v1318_v31, 4  ;;  %v6720_v26 = vstv %s6674_s16  ;;  %v1314_v62 = vsel %vm762_vm3, %v1312_v58, %v1313_v44  ;;  %s7156_s16 = sld [smem:[#allocation9 + $0x1b]] }
 0x194   : > { %v1323_v13 = vrot.slane %v1319_v53, 4  ;;  %v1332_v55 = vrot.slane %v1328_v24, 4  ;;  %v1333_v17 = vrot.slane %v1329_v54, 4  ;;  %v1338_v43 = vmul.f32 %v6720_v26, %v6595_v38 }
 0x195   : > { %v1339_v51 = vmul.f32 %v6720_v26, %v6613_v16  ;;  %v9607_v48 = vstv %s5968_s17  ;;  %v3179_v49 = vmul.f32 %v6717_v41, %v1221_v29  ;;  %v6735_v8 = vadd.f32 %v1314_v62, %v1286_v15  ;;  %s7015_s17 = sld [smem:[#allocation9 + $0x1a]] }
 0x196   : > { %v3177_v39 = vmul.f32 %v6717_v41, %v9607_v48  ;;  %v1324_v63 = vsel %vm793_vm4, %v1322_v60, %v1323_v13  ;;  %v3181_v9 = vmul.f32 %v6717_v41, %v1224_v27  ;;  %v3183_v38 = vmul.f32 %v6717_v41, %v9606_v35 }
 0x197   : > { %v6743_v47 = vadd.f32 %v1324_v63, %v1296_v23  ;;  %v1334_v16 = vsel %vm793_vm4, %v1332_v55, %v1333_v17  ;;  %v1342_v10 = vrot.slane %v1338_v43, 4  ;;  %v1343_v40 = vrot.slane %v1339_v51, 4 }
 0x198   : > { %v6746_v2 = vadd.f32 %v1334_v16, %v1306_v25  ;;  %v3178_v29 = vadd.f32 %v3177_v39, %v6606_v59  ;;  %v3180_v14 = vadd.f32 %v3179_v49, %v6611_v56  ;;  %v3184_v3 = vmul.f32 %v6727_v1, %v9606_v35 }
 0x199   : > { %v3182_v50 = vadd.f32 %v3181_v9, %v3172_v45  ;;  %v3187_v27 = vrot.slane %v3183_v38, 1  ;;  %v3192_v36 = vmul.f32 %v6717_v41, %v6630_v22  ;;  %v3193_v20 = vmul.f32 %v6727_v1, %v6630_v22 }
 0x19a   : > { %v6757_v34 = vsel %vm793_vm4, %v1342_v10, %v1343_v40  ;;  %v3188_v61 = vrot.slane %v3184_v3, 1  ;;  %v3201_v59 = vmul.f32 %v6717_v41, %v6643_v18  ;;  %v3202_v56 = vmul.f32 %v6727_v1, %v6643_v18 }
 0x19b   : > { %v3196_v7 = vrot.slane %v3192_v36, 1  ;;  %v3197_v35 = vrot.slane %v3193_v20, 1  ;;  %v3210_v28 = vmul.f32 %v6717_v41, %v6405_v4  ;;  %v3211_v11 = vmul.f32 %v6727_v1, %v6405_v4 }
 0x19c   : > { %v3189_v22 = vsel %vm700_vm1, %v3187_v27, %v3188_v61  ;;  %v3205_v12 = vrot.slane %v3201_v59, 1  ;;  %v3206_v37 = vrot.slane %v3202_v56, 1  ;;  %v3219_v19 = vmul.f32 %v6717_v41, %v6657_v6 }
 0x19d   : > { %v3191_v45 = vadd.f32 %v3189_v22, %v3178_v29  ;;  %v3198_v15 = vsel %vm700_vm1, %v3196_v7, %v3197_v35  ;;  %v3214_v5 = vrot.slane %v3210_v28, 2  ;;  %v3215_v18 = vrot.slane %v3211_v11, 2 }
 0x19e   : > { %v3200_v21 = vadd.f32 %v3198_v15, %v3180_v14  ;;  %v3207_v0 = vsel %vm700_vm1, %v3205_v12, %v3206_v37  ;;  %v3220_v58 = vmul.f32 %v6727_v1, %v6657_v6  ;;  %v3223_v44 = vrot.slane %v3219_v19, 2 }
 0x19f   : > { %v3209_v4 = vadd.f32 %v3207_v0, %v3182_v50  ;;  %v3216_v31 = vsel %vm731_vm2, %v3214_v5, %v3215_v18  ;;  %v3228_v30 = vmul.f32 %v6717_v41, %v6668_v32  ;;  %v3229_v53 = vmul.f32 %v6727_v1, %v6668_v32 }
 0x1a0   : > { %v3218_v24 = vadd.f32 %v3216_v31, %v3191_v45  ;;  %v3224_v54 = vrot.slane %v3220_v58, 2  ;;  %v3237_v23 = vmul.f32 %v6717_v41, %v6671_v42  ;;  %v3238_v25 = vmul.f32 %v6727_v1, %v6671_v42  ;;  %v6846_v45 = vpop.permute.xlu1 %1360 }
 0x1a1   : > { %v3232_v6 = vrot.slane %v3228_v30, 2  ;;  %v3233_v60 = vrot.slane %v3229_v53, 2  ;;  %v3246_v62 = vmul.f32 %v6717_v41, %v6686_v46  ;;  %v3247_v13 = vmul.f32 %v6727_v1, %v6686_v46 }
 0x1a2   : > { %v3225_v32 = vsel %vm731_vm2, %v3223_v44, %v3224_v54  ;;  %v3241_v55 = vrot.slane %v3237_v23, 3  ;;  %v3242_v17 = vrot.slane %v3238_v25, 3  ;;  %v3255_v43 = vmul.f32 %v6717_v41, %v6689_v33 }
 0x1a3   : > { %v3227_v42 = vadd.f32 %v3225_v32, %v3200_v21  ;;  %v3234_v51 = vsel %vm731_vm2, %v3232_v6, %v3233_v60  ;;  %v3250_v48 = vrot.slane %v3246_v62, 3  ;;  %v3251_v39 = vrot.slane %v3247_v13, 3 }
 0x1a4   : > { %v3236_v49 = vadd.f32 %v3234_v51, %v3209_v4  ;;  %v3243_v63 = vsel %vm762_vm3, %v3241_v55, %v3242_v17  ;;  %v3256_v46 = vmul.f32 %v6727_v1, %v6689_v33  ;;  %v3259_v9 = vrot.slane %v3255_v43, 3 }
 0x1a5   : > { %v3245_v38 = vadd.f32 %v3243_v63, %v3218_v24  ;;  %v3252_v16 = vsel %vm762_vm3, %v3250_v48, %v3251_v39  ;;  %v3264_v10 = vmul.f32 %v6717_v41, %v6701_v57  ;;  %v3265_v40 = vmul.f32 %v6727_v1, %v6701_v57 }
 0x1a6   : > { %v3254_v29 = vadd.f32 %v3252_v16, %v3227_v42  ;;  %v3260_v14 = vrot.slane %v3256_v46, 3  ;;  %v3273_v33 = vmul.f32 %v6717_v41, %v6704_v52  ;;  %v3274_v3 = vmul.f32 %v6727_v1, %v6704_v52 }
 0x1a7   : > { %v3268_v50 = vrot.slane %v3264_v10, 4  ;;  %v3269_v27 = vrot.slane %v3265_v40, 4  ;;  %v3282_v36 = vmul.f32 %v6717_v41, %v6720_v26  ;;  %v3283_v57 = vmul.f32 %v6727_v1, %v6720_v26  ;;  %v6829_v1 = vpop.permute.xlu0 %1358 }
 0x1a8   : > { %v3261_v20 = vsel %vm762_vm3, %v3259_v9, %v3260_v14  ;;  %v3277_v61 = vrot.slane %v3273_v33, 4  ;;  %v3278_v52 = vrot.slane %v3274_v3, 4  ;;  %v1362_v59 = vstv %s6783_s5  ;;  %s7163_s5 = sld [smem:[#allocation9 + $0x66]] }
 0x1a9   : > { %v1346_v56 = vadd.f32 %v6757_v34, %v6735_v8  ;;  %v6827_v7 = vadd.f32 %v3261_v20, %v3236_v49  ;;  %v3286_v41 = vrot.slane %v3282_v36, 4  ;;  %v3287_v26 = vrot.slane %v3283_v57, 4 }
 0x1aa   : > { %v3270_v35 = vsel %vm793_vm4, %v3268_v50, %v3269_v27  ;;  %v3279_v28 = vsel %vm793_vm4, %v3277_v61, %v3278_v52  ;;  %v1363_v11 = vmul.f32 %v1362_v59, %v6829_v1  ;;  %v1365_v22 = vstv %s6792_s2  ;;  %s7170_s2 = sld [smem:[#allocation9 + $0x20]] }
 0x1ab   : > { %v6837_v12 = vadd.f32 %v3270_v35, %v3245_v38  ;;  %v6839_v8 = vadd.f32 %v3279_v28, %v3254_v29  ;;  %v1366_v34 = vmul.f32 %v1365_v22, %v6829_v1  ;;  %v1368_v37 = vstv %s6795_s18  ;;  %s7179_s18 = sld [smem:[#allocation9 + $0xb1]] }
 0x1ac   : > { %v3288_v19 = vsel %vm793_vm4, %v3286_v41, %v3287_v26  ;;  %v1364_v15 = vadd.f32 %v1363_v11, %v6743_v47  ;;  %v1369_v5 = vmul.f32 %v1368_v37, %v6829_v1  ;;  %v6855_v18 = vstv %s6800_s19  ;;  %s7184_s19 = sld [smem:[#allocation9 + $0x6b]] }
 0x1ad   : > { %v1367_v21 = vadd.f32 %v1366_v34, %v6746_v2  ;;  %v1372_v0 = vmul.f32 %v6855_v18, %v6829_v1  ;;  %v1373_v58 = vmul.f32 %v6855_v18, %v6846_v45  ;;  %v6865_v44 = vstv %s6807_s20  ;;  %s7199_s20 = sld [smem:[#allocation9 + $0xb6]] }
 0x1ae   : > { %v1370_v47 = vadd.f32 %v1369_v5, %v1346_v56  ;;  %v1382_v4 = vmul.f32 %v6865_v44, %v6829_v1  ;;  %v1383_v31 = vmul.f32 %v6865_v44, %v6846_v45  ;;  %v6874_v2 = vstv %s6813_s21  ;;  %s7201_s21 = sld [smem:[#allocation9 + $0x25]] }
 0x1af   : > { %v1376_v30 = vrot.slane %v1372_v0, 1  ;;  %v1377_v53 = vrot.slane %v1373_v58, 1  ;;  %v1392_v24 = vmul.f32 %v6874_v2, %v6829_v1  ;;  %v1393_v54 = vmul.f32 %v6874_v2, %v6846_v45 }
 0x1b0   : > { %v1386_v23 = vrot.slane %v1382_v4, 1  ;;  %v1387_v25 = vrot.slane %v1383_v31, 1  ;;  %v6883_v6 = vstv %s6819_s23  ;;  %v6886_v60 = vstv %s6822_s6  ;;  %s7215_s23 = sld [smem:[#allocation9 + $0x70]] }
 0x1b1   : > { %v1378_v62 = vsel %vm700_vm1, %v1376_v30, %v1377_v53  ;;  %v1396_v13 = vrot.slane %v1392_v24, 1  ;;  %v1397_v32 = vrot.slane %v1393_v54, 1  ;;  %v1402_v55 = vmul.f32 %v6883_v6, %v6829_v1  ;;  %v6951_v24 = vpop.permute.xlu0 %3297  ;;  %s7217_s6 = sld [smem:[#allocation9 + $0xbb]] }
 0x1b2   : > { %v1380_v17 = vadd.f32 %v1378_v62, %v1364_v15  ;;  %v1388_v43 = vsel %vm700_vm1, %v1386_v23, %v1387_v25  ;;  %v1403_v42 = vmul.f32 %v6883_v6, %v6846_v45  ;;  %v1412_v51 = vmul.f32 %v6886_v60, %v6829_v1 }
 0x1b3   : > { %v1390_v48 = vadd.f32 %v1388_v43, %v1367_v21  ;;  %v1398_v39 = vsel %vm700_vm1, %v1396_v13, %v1397_v32  ;;  %v1406_v49 = vrot.slane %v1402_v55, 2  ;;  %v1413_v63 = vmul.f32 %v6886_v60, %v6846_v45 }
 0x1b4   : > { %v1400_v46 = vadd.f32 %v1398_v39, %v1370_v47  ;;  %v1407_v9 = vrot.slane %v1403_v42, 2  ;;  %v1416_v38 = vrot.slane %v1412_v51, 2  ;;  %v6906_v16 = vstv %s6848_s8  ;;  %s9610_s8 = sld [smem:[#allocation32_spill]] }
 0x1b5   : > { %v1417_v10 = vrot.slane %v1413_v63, 2  ;;  %v1422_v40 = vmul.f32 %v6906_v16, %v6829_v1  ;;  %v1423_v29 = vmul.f32 %v6906_v16, %v6846_v45  ;;  %v6913_v14 = vstv %s6857_s22  ;;  %s7385_s22 = sld [smem:[#allocation9 + $0x2a]] }
 0x1b6   : > { %v1408_v33 = vsel %vm731_vm2, %v1406_v49, %v1407_v9  ;;  %v1432_v3 = vmul.f32 %v6913_v14, %v6829_v1  ;;  %v1433_v50 = vmul.f32 %v6913_v14, %v6846_v45  ;;  %v6921_v27 = vstv %s6867_s11  ;;  %s7388_s11 = sld [smem:[#allocation9 + $0x75]] }
 0x1b7   : > { %v3290_v36 = vadd.f32 %v3288_v19, %v6827_v7  ;;  %v1410_v57 = vadd.f32 %v1408_v33, %v1380_v17  ;;  %v1426_v20 = vrot.slane %v1422_v40, 2  ;;  %v1427_v61 = vrot.slane %v1423_v29, 2 }
 0x1b8   : > { %v1418_v52 = vsel %vm731_vm2, %v1416_v38, %v1417_v10  ;;  %v1436_v56 = vrot.slane %v1432_v3, 3  ;;  %v1437_v41 = vrot.slane %v1433_v50, 3  ;;  %v1442_v26 = vmul.f32 %v6921_v27, %v6829_v1 }
 0x1b9   : > { %v1428_v35 = vsel %vm731_vm2, %v1426_v20, %v1427_v61  ;;  %v1443_v28 = vmul.f32 %v6921_v27, %v6846_v45  ;;  %v6931_v11 = vstv %s6888_s3  ;;  %v6934_v7 = vstv %s6880_s9  ;;  %s7392_s9 = sld [smem:[#allocation9 + $0xc0]] }
 0x1ba   : > { %v1420_v34 = vadd.f32 %v1418_v52, %v1390_v48  ;;  %v1430_v19 = vadd.f32 %v1428_v35, %v1400_v46  ;;  %v1446_v15 = vrot.slane %v1442_v26, 3  ;;  %v1452_v5 = vmul.f32 %v6931_v11, %v6829_v1  ;;  %v6962_v48 = vpop.permute.xlu1 %3299  ;;  %s7399_s3 = sld [smem:[#allocation9 + $0x2f]] }
 0x1bb   : > { %v1438_v21 = vsel %vm762_vm3, %v1436_v56, %v1437_v41  ;;  %v1447_v0 = vrot.slane %v1443_v28, 3  ;;  %v1453_v58 = vmul.f32 %v6931_v11, %v6846_v45  ;;  %v1462_v47 = vmul.f32 %v6934_v7, %v6829_v1 }
 0x1bc   : > { %v1456_v4 = vrot.slane %v1452_v5, 3  ;;  %v1463_v31 = vmul.f32 %v6934_v7, %v6846_v45  ;;  %v6946_v30 = vstv %s6898_s27  ;;  %v6949_v53 = vstv %s6903_s26  ;;  %s7404_s27 = sld [smem:[#allocation9 + $0x7a]] }
 0x1bd   : > { %v1440_v54 = vadd.f32 %v1438_v21, %v1410_v57  ;;  %v1457_v23 = vrot.slane %v1453_v58, 3  ;;  %v1466_v25 = vrot.slane %v1462_v47, 4  ;;  %v1472_v62 = vmul.f32 %v6946_v30, %v6829_v1  ;;  %s7408_s26 = sld [smem:[#allocation9 + $0xc5]] }
 0x1be   : > { %v1448_v13 = vsel %vm762_vm3, %v1446_v15, %v1447_v0  ;;  %v1467_v32 = vrot.slane %v1463_v31, 4  ;;  %v1473_v55 = vmul.f32 %v6946_v30, %v6846_v45  ;;  %v1482_v17 = vmul.f32 %v6949_v53, %v6829_v1 }
 0x1bf   : > { %v1450_v43 = vadd.f32 %v1448_v13, %v1420_v34  ;;  %v1476_v42 = vrot.slane %v1472_v62, 4  ;;  %v1483_v51 = vmul.f32 %v6949_v53, %v6846_v45  ;;  %v3301_v39 = vmul.f32 %v6951_v24, %v1362_v59 }
 0x1c0   : > { %v1458_v49 = vsel %vm762_vm3, %v1456_v4, %v1457_v23  ;;  %v1468_v63 = vsel %vm793_vm4, %v1466_v25, %v1467_v32  ;;  %v1477_v46 = vrot.slane %v1473_v55, 4  ;;  %v1486_v9 = vrot.slane %v1482_v17, 4 }
 0x1c1   : > { %v6969_v38 = vadd.f32 %v1458_v49, %v1430_v19  ;;  %v6971_v10 = vadd.f32 %v1468_v63, %v1440_v54  ;;  %v1487_v1 = vrot.slane %v1483_v51, 4  ;;  %v3303_v40 = vmul.f32 %v6951_v24, %v1365_v22 }
 0x1c2   : > { %v1478_v45 = vsel %vm793_vm4, %v1476_v42, %v1477_v46  ;;  %v3305_v29 = vmul.f32 %v6951_v24, %v1368_v37  ;;  %v3307_v59 = vmul.f32 %v6951_v24, %v6855_v18  ;;  %v3308_v33 = vmul.f32 %v6962_v48, %v6855_v18 }
 0x1c3   : > { %v6984_v3 = vadd.f32 %v1478_v45, %v1450_v43  ;;  %v6987_v50 = vsel %vm793_vm4, %v1486_v9, %v1487_v1  ;;  %v3302_v57 = vadd.f32 %v3301_v39, %v6837_v12  ;;  %v3316_v22 = vmul.f32 %v6951_v24, %v6865_v44 }
 0x1c4   : > { %v3304_v20 = vadd.f32 %v3303_v40, %v6839_v8  ;;  %v3306_v61 = vadd.f32 %v3305_v29, %v3290_v36  ;;  %v3311_v37 = vrot.slane %v3307_v59, 1  ;;  %v3312_v52 = vrot.slane %v3308_v33, 1 }
 0x1c5   : > { %v3317_v56 = vmul.f32 %v6962_v48, %v6865_v44  ;;  %v3320_v41 = vrot.slane %v3316_v22, 1  ;;  %v3325_v18 = vmul.f32 %v6951_v24, %v6874_v2  ;;  %v3326_v26 = vmul.f32 %v6962_v48, %v6874_v2 }
 0x1c6   : > { %v3313_v12 = vsel %vm700_vm1, %v3311_v37, %v3312_v52  ;;  %v3334_v35 = vmul.f32 %v6951_v24, %v6883_v6  ;;  %v3335_v8 = vmul.f32 %v6962_v48, %v6883_v6  ;;  %v3343_v36 = vmul.f32 %v6951_v24, %v6886_v60 }
 0x1c7   : > { %v3315_v28 = vadd.f32 %v3313_v12, %v3302_v57  ;;  %v3321_v44 = vrot.slane %v3317_v56, 1  ;;  %v3329_v34 = vrot.slane %v3325_v18, 1  ;;  %v3330_v19 = vrot.slane %v3326_v26, 1 }
 0x1c8   : > { %v3338_v15 = vrot.slane %v3334_v35, 2  ;;  %v3339_v5 = vrot.slane %v3335_v8, 2  ;;  %v3344_v2 = vmul.f32 %v6962_v48, %v6886_v60  ;;  %v3347_v21 = vrot.slane %v3343_v36, 2  ;;  %v7069_v8 = vpop.permute.xlu0 %1491 }
 0x1c9   : > { %v3322_v0 = vsel %vm700_vm1, %v3320_v41, %v3321_v44  ;;  %v3331_v58 = vsel %vm700_vm1, %v3329_v34, %v3330_v19  ;;  %v3352_v6 = vmul.f32 %v6951_v24, %v6906_v16  ;;  %v3353_v47 = vmul.f32 %v6962_v48, %v6906_v16 }
 0x1ca   : > { %v3324_v4 = vadd.f32 %v3322_v0, %v3304_v20  ;;  %v3333_v31 = vadd.f32 %v3331_v58, %v3306_v61  ;;  %v3340_v54 = vsel %vm731_vm2, %v3338_v15, %v3339_v5  ;;  %v3348_v23 = vrot.slane %v3344_v2, 2  ;;  %v7092_v5 = vpop.permute.xlu1 %1493 }
 0x1cb   : > { %v3342_v25 = vadd.f32 %v3340_v54, %v3315_v28  ;;  %v3356_v60 = vrot.slane %v3352_v6, 2  ;;  %v3357_v62 = vrot.slane %v3353_v47, 2  ;;  %v3361_v13 = vmul.f32 %v6951_v24, %v6913_v14 }
 0x1cc   : > { %v3349_v32 = vsel %vm731_vm2, %v3347_v21, %v3348_v23  ;;  %v3362_v16 = vmul.f32 %v6962_v48, %v6913_v14  ;;  %v3370_v55 = vmul.f32 %v6951_v24, %v6921_v27  ;;  %v3371_v17 = vmul.f32 %v6962_v48, %v6921_v27 }
 0x1cd   : > { %v3351_v43 = vadd.f32 %v3349_v32, %v3324_v4  ;;  %v3358_v42 = vsel %vm731_vm2, %v3356_v60, %v3357_v62  ;;  %v3365_v51 = vrot.slane %v3361_v13, 3  ;;  %v3379_v39 = vmul.f32 %v6951_v24, %v6931_v11 }
 0x1ce   : > { %v3360_v49 = vadd.f32 %v3358_v42, %v3333_v31  ;;  %v3366_v63 = vrot.slane %v3362_v16, 3  ;;  %v3374_v14 = vrot.slane %v3370_v55, 3  ;;  %v3375_v46 = vrot.slane %v3371_v17, 3 }
 0x1cf   : > { %v3380_v27 = vmul.f32 %v6962_v48, %v6931_v11  ;;  %v3383_v9 = vrot.slane %v3379_v39, 3  ;;  %v3388_v1 = vmul.f32 %v6951_v24, %v6934_v7  ;;  %v3389_v40 = vmul.f32 %v6962_v48, %v6934_v7 }
 0x1d0   : > { %v3367_v45 = vsel %vm762_vm3, %v3365_v51, %v3366_v63  ;;  %v3376_v29 = vsel %vm762_vm3, %v3374_v14, %v3375_v46  ;;  %v3397_v59 = vmul.f32 %v6951_v24, %v6946_v30  ;;  %v3398_v33 = vmul.f32 %v6962_v48, %v6946_v30 }
 0x1d1   : > { %v3369_v11 = vadd.f32 %v3367_v45, %v3342_v25  ;;  %v3378_v57 = vadd.f32 %v3376_v29, %v3351_v43  ;;  %v3384_v22 = vrot.slane %v3380_v27, 3  ;;  %v3392_v20 = vrot.slane %v3388_v1, 4 }
 0x1d2   : > { %v3393_v7 = vrot.slane %v3389_v40, 4  ;;  %v3401_v61 = vrot.slane %v3397_v59, 4  ;;  %v3402_v37 = vrot.slane %v3398_v33, 4  ;;  %v3406_v52 = vmul.f32 %v6951_v24, %v6949_v53 }
 0x1d3   : > { %v3385_v30 = vsel %vm762_vm3, %v3383_v9, %v3384_v22  ;;  %v3407_v56 = vmul.f32 %v6962_v48, %v6949_v53  ;;  %v1495_v41 = vstv %s7015_s17  ;;  %v1498_v18 = vstv %s7019_s25  ;;  %s7425_s17 = sld [smem:[#allocation9 + $0x1c]] }
 0x1d4   : > { %v1490_v26 = vadd.f32 %v6987_v50, %v6969_v38  ;;  %v7066_v12 = vadd.f32 %v3385_v30, %v3360_v49  ;;  %v3394_v24 = vsel %vm793_vm4, %v3392_v20, %v3393_v7  ;;  %v3410_v35 = vrot.slane %v3406_v52, 4  ;;  %s7435_s25 = sld [smem:[#allocation9 + $0x67]] }
 0x1d5   : > { %v7071_v36 = vadd.f32 %v3394_v24, %v3369_v11  ;;  %v3403_v53 = vsel %vm793_vm4, %v3401_v61, %v3402_v37  ;;  %v3411_v48 = vrot.slane %v3407_v56, 4  ;;  %v1496_v28 = vmul.f32 %v1495_v41, %v7069_v8 }
 0x1d6   : > { %v1499_v44 = vmul.f32 %v1498_v18, %v7069_v8  ;;  %v1501_v38 = vstv %s7035_s0  ;;  %v7082_v50 = vstv %s7028_s29  ;;  %v7085_v34 = vstv %s7033_s7  ;;  %s7449_s29 = sld [smem:[#allocation9 + $0xb2]] }
 0x1d7   : > { %v7087_v19 = vadd.f32 %v3403_v53, %v3378_v57  ;;  %v7090_v15 = vsel %vm793_vm4, %v3410_v35, %v3411_v48  ;;  %v1502_v2 = vmul.f32 %v1501_v38, %v7069_v8  ;;  %v1505_v21 = vmul.f32 %v7082_v50, %v7069_v8  ;;  %s7455_s7 = sld [smem:[#allocation9 + $0x21]] }
 0x1d8   : > { %v1497_v0 = vadd.f32 %v1496_v28, %v6971_v10  ;;  %v1500_v58 = vadd.f32 %v1499_v44, %v6984_v3  ;;  %v1506_v6 = vmul.f32 %v7082_v50, %v7092_v5  ;;  %v1515_v47 = vmul.f32 %v7085_v34, %v7069_v8  ;;  %s7467_s0 = sld [smem:[#allocation9 + $0x6c]] }
 0x1d9   : > { %v1503_v4 = vadd.f32 %v1502_v2, %v1490_v26  ;;  %v1509_v31 = vrot.slane %v1505_v21, 1  ;;  %v1516_v54 = vmul.f32 %v7085_v34, %v7092_v5  ;;  %v7112_v23 = vstv %s7051_s1  ;;  %s7480_s1 = sld [smem:[#allocation9 + $0xb7]] }
 0x1da   : > { %v1510_v25 = vrot.slane %v1506_v6, 1  ;;  %v1519_v60 = vrot.slane %v1515_v47, 1  ;;  %v1525_v10 = vmul.f32 %v7112_v23, %v7069_v8  ;;  %v1526_v3 = vmul.f32 %v7112_v23, %v7092_v5 }
 0x1db   : > { %v1520_v62 = vrot.slane %v1516_v54, 1  ;;  %v7121_v13 = vstv %s7049_s10  ;;  %v7124_v32 = vstv %s7055_s13  ;;  %v7127_v16 = vstv %s7060_s15  ;;  %s7471_s10 = sld [smem:[#allocation9 + $0x26]] }
 0x1dc   : > { %v1511_v55 = vsel %vm700_vm1, %v1509_v31, %v1510_v25  ;;  %v1529_v17 = vrot.slane %v1525_v10, 1  ;;  %v1530_v43 = vrot.slane %v1526_v3, 1  ;;  %v1535_v42 = vmul.f32 %v7121_v13, %v7069_v8  ;;  %s7491_s13 = sld [smem:[#allocation9 + $0x71]] }
 0x1dd   : > { %v1513_v51 = vadd.f32 %v1511_v55, %v1497_v0  ;;  %v1521_v39 = vsel %vm700_vm1, %v1519_v60, %v1520_v62  ;;  %v1536_v49 = vmul.f32 %v7121_v13, %v7092_v5  ;;  %v1545_v63 = vmul.f32 %v7124_v32, %v7069_v8  ;;  %s7500_s15 = sld [smem:[#allocation9 + $0x2b]] }
 0x1de   : > { %v1523_v14 = vadd.f32 %v1521_v39, %v1500_v58  ;;  %v1531_v46 = vsel %vm700_vm1, %v1529_v17, %v1530_v43  ;;  %v1539_v27 = vrot.slane %v1535_v42, 2  ;;  %v1546_v9 = vmul.f32 %v7124_v32, %v7092_v5 }
 0x1df   : > { %v1533_v1 = vadd.f32 %v1531_v46, %v1503_v4  ;;  %v1540_v40 = vrot.slane %v1536_v49, 2  ;;  %v1549_v45 = vrot.slane %v1545_v63, 2  ;;  %v1555_v29 = vmul.f32 %v7127_v16, %v7069_v8 }
 0x1e0   : > { %v1550_v59 = vrot.slane %v1546_v9, 2  ;;  %v1556_v33 = vmul.f32 %v7127_v16, %v7092_v5  ;;  %v7151_v11 = vstv %s7094_s28  ;;  %v7154_v57 = vstv %s7101_s4  ;;  %s7509_s28 = sld [smem:[#allocation9 + $0xbc]] }
 0x1e1   : > { %v1541_v22 = vsel %vm731_vm2, %v1539_v27, %v1540_v40  ;;  %v1559_v20 = vrot.slane %v1555_v29, 2  ;;  %v1565_v7 = vmul.f32 %v7151_v11, %v7069_v8  ;;  %v1566_v61 = vmul.f32 %v7151_v11, %v7092_v5  ;;  %v9608_v29 = vld [vmem:[#allocation34_spill] sm:$0xff]  ;;  %s7524_s4 = sld [smem:[#allocation9 + $0x76]] }
 0x1e2   : > { %v1543_v37 = vadd.f32 %v1541_v22, %v1513_v51  ;;  %v1551_v52 = vsel %vm731_vm2, %v1549_v45, %v1550_v59  ;;  %v1560_v30 = vrot.slane %v1556_v33, 2  ;;  %v1575_v56 = vmul.f32 %v7154_v57, %v7069_v8 }
 0x1e3   : > { %v1553_v26 = vadd.f32 %v1551_v52, %v1523_v14  ;;  %v1569_v24 = vrot.slane %v1565_v7, 3  ;;  %v1570_v35 = vrot.slane %v1566_v61, 3  ;;  %v1576_v53 = vmul.f32 %v7154_v57, %v7092_v5 }
 0x1e4   : > { %v1561_v48 = vsel %vm731_vm2, %v1559_v20, %v1560_v30  ;;  %v1579_v28 = vrot.slane %v1575_v56, 3  ;;  %v7174_v44 = vstv %s7129_s24  ;;  %v7177_v2 = vstv %s7118_s30  ;;  %s7530_s30 = sld [smem:[#allocation9 + $0xc1]] }
 0x1e5   : > { %v1563_v21 = vadd.f32 %v1561_v48, %v1533_v1  ;;  %v1571_v0 = vsel %vm762_vm3, %v1569_v24, %v1570_v35  ;;  %v1580_v58 = vrot.slane %v1576_v53, 3  ;;  %v1585_v6 = vmul.f32 %v7174_v44, %v7069_v8  ;;  %v9609_v35 = vld [vmem:[#allocation33_spill] sm:$0xff]  ;;  %s7550_s24 = sld [smem:[#allocation9 + $0x30]] }
 0x1e6   : > { %v1573_v47 = vadd.f32 %v1571_v0, %v1543_v37  ;;  %v1586_v4 = vmul.f32 %v7174_v44, %v7092_v5  ;;  %v1595_v31 = vmul.f32 %v7177_v2, %v7069_v8  ;;  %v1596_v54 = vmul.f32 %v7177_v2, %v7092_v5 }
 0x1e7   : > { %v1581_v25 = vsel %vm762_vm3, %v1579_v28, %v1580_v58  ;;  %v1589_v60 = vrot.slane %v1585_v6, 3  ;;  %v7194_v10 = vstv %s7139_s14  ;;  %v7197_v3 = vstv %s7144_s12  ;;  %s7555_s14 = sld [smem:[#allocation9 + $0x7b]] }
 0x1e8   : > { %v1583_v62 = vadd.f32 %v1581_v25, %v1553_v26  ;;  %v1590_v55 = vrot.slane %v1586_v4, 3  ;;  %v1599_v17 = vrot.slane %v1595_v31, 4  ;;  %v1600_v43 = vrot.slane %v1596_v54, 4  ;;  %s7566_s12 = sld [smem:[#allocation9 + $0xc6]] }
 0x1e9   : > { %v1605_v42 = vmul.f32 %v7194_v10, %v7069_v8  ;;  %v1606_v51 = vmul.f32 %v7194_v10, %v7092_v5  ;;  %v1615_v39 = vmul.f32 %v7197_v3, %v7069_v8  ;;  %v1616_v49 = vmul.f32 %v7197_v3, %v7092_v5 }
 0x1ea   : > { %v1591_v63 = vsel %vm762_vm3, %v1589_v60, %v1590_v55  ;;  %v1601_v14 = vsel %vm793_vm4, %v1599_v17, %v1600_v43  ;;  %v1624_v46 = vstv %s7156_s16  ;;  %v1627_v27 = vstv %s7163_s5  ;;  %s7708_s16 = sld [smem:[#allocation9 + $0x1d]] }
 0x1eb   : > { %v1593_v9 = vadd.f32 %v1591_v63, %v1563_v21  ;;  %v1603_v1 = vadd.f32 %v1601_v14, %v1573_v47  ;;  %v1609_v40 = vrot.slane %v1605_v42, 4  ;;  %v1610_v45 = vrot.slane %v1606_v51, 4  ;;  %s7710_s5 = sld [smem:[#allocation9 + $0x68]] }
 0x1ec   : > { %v1619_v8 = vrot.slane %v1615_v39, 4  ;;  %v1620_v5 = vrot.slane %v1616_v49, 4  ;;  %v1625_v59 = vmul.f32 %v1624_v46, %v9608_v29  ;;  %v1628_v33 = vmul.f32 %v1627_v27, %v9608_v29  ;;  %v7269_v49 = vpop.permute.xlu0 %3415 }
 0x1ed   : > { %v3414_v22 = vadd.f32 %v7090_v15, %v7066_v12  ;;  %v1611_v20 = vsel %vm793_vm4, %v1609_v40, %v1610_v45  ;;  %v1630_v7 = vstv %s7179_s18  ;;  %v7230_v61 = vstv %s7170_s2  ;;  %s7716_s2 = sld [smem:[#allocation9 + $0x22]] }
 0x1ee   : > { %v1613_v37 = vadd.f32 %v1611_v20, %v1583_v62  ;;  %v1621_v52 = vsel %vm793_vm4, %v1619_v8, %v1620_v5  ;;  %v1631_v30 = vmul.f32 %v1630_v7, %v9608_v29  ;;  %v7237_v56 = vstv %s7184_s19  ;;  %s7725_s18 = sld [smem:[#allocation9 + $0xb3]] }
 0x1ef   : > { %v1623_v26 = vadd.f32 %v1621_v52, %v1593_v9  ;;  %v1634_v24 = vmul.f32 %v7230_v61, %v9608_v29  ;;  %v1635_v12 = vmul.f32 %v7230_v61, %v9609_v35  ;;  %v1644_v15 = vmul.f32 %v7237_v56, %v9608_v29  ;;  %s7728_s19 = sld [smem:[#allocation9 + $0x27]] }
 0x1f0   : > { %v1626_v53 = vadd.f32 %v1625_v59, %v1603_v1  ;;  %v1629_v48 = vadd.f32 %v1628_v33, %v1613_v37  ;;  %v1645_v28 = vmul.f32 %v7237_v56, %v9609_v35  ;;  %v7248_v21 = vstv %s7199_s20  ;;  %v7281_v37 = vpop.permute.xlu1 %3417  ;;  %s7732_s20 = sld [smem:[#allocation9 + $0x6d]] }
 0x1f1   : > { %v1638_v0 = vrot.slane %v1634_v24, 1  ;;  %v1639_v58 = vrot.slane %v1635_v12, 1  ;;  %v1648_v6 = vrot.slane %v1644_v15, 1  ;;  %v7251_v47 = vstv %s7201_s21  ;;  %s7739_s21 = sld [smem:[#allocation9 + $0x72]] }
 0x1f2   : > { %v1649_v4 = vrot.slane %v1645_v28, 1  ;;  %v1654_v31 = vmul.f32 %v7248_v21, %v9608_v29  ;;  %v1655_v54 = vmul.f32 %v7248_v21, %v9609_v35  ;;  %v1664_v25 = vmul.f32 %v7251_v47, %v9608_v29 }
 0x1f3   : > { %v1632_v60 = vadd.f32 %v1631_v30, %v1623_v26  ;;  %v1640_v62 = vsel %vm700_vm1, %v1638_v0, %v1639_v58  ;;  %v1665_v55 = vmul.f32 %v7251_v47, %v9609_v35  ;;  %v7263_v17 = vstv %s7215_s23  ;;  %s7745_s23 = sld [smem:[#allocation9 + $0xb8]] }
 0x1f4   : > { %v1650_v43 = vsel %vm700_vm1, %v1648_v6, %v1649_v4  ;;  %v1658_v42 = vrot.slane %v1654_v31, 1  ;;  %v1659_v51 = vrot.slane %v1655_v54, 1  ;;  %v7267_v39 = vstv %s7217_s6  ;;  %s7758_s6 = sld [smem:[#allocation9 + $0x2c]] }
 0x1f5   : > { %v1642_v63 = vadd.f32 %v1640_v62, %v1626_v53  ;;  %v1668_v14 = vrot.slane %v1664_v25, 2  ;;  %v1669_v9 = vrot.slane %v1665_v55, 2  ;;  %v1674_v1 = vmul.f32 %v7263_v17, %v9608_v29 }
 0x1f6   : > { %v1660_v40 = vsel %vm700_vm1, %v1658_v42, %v1659_v51  ;;  %v1675_v45 = vmul.f32 %v7263_v17, %v9609_v35  ;;  %v1684_v8 = vmul.f32 %v7267_v39, %v9608_v29  ;;  %v1685_v5 = vmul.f32 %v7267_v39, %v9609_v35 }
 0x1f7   : > { %v1652_v59 = vadd.f32 %v1650_v43, %v1629_v48  ;;  %v1670_v33 = vsel %vm731_vm2, %v1668_v14, %v1669_v9  ;;  %v1678_v20 = vrot.slane %v1674_v1, 2  ;;  %v3419_v52 = vmul.f32 %v7269_v49, %v1495_v41 }
 0x1f8   : > { %v7286_v30 = vadd.f32 %v1660_v40, %v1632_v60  ;;  %v1679_v26 = vrot.slane %v1675_v45, 2  ;;  %v1688_v24 = vrot.slane %v1684_v8, 2  ;;  %v1689_v12 = vrot.slane %v1685_v5, 2 }
 0x1f9   : > { %v7288_v15 = vadd.f32 %v1670_v33, %v1642_v63  ;;  %v3421_v53 = vmul.f32 %v7269_v49, %v1498_v18  ;;  %v3423_v48 = vmul.f32 %v7269_v49, %v1501_v38  ;;  %v3425_v28 = vmul.f32 %v7269_v49, %v7082_v50 }
 0x1fa   : > { %v1680_v0 = vsel %vm731_vm2, %v1678_v20, %v1679_v26  ;;  %v3420_v41 = vadd.f32 %v3419_v52, %v7071_v36  ;;  %v3426_v58 = vmul.f32 %v7281_v37, %v7082_v50  ;;  %v3434_v6 = vmul.f32 %v7269_v49, %v7085_v34 }
 0x1fb   : > { %v7304_v4 = vadd.f32 %v1680_v0, %v1652_v59  ;;  %v7307_v18 = vsel %vm731_vm2, %v1688_v24, %v1689_v12  ;;  %v3422_v38 = vadd.f32 %v3421_v53, %v7087_v19  ;;  %v3424_v31 = vadd.f32 %v3423_v48, %v3414_v22 }
 0x1fc   : > { %v3429_v54 = vrot.slane %v3425_v28, 1  ;;  %v3430_v25 = vrot.slane %v3426_v58, 1  ;;  %v3435_v60 = vmul.f32 %v7281_v37, %v7085_v34  ;;  %v3438_v36 = vrot.slane %v3434_v6, 1 }
 0x1fd   : > { %v3443_v50 = vmul.f32 %v7269_v49, %v7112_v23  ;;  %v3444_v62 = vmul.f32 %v7281_v37, %v7112_v23  ;;  %v3452_v55 = vmul.f32 %v7269_v49, %v7121_v13  ;;  %v3453_v43 = vmul.f32 %v7281_v37, %v7121_v13 }
 0x1fe   : > { %v3431_v19 = vsel %vm700_vm1, %v3429_v54, %v3430_v25  ;;  %v3439_v22 = vrot.slane %v3435_v60, 1  ;;  %v3461_v42 = vmul.f32 %v7269_v49, %v7124_v32  ;;  %v3462_v34 = vmul.f32 %v7281_v37, %v7124_v32 }
 0x1ff   : > { %v3433_v51 = vadd.f32 %v3431_v19, %v3420_v41  ;;  %v3447_v63 = vrot.slane %v3443_v50, 1  ;;  %v3448_v14 = vrot.slane %v3444_v62, 1  ;;  %v3456_v9 = vrot.slane %v3452_v55, 2 }
 0x200   : > { %v3440_v23 = vsel %vm700_vm1, %v3438_v36, %v3439_v22  ;;  %v3457_v1 = vrot.slane %v3453_v43, 2  ;;  %v3465_v40 = vrot.slane %v3461_v42, 2  ;;  %v3466_v45 = vrot.slane %v3462_v34, 2 }
 0x201   : > { %v3442_v8 = vadd.f32 %v3440_v23, %v3422_v38  ;;  %v3449_v13 = vsel %vm700_vm1, %v3447_v63, %v3448_v14  ;;  %v3470_v5 = vmul.f32 %v7269_v49, %v7127_v16  ;;  %v3471_v59 = vmul.f32 %v7281_v37, %v7127_v16 }
 0x202   : > { %v3451_v33 = vadd.f32 %v3449_v13, %v3424_v31  ;;  %v3458_v32 = vsel %vm731_vm2, %v3456_v9, %v3457_v1  ;;  %v3467_v20 = vsel %vm731_vm2, %v3465_v40, %v3466_v45  ;;  %v3479_v52 = vmul.f32 %v7269_v49, %v7151_v11  ;;  %v7363_v1 = vld [vmem:[%s9610_s8 + $0x16] sm:$0xff] }
 0x203   : > { %v3460_v26 = vadd.f32 %v3458_v32, %v3433_v51  ;;  %v3469_v24 = vadd.f32 %v3467_v20, %v3442_v8  ;;  %v3474_v12 = vrot.slane %v3470_v5, 2  ;;  %v3475_v53 = vrot.slane %v3471_v59, 2 }
 0x204   : > { %v3480_v48 = vmul.f32 %v7281_v37, %v7151_v11  ;;  %v3483_v28 = vrot.slane %v3479_v52, 3  ;;  %v3488_v0 = vmul.f32 %v7269_v49, %v7154_v57  ;;  %v3489_v16 = vmul.f32 %v7281_v37, %v7154_v57 }
 0x205   : > { %v3476_v41 = vsel %vm731_vm2, %v3474_v12, %v3475_v53  ;;  %v3497_v58 = vmul.f32 %v7269_v49, %v7174_v44  ;;  %v3498_v6 = vmul.f32 %v7281_v37, %v7174_v44  ;;  %v3506_v38 = vmul.f32 %v7269_v49, %v7177_v2 }
 0x206   : > { %v3478_v31 = vadd.f32 %v3476_v41, %v3451_v33  ;;  %v3484_v11 = vrot.slane %v3480_v48, 3  ;;  %v3492_v54 = vrot.slane %v3488_v0, 3  ;;  %v3493_v25 = vrot.slane %v3489_v16, 3 }
 0x207   : > { %v3501_v60 = vrot.slane %v3497_v58, 3  ;;  %v3502_v36 = vrot.slane %v3498_v6, 3  ;;  %v3507_v57 = vmul.f32 %v7281_v37, %v7177_v2  ;;  %v3510_v50 = vrot.slane %v3506_v38, 4 }
 0x208   : > { %v3485_v62 = vsel %vm762_vm3, %v3483_v28, %v3484_v11  ;;  %v3494_v44 = vsel %vm762_vm3, %v3492_v54, %v3493_v25  ;;  %v3515_v55 = vmul.f32 %v7269_v49, %v7194_v10  ;;  %v3516_v43 = vmul.f32 %v7281_v37, %v7194_v10 }
 0x209   : > { %v3487_v19 = vadd.f32 %v3485_v62, %v3460_v26  ;;  %v3496_v22 = vadd.f32 %v3494_v44, %v3469_v24  ;;  %v3503_v42 = vsel %vm762_vm3, %v3501_v60, %v3502_v36  ;;  %v3511_v2 = vrot.slane %v3507_v57, 4 }
 0x20a   : > { %v3505_v34 = vadd.f32 %v3503_v42, %v3478_v31  ;;  %v3519_v51 = vrot.slane %v3515_v55, 4  ;;  %v3520_v63 = vrot.slane %v3516_v43, 4  ;;  %v3524_v14 = vmul.f32 %v7269_v49, %v7197_v3 }
 0x20b   : > { %v3512_v9 = vsel %vm793_vm4, %v3510_v50, %v3511_v2  ;;  %v3525_v23 = vmul.f32 %v7281_v37, %v7197_v3  ;;  %v3533_v10 = vmul.f32 %v7363_v1, %v1624_v46  ;;  %v3535_v40 = vmul.f32 %v7363_v1, %v1627_v27  ;;  %v9611_v37 = vld [vmem:[#allocation35_spill] sm:$0xff] }
 0x20c   : > { %v3514_v45 = vadd.f32 %v3512_v9, %v3487_v19  ;;  %v3521_v8 = vsel %vm793_vm4, %v3519_v51, %v3520_v63  ;;  %v3528_v13 = vrot.slane %v3524_v14, 4  ;;  %v3537_v49 = vmul.f32 %v7363_v1, %v1630_v7 }
 0x20d   : > { %v3523_v5 = vadd.f32 %v3521_v8, %v3496_v22  ;;  %v3529_v59 = vrot.slane %v3525_v23, 4  ;;  %v3539_v3 = vmul.f32 %v7363_v1, %v7230_v61  ;;  %v3540_v33 = vmul.f32 %v9611_v37, %v7230_v61 }
 0x20e   : > { %v3534_v32 = vadd.f32 %v3533_v10, %v3514_v45  ;;  %v3548_v46 = vmul.f32 %v7363_v1, %v7237_v56  ;;  %v3549_v27 = vmul.f32 %v9611_v37, %v7237_v56  ;;  %v3557_v20 = vmul.f32 %v7363_v1, %v7248_v21 }
 0x20f   : > { %v3530_v7 = vsel %vm793_vm4, %v3528_v13, %v3529_v59  ;;  %v3536_v52 = vadd.f32 %v3535_v40, %v3523_v5  ;;  %v3543_v26 = vrot.slane %v3539_v3, 1  ;;  %v3544_v24 = vrot.slane %v3540_v33, 1 }
 0x210   : > { %v3532_v61 = vadd.f32 %v3530_v7, %v3505_v34  ;;  %v3552_v12 = vrot.slane %v3548_v46, 1  ;;  %v3553_v53 = vrot.slane %v3549_v27, 1  ;;  %v3558_v48 = vmul.f32 %v9611_v37, %v7248_v21 }
 0x211   : > { %v3545_v56 = vsel %vm700_vm1, %v3543_v26, %v3544_v24  ;;  %v3561_v28 = vrot.slane %v3557_v20, 1  ;;  %v3566_v0 = vmul.f32 %v7363_v1, %v7251_v47  ;;  %v3567_v16 = vmul.f32 %v9611_v37, %v7251_v47 }
 0x212   : > { %v1692_v41 = vadd.f32 %v7307_v18, %v7286_v30  ;;  %v3538_v58 = vadd.f32 %v3537_v49, %v3532_v61  ;;  %v3554_v6 = vsel %vm700_vm1, %v3552_v12, %v3553_v53  ;;  %v3562_v21 = vrot.slane %v3558_v48, 1 }
 0x213   : > { %v3547_v38 = vadd.f32 %v3545_v56, %v3534_v32  ;;  %v3570_v31 = vrot.slane %v3566_v0, 2  ;;  %v3571_v11 = vrot.slane %v3567_v16, 2  ;;  %v3575_v54 = vmul.f32 %v7363_v1, %v7263_v17  ;;  %v7489_v56 = vpop.permute.xlu0 %1753 }
 0x214   : > { %v3563_v47 = vsel %vm700_vm1, %v3561_v28, %v3562_v21  ;;  %v3576_v30 = vmul.f32 %v9611_v37, %v7263_v17  ;;  %v3584_v18 = vmul.f32 %v7363_v1, %v7267_v39  ;;  %v3585_v25 = vmul.f32 %v9611_v37, %v7267_v39 }
 0x215   : > { %v3556_v60 = vadd.f32 %v3554_v6, %v3536_v52  ;;  %v7417_v36 = vadd.f32 %v3563_v47, %v3538_v58  ;;  %v3572_v57 = vsel %vm731_vm2, %v3570_v31, %v3571_v11  ;;  %v3579_v50 = vrot.slane %v3575_v54, 2  ;;  %v7507_v54 = vpop.permute.xlu1 %1755 }
 0x216   : > { %v3580_v62 = vrot.slane %v3576_v30, 2  ;;  %v3588_v44 = vrot.slane %v3584_v18, 2  ;;  %v3589_v55 = vrot.slane %v3585_v25, 2  ;;  %v7421_v43 = vstv %s7385_s22  ;;  %s7775_s22 = sld [smem:[#allocation9 + $0xbd]] }
 0x217   : > { %v7423_v19 = vadd.f32 %v3572_v57, %v3547_v38  ;;  %v1694_v17 = vmul.f32 %v7421_v43, %v9608_v29  ;;  %v1695_v39 = vmul.f32 %v7421_v43, %v9609_v35  ;;  %v7432_v22 = vstv %s7388_s11  ;;  %s7789_s11 = sld [smem:[#allocation9 + $0x77]] }
 0x218   : > { %v3581_v42 = vsel %vm731_vm2, %v3579_v50, %v3580_v62  ;;  %v1704_v2 = vmul.f32 %v7432_v22, %v9608_v29  ;;  %v1705_v34 = vmul.f32 %v7432_v22, %v9609_v35  ;;  %v7442_v51 = vstv %s7392_s9  ;;  %s7795_s9 = sld [smem:[#allocation9 + $0xc2]] }
 0x219   : > { %v7444_v63 = vadd.f32 %v3581_v42, %v3556_v60  ;;  %v7447_v14 = vsel %vm731_vm2, %v3588_v44, %v3589_v55  ;;  %v1698_v9 = vrot.slane %v1694_v17, 3  ;;  %v1699_v23 = vrot.slane %v1695_v39, 3 }
 0x21a   : > { %v1708_v10 = vrot.slane %v1704_v2, 3  ;;  %v1709_v40 = vrot.slane %v1705_v34, 3  ;;  %v1714_v45 = vmul.f32 %v7442_v51, %v9608_v29  ;;  %v1715_v8 = vmul.f32 %v7442_v51, %v9609_v35 }
 0x21b   : > { %v1700_v13 = vsel %vm762_vm3, %v1698_v9, %v1699_v23  ;;  %v7459_v49 = vstv %s7399_s3  ;;  %v7462_v5 = vstv %s7404_s27  ;;  %v7465_v59 = vstv %s7408_s26  ;;  %s7810_s3 = sld [smem:[#allocation9 + $0x31]] }
 0x21c   : > { %v1702_v3 = vadd.f32 %v1700_v13, %v7288_v15  ;;  %v1710_v33 = vsel %vm762_vm3, %v1708_v10, %v1709_v40  ;;  %v1718_v32 = vrot.slane %v1714_v45, 3  ;;  %v1719_v46 = vrot.slane %v1715_v8, 3  ;;  %s7821_s27 = sld [smem:[#allocation9 + $0x7c]] }
 0x21d   : > { %v1712_v27 = vadd.f32 %v1710_v33, %v7304_v4  ;;  %v1724_v20 = vmul.f32 %v7459_v49, %v9608_v29  ;;  %v1725_v7 = vmul.f32 %v7459_v49, %v9609_v35  ;;  %v1734_v52 = vmul.f32 %v7462_v5, %v9608_v29  ;;  %s7833_s26 = sld [smem:[#allocation9 + $0xc7]] }
 0x21e   : > { %v1720_v15 = vsel %vm762_vm3, %v1718_v32, %v1719_v46  ;;  %v1735_v26 = vmul.f32 %v7462_v5, %v9609_v35  ;;  %v1744_v4 = vmul.f32 %v7465_v59, %v9608_v29  ;;  %v1745_v24 = vmul.f32 %v7465_v59, %v9609_v35 }
 0x21f   : > { %v1722_v61 = vadd.f32 %v1720_v15, %v1692_v41  ;;  %v1728_v12 = vrot.slane %v1724_v20, 4  ;;  %v1729_v53 = vrot.slane %v1725_v7, 4  ;;  %v1738_v48 = vrot.slane %v1734_v52, 4 }
 0x220   : > { %v1739_v28 = vrot.slane %v1735_v26, 4  ;;  %v1748_v0 = vrot.slane %v1744_v4, 4  ;;  %v1749_v16 = vrot.slane %v1745_v24, 4  ;;  %v1757_v58 = vstv %s7425_s17  ;;  %s7938_s17 = sld [smem:[#allocation9 + $0x32]] }
 0x221   : > { %v1730_v29 = vsel %vm793_vm4, %v1728_v12, %v1729_v53  ;;  %v1758_v35 = vmul.f32 %v1757_v58, %v7489_v56  ;;  %v1760_v41 = vstv %s7435_s25  ;;  %v1763_v6 = vstv %s7449_s29  ;;  %s7947_s25 = sld [smem:[#allocation9 + $0x37]] }
 0x222   : > { %v1732_v21 = vadd.f32 %v1730_v29, %v1702_v3  ;;  %v1740_v38 = vsel %vm793_vm4, %v1738_v48, %v1739_v28  ;;  %v1750_v31 = vsel %vm793_vm4, %v1748_v0, %v1749_v16  ;;  %v1761_v11 = vmul.f32 %v1760_v41, %v7489_v56  ;;  %s7950_s29 = sld [smem:[#allocation9 + $0x7d]] }
 0x223   : > { %v1742_v47 = vadd.f32 %v1740_v38, %v1712_v27  ;;  %v1752_v30 = vadd.f32 %v1750_v31, %v1722_v61  ;;  %v1764_v18 = vmul.f32 %v1763_v6, %v7489_v56  ;;  %v7515_v25 = vstv %s7455_s7  ;;  %s7952_s7 = sld [smem:[#allocation9 + $0xc8]] }
 0x224   : > { %v1759_v60 = vadd.f32 %v1758_v35, %v1732_v21  ;;  %v1767_v57 = vmul.f32 %v7515_v25, %v7489_v56  ;;  %v1768_v50 = vmul.f32 %v7515_v25, %v7507_v54  ;;  %v7522_v62 = vstv %s7467_s0  ;;  %s7965_s0 = sld [smem:[#allocation9 + $0x82]] }
 0x225   : > { %v1762_v44 = vadd.f32 %v1761_v11, %v1742_v47  ;;  %v1765_v55 = vadd.f32 %v1764_v18, %v1752_v30  ;;  %v1777_v17 = vmul.f32 %v7522_v62, %v7489_v56  ;;  %v1778_v39 = vmul.f32 %v7522_v62, %v7507_v54 }
 0x226   : > { %v1771_v42 = vrot.slane %v1767_v57, 1  ;;  %v1772_v2 = vrot.slane %v1768_v50, 1  ;;  %v7533_v34 = vstv %s7480_s1  ;;  %v7536_v9 = vstv %s7471_s10  ;;  %s7970_s10 = sld [smem:[#allocation9 + $0xcd]] }
 0x227   : > { %v1781_v23 = vrot.slane %v1777_v17, 1  ;;  %v1782_v10 = vrot.slane %v1778_v39, 1  ;;  %v1787_v40 = vmul.f32 %v7533_v34, %v7489_v56  ;;  %v1788_v45 = vmul.f32 %v7533_v34, %v7507_v54  ;;  %s7979_s1 = sld [smem:[#allocation9 + $0x3c]] }
 0x228   : > { %v1773_v8 = vsel %vm700_vm1, %v1771_v42, %v1772_v2  ;;  %v1797_v13 = vmul.f32 %v7536_v9, %v7489_v56  ;;  %v1798_v3 = vmul.f32 %v7536_v9, %v7507_v54  ;;  %v7548_v33 = vstv %s7491_s13  ;;  %s7985_s13 = sld [smem:[#allocation9 + $0x87]] }
 0x229   : > { %v1775_v32 = vadd.f32 %v1773_v8, %v1759_v60  ;;  %v1783_v46 = vsel %vm700_vm1, %v1781_v23, %v1782_v10  ;;  %v1791_v27 = vrot.slane %v1787_v40, 1  ;;  %v1792_v20 = vrot.slane %v1788_v45, 1 }
 0x22a   : > { %v1785_v7 = vadd.f32 %v1783_v46, %v1762_v44  ;;  %v1801_v52 = vrot.slane %v1797_v13, 2  ;;  %v1802_v15 = vrot.slane %v1798_v3, 2  ;;  %v1807_v26 = vmul.f32 %v7548_v33, %v7489_v56 }
 0x22b   : > { %v1793_v4 = vsel %vm700_vm1, %v1791_v27, %v1792_v20  ;;  %v1808_v24 = vmul.f32 %v7548_v33, %v7507_v54  ;;  %v7561_v61 = vstv %s7509_s28  ;;  %v7564_v12 = vstv %s7500_s15  ;;  %s7998_s15 = sld [smem:[#allocation9 + $0x41]] }
 0x22c   : > { %v1795_v53 = vadd.f32 %v1793_v4, %v1765_v55  ;;  %v1803_v48 = vsel %vm731_vm2, %v1801_v52, %v1802_v15  ;;  %v1811_v28 = vrot.slane %v1807_v26, 2  ;;  %v1817_v0 = vmul.f32 %v7561_v61, %v7489_v56  ;;  %s8011_s28 = sld [smem:[#allocation9 + $0xd2]] }
 0x22d   : > { %v1805_v16 = vadd.f32 %v1803_v48, %v1775_v32  ;;  %v1812_v29 = vrot.slane %v1808_v24, 2  ;;  %v1818_v35 = vmul.f32 %v7561_v61, %v7507_v54  ;;  %v1827_v21 = vmul.f32 %v7564_v12, %v7489_v56 }
 0x22e   : > { %v1821_v38 = vrot.slane %v1817_v0, 2  ;;  %v1828_v31 = vmul.f32 %v7564_v12, %v7507_v54  ;;  %v7578_v11 = vstv %s7524_s4  ;;  %v7581_v47 = vstv %s7530_s30  ;;  %s8022_s4 = sld [smem:[#allocation9 + $0x8c]] }
 0x22f   : > { %v1813_v30 = vsel %vm731_vm2, %v1811_v28, %v1812_v29  ;;  %v1822_v18 = vrot.slane %v1818_v35, 2  ;;  %v1831_v60 = vrot.slane %v1827_v21, 3  ;;  %v1837_v57 = vmul.f32 %v7578_v11, %v7489_v56  ;;  %s8038_s30 = sld [smem:[#allocation9 + $0x46]] }
 0x230   : > { %v1815_v50 = vadd.f32 %v1813_v30, %v1785_v7  ;;  %v1832_v44 = vrot.slane %v1828_v31, 3  ;;  %v1838_v55 = vmul.f32 %v7578_v11, %v7507_v54  ;;  %v1847_v17 = vmul.f32 %v7581_v47, %v7489_v56 }
 0x231   : > { %v1823_v39 = vsel %vm731_vm2, %v1821_v38, %v1822_v18  ;;  %v1841_v42 = vrot.slane %v1837_v57, 3  ;;  %v1848_v2 = vmul.f32 %v7581_v47, %v7507_v54  ;;  %v7594_v23 = vstv %s7550_s24  ;;  %s8044_s24 = sld [smem:[#allocation9 + $0xd7]] }
 0x232   : > { %v3592_v10 = vadd.f32 %v7447_v14, %v7417_v36  ;;  %v1825_v40 = vadd.f32 %v1823_v39, %v1795_v53  ;;  %v1842_v45 = vrot.slane %v1838_v55, 3  ;;  %v1851_v8 = vrot.slane %v1847_v17, 3 }
 0x233   : > { %v1833_v13 = vsel %vm762_vm3, %v1831_v60, %v1832_v44  ;;  %v1852_v3 = vrot.slane %v1848_v2, 3  ;;  %v1857_v32 = vmul.f32 %v7594_v23, %v7489_v56  ;;  %v1858_v46 = vmul.f32 %v7594_v23, %v7507_v54 }
 0x234   : > { %v1843_v27 = vsel %vm762_vm3, %v1841_v42, %v1842_v45  ;;  %v7605_v20 = vstv %s7555_s14  ;;  %v7608_v7 = vstv %s7566_s12  ;;  %v3593_v36 = vmul.f32 %v7363_v1, %v7421_v43  ;;  %s8058_s14 = sld [smem:[#allocation9 + $0x91]] }
 0x235   : > { %v1835_v14 = vadd.f32 %v1833_v13, %v1805_v16  ;;  %v1845_v52 = vadd.f32 %v1843_v27, %v1815_v50  ;;  %v1861_v15 = vrot.slane %v1857_v32, 4  ;;  %v1862_v26 = vrot.slane %v1858_v46, 4  ;;  %s8066_s12 = sld [smem:[#allocation9 + $0xdc]] }
 0x236   : > { %v1853_v4 = vsel %vm762_vm3, %v1851_v8, %v1852_v3  ;;  %v1867_v24 = vmul.f32 %v7605_v20, %v7489_v56  ;;  %v1868_v53 = vmul.f32 %v7605_v20, %v7507_v54  ;;  %v1877_v48 = vmul.f32 %v7608_v7, %v7489_v56  ;;  %v7650_v3 = vpop.permute.xlu0 %3647 }
 0x237   : > { %v7619_v28 = vadd.f32 %v1853_v4, %v1825_v40  ;;  %v1878_v0 = vmul.f32 %v7608_v7, %v7507_v54  ;;  %v3594_v16 = vmul.f32 %v9611_v37, %v7421_v43  ;;  %v3597_v29 = vrot.slane %v3593_v36, 3 }
 0x238   : > { %v1863_v35 = vsel %vm793_vm4, %v1861_v15, %v1862_v26  ;;  %v1871_v21 = vrot.slane %v1867_v24, 4  ;;  %v1872_v38 = vrot.slane %v1868_v53, 4  ;;  %v1881_v31 = vrot.slane %v1877_v48, 4  ;;  %v7661_v15 = vpop.permute.xlu1 %3649 }
 0x239   : > { %v1882_v30 = vrot.slane %v1878_v0, 4  ;;  %v3598_v18 = vrot.slane %v3594_v16, 3  ;;  %v3602_v60 = vmul.f32 %v7363_v1, %v7432_v22  ;;  %v3603_v56 = vmul.f32 %v9611_v37, %v7432_v22 }
 0x23a   : > { %v1873_v57 = vsel %vm793_vm4, %v1871_v21, %v1872_v38  ;;  %v3611_v54 = vmul.f32 %v7363_v1, %v7442_v51  ;;  %v3612_v43 = vmul.f32 %v9611_v37, %v7442_v51  ;;  %v3620_v50 = vmul.f32 %v7363_v1, %v7459_v49 }
 0x23b   : > { %v7637_v44 = vadd.f32 %v1863_v35, %v1835_v14  ;;  %v7639_v55 = vadd.f32 %v1873_v57, %v1845_v52  ;;  %v3599_v17 = vsel %vm762_vm3, %v3597_v29, %v3598_v18  ;;  %v3606_v39 = vrot.slane %v3602_v60, 3 }
 0x23c   : > { %v7643_v22 = vsel %vm793_vm4, %v1881_v31, %v1882_v30  ;;  %v3601_v42 = vadd.f32 %v3599_v17, %v7423_v19  ;;  %v3607_v2 = vrot.slane %v3603_v56, 3  ;;  %v3615_v40 = vrot.slane %v3611_v54, 3 }
 0x23d   : > { %v3616_v45 = vrot.slane %v3612_v43, 3  ;;  %v3621_v51 = vmul.f32 %v9611_v37, %v7459_v49  ;;  %v3624_v8 = vrot.slane %v3620_v50, 4  ;;  %v3629_v13 = vmul.f32 %v7363_v1, %v7462_v5 }
 0x23e   : > { %v3608_v32 = vsel %vm762_vm3, %v3606_v39, %v3607_v2  ;;  %v3630_v19 = vmul.f32 %v9611_v37, %v7462_v5  ;;  %v3638_v46 = vmul.f32 %v7363_v1, %v7465_v59  ;;  %v3639_v49 = vmul.f32 %v9611_v37, %v7465_v59 }
 0x23f   : > { %v3610_v27 = vadd.f32 %v3608_v32, %v7444_v63  ;;  %v3617_v36 = vsel %vm762_vm3, %v3615_v40, %v3616_v45  ;;  %v3625_v14 = vrot.slane %v3621_v51, 4  ;;  %v3633_v52 = vrot.slane %v3629_v13, 4 }
 0x240   : > { %v3619_v26 = vadd.f32 %v3617_v36, %v3592_v10  ;;  %v3634_v4 = vrot.slane %v3630_v19, 4  ;;  %v3642_v24 = vrot.slane %v3638_v46, 4  ;;  %v3643_v53 = vrot.slane %v3639_v49, 4 }
 0x241   : > { %v3626_v5 = vsel %vm793_vm4, %v3624_v8, %v3625_v14  ;;  %v3651_v1 = vmul.f32 %v7650_v3, %v1757_v58  ;;  %v3653_v37 = vmul.f32 %v7650_v3, %v1760_v41  ;;  %v3655_v63 = vmul.f32 %v7650_v3, %v1763_v6 }
 0x242   : > { %v3628_v59 = vadd.f32 %v3626_v5, %v3601_v42  ;;  %v3635_v48 = vsel %vm793_vm4, %v3633_v52, %v3634_v4  ;;  %v3644_v0 = vsel %vm793_vm4, %v3642_v24, %v3643_v53  ;;  %v3657_v10 = vmul.f32 %v7650_v3, %v7515_v25 }
 0x243   : > { %v3637_v16 = vadd.f32 %v3635_v48, %v3610_v27  ;;  %v3646_v29 = vadd.f32 %v3644_v0, %v3619_v26  ;;  %v3658_v35 = vmul.f32 %v7661_v15, %v7515_v25  ;;  %v3666_v58 = vmul.f32 %v7650_v3, %v7522_v62 }
 0x244   : > { %v3652_v41 = vadd.f32 %v3651_v1, %v3628_v59  ;;  %v3661_v21 = vrot.slane %v3657_v10, 1  ;;  %v3667_v6 = vmul.f32 %v7661_v15, %v7522_v62  ;;  %v3675_v38 = vmul.f32 %v7650_v3, %v7533_v34 }
 0x245   : > { %v3654_v31 = vadd.f32 %v3653_v37, %v3637_v16  ;;  %v3656_v30 = vadd.f32 %v3655_v63, %v3646_v29  ;;  %v3662_v18 = vrot.slane %v3658_v35, 1  ;;  %v3670_v60 = vrot.slane %v3666_v58, 1 }
 0x246   : > { %v3671_v56 = vrot.slane %v3667_v6, 1  ;;  %v3676_v57 = vmul.f32 %v7661_v15, %v7533_v34  ;;  %v3679_v25 = vrot.slane %v3675_v38, 1  ;;  %v3684_v54 = vmul.f32 %v7650_v3, %v7536_v9 }
 0x247   : > { %v3663_v43 = vsel %vm700_vm1, %v3661_v21, %v3662_v18  ;;  %v3685_v62 = vmul.f32 %v7661_v15, %v7536_v9  ;;  %v3693_v50 = vmul.f32 %v7650_v3, %v7548_v33  ;;  %v3694_v17 = vmul.f32 %v7661_v15, %v7548_v33 }
 0x248   : > { %v3665_v39 = vadd.f32 %v3663_v43, %v3652_v41  ;;  %v3672_v42 = vsel %vm700_vm1, %v3670_v60, %v3671_v56  ;;  %v3680_v2 = vrot.slane %v3676_v57, 1  ;;  %v3688_v34 = vrot.slane %v3684_v54, 2  ;;  %v7756_v43 = vpop.permute.xlu0 %1886 }
 0x249   : > { %v3674_v40 = vadd.f32 %v3672_v42, %v3654_v31  ;;  %v3689_v45 = vrot.slane %v3685_v62, 2  ;;  %v3697_v51 = vrot.slane %v3693_v50, 2  ;;  %v3698_v8 = vrot.slane %v3694_v17, 2  ;;  %v7773_v42 = vpop.permute.xlu1 %1888 }
 0x24a   : > { %v3681_v13 = vsel %vm700_vm1, %v3679_v25, %v3680_v2  ;;  %v3702_v9 = vmul.f32 %v7650_v3, %v7561_v61  ;;  %v3703_v32 = vmul.f32 %v7661_v15, %v7561_v61  ;;  %v3711_v33 = vmul.f32 %v7650_v3, %v7564_v12 }
 0x24b   : > { %v3683_v19 = vadd.f32 %v3681_v13, %v3656_v30  ;;  %v3690_v46 = vsel %vm731_vm2, %v3688_v34, %v3689_v45  ;;  %v3699_v49 = vsel %vm731_vm2, %v3697_v51, %v3698_v8  ;;  %v3712_v27 = vmul.f32 %v7661_v15, %v7564_v12 }
 0x24c   : > { %v3692_v36 = vadd.f32 %v3690_v46, %v3665_v39  ;;  %v3701_v14 = vadd.f32 %v3699_v49, %v3674_v40  ;;  %v3706_v52 = vrot.slane %v3702_v9, 2  ;;  %v3707_v26 = vrot.slane %v3703_v32, 2 }
 0x24d   : > { %v3715_v61 = vrot.slane %v3711_v33, 3  ;;  %v3716_v4 = vrot.slane %v3712_v27, 3  ;;  %v3720_v24 = vmul.f32 %v7650_v3, %v7578_v11  ;;  %v3721_v53 = vmul.f32 %v7661_v15, %v7578_v11 }
 0x24e   : > { %v3708_v12 = vsel %vm731_vm2, %v3706_v52, %v3707_v26  ;;  %v3729_v5 = vmul.f32 %v7650_v3, %v7581_v47  ;;  %v3730_v1 = vmul.f32 %v7661_v15, %v7581_v47  ;;  %v3738_v37 = vmul.f32 %v7650_v3, %v7594_v23 }
 0x24f   : > { %v3710_v63 = vadd.f32 %v3708_v12, %v3683_v19  ;;  %v3717_v59 = vsel %vm762_vm3, %v3715_v61, %v3716_v4  ;;  %v3724_v48 = vrot.slane %v3720_v24, 3  ;;  %v3725_v11 = vrot.slane %v3721_v53, 3 }
 0x250   : > { %v3719_v0 = vadd.f32 %v3717_v59, %v3692_v36  ;;  %v3733_v10 = vrot.slane %v3729_v5, 3  ;;  %v3734_v16 = vrot.slane %v3730_v1, 3  ;;  %v3739_v29 = vmul.f32 %v7661_v15, %v7594_v23 }
 0x251   : > { %v3726_v47 = vsel %vm762_vm3, %v3724_v48, %v3725_v11  ;;  %v3742_v35 = vrot.slane %v3738_v37, 4  ;;  %v3747_v58 = vmul.f32 %v7650_v3, %v7605_v20  ;;  %v3748_v41 = vmul.f32 %v7661_v15, %v7605_v20 }
 0x252   : > { %v1885_v21 = vadd.f32 %v7643_v22, %v7619_v28  ;;  %v3728_v6 = vadd.f32 %v3726_v47, %v3701_v14  ;;  %v3743_v23 = vrot.slane %v3739_v29, 4  ;;  %v3756_v38 = vmul.f32 %v7650_v3, %v7608_v7 }
 0x253   : > { %v3735_v31 = vsel %vm762_vm3, %v3733_v10, %v3734_v16  ;;  %v3751_v30 = vrot.slane %v3747_v58, 4  ;;  %v3752_v20 = vrot.slane %v3748_v41, 4  ;;  %v3757_v18 = vmul.f32 %v7661_v15, %v7608_v7 }
 0x254   : > { %v3744_v28 = vsel %vm793_vm4, %v3742_v35, %v3743_v23  ;;  %v3760_v22 = vrot.slane %v3756_v38, 4  ;;  %v1890_v60 = vstv %s7708_s16  ;;  %v1893_v56 = vstv %s7710_s5  ;;  %s8174_s16 = sld [smem:[#allocation9 + $0x33]] }
 0x255   : > { %v3737_v3 = vadd.f32 %v3735_v31, %v3710_v63  ;;  %v7753_v57 = vadd.f32 %v3744_v28, %v3719_v0  ;;  %v3753_v25 = vsel %vm793_vm4, %v3751_v30, %v3752_v20  ;;  %v3761_v54 = vrot.slane %v3757_v18, 4  ;;  %s8178_s5 = sld [smem:[#allocation9 + $0x38]] }
 0x256   : > { %v1891_v7 = vmul.f32 %v1890_v60, %v7756_v43  ;;  %v1894_v15 = vmul.f32 %v1893_v56, %v7756_v43  ;;  %v1896_v62 = vstv %s7725_s18  ;;  %v7768_v50 = vstv %s7716_s2  ;;  %s8185_s2 = sld [smem:[#allocation9 + $0x7e]] }
 0x257   : > { %v7770_v17 = vadd.f32 %v3753_v25, %v3728_v6  ;;  %v3762_v39 = vsel %vm793_vm4, %v3760_v22, %v3761_v54  ;;  %v1897_v2 = vmul.f32 %v1896_v62, %v7756_v43  ;;  %v1900_v34 = vmul.f32 %v7768_v50, %v7756_v43  ;;  %s8190_s18 = sld [smem:[#allocation9 + $0xc9]] }
 0x258   : > { %v1892_v40 = vadd.f32 %v1891_v7, %v7637_v44  ;;  %v1895_v45 = vadd.f32 %v1894_v15, %v7639_v55  ;;  %v1901_v51 = vmul.f32 %v7768_v50, %v7773_v42  ;;  %v7787_v8 = vstv %s7732_s20  ;;  %s8201_s20 = sld [smem:[#allocation9 + $0x83]] }
 0x259   : > { %v1898_v13 = vadd.f32 %v1897_v2, %v1885_v21  ;;  %v1904_v9 = vrot.slane %v1900_v34, 1  ;;  %v1910_v32 = vmul.f32 %v7787_v8, %v7756_v43  ;;  %v1911_v33 = vmul.f32 %v7787_v8, %v7773_v42 }
 0x25a   : > { %v1905_v44 = vrot.slane %v1901_v51, 1  ;;  %v7798_v19 = vstv %s7745_s23  ;;  %v7801_v55 = vstv %s7728_s19  ;;  %v7804_v46 = vstv %s7739_s21  ;;  %s8194_s19 = sld [smem:[#allocation9 + $0x3d]] }
 0x25b   : > { %v1914_v49 = vrot.slane %v1910_v32, 1  ;;  %v1915_v27 = vrot.slane %v1911_v33, 1  ;;  %v1920_v36 = vmul.f32 %v7798_v19, %v7756_v43  ;;  %v1921_v14 = vmul.f32 %v7798_v19, %v7773_v42  ;;  %s8206_s21 = sld [smem:[#allocation9 + $0xce]] }
 0x25c   : > { %v1906_v52 = vsel %vm700_vm1, %v1904_v9, %v1905_v44  ;;  %v1930_v26 = vmul.f32 %v7801_v55, %v7756_v43  ;;  %v1931_v61 = vmul.f32 %v7801_v55, %v7773_v42  ;;  %v1940_v4 = vmul.f32 %v7804_v46, %v7756_v43  ;;  %s8221_s23 = sld [smem:[#allocation9 + $0x88]] }
 0x25d   : > { %v7819_v24 = vadd.f32 %v3762_v39, %v3737_v3  ;;  %v1908_v53 = vadd.f32 %v1906_v52, %v1892_v40  ;;  %v1924_v12 = vrot.slane %v1920_v36, 1  ;;  %v1925_v5 = vrot.slane %v1921_v14, 1  ;;  %v7879_v52 = vpop.permute.xlu0 %3765 }
 0x25e   : > { %v1916_v1 = vsel %vm700_vm1, %v1914_v49, %v1915_v27  ;;  %v1934_v37 = vrot.slane %v1930_v26, 2  ;;  %v1935_v63 = vrot.slane %v1931_v61, 2  ;;  %v1941_v59 = vmul.f32 %v7804_v46, %v7773_v42 }
 0x25f   : > { %v1926_v48 = vsel %vm700_vm1, %v1924_v12, %v1925_v5  ;;  %v1944_v11 = vrot.slane %v1940_v4, 2  ;;  %v7828_v0 = vstv %s7775_s22  ;;  %v7831_v10 = vstv %s7758_s6  ;;  %s8229_s6 = sld [smem:[#allocation9 + $0x42]] }
 0x260   : > { %v1918_v16 = vadd.f32 %v1916_v1, %v1895_v45  ;;  %v1928_v29 = vadd.f32 %v1926_v48, %v1898_v13  ;;  %v1945_v47 = vrot.slane %v1941_v59, 2  ;;  %v1950_v35 = vmul.f32 %v7828_v0, %v7756_v43  ;;  %v7888_v48 = vpop.permute.xlu1 %3767  ;;  %s8245_s22 = sld [smem:[#allocation9 + $0xd3]] }
 0x261   : > { %v1936_v58 = vsel %vm731_vm2, %v1934_v37, %v1935_v63  ;;  %v1951_v41 = vmul.f32 %v7828_v0, %v7773_v42  ;;  %v1960_v21 = vmul.f32 %v7831_v10, %v7756_v43  ;;  %v1961_v6 = vmul.f32 %v7831_v10, %v7773_v42 }
 0x262   : > { %v1938_v23 = vadd.f32 %v1936_v58, %v1908_v53  ;;  %v1954_v38 = vrot.slane %v1950_v35, 2  ;;  %v7845_v31 = vstv %s7789_s11  ;;  %v7848_v30 = vstv %s7795_s9  ;;  %s8258_s11 = sld [smem:[#allocation9 + $0x8d]] }
 0x263   : > { %v1946_v20 = vsel %vm731_vm2, %v1944_v11, %v1945_v47  ;;  %v1955_v18 = vrot.slane %v1951_v41, 2  ;;  %v1964_v28 = vrot.slane %v1960_v21, 3  ;;  %v1965_v22 = vrot.slane %v1961_v6, 3  ;;  %s8270_s9 = sld [smem:[#allocation9 + $0xd8]] }
 0x264   : > { %v1970_v3 = vmul.f32 %v7845_v31, %v7756_v43  ;;  %v1971_v25 = vmul.f32 %v7845_v31, %v7773_v42  ;;  %v1980_v54 = vmul.f32 %v7848_v30, %v7756_v43  ;;  %v1981_v7 = vmul.f32 %v7848_v30, %v7773_v42 }
 0x265   : > { %v1948_v15 = vadd.f32 %v1946_v20, %v1918_v16  ;;  %v1956_v39 = vsel %vm731_vm2, %v1954_v38, %v1955_v18  ;;  %v7861_v2 = vstv %s7810_s3  ;;  %v7864_v34 = vstv %s7821_s27  ;;  %s8288_s3 = sld [smem:[#allocation9 + $0x47]] }
 0x266   : > { %v1958_v40 = vadd.f32 %v1956_v39, %v1928_v29  ;;  %v1966_v45 = vsel %vm762_vm3, %v1964_v28, %v1965_v22  ;;  %v1974_v51 = vrot.slane %v1970_v3, 3  ;;  %v1975_v13 = vrot.slane %v1971_v25, 3  ;;  %s8294_s27 = sld [smem:[#allocation9 + $0x92]] }
 0x267   : > { %v1984_v9 = vrot.slane %v1980_v54, 3  ;;  %v1985_v32 = vrot.slane %v1981_v7, 3  ;;  %v1990_v33 = vmul.f32 %v7861_v2, %v7756_v43  ;;  %v1991_v44 = vmul.f32 %v7861_v2, %v7773_v42 }
 0x268   : > { %v1976_v49 = vsel %vm762_vm3, %v1974_v51, %v1975_v13  ;;  %v2000_v27 = vmul.f32 %v7864_v34, %v7756_v43  ;;  %v2001_v36 = vmul.f32 %v7864_v34, %v7773_v42  ;;  %v7877_v14 = vstv %s7833_s26  ;;  %s8304_s26 = sld [smem:[#allocation9 + $0xdd]] }
 0x269   : > { %v1968_v26 = vadd.f32 %v1966_v45, %v1938_v23  ;;  %v1978_v61 = vadd.f32 %v1976_v49, %v1948_v15  ;;  %v1994_v4 = vrot.slane %v1990_v33, 4  ;;  %v1995_v53 = vrot.slane %v1991_v44, 4 }
 0x26a   : > { %v1986_v12 = vsel %vm762_vm3, %v1984_v9, %v1985_v32  ;;  %v2004_v5 = vrot.slane %v2000_v27, 4  ;;  %v2005_v1 = vrot.slane %v2001_v36, 4  ;;  %v2010_v37 = vmul.f32 %v7877_v14, %v7756_v43 }
 0x26b   : > { %v7884_v63 = vadd.f32 %v1986_v12, %v1958_v40  ;;  %v2011_v59 = vmul.f32 %v7877_v14, %v7773_v42  ;;  %v3769_v11 = vmul.f32 %v7879_v52, %v1890_v60  ;;  %v3771_v16 = vmul.f32 %v7879_v52, %v1893_v56 }
 0x26c   : > { %v1996_v29 = vsel %vm793_vm4, %v1994_v4, %v1995_v53  ;;  %v2006_v47 = vsel %vm793_vm4, %v2004_v5, %v2005_v1  ;;  %v2014_v35 = vrot.slane %v2010_v37, 4  ;;  %v3773_v43 = vmul.f32 %v7879_v52, %v1896_v62 }
 0x26d   : > { %v7901_v58 = vadd.f32 %v1996_v29, %v1968_v26  ;;  %v7903_v41 = vadd.f32 %v2006_v47, %v1978_v61  ;;  %v2015_v42 = vrot.slane %v2011_v59, 4  ;;  %v3770_v21 = vadd.f32 %v3769_v11, %v7753_v57 }
 0x26e   : > { %v3772_v60 = vadd.f32 %v3771_v16, %v7770_v17  ;;  %v3775_v56 = vmul.f32 %v7879_v52, %v7768_v50  ;;  %v3776_v6 = vmul.f32 %v7888_v48, %v7768_v50  ;;  %v3784_v23 = vmul.f32 %v7879_v52, %v7787_v8 }
 0x26f   : > { %v3774_v62 = vadd.f32 %v3773_v43, %v7819_v24  ;;  %v3785_v38 = vmul.f32 %v7888_v48, %v7787_v8  ;;  %v3793_v20 = vmul.f32 %v7879_v52, %v7798_v19  ;;  %v3794_v57 = vmul.f32 %v7888_v48, %v7798_v19 }
 0x270   : > { %v2016_v17 = vsel %vm793_vm4, %v2014_v35, %v2015_v42  ;;  %v3779_v18 = vrot.slane %v3775_v56, 1  ;;  %v3780_v28 = vrot.slane %v3776_v6, 1  ;;  %v3788_v22 = vrot.slane %v3784_v23, 1 }
 0x271   : > { %v3789_v50 = vrot.slane %v3785_v38, 1  ;;  %v3797_v3 = vrot.slane %v3793_v20, 1  ;;  %v3798_v25 = vrot.slane %v3794_v57, 1  ;;  %v3802_v24 = vmul.f32 %v7879_v52, %v7801_v55 }
 0x272   : > { %v3781_v54 = vsel %vm700_vm1, %v3779_v18, %v3780_v28  ;;  %v3803_v8 = vmul.f32 %v7888_v48, %v7801_v55  ;;  %v3811_v7 = vmul.f32 %v7879_v52, %v7804_v46  ;;  %v3812_v19 = vmul.f32 %v7888_v48, %v7804_v46 }
 0x273   : > { %v3783_v15 = vadd.f32 %v3781_v54, %v3770_v21  ;;  %v3790_v39 = vsel %vm700_vm1, %v3788_v22, %v3789_v50  ;;  %v3799_v40 = vsel %vm700_vm1, %v3797_v3, %v3798_v25  ;;  %v3806_v45 = vrot.slane %v3802_v24, 2  ;;  %v7983_v3 = vpop.permute.xlu0 %2030 }
 0x274   : > { %v3792_v51 = vadd.f32 %v3790_v39, %v3772_v60  ;;  %v3801_v13 = vadd.f32 %v3799_v40, %v3774_v62  ;;  %v3807_v9 = vrot.slane %v3803_v8, 2  ;;  %v3815_v32 = vrot.slane %v3811_v7, 2  ;;  %v8009_v39 = vpop.permute.xlu1 %2032 }
 0x275   : > { %v3816_v33 = vrot.slane %v3812_v19, 2  ;;  %v3820_v55 = vmul.f32 %v7879_v52, %v7828_v0  ;;  %v3821_v44 = vmul.f32 %v7888_v48, %v7828_v0  ;;  %v3829_v46 = vmul.f32 %v7879_v52, %v7831_v10 }
 0x276   : > { %v3808_v49 = vsel %vm731_vm2, %v3806_v45, %v3807_v9  ;;  %v3830_v27 = vmul.f32 %v7888_v48, %v7831_v10  ;;  %v3838_v36 = vmul.f32 %v7879_v52, %v7845_v31  ;;  %v3839_v26 = vmul.f32 %v7888_v48, %v7845_v31 }
 0x277   : > { %v3810_v61 = vadd.f32 %v3808_v49, %v3783_v15  ;;  %v3817_v0 = vsel %vm731_vm2, %v3815_v32, %v3816_v33  ;;  %v3824_v4 = vrot.slane %v3820_v55, 2  ;;  %v3825_v53 = vrot.slane %v3821_v44, 2 }
 0x278   : > { %v3819_v12 = vadd.f32 %v3817_v0, %v3792_v51  ;;  %v3833_v5 = vrot.slane %v3829_v46, 3  ;;  %v3834_v1 = vrot.slane %v3830_v27, 3  ;;  %v3842_v37 = vrot.slane %v3838_v36, 3 }
 0x279   : > { %v3826_v10 = vsel %vm731_vm2, %v3824_v4, %v3825_v53  ;;  %v3843_v59 = vrot.slane %v3839_v26, 3  ;;  %v3847_v31 = vmul.f32 %v7879_v52, %v7848_v30  ;;  %v3848_v11 = vmul.f32 %v7888_v48, %v7848_v30 }
 0x27a   : > { %v3828_v16 = vadd.f32 %v3826_v10, %v3801_v13  ;;  %v3835_v29 = vsel %vm762_vm3, %v3833_v5, %v3834_v1  ;;  %v3856_v47 = vmul.f32 %v7879_v52, %v7861_v2  ;;  %v3857_v35 = vmul.f32 %v7888_v48, %v7861_v2 }
 0x27b   : > { %v2018_v43 = vadd.f32 %v2016_v17, %v7884_v63  ;;  %v3837_v42 = vadd.f32 %v3835_v29, %v3810_v61  ;;  %v3851_v21 = vrot.slane %v3847_v31, 3  ;;  %v3852_v60 = vrot.slane %v3848_v11, 3 }
 0x27c   : > { %v3844_v56 = vsel %vm762_vm3, %v3842_v37, %v3843_v59  ;;  %v3860_v30 = vrot.slane %v3856_v47, 4  ;;  %v3861_v6 = vrot.slane %v3857_v35, 4  ;;  %v3865_v23 = vmul.f32 %v7879_v52, %v7864_v34 }
 0x27d   : > { %v3853_v2 = vsel %vm762_vm3, %v3851_v21, %v3852_v60  ;;  %v3866_v63 = vmul.f32 %v7888_v48, %v7864_v34  ;;  %v3874_v62 = vmul.f32 %v7879_v52, %v7877_v14  ;;  %v3875_v38 = vmul.f32 %v7888_v48, %v7877_v14 }
 0x27e   : > { %v3846_v20 = vadd.f32 %v3844_v56, %v3819_v12  ;;  %v3855_v57 = vadd.f32 %v3853_v2, %v3828_v16  ;;  %v3869_v17 = vrot.slane %v3865_v23, 4  ;;  %v2034_v18 = vstv %s7938_s17  ;;  %s8311_s17 = sld [smem:[#allocation9 + $0x34]] }
 0x27f   : > { %v3862_v28 = vsel %vm793_vm4, %v3860_v30, %v3861_v6  ;;  %v3870_v22 = vrot.slane %v3866_v63, 4  ;;  %v3878_v34 = vrot.slane %v3874_v62, 4  ;;  %v3879_v50 = vrot.slane %v3875_v38, 4 }
 0x280   : > { %v2035_v14 = vmul.f32 %v2034_v18, %v7983_v3  ;;  %v2037_v52 = vstv %s7950_s29  ;;  %v2040_v48 = vstv %s7952_s7  ;;  %v7993_v25 = vstv %s7947_s25  ;;  %s8323_s25 = sld [smem:[#allocation9 + $0x7f]] }
 0x281   : > { %v7995_v24 = vadd.f32 %v3862_v28, %v3837_v42  ;;  %v3871_v54 = vsel %vm793_vm4, %v3869_v17, %v3870_v22  ;;  %v2038_v8 = vmul.f32 %v2037_v52, %v7983_v3  ;;  %v2041_v7 = vmul.f32 %v2040_v48, %v7983_v3  ;;  %s8328_s29 = sld [smem:[#allocation9 + $0x39]] }
 0x282   : > { %v8006_v19 = vadd.f32 %v3871_v54, %v3846_v20  ;;  %v3880_v15 = vsel %vm793_vm4, %v3878_v34, %v3879_v50  ;;  %v2036_v40 = vadd.f32 %v2035_v14, %v7901_v58  ;;  %v2044_v45 = vmul.f32 %v7993_v25, %v7983_v3  ;;  %s8332_s7 = sld [smem:[#allocation9 + $0xca]] }
 0x283   : > { %v2039_v51 = vadd.f32 %v2038_v8, %v7903_v41  ;;  %v2042_v13 = vadd.f32 %v2041_v7, %v2018_v43  ;;  %v2045_v9 = vmul.f32 %v7993_v25, %v8009_v39  ;;  %v8020_v32 = vstv %s7965_s0  ;;  %s8339_s0 = sld [smem:[#allocation9 + $0x84]] }
 0x284   : > { %v2048_v33 = vrot.slane %v2044_v45, 1  ;;  %v2054_v55 = vmul.f32 %v8020_v32, %v7983_v3  ;;  %v2055_v58 = vmul.f32 %v8020_v32, %v8009_v39  ;;  %v8029_v44 = vstv %s7970_s10  ;;  %s8347_s10 = sld [smem:[#allocation9 + $0x3e]] }
 0x285   : > { %v2049_v46 = vrot.slane %v2045_v9, 1  ;;  %v2064_v41 = vmul.f32 %v8029_v44, %v7983_v3  ;;  %v2065_v49 = vmul.f32 %v8029_v44, %v8009_v39  ;;  %v8036_v27 = vstv %s7979_s1  ;;  %s8358_s1 = sld [smem:[#allocation9 + $0xcf]] }
 0x286   : > { %v2058_v36 = vrot.slane %v2054_v55, 1  ;;  %v2059_v26 = vrot.slane %v2055_v58, 1  ;;  %v2074_v61 = vmul.f32 %v8036_v27, %v7983_v3  ;;  %v2075_v0 = vmul.f32 %v8036_v27, %v8009_v39 }
 0x287   : > { %v2050_v4 = vsel %vm700_vm1, %v2048_v33, %v2049_v46  ;;  %v2068_v53 = vrot.slane %v2064_v41, 1  ;;  %v2069_v12 = vrot.slane %v2065_v49, 1  ;;  %v8048_v5 = vstv %s7985_s13  ;;  %s8367_s13 = sld [smem:[#allocation9 + $0x89]] }
 0x288   : > { %v8050_v1 = vadd.f32 %v3880_v15, %v3855_v57  ;;  %v2052_v37 = vadd.f32 %v2050_v4, %v2036_v40  ;;  %v2078_v10 = vrot.slane %v2074_v61, 2  ;;  %v2079_v59 = vrot.slane %v2075_v0, 2 }
 0x289   : > { %v2060_v31 = vsel %vm700_vm1, %v2058_v36, %v2059_v26  ;;  %v2070_v11 = vsel %vm700_vm1, %v2068_v53, %v2069_v12  ;;  %v2084_v16 = vmul.f32 %v8048_v5, %v7983_v3  ;;  %v2085_v29 = vmul.f32 %v8048_v5, %v8009_v39 }
 0x28a   : > { %v2062_v47 = vadd.f32 %v2060_v31, %v2039_v51  ;;  %v2072_v35 = vadd.f32 %v2070_v11, %v2042_v13  ;;  %v8061_v43 = vstv %s8011_s28  ;;  %v8064_v42 = vstv %s7998_s15  ;;  %v8097_v51 = vpop.permute.xlu0 %3889  ;;  %s8373_s15 = sld [smem:[#allocation9 + $0xd4]] }
 0x28b   : > { %v2080_v21 = vsel %vm731_vm2, %v2078_v10, %v2079_v59  ;;  %v2088_v60 = vrot.slane %v2084_v16, 2  ;;  %v2089_v56 = vrot.slane %v2085_v29, 2  ;;  %v2094_v30 = vmul.f32 %v8061_v43, %v7983_v3  ;;  %s8545_s28 = sld [smem:[#allocation9 + $0x8e]] }
 0x28c   : > { %v2095_v6 = vmul.f32 %v8061_v43, %v8009_v39  ;;  %v2104_v23 = vmul.f32 %v8064_v42, %v7983_v3  ;;  %v2105_v2 = vmul.f32 %v8064_v42, %v8009_v39  ;;  %v8078_v63 = vstv %s8022_s4  ;;  %s8549_s4 = sld [smem:[#allocation9 + $0xd9]] }
 0x28d   : > { %v2082_v62 = vadd.f32 %v2080_v21, %v2052_v37  ;;  %v2098_v38 = vrot.slane %v2094_v30, 2  ;;  %v2114_v20 = vmul.f32 %v8078_v63, %v7983_v3  ;;  %v2115_v57 = vmul.f32 %v8078_v63, %v8009_v39 }
 0x28e   : > { %v2090_v17 = vsel %vm731_vm2, %v2088_v60, %v2089_v56  ;;  %v2099_v28 = vrot.slane %v2095_v6, 2  ;;  %v2108_v22 = vrot.slane %v2104_v23, 3  ;;  %v2109_v34 = vrot.slane %v2105_v2, 3 }
 0x28f   : > { %v2118_v50 = vrot.slane %v2114_v20, 3  ;;  %v2119_v14 = vrot.slane %v2115_v57, 3  ;;  %v8086_v54 = vstv %s8044_s24  ;;  %v8089_v8 = vstv %s8038_s30  ;;  %s8556_s30 = sld [smem:[#allocation9 + $0x48]] }
 0x290   : > { %v2100_v7 = vsel %vm731_vm2, %v2098_v38, %v2099_v28  ;;  %v2110_v15 = vsel %vm762_vm3, %v2108_v22, %v2109_v34  ;;  %v2124_v40 = vmul.f32 %v8086_v54, %v7983_v3  ;;  %v2125_v45 = vmul.f32 %v8086_v54, %v8009_v39  ;;  %s8561_s24 = sld [smem:[#allocation9 + $0x93]] }
 0x291   : > { %v2092_v13 = vadd.f32 %v2090_v17, %v2062_v47  ;;  %v2102_v9 = vadd.f32 %v2100_v7, %v2072_v35  ;;  %v2112_v33 = vadd.f32 %v2110_v15, %v2082_v62  ;;  %v2134_v55 = vmul.f32 %v8089_v8, %v7983_v3 }
 0x292   : > { %v2120_v58 = vsel %vm762_vm3, %v2118_v50, %v2119_v14  ;;  %v2128_v46 = vrot.slane %v2124_v40, 3  ;;  %v2129_v41 = vrot.slane %v2125_v45, 3  ;;  %v2135_v49 = vmul.f32 %v8089_v8, %v8009_v39 }
 0x293   : > { %v2138_v36 = vrot.slane %v2134_v55, 4  ;;  %v8105_v26 = vstv %s8058_s14  ;;  %v8108_v61 = vstv %s8066_s12  ;;  %v3893_v0 = vmul.f32 %v8097_v51, %v2034_v18  ;;  %v8124_v18 = vpop.permute.xlu1 %3891  ;;  %s8573_s14 = sld [smem:[#allocation9 + $0xde]] }
 0x294   : > { %v2130_v4 = vsel %vm762_vm3, %v2128_v46, %v2129_v41  ;;  %v2139_v53 = vrot.slane %v2135_v49, 4  ;;  %v2144_v12 = vmul.f32 %v8105_v26, %v7983_v3  ;;  %v2145_v37 = vmul.f32 %v8105_v26, %v8009_v39  ;;  %s8580_s12 = sld [smem:[#allocation9 + $0x35]] }
 0x295   : > { %v2122_v10 = vadd.f32 %v2120_v58, %v2092_v13  ;;  %v8118_v59 = vadd.f32 %v2130_v4, %v2102_v9  ;;  %v2154_v31 = vmul.f32 %v8108_v61, %v7983_v3  ;;  %v2155_v11 = vmul.f32 %v8108_v61, %v8009_v39 }
 0x296   : > { %v2148_v16 = vrot.slane %v2144_v12, 4  ;;  %v2149_v29 = vrot.slane %v2145_v37, 4  ;;  %v3894_v47 = vadd.f32 %v3893_v0, %v7995_v24  ;;  %v3895_v35 = vmul.f32 %v8097_v51, %v2037_v52 }
 0x297   : > { %v2140_v21 = vsel %vm793_vm4, %v2138_v36, %v2139_v53  ;;  %v2158_v60 = vrot.slane %v2154_v31, 4  ;;  %v2159_v56 = vrot.slane %v2155_v11, 4  ;;  %v3897_v30 = vmul.f32 %v8097_v51, %v2040_v48 }
 0x298   : > { %v8134_v3 = vadd.f32 %v2140_v21, %v2112_v33  ;;  %v2150_v39 = vsel %vm793_vm4, %v2148_v16, %v2149_v29  ;;  %v3899_v6 = vmul.f32 %v8097_v51, %v7993_v25  ;;  %v3900_v24 = vmul.f32 %v8124_v18, %v7993_v25 }
 0x299   : > { %v8141_v23 = vadd.f32 %v2150_v39, %v2122_v10  ;;  %v8144_v52 = vsel %vm793_vm4, %v2158_v60, %v2159_v56  ;;  %v3896_v2 = vadd.f32 %v3895_v35, %v8006_v19  ;;  %v3908_v48 = vmul.f32 %v8097_v51, %v8020_v32 }
 0x29a   : > { %v3898_v62 = vadd.f32 %v3897_v30, %v8050_v1  ;;  %v3903_v38 = vrot.slane %v3899_v6, 1  ;;  %v3904_v20 = vrot.slane %v3900_v24, 1  ;;  %v3909_v57 = vmul.f32 %v8124_v18, %v8020_v32 }
 0x29b   : > { %v3912_v17 = vrot.slane %v3908_v48, 1  ;;  %v3917_v25 = vmul.f32 %v8097_v51, %v8029_v44  ;;  %v3918_v28 = vmul.f32 %v8124_v18, %v8029_v44  ;;  %v3926_v19 = vmul.f32 %v8097_v51, %v8036_v27 }
 0x29c   : > { %v3905_v22 = vsel %vm700_vm1, %v3903_v38, %v3904_v20  ;;  %v3913_v34 = vrot.slane %v3909_v57, 1  ;;  %v3927_v1 = vmul.f32 %v8124_v18, %v8036_v27  ;;  %v3935_v50 = vmul.f32 %v8097_v51, %v8048_v5 }
 0x29d   : > { %v3907_v32 = vadd.f32 %v3905_v22, %v3894_v47  ;;  %v3921_v14 = vrot.slane %v3917_v25, 1  ;;  %v3922_v7 = vrot.slane %v3918_v28, 1  ;;  %v3930_v15 = vrot.slane %v3926_v19, 2  ;;  %v8219_v19 = vpop.permute.xlu0 %2163 }
 0x29e   : > { %v3914_v40 = vsel %vm700_vm1, %v3912_v17, %v3913_v34  ;;  %v3931_v45 = vrot.slane %v3927_v1, 2  ;;  %v3936_v44 = vmul.f32 %v8124_v18, %v8048_v5  ;;  %v3939_v13 = vrot.slane %v3935_v50, 2 }
 0x29f   : > { %v3916_v9 = vadd.f32 %v3914_v40, %v3896_v2  ;;  %v3923_v33 = vsel %vm700_vm1, %v3921_v14, %v3922_v7  ;;  %v3944_v27 = vmul.f32 %v8097_v51, %v8061_v43  ;;  %v3945_v55 = vmul.f32 %v8124_v18, %v8061_v43  ;;  %v8243_v7 = vpop.permute.xlu1 %2165 }
 0x2a0   : > { %v3925_v58 = vadd.f32 %v3923_v33, %v3898_v62  ;;  %v3932_v46 = vsel %vm731_vm2, %v3930_v15, %v3931_v45  ;;  %v3940_v41 = vrot.slane %v3936_v44, 2  ;;  %v3953_v49 = vmul.f32 %v8097_v51, %v8064_v42 }
 0x2a1   : > { %v3934_v5 = vadd.f32 %v3932_v46, %v3907_v32  ;;  %v3948_v36 = vrot.slane %v3944_v27, 2  ;;  %v3949_v0 = vrot.slane %v3945_v55, 2  ;;  %v3954_v4 = vmul.f32 %v8124_v18, %v8064_v42 }
 0x2a2   : > { %v3941_v53 = vsel %vm731_vm2, %v3939_v13, %v3940_v41  ;;  %v3957_v43 = vrot.slane %v3953_v49, 3  ;;  %v3962_v12 = vmul.f32 %v8097_v51, %v8078_v63  ;;  %v3963_v37 = vmul.f32 %v8124_v18, %v8078_v63 }
 0x2a3   : > { %v3943_v10 = vadd.f32 %v3941_v53, %v3916_v9  ;;  %v3950_v31 = vsel %vm731_vm2, %v3948_v36, %v3949_v0  ;;  %v3958_v11 = vrot.slane %v3954_v4, 3  ;;  %v3971_v42 = vmul.f32 %v8097_v51, %v8086_v54 }
 0x2a4   : > { %v3952_v16 = vadd.f32 %v3950_v31, %v3925_v58  ;;  %v3966_v29 = vrot.slane %v3962_v12, 3  ;;  %v3967_v47 = vrot.slane %v3963_v37, 3  ;;  %v3972_v35 = vmul.f32 %v8124_v18, %v8086_v54 }
 0x2a5   : > { %v3959_v63 = vsel %vm762_vm3, %v3957_v43, %v3958_v11  ;;  %v3975_v21 = vrot.slane %v3971_v42, 3  ;;  %v3980_v60 = vmul.f32 %v8097_v51, %v8089_v8  ;;  %v3981_v56 = vmul.f32 %v8124_v18, %v8089_v8 }
 0x2a6   : > { %v3961_v30 = vadd.f32 %v3959_v63, %v3934_v5  ;;  %v3968_v39 = vsel %vm762_vm3, %v3966_v29, %v3967_v47  ;;  %v3976_v6 = vrot.slane %v3972_v35, 3  ;;  %v3989_v54 = vmul.f32 %v8097_v51, %v8105_v26 }
 0x2a7   : > { %v3970_v24 = vadd.f32 %v3968_v39, %v3943_v10  ;;  %v3984_v2 = vrot.slane %v3980_v60, 4  ;;  %v3985_v48 = vrot.slane %v3981_v56, 4  ;;  %v3990_v62 = vmul.f32 %v8124_v18, %v8105_v26 }
 0x2a8   : > { %v3977_v8 = vsel %vm762_vm3, %v3975_v21, %v3976_v6  ;;  %v3993_v38 = vrot.slane %v3989_v54, 4  ;;  %v3998_v20 = vmul.f32 %v8097_v51, %v8108_v61  ;;  %v3999_v57 = vmul.f32 %v8124_v18, %v8108_v61 }
 0x2a9   : > { %v2162_v17 = vadd.f32 %v8144_v52, %v8118_v59  ;;  %v8217_v25 = vadd.f32 %v3977_v8, %v3952_v16  ;;  %v3994_v28 = vrot.slane %v3990_v62, 4  ;;  %v2167_v26 = vstv %s8174_s16  ;;  %s8587_s16 = sld [smem:[#allocation9 + $0x80]] }
 0x2aa   : > { %v3986_v22 = vsel %vm793_vm4, %v3984_v2, %v3985_v48  ;;  %v4002_v51 = vrot.slane %v3998_v20, 4  ;;  %v4003_v34 = vrot.slane %v3999_v57, 4  ;;  %v2168_v61 = vmul.f32 %v2167_v26, %v8219_v19 }
 0x2ab   : > { %v3995_v18 = vsel %vm793_vm4, %v3993_v38, %v3994_v28  ;;  %v2170_v59 = vstv %s8185_s2  ;;  %v2173_v52 = vstv %s8190_s18  ;;  %v8234_v1 = vstv %s8178_s5  ;;  %s8596_s5 = sld [smem:[#allocation9 + $0xcb]] }
 0x2ac   : > { %v8236_v50 = vadd.f32 %v3986_v22, %v3961_v30  ;;  %v8238_v32 = vadd.f32 %v3995_v18, %v3970_v24  ;;  %v8241_v14 = vsel %vm793_vm4, %v4002_v51, %v4003_v34  ;;  %v2171_v15 = vmul.f32 %v2170_v59, %v8219_v19  ;;  %s8606_s2 = sld [smem:[#allocation9 + $0x3a]] }
 0x2ad   : > { %v2169_v40 = vadd.f32 %v2168_v61, %v8134_v3  ;;  %v2174_v45 = vmul.f32 %v2173_v52, %v8219_v19  ;;  %v2177_v44 = vmul.f32 %v8234_v1, %v8219_v19  ;;  %v2178_v13 = vmul.f32 %v8234_v1, %v8243_v7  ;;  %s8612_s18 = sld [smem:[#allocation9 + $0x85]] }
 0x2ae   : > { %v2172_v9 = vadd.f32 %v2171_v15, %v8141_v23  ;;  %v8262_v33 = vstv %s8201_s20  ;;  %v8265_v27 = vstv %s8206_s21  ;;  %v8268_v55 = vstv %s8194_s19  ;;  %s8622_s19 = sld [smem:[#allocation9 + $0xd0]] }
 0x2af   : > { %v2175_v3 = vadd.f32 %v2174_v45, %v2162_v17  ;;  %v2181_v58 = vrot.slane %v2177_v44, 1  ;;  %v2182_v46 = vrot.slane %v2178_v13, 1  ;;  %v2187_v41 = vmul.f32 %v8262_v33, %v8219_v19  ;;  %s8638_s20 = sld [smem:[#allocation9 + $0x3f]] }
 0x2b0   : > { %v2188_v49 = vmul.f32 %v8262_v33, %v8243_v7  ;;  %v2197_v23 = vmul.f32 %v8265_v27, %v8219_v19  ;;  %v2198_v5 = vmul.f32 %v8265_v27, %v8243_v7  ;;  %v2207_v36 = vmul.f32 %v8268_v55, %v8219_v19  ;;  %s8646_s21 = sld [smem:[#allocation9 + $0x8a]] }
 0x2b1   : > { %v2183_v0 = vsel %vm700_vm1, %v2181_v58, %v2182_v46  ;;  %v2191_v4 = vrot.slane %v2187_v41, 1  ;;  %v2208_v53 = vmul.f32 %v8268_v55, %v8243_v7  ;;  %v8286_v43 = vstv %s8221_s23  ;;  %s8654_s23 = sld [smem:[#allocation9 + $0x44]] }
 0x2b2   : > { %v2185_v12 = vadd.f32 %v2183_v0, %v2169_v40  ;;  %v2192_v37 = vrot.slane %v2188_v49, 1  ;;  %v2201_v10 = vrot.slane %v2197_v23, 1  ;;  %v2202_v31 = vrot.slane %v2198_v5, 1 }
 0x2b3   : > { %v2211_v11 = vrot.slane %v2207_v36, 2  ;;  %v2212_v42 = vrot.slane %v2208_v53, 2  ;;  %v2217_v16 = vmul.f32 %v8286_v43, %v8219_v19  ;;  %v2218_v29 = vmul.f32 %v8286_v43, %v8243_v7 }
 0x2b4   : > { %v2193_v47 = vsel %vm700_vm1, %v2191_v4, %v2192_v37  ;;  %v2203_v35 = vsel %vm700_vm1, %v2201_v10, %v2202_v31  ;;  %v8299_v63 = vstv %s8245_s22  ;;  %v8302_v21 = vstv %s8229_s6  ;;  %s8657_s6 = sld [smem:[#allocation9 + $0x8f]] }
 0x2b5   : > { %v2195_v60 = vadd.f32 %v2193_v47, %v2172_v9  ;;  %v2205_v56 = vadd.f32 %v2203_v35, %v2175_v3  ;;  %v2213_v30 = vsel %vm731_vm2, %v2211_v11, %v2212_v42  ;;  %v2221_v39 = vrot.slane %v2217_v16, 2  ;;  %s8668_s22 = sld [smem:[#allocation9 + $0xd5]] }
 0x2b6   : > { %v2215_v6 = vadd.f32 %v2213_v30, %v2185_v12  ;;  %v2222_v54 = vrot.slane %v2218_v29, 2  ;;  %v2227_v24 = vmul.f32 %v8299_v63, %v8219_v19  ;;  %v2228_v2 = vmul.f32 %v8299_v63, %v8243_v7 }
 0x2b7   : > { %v2237_v48 = vmul.f32 %v8302_v21, %v8219_v19  ;;  %v2238_v62 = vmul.f32 %v8302_v21, %v8243_v7  ;;  %v8318_v8 = vstv %s8258_s11  ;;  %v8321_v38 = vstv %s8270_s9  ;;  %s8682_s11 = sld [smem:[#allocation9 + $0xda]] }
 0x2b8   : > { %v2223_v20 = vsel %vm731_vm2, %v2221_v39, %v2222_v54  ;;  %v2231_v57 = vrot.slane %v2227_v24, 2  ;;  %v2232_v17 = vrot.slane %v2228_v2, 2  ;;  %v2247_v28 = vmul.f32 %v8318_v8, %v8219_v19  ;;  %v9612_v39 = vld [vmem:[#allocation36_spill] sm:$0xff]  ;;  %s8699_s9 = sld [smem:[#allocation9 + $0x49]] }
 0x2b9   : > { %v2225_v22 = vadd.f32 %v2223_v20, %v2195_v60  ;;  %v2241_v51 = vrot.slane %v2237_v48, 3  ;;  %v2242_v34 = vrot.slane %v2238_v62, 3  ;;  %v2248_v61 = vmul.f32 %v8318_v8, %v8243_v7 }
 0x2ba   : > { %v2233_v18 = vsel %vm731_vm2, %v2231_v57, %v2232_v17  ;;  %v2251_v15 = vrot.slane %v2247_v28, 3  ;;  %v2257_v40 = vmul.f32 %v8321_v38, %v8219_v19  ;;  %v2258_v45 = vmul.f32 %v8321_v38, %v8243_v7 }
 0x2bb   : > { %v2235_v44 = vadd.f32 %v2233_v18, %v2205_v56  ;;  %v2243_v13 = vsel %vm762_vm3, %v2241_v51, %v2242_v34  ;;  %v2252_v9 = vrot.slane %v2248_v61, 3  ;;  %v8343_v3 = vstv %s8288_s3  ;;  %v9613_v34 = vld [vmem:[#allocation39_spill] sm:$0xff]  ;;  %s8708_s3 = sld [smem:[#allocation9 + $0x94]] }
 0x2bc   : > { %v2245_v58 = vadd.f32 %v2243_v13, %v2215_v6  ;;  %v2261_v46 = vrot.slane %v2257_v40, 3  ;;  %v2262_v41 = vrot.slane %v2258_v45, 3  ;;  %v2267_v49 = vmul.f32 %v8343_v3, %v8219_v19 }
 0x2bd   : > { %v2253_v23 = vsel %vm762_vm3, %v2251_v15, %v2252_v9  ;;  %v2268_v5 = vmul.f32 %v8343_v3, %v8243_v7  ;;  %v8353_v36 = vstv %s8294_s27  ;;  %v8356_v0 = vstv %s8304_s26  ;;  %s8720_s27 = sld [smem:[#allocation9 + $0xdf]] }
 0x2be   : > { %v2255_v4 = vadd.f32 %v2253_v23, %v2225_v22  ;;  %v2263_v53 = vsel %vm762_vm3, %v2261_v46, %v2262_v41  ;;  %v2271_v12 = vrot.slane %v2267_v49, 4  ;;  %v2277_v37 = vmul.f32 %v8353_v36, %v8219_v19  ;;  %s8861_s26 = sld [smem:[#allocation9 + $0x3b]] }
 0x2bf   : > { %v2265_v10 = vadd.f32 %v2263_v53, %v2235_v44  ;;  %v2272_v31 = vrot.slane %v2268_v5, 4  ;;  %v2278_v11 = vmul.f32 %v8353_v36, %v8243_v7  ;;  %v2287_v42 = vmul.f32 %v8356_v0, %v8219_v19 }
 0x2c0   : > { %v2281_v16 = vrot.slane %v2277_v37, 4  ;;  %v2288_v29 = vmul.f32 %v8356_v0, %v8243_v7  ;;  %v2296_v47 = vstv %s8311_s17  ;;  %v2299_v35 = vstv %s8323_s25  ;;  %s8869_s17 = sld [smem:[#allocation9 + $0x40]] }
 0x2c1   : > { %v2273_v60 = vsel %vm793_vm4, %v2271_v12, %v2272_v31  ;;  %v2282_v56 = vrot.slane %v2278_v11, 4  ;;  %v2291_v30 = vrot.slane %v2287_v42, 4  ;;  %v2297_v19 = vmul.f32 %v2296_v47, %v9612_v39  ;;  %v8424_v31 = vpop.permute.xlu0 %4007  ;;  %s8876_s25 = sld [smem:[#allocation9 + $0x86]] }
 0x2c2   : > { %v2275_v6 = vadd.f32 %v2273_v60, %v2245_v58  ;;  %v2292_v54 = vrot.slane %v2288_v29, 4  ;;  %v2300_v24 = vmul.f32 %v2299_v35, %v9612_v39  ;;  %v2302_v2 = vstv %s8332_s7  ;;  %s8886_s7 = sld [smem:[#allocation9 + $0xd1]] }
 0x2c3   : > { %v2283_v7 = vsel %vm793_vm4, %v2281_v16, %v2282_v56  ;;  %v2303_v48 = vmul.f32 %v2302_v2, %v9612_v39  ;;  %v8388_v62 = vstv %s8328_s29  ;;  %v8391_v20 = vstv %s8339_s0  ;;  %s8880_s29 = sld [smem:[#allocation9 + $0x8b]] }
 0x2c4   : > { %v2285_v57 = vadd.f32 %v2283_v7, %v2255_v4  ;;  %v2293_v17 = vsel %vm793_vm4, %v2291_v30, %v2292_v54  ;;  %v2298_v28 = vadd.f32 %v2297_v19, %v2275_v6  ;;  %v2306_v22 = vmul.f32 %v8388_v62, %v9612_v39  ;;  %s8893_s0 = sld [smem:[#allocation9 + $0x45]] }
 0x2c5   : > { %v2295_v51 = vadd.f32 %v2293_v17, %v2265_v10  ;;  %v2307_v61 = vmul.f32 %v8388_v62, %v9613_v34  ;;  %v2316_v18 = vmul.f32 %v8391_v20, %v9612_v39  ;;  %v2317_v15 = vmul.f32 %v8391_v20, %v9613_v34 }
 0x2c6   : > { %v2301_v40 = vadd.f32 %v2300_v24, %v2285_v57  ;;  %v2310_v45 = vrot.slane %v2306_v22, 1  ;;  %v8403_v44 = vstv %s8358_s1  ;;  %v8406_v13 = vstv %s8347_s10  ;;  %v8441_v22 = vpop.permute.xlu1 %4009  ;;  %s8903_s10 = sld [smem:[#allocation9 + $0x4a]] }
 0x2c7   : > { %v2304_v9 = vadd.f32 %v2303_v48, %v2295_v51  ;;  %v2311_v58 = vrot.slane %v2307_v61, 1  ;;  %v2320_v46 = vrot.slane %v2316_v18, 1  ;;  %v2321_v41 = vrot.slane %v2317_v15, 1  ;;  %s8913_s1 = sld [smem:[#allocation9 + $0xd6]] }
 0x2c8   : > { %v2326_v49 = vmul.f32 %v8403_v44, %v9612_v39  ;;  %v2327_v23 = vmul.f32 %v8403_v44, %v9613_v34  ;;  %v2336_v5 = vmul.f32 %v8406_v13, %v9612_v39  ;;  %v2337_v4 = vmul.f32 %v8406_v13, %v9613_v34 }
 0x2c9   : > { %v2312_v53 = vsel %vm700_vm1, %v2310_v45, %v2311_v58  ;;  %v2322_v12 = vsel %vm700_vm1, %v2320_v46, %v2321_v41  ;;  %v8419_v37 = vstv %s8367_s13  ;;  %v8422_v10 = vstv %s8373_s15  ;;  %s8929_s13 = sld [smem:[#allocation9 + $0x90]] }
 0x2ca   : > { %v2314_v11 = vadd.f32 %v2312_v53, %v2298_v28  ;;  %v2324_v42 = vadd.f32 %v2322_v12, %v2301_v40  ;;  %v2330_v16 = vrot.slane %v2326_v49, 1  ;;  %v2331_v29 = vrot.slane %v2327_v23, 1  ;;  %s8944_s15 = sld [smem:[#allocation9 + $0xdb]] }
 0x2cb   : > { %v2340_v60 = vrot.slane %v2336_v5, 2  ;;  %v2341_v56 = vrot.slane %v2337_v4, 2  ;;  %v2346_v30 = vmul.f32 %v8419_v37, %v9612_v39  ;;  %v2347_v19 = vmul.f32 %v8419_v37, %v9613_v34 }
 0x2cc   : > { %v2332_v6 = vsel %vm700_vm1, %v2330_v16, %v2331_v29  ;;  %v2356_v54 = vmul.f32 %v8422_v10, %v9612_v39  ;;  %v2357_v24 = vmul.f32 %v8422_v10, %v9613_v34  ;;  %v4011_v7 = vmul.f32 %v8424_v31, %v2167_v26 }
 0x2cd   : > { %v4006_v48 = vadd.f32 %v8241_v14, %v8217_v25  ;;  %v2342_v57 = vsel %vm731_vm2, %v2340_v60, %v2341_v56  ;;  %v2350_v17 = vrot.slane %v2346_v30, 2  ;;  %v2351_v28 = vrot.slane %v2347_v19, 2 }
 0x2ce   : > { %v8443_v51 = vadd.f32 %v2332_v6, %v2304_v9  ;;  %v8445_v61 = vadd.f32 %v2342_v57, %v2314_v11  ;;  %v2360_v18 = vrot.slane %v2356_v54, 2  ;;  %v2361_v15 = vrot.slane %v2357_v24, 2 }
 0x2cf   : > { %v2352_v40 = vsel %vm731_vm2, %v2350_v17, %v2351_v28  ;;  %v4013_v26 = vmul.f32 %v8424_v31, %v2170_v59  ;;  %v4015_v25 = vmul.f32 %v8424_v31, %v2173_v52  ;;  %v4017_v14 = vmul.f32 %v8424_v31, %v8234_v1 }
 0x2d0   : > { %v8456_v45 = vadd.f32 %v2352_v40, %v2324_v42  ;;  %v4012_v9 = vadd.f32 %v4011_v7, %v8236_v50  ;;  %v4018_v58 = vmul.f32 %v8441_v22, %v8234_v1  ;;  %v4026_v46 = vmul.f32 %v8424_v31, %v8262_v33 }
 0x2d1   : > { %v8464_v41 = vsel %vm731_vm2, %v2360_v18, %v2361_v15  ;;  %v4014_v59 = vadd.f32 %v4013_v26, %v8238_v32  ;;  %v4016_v49 = vadd.f32 %v4015_v25, %v4006_v48  ;;  %v4021_v52 = vrot.slane %v4017_v14, 1 }
 0x2d2   : > { %v4022_v23 = vrot.slane %v4018_v58, 1  ;;  %v4027_v5 = vmul.f32 %v8441_v22, %v8262_v33  ;;  %v4030_v4 = vrot.slane %v4026_v46, 1  ;;  %v4035_v50 = vmul.f32 %v8424_v31, %v8265_v27 }
 0x2d3   : > { %v4036_v1 = vmul.f32 %v8441_v22, %v8265_v27  ;;  %v4044_v53 = vmul.f32 %v8424_v31, %v8268_v55  ;;  %v4045_v12 = vmul.f32 %v8441_v22, %v8268_v55  ;;  %v4053_v32 = vmul.f32 %v8424_v31, %v8286_v43 }
 0x2d4   : > { %v4023_v11 = vsel %vm700_vm1, %v4021_v52, %v4022_v23  ;;  %v4031_v42 = vrot.slane %v4027_v5, 1  ;;  %v4039_v33 = vrot.slane %v4035_v50, 1  ;;  %v4054_v16 = vmul.f32 %v8441_v22, %v8286_v43 }
 0x2d5   : > { %v4025_v29 = vadd.f32 %v4023_v11, %v4012_v9  ;;  %v4040_v60 = vrot.slane %v4036_v1, 1  ;;  %v4048_v56 = vrot.slane %v4044_v53, 2  ;;  %v4049_v27 = vrot.slane %v4045_v12, 2 }
 0x2d6   : > { %v4032_v30 = vsel %vm700_vm1, %v4030_v4, %v4031_v42  ;;  %v4057_v19 = vrot.slane %v4053_v32, 2  ;;  %v4058_v6 = vrot.slane %v4054_v16, 2  ;;  %v4062_v55 = vmul.f32 %v8424_v31, %v8299_v63 }
 0x2d7   : > { %v4034_v54 = vadd.f32 %v4032_v30, %v4014_v59  ;;  %v4041_v24 = vsel %vm700_vm1, %v4039_v33, %v4040_v60  ;;  %v4050_v7 = vsel %vm731_vm2, %v4048_v56, %v4049_v27  ;;  %v4063_v48 = vmul.f32 %v8441_v22, %v8299_v63 }
 0x2d8   : > { %v4043_v43 = vadd.f32 %v4041_v24, %v4016_v49  ;;  %v4052_v57 = vadd.f32 %v4050_v7, %v4025_v29  ;;  %v4059_v17 = vsel %vm731_vm2, %v4057_v19, %v4058_v6  ;;  %v4066_v28 = vrot.slane %v4062_v55, 2  ;;  %v8520_v19 = vld [vmem:[%s9610_s8 + $0x26] sm:$0xff]  ;;  %s8538_s8 = sld [smem:[#allocation9 + $0x43]] }
 0x2d9   : > { %v4061_v18 = vadd.f32 %v4059_v17, %v4034_v54  ;;  %v4067_v15 = vrot.slane %v4063_v48, 2  ;;  %v4071_v40 = vmul.f32 %v8424_v31, %v8302_v21  ;;  %v4072_v26 = vmul.f32 %v8441_v22, %v8302_v21 }
 0x2da   : > { %v4080_v25 = vmul.f32 %v8424_v31, %v8318_v8  ;;  %v4081_v14 = vmul.f32 %v8441_v22, %v8318_v8  ;;  %v4089_v63 = vmul.f32 %v8424_v31, %v8321_v38  ;;  %v4090_v9 = vmul.f32 %v8441_v22, %v8321_v38 }
 0x2db   : > { %v4068_v58 = vsel %vm731_vm2, %v4066_v28, %v4067_v15  ;;  %v4075_v46 = vrot.slane %v4071_v40, 3  ;;  %v4076_v59 = vrot.slane %v4072_v26, 3  ;;  %v4098_v49 = vmul.f32 %v8424_v31, %v8343_v3 }
 0x2dc   : > { %v4070_v21 = vadd.f32 %v4068_v58, %v4043_v43  ;;  %v4084_v52 = vrot.slane %v4080_v25, 3  ;;  %v4085_v23 = vrot.slane %v4081_v14, 3  ;;  %v4093_v5 = vrot.slane %v4089_v63, 3 }
 0x2dd   : > { %v4077_v4 = vsel %vm762_vm3, %v4075_v46, %v4076_v59  ;;  %v4094_v8 = vrot.slane %v4090_v9, 3  ;;  %v4099_v50 = vmul.f32 %v8441_v22, %v8343_v3  ;;  %v4102_v1 = vrot.slane %v4098_v49, 4 }
 0x2de   : > { %v4079_v38 = vadd.f32 %v4077_v4, %v4052_v57  ;;  %v4086_v53 = vsel %vm762_vm3, %v4084_v52, %v4085_v23  ;;  %v4107_v12 = vmul.f32 %v8424_v31, %v8353_v36  ;;  %v4108_v32 = vmul.f32 %v8441_v22, %v8353_v36 }
 0x2df   : > { %v4088_v11 = vadd.f32 %v4086_v53, %v4061_v18  ;;  %v4095_v42 = vsel %vm762_vm3, %v4093_v5, %v4094_v8  ;;  %v4103_v33 = vrot.slane %v4099_v50, 4  ;;  %v4116_v3 = vmul.f32 %v8424_v31, %v8356_v0 }
 0x2e0   : > { %v4097_v16 = vadd.f32 %v4095_v42, %v4070_v21  ;;  %v4111_v29 = vrot.slane %v4107_v12, 4  ;;  %v4112_v60 = vrot.slane %v4108_v32, 4  ;;  %v4117_v56 = vmul.f32 %v8441_v22, %v8356_v0  ;;  %v9614_v22 = vld [vmem:[#allocation47_spill] sm:$0xff] }
 0x2e1   : > { %v4104_v27 = vsel %vm793_vm4, %v4102_v1, %v4103_v33  ;;  %v4120_v30 = vrot.slane %v4116_v3, 4  ;;  %v4125_v36 = vmul.f32 %v8520_v19, %v2296_v47  ;;  %v4127_v6 = vmul.f32 %v8520_v19, %v2299_v35 }
 0x2e2   : > { %v4106_v55 = vadd.f32 %v4104_v27, %v4079_v38  ;;  %v4113_v31 = vsel %vm793_vm4, %v4111_v29, %v4112_v60  ;;  %v4121_v54 = vrot.slane %v4117_v56, 4  ;;  %v4129_v24 = vmul.f32 %v8520_v19, %v2302_v2 }
 0x2e3   : > { %v4115_v7 = vadd.f32 %v4113_v31, %v4088_v11  ;;  %v4131_v0 = vmul.f32 %v8520_v19, %v8388_v62  ;;  %v4132_v48 = vmul.f32 %v9614_v22, %v8388_v62  ;;  %v4140_v47 = vmul.f32 %v8520_v19, %v8391_v20 }
 0x2e4   : > { %v4122_v35 = vsel %vm793_vm4, %v4120_v30, %v4121_v54  ;;  %v4126_v43 = vadd.f32 %v4125_v36, %v4106_v55  ;;  %v4141_v57 = vmul.f32 %v9614_v22, %v8391_v20  ;;  %v4149_v2 = vmul.f32 %v8520_v19, %v8403_v44 }
 0x2e5   : > { %v4124_v17 = vadd.f32 %v4122_v35, %v4097_v16  ;;  %v4128_v28 = vadd.f32 %v4127_v6, %v4115_v7  ;;  %v4135_v18 = vrot.slane %v4131_v0, 1  ;;  %v4136_v15 = vrot.slane %v4132_v48, 1 }
 0x2e6   : > { %v4144_v62 = vrot.slane %v4140_v47, 1  ;;  %v4145_v40 = vrot.slane %v4141_v57, 1  ;;  %v4150_v26 = vmul.f32 %v9614_v22, %v8403_v44  ;;  %v4153_v25 = vrot.slane %v4149_v2, 1 }
 0x2e7   : > { %v4130_v14 = vadd.f32 %v4129_v24, %v4124_v17  ;;  %v4137_v20 = vsel %vm700_vm1, %v4135_v18, %v4136_v15  ;;  %v4158_v63 = vmul.f32 %v8520_v19, %v8406_v13  ;;  %v4159_v9 = vmul.f32 %v9614_v22, %v8406_v13 }
 0x2e8   : > { %v4139_v58 = vadd.f32 %v4137_v20, %v4126_v43  ;;  %v4146_v46 = vsel %vm700_vm1, %v4144_v62, %v4145_v40  ;;  %v4154_v59 = vrot.slane %v4150_v26, 1  ;;  %v4167_v44 = vmul.f32 %v8520_v19, %v8419_v37 }
 0x2e9   : > { %v4148_v49 = vadd.f32 %v4146_v46, %v4128_v28  ;;  %v4162_v21 = vrot.slane %v4158_v63, 2  ;;  %v4163_v52 = vrot.slane %v4159_v9, 2  ;;  %v4168_v23 = vmul.f32 %v9614_v22, %v8419_v37 }
 0x2ea   : > { %v4155_v13 = vsel %vm700_vm1, %v4153_v25, %v4154_v59  ;;  %v4171_v5 = vrot.slane %v4167_v44, 2  ;;  %v4176_v4 = vmul.f32 %v8520_v19, %v8422_v10  ;;  %v4177_v8 = vmul.f32 %v9614_v22, %v8422_v10 }
 0x2eb   : > { %v2364_v50 = vadd.f32 %v8464_v41, %v8443_v51  ;;  %v4164_v1 = vsel %vm731_vm2, %v4162_v21, %v4163_v52  ;;  %v4172_v38 = vrot.slane %v4168_v23, 2  ;;  %v8576_v37 = vstv %s8538_s8  ;;  %s8948_s8 = sld [smem:[#allocation9 + $0x95]] }
 0x2ec   : > { %v8578_v53 = vadd.f32 %v4155_v13, %v4130_v14  ;;  %v4180_v12 = vrot.slane %v4176_v4, 2  ;;  %v4181_v32 = vrot.slane %v4177_v8, 2  ;;  %v2366_v10 = vmul.f32 %v8576_v37, %v9612_v39  ;;  %v8680_v8 = vpop.permute.xlu1 %2427 }
 0x2ed   : > { %v8584_v11 = vadd.f32 %v4164_v1, %v4139_v58  ;;  %v4173_v51 = vsel %vm731_vm2, %v4171_v5, %v4172_v38  ;;  %v2367_v41 = vmul.f32 %v8576_v37, %v9613_v34  ;;  %v8592_v42 = vstv %s8545_s28  ;;  %v8652_v58 = vpop.permute.xlu0 %2425  ;;  %s8953_s28 = sld [smem:[#allocation9 + $0xe0]] }
 0x2ee   : > { %v8594_v33 = vadd.f32 %v4173_v51, %v4148_v49  ;;  %v2370_v3 = vrot.slane %v2366_v10, 3  ;;  %v2376_v16 = vmul.f32 %v8592_v42, %v9612_v39  ;;  %v8601_v29 = vstv %s8549_s4  ;;  %s9030_s4 = sld [smem:[#allocation9 + $0x36]] }
 0x2ef   : > { %v8604_v60 = vsel %vm731_vm2, %v4180_v12, %v4181_v32  ;;  %v2371_v56 = vrot.slane %v2367_v41, 3  ;;  %v2377_v27 = vmul.f32 %v8592_v42, %v9613_v34  ;;  %v2386_v30 = vmul.f32 %v8601_v29, %v9612_v39 }
 0x2f0   : > { %v2380_v36 = vrot.slane %v2376_v16, 3  ;;  %v2387_v6 = vmul.f32 %v8601_v29, %v9613_v34  ;;  %v8617_v55 = vstv %s8556_s30  ;;  %v8620_v31 = vstv %s8561_s24  ;;  %s9041_s30 = sld [smem:[#allocation9 + $0x81]] }
 0x2f1   : > { %v2372_v54 = vsel %vm762_vm3, %v2370_v3, %v2371_v56  ;;  %v2381_v24 = vrot.slane %v2377_v27, 3  ;;  %v2390_v7 = vrot.slane %v2386_v30, 3  ;;  %v2396_v0 = vmul.f32 %v8617_v55, %v9612_v39  ;;  %s9054_s24 = sld [smem:[#allocation9 + $0xcc]] }
 0x2f2   : > { %v2374_v48 = vadd.f32 %v2372_v54, %v8445_v61  ;;  %v2391_v47 = vrot.slane %v2387_v6, 3  ;;  %v2397_v35 = vmul.f32 %v8617_v55, %v9613_v34  ;;  %v2406_v43 = vmul.f32 %v8620_v31, %v9612_v39 }
 0x2f3   : > { %v2382_v57 = vsel %vm762_vm3, %v2380_v36, %v2381_v24  ;;  %v2400_v2 = vrot.slane %v2396_v0, 4  ;;  %v2407_v17 = vmul.f32 %v8620_v31, %v9613_v34  ;;  %v8636_v28 = vstv %s8573_s14  ;;  %s9151_s14 = sld [smem:[#allocation10]] }
 0x2f4   : > { %v2384_v61 = vadd.f32 %v2382_v57, %v8456_v45  ;;  %v2392_v18 = vsel %vm762_vm3, %v2390_v7, %v2391_v47  ;;  %v2401_v15 = vrot.slane %v2397_v35, 4  ;;  %v2410_v62 = vrot.slane %v2406_v43, 4 }
 0x2f5   : > { %v2394_v40 = vadd.f32 %v2392_v18, %v2364_v50  ;;  %v2411_v26 = vrot.slane %v2407_v17, 4  ;;  %v2416_v25 = vmul.f32 %v8636_v28, %v9612_v39  ;;  %v2417_v14 = vmul.f32 %v8636_v28, %v9613_v34 }
 0x2f6   : > { %v2402_v20 = vsel %vm793_vm4, %v2400_v2, %v2401_v15  ;;  %v2429_v45 = vstv %s8580_s12  ;;  %v2432_v63 = vstv %s8587_s16  ;;  %v2435_v9 = vstv %s8596_s5  ;;  %s9156_s12 = sld [smem:[#allocation10 + $0x1]] }
 0x2f7   : > { %v2404_v39 = vadd.f32 %v2402_v20, %v2374_v48  ;;  %v2412_v46 = vsel %vm793_vm4, %v2410_v62, %v2411_v26  ;;  %v2420_v59 = vrot.slane %v2416_v25, 4  ;;  %v2421_v34 = vrot.slane %v2417_v14, 4  ;;  %s9163_s16 = sld [smem:[#allocation10 + $0x2]] }
 0x2f8   : > { %v2414_v44 = vadd.f32 %v2412_v46, %v2384_v61  ;;  %v2430_v49 = vmul.f32 %v2429_v45, %v8652_v58  ;;  %v2433_v21 = vmul.f32 %v2432_v63, %v8652_v58  ;;  %v2436_v52 = vmul.f32 %v2435_v9, %v8652_v58  ;;  %s9645_s5 = sld [smem:[#allocation31_spill]] }
 0x2f9   : > { %v2422_v23 = vsel %vm793_vm4, %v2420_v59, %v2421_v34  ;;  %v8672_v13 = vstv %s8606_s2  ;;  %v8675_v5 = vstv %s8612_s18  ;;  %v8678_v4 = vstv %s8622_s19  ;;  %s9672_s19 = sld [smem:[#allocation24_spill]] }
 0x2fa   : > { %v2424_v50 = vadd.f32 %v2422_v23, %v2394_v40  ;;  %v2431_v1 = vadd.f32 %v2430_v49, %v2404_v39  ;;  %v2434_v38 = vadd.f32 %v2433_v21, %v2414_v44  ;;  %v2439_v12 = vmul.f32 %v8672_v13, %v8652_v58 }
 0x2fb   : > { %v2440_v32 = vmul.f32 %v8672_v13, %v8680_v8  ;;  %v2449_v10 = vmul.f32 %v8675_v5, %v8652_v58  ;;  %v2450_v51 = vmul.f32 %v8675_v5, %v8680_v8  ;;  %v2459_v41 = vmul.f32 %v8678_v4, %v8652_v58 }
 0x2fc   : > { %v2437_v3 = vadd.f32 %v2436_v52, %v2424_v50  ;;  %v2443_v16 = vrot.slane %v2439_v12, 1  ;;  %v2460_v56 = vmul.f32 %v8678_v4, %v8680_v8  ;;  %v8697_v27 = vstv %s8638_s20 }
 0x2fd   : > { %v2444_v30 = vrot.slane %v2440_v32, 1  ;;  %v2453_v36 = vrot.slane %v2449_v10, 1  ;;  %v2454_v6 = vrot.slane %v2450_v51, 1  ;;  %v2463_v54 = vrot.slane %v2459_v41, 1 }
 0x2fe   : > { %v2464_v24 = vrot.slane %v2460_v56, 1  ;;  %v2469_v7 = vmul.f32 %v8697_v27, %v8652_v58  ;;  %v2470_v0 = vmul.f32 %v8697_v27, %v8680_v8  ;;  %v8706_v48 = vstv %s8646_s21  ;;  %s9653_s2 = smul.u32 48, %s9645_s5  ;;  %s9678_s21 = sld [smem:[#allocation28_spill]] }
 0x2ff   : > { %v2445_v47 = vsel %vm700_vm1, %v2443_v16, %v2444_v30  ;;  %v2455_v35 = vsel %vm700_vm1, %v2453_v36, %v2454_v6  ;;  %v2479_v43 = vmul.f32 %v8706_v48, %v8652_v58  ;;  %v2480_v57 = vmul.f32 %v8706_v48, %v8680_v8  ;;  %s4917_s20 = smul.u32 768, %s9672_s19 }
 0x300   : > { %v8718_v2 = vadd.f32 %v8604_v60, %v8578_v53  ;;  %v8722_v17 = vadd.f32 %v2445_v47, %v2431_v1  ;;  %v8724_v61 = vadd.f32 %v2455_v35, %v2434_v38  ;;  %v2473_v18 = vrot.slane %v2469_v7, 2  ;;  %s9210_s18 = scalar_lea.vmem [#allocation12], %s9653_s2 }
 0x301   : > { %v2465_v15 = vsel %vm700_vm1, %v2463_v54, %v2464_v24  ;;  %v2474_v62 = vrot.slane %v2470_v0, 2  ;;  %v2483_v40 = vrot.slane %v2479_v43, 2  ;;  %v2484_v26 = vrot.slane %v2480_v57, 2 }
 0x302   : > { %v8728_v25 = vstv %s8668_s22  ;;  %v8731_v14 = vstv %s8654_s23  ;;  %v8734_v20 = vstv %s8657_s6  ;;  %v8737_v53 = vstv %s8682_s11  ;;  %s4497_s23 = sshll.u32 %s9210_s18, 4  ;;  %s9679_s11 = sld [smem:[#allocation93_spill]]  ;;  %s9309_s23 = int_to_ptr.vmem [resolvable:$true] %s4497_s23 }
 0x303   : > { %9615 = vst [vmem:[#allocation53_spill] sm:$0xff] %v8731_v14  ;;  %9616 = vst [vmem:[#allocation58_spill] sm:$0xff] %v8734_v20  ;;  %v8739_v60 = vadd.f32 %v2465_v15, %v2437_v3  ;;  %v8742_v39 = vsel %vm731_vm2, %v2473_v18, %v2474_v62  ;;  %v2489_v46 = vmul.f32 %v8728_v25, %v8652_v58  ;;  %v8784_v16 = vstv %s8699_s9 }
 0x304   : > { %9617 = vst [vmem:[#allocation52_spill] sm:$0xff] %v8737_v53  ;;  %v2490_v59 = vmul.f32 %v8728_v25, %v8680_v8  ;;  %v8750_v34 = vmul.f32 %v8731_v14, %v8652_v58  ;;  %v8754_v44 = vmul.f32 %v8731_v14, %v8680_v8  ;;  %v8758_v49 = vmul.f32 %v8734_v20, %v8652_v58  ;;  %p9680_p13 = scmp.ne.s32.totalorder %s9678_s21, 0 }
 0x305   : > { %v8762_v21 = vmul.f32 %v8734_v20, %v8680_v8  ;;  %v2493_v52 = vrot.slane %v2489_v46, 2  ;;  %v8766_v50 = vmul.f32 %v8737_v53, %v8652_v58  ;;  %v8770_v1 = vmul.f32 %v8737_v53, %v8680_v8 }
 0x306   : > { %v2494_v23 = vrot.slane %v2490_v59, 2  ;;  %v8773_v38 = vsel %vm731_vm2, %v2483_v40, %v2484_v26  ;;  %v8788_v56 = vmul.f32 %v8784_v16, %v8680_v8  ;;  %v8791_v30 = vstv %s8708_s3  ;;  %v8821_v59 = vpop.permute.xlu0 %4239  ;;  %s4482_s3 = scalar_lea.sflag [#allocation4], %s9645_s5 }
 0x307   : > { %v8794_v36 = vstv %s8720_s27  ;;  %v4185_v6 = vmul.f32 %v8520_v19, %v8576_v37  ;;  %v8801_v24 = vmul.f32 %v8791_v30, %v8680_v8  ;;  %v4186_v7 = vmul.f32 %v9614_v22, %v8576_v37  ;;  %9618 = vst [vmem:[#allocation54_spill] sm:$0xff] %v8821_v59  ;;  %s5107_s27 = scalar_lea.vmem %s9309_s23, 768 }
 0x308   : > { %v8779_v51 = vsel %vm731_vm2, %v2493_v52, %v2494_v23  ;;  %v4194_v0 = vmul.f32 %v8520_v19, %v8592_v42  ;;  %v8809_v47 = vmul.f32 %v8794_v36, %v8680_v8  ;;  %v4195_v43 = vmul.f32 %v9614_v22, %v8592_v42  ;;  %s9304_s9 = scalar_lea.hbm %s9679_s11, %s4917_s20  ;;  %p5108_p12 = scmp.ne.s32.totalorder %s9309_s23, %s5107_s27 }
 0x309   : > { %v4189_v35 = vrot.slane %v4185_v6, 3  ;;  %v4203_v57 = vmul.f32 %v8520_v19, %v8601_v29  ;;  %v4190_v62 = vrot.slane %v4186_v7, 3  ;;  %v4204_v26 = vmul.f32 %v9614_v22, %v8601_v29 }
 0x30a   : > { %v4198_v37 = vrot.slane %v4194_v0, 3  ;;  %v4199_v40 = vrot.slane %v4195_v43, 3  ;;  %v4212_v8 = vmul.f32 %v8520_v19, %v8617_v55  ;;  %v4213_v52 = vmul.f32 %v9614_v22, %v8617_v55  ;;  %v8833_v55 = vpop.permute.xlu1 %4241  ;;  %p5109_p1 = pnand %p5108_p12, %p9680_p13 }
 0x30b   : > { %v4207_v46 = vrot.slane %v4203_v57, 3  ;;  %v4191_v42 = vsel %vm762_vm3, %v4189_v35, %v4190_v62  ;;  %v4221_v23 = vmul.f32 %v8520_v19, %v8620_v31  ;;  %v4222_v6 = vmul.f32 %v9614_v22, %v8620_v31 }
 0x30c   : > { %v4193_v29 = vadd.f32 %v4191_v42, %v8584_v11  ;;  %v4200_v7 = vsel %vm762_vm3, %v4198_v37, %v4199_v40  ;;  %v4208_v0 = vrot.slane %v4204_v26, 3  ;;  %v4216_v43 = vrot.slane %v4212_v8, 4  ;;  %p5110_p3 = pneg %p5109_p1 }
 0x30d   : > { %v4202_v57 = vadd.f32 %v4200_v7, %v8594_v33  ;;  %v4217_v35 = vrot.slane %v4213_v52, 4  ;;  %v4225_v62 = vrot.slane %v4221_v23, 4  ;;  %v4226_v15 = vrot.slane %v4222_v6, 4 }
 0x30e   : > { %v4209_v18 = vsel %vm762_vm3, %v4207_v46, %v4208_v0  ;;  %v4230_v31 = vmul.f32 %v8520_v19, %v8636_v28  ;;  %v4231_v11 = vmul.f32 %v9614_v22, %v8636_v28  ;;  %v4243_v37 = vmul.f32 %v8821_v59, %v2429_v45 }
 0x30f   : > { %v4211_v40 = vadd.f32 %v4209_v18, %v8718_v2  ;;  %v4218_v33 = vsel %vm793_vm4, %v4216_v43, %v4217_v35  ;;  %v4227_v26 = vsel %vm793_vm4, %v4225_v62, %v4226_v15  ;;  %v4245_v8 = vmul.f32 %v8821_v59, %v2432_v63 }
 0x310   : > { %v4220_v42 = vadd.f32 %v4218_v33, %v4193_v29  ;;  %v4229_v46 = vadd.f32 %v4227_v26, %v4202_v57  ;;  %v4234_v52 = vrot.slane %v4230_v31, 4  ;;  %v4235_v23 = vrot.slane %v4231_v11, 4 }
 0x311   : > { %v4247_v19 = vmul.f32 %v8821_v59, %v2435_v9  ;;  %v4249_v22 = vmul.f32 %v8821_v59, %v8672_v13  ;;  %v4250_v28 = vmul.f32 %v8833_v55, %v8672_v13  ;;  %v4258_v45 = vmul.f32 %v8821_v59, %v8675_v5 }
 0x312   : > { %v4236_v2 = vsel %vm793_vm4, %v4234_v52, %v4235_v23  ;;  %v4244_v18 = vadd.f32 %v4243_v37, %v4220_v42  ;;  %v4246_v63 = vadd.f32 %v4245_v8, %v4229_v46  ;;  %v4259_v15 = vmul.f32 %v8833_v55, %v8675_v5 }
 0x313   : > { %v4238_v6 = vadd.f32 %v4236_v2, %v4211_v40  ;;  %v4253_v29 = vrot.slane %v4249_v22, 1  ;;  %v4254_v7 = vrot.slane %v4250_v28, 1  ;;  %v4262_v9 = vrot.slane %v4258_v45, 1 }
 0x314   : > { %v4263_v0 = vrot.slane %v4259_v15, 1  ;;  %v4267_v13 = vmul.f32 %v8821_v59, %v8678_v4  ;;  %v4268_v43 = vmul.f32 %v8833_v55, %v8678_v4  ;;  %v4276_v57 = vmul.f32 %v8821_v59, %v8697_v27 }
 0x315   : > { %v4248_v35 = vadd.f32 %v4247_v19, %v4238_v6  ;;  %v4255_v5 = vsel %vm700_vm1, %v4253_v29, %v4254_v7  ;;  %v4277_v62 = vmul.f32 %v8833_v55, %v8697_v27  ;;  %v4285_v31 = vmul.f32 %v8821_v59, %v8706_v48 }
 0x316   : > { %v4264_v4 = vsel %vm700_vm1, %v4262_v9, %v4263_v0  ;;  %v4271_v37 = vrot.slane %v4267_v13, 1  ;;  %v4272_v40 = vrot.slane %v4268_v43, 1  ;;  %v8882_v33 = vadd.f32 %v4255_v5, %v4244_v18  ;;  %v8940_v43 = vpop.permute.xlu0 %2558 }
 0x317   : > { %v4280_v26 = vrot.slane %v4276_v57, 2  ;;  %v4281_v8 = vrot.slane %v4277_v62, 2  ;;  %v4286_v27 = vmul.f32 %v8833_v55, %v8706_v48  ;;  %v4289_v46 = vrot.slane %v4285_v31, 2  ;;  %v8942_v57 = vpop.permute.xlu1 %2560 }
 0x318   : > { %v4273_v42 = vsel %vm700_vm1, %v4271_v37, %v4272_v40  ;;  %v4294_v52 = vmul.f32 %v8821_v59, %v8728_v25  ;;  %v4295_v23 = vmul.f32 %v8833_v55, %v8728_v25  ;;  %v8895_v19 = vadd.f32 %v4264_v4, %v4246_v63 }
 0x319   : > { %v8897_v22 = vadd.f32 %v4273_v42, %v4248_v35  ;;  %v4290_v28 = vrot.slane %v4286_v27, 2  ;;  %v8901_v48 = vmul.f32 %v8833_v55, %v8731_v14  ;;  %v8907_v18 = vmul.f32 %v8833_v55, %v8734_v20 }
 0x31a   : > { %v4298_v45 = vrot.slane %v4294_v52, 2  ;;  %v4299_v2 = vrot.slane %v4295_v23, 2  ;;  %v8911_v25 = vmul.f32 %v8833_v55, %v8737_v53  ;;  %v8916_v63 = vsel %vm731_vm2, %v4280_v26, %v4281_v8  ;;  %v8984_v5 = vpop.permute.xlu0 %4357 }
 0x31b   : > { %9619 = vst [vmem:[#allocation59_spill] sm:$0xff] %v8897_v22  ;;  %9620 = vst [vmem:[#allocation55_spill] sm:$0xff] %v8901_v48  ;;  %v8919_v15 = vsel %vm731_vm2, %v4289_v46, %v4290_v28  ;;  %v8923_v6 = vmul.f32 %v8833_v55, %v8784_v16  ;;  %v8927_v29 = vmul.f32 %v8833_v55, %v8791_v30  ;;  %v2571_v62 = vstv %s8861_s26  ;;  %v4360_v35 = vpop.permute.xlu1 %4359  ;;  %s5218_s26 = smov [#allocation12]  }
 0x31c   : > { %9621 = vst [vmem:[#allocation56_spill] sm:$0xff] %v8907_v18  ;;  %9622 = vst [vmem:[#allocation37_spill] sm:$0xff] %v8911_v25  ;;  %v8932_v7 = vsel %vm731_vm2, %v4298_v45, %v4299_v2  ;;  %v8938_v13 = vmul.f32 %v8833_v55, %v8794_v36  ;;  %v2581_v31 = vstv %s8876_s25  ;;  %v8956_v55 = vmul.f32 %v2571_v62, %v8940_v43 }
 0x31d   : > { %9623 = vst [vmem:[#allocation57_spill] sm:$0xff] %v8919_v15  ;;  %9624 = vst [vmem:[#allocation38_spill] sm:$0xff] %v8923_v6  ;;  %v8959_v37 = vmul.f32 %v2571_v62, %v8942_v57  ;;  %v8962_v40 = vmul.f32 %v2581_v31, %v8940_v43  ;;  %v8965_v26 = vmul.f32 %v2581_v31, %v8942_v57  ;;  %v2591_v8 = vstv %s8886_s7 }
 0x31e   : > { %9625 = vst [vmem:[#allocation42_spill] sm:$0xff] %v8927_v29  ;;  %9626 = vst [vmem:[#allocation41_spill] sm:$0xff] %v8932_v7  ;;  %v2601_v27 = vstv %s8869_s17  ;;  %v2611_v42 = vstv %s8880_s29  ;;  %v8974_v28 = vmul.f32 %v2591_v8, %v8940_v43  ;;  %v8979_v4 = vmul.f32 %v2591_v8, %v8942_v57  ;;  %s5111_s17 = sshll.u32 %s5218_s26, 4  ;;  %s5112_s17 = int_to_ptr.vmem [resolvable:$false] %s5111_s17 }
 0x31f   : > { %9627 = vst [vmem:[#allocation43_spill] sm:$0xff] %v8938_v13  ;;  %v8982_v46 = vmul.f32 %v2601_v27, %v8940_v43  ;;  %v8988_v9 = vmul.f32 %v2601_v27, %v8942_v57  ;;  %v8991_v11 = vmul.f32 %v2611_v42, %v8940_v43  ;;  %v2621_v45 = vstv %s8913_s1  ;;  %s5113_s25 = scalar_lea.vmem %s5112_s17, 1536  ;;  %p5114_p7 = scmp.lt.s32.totalorder %s9309_s23, %s5112_s17 }
 0x320   : > { %v8996_v52 = vmul.f32 %v2611_v42, %v8942_v57  ;;  %v8999_v23 = vmul.f32 %v2621_v45, %v8940_v43  ;;  %v9002_v3 = vmul.f32 %v2621_v45, %v8942_v57  ;;  %v9005_v0 = vstv %s8893_s0  ;;  %p5115_p5 = scmp.lt.s32.totalorder %s5113_s25, %s5107_s27 }
 0x321   : > { %v9008_v54 = vstv %s8929_s13  ;;  %v9011_v10 = vstv %s8944_s15  ;;  %v9014_v41 = vstv %s8903_s10  ;;  %v9017_v12 = vstv %s8948_s8 }
 0x322   : > { %v4367_v2 = vmul.f32 %v8984_v5, %v2571_v62  ;;  %v4368_v32 = vmul.f32 %v4360_v35, %v2571_v62  ;;  %v4376_v13 = vmul.f32 %v8984_v5, %v2581_v31  ;;  %v9022_v29 = vstv %s8953_s28  ;;  %p5116_p8 = por %p5115_p5, %p5114_p7 }
 0x323   : > { %v4377_v6 = vmul.f32 %v4360_v35, %v2581_v31  ;;  %v4385_v25 = vmul.f32 %v8984_v5, %v2591_v8  ;;  %v4386_v18 = vmul.f32 %v4360_v35, %v2591_v8  ;;  %v9025_v59 = vmul.f32 %v4360_v35, %v2601_v27 }
 0x324   : > { %v4371_v48 = vrot.slane %v4367_v2, 1  ;;  %v4372_v53 = vrot.slane %v4368_v32, 1  ;;  %v4380_v20 = vrot.slane %v4376_v13, 1  ;;  %v9028_v15 = vmul.f32 %v8984_v5, %v2601_v27  ;;  %p5117_p11 = pnand %p5116_p8, %p5110_p3 }
 0x325   : > { %v4381_v14 = vrot.slane %v4377_v6, 1  ;;  %v4389_v7 = vrot.slane %v4385_v25, 1  ;;  %v4390_v22 = vrot.slane %v4386_v18, 1  ;;  %v9037_v8 = vmul.f32 %v8984_v5, %v2611_v42 }
 0x326   : > { %v9033_v62 = vsel %vm700_vm1, %v4371_v48, %v4372_v53  ;;  %v9039_v32 = vmul.f32 %v4360_v35, %v2611_v42  ;;  %v9047_v18 = vmul.f32 %v8984_v5, %v2621_v45  ;;  %v9049_v6 = vmul.f32 %v4360_v35, %v2621_v45 }
 0x327   : > { %v9044_v25 = vsel %vm700_vm1, %v4380_v20, %v4381_v14  ;;  %v9052_v53 = vmul.f32 %v4360_v35, %v9005_v0  ;;  %v9057_v48 = vsel %vm700_vm1, %v4389_v7, %v4390_v22  ;;  %v9060_v13 = vmul.f32 %v4360_v35, %v9008_v54 }
 0x328   : > { %9628 = vst [vmem:[#allocation45_spill] sm:$0xff] %v9057_v48  ;;  %v9063_v27 = vmul.f32 %v4360_v35, %v9011_v10  ;;  %v9066_v14 = vmul.f32 %v4360_v35, %v9014_v41  ;;  %v9072_v2 = vmul.f32 %v4360_v35, %v9017_v12  ;;  %v9077_v31 = vmul.f32 %v4360_v35, %v9022_v29 }
 0x329   : > { %v2477_v48 = vadd.f32 %v8742_v39, %v8722_v17  ;;  %v2487_v45 = vadd.f32 %v8773_v38, %v8724_v61  ;;  %v2497_v7 = vadd.f32 %v8779_v51, %v8739_v60  ;;  %v9630_v35 = vrot.slane %v8754_v44, 3 }
 0x32a   : > { %9629 = vst [vmem:[#allocation44_spill] sm:$0xff] %v9072_v2  ;;  %v9631_v22 = vrot.slane %v8750_v34, 3  ;;  %v9632_v39 = vrot.slane %v8762_v21, 3  ;;  %v9633_v20 = vrot.slane %v8758_v49, 3  ;;  %v9634_v2 = vrot.slane %v8770_v1, 3 }
 0x32b   : > { %v9635_v61 = vrot.slane %v8766_v50, 3  ;;  %v2529_v60 = vmul.f32 %v8784_v16, %v8652_v58  ;;  %v2539_v21 = vmul.f32 %v8791_v30, %v8652_v58  ;;  %v2549_v49 = vmul.f32 %v8794_v36, %v8652_v58 }
 0x32c   : > { %v2505_v17 = vsel %vm762_vm3, %v9631_v22, %v9630_v35  ;;  %v2515_v42 = vsel %vm762_vm3, %v9633_v20, %v9632_v39  ;;  %v2562_v20 = vstv %s9030_s4  ;;  %v9433_v1 = vstv %s9041_s30 }
 0x32d   : > { %v2525_v38 = vsel %vm762_vm3, %v9635_v61, %v9634_v2  ;;  %v2507_v34 = vadd.f32 %v2505_v17, %v2477_v48  ;;  %v2517_v44 = vadd.f32 %v2515_v42, %v2487_v45  ;;  %v2533_v22 = vrot.slane %v2529_v60, 4 }
 0x32e   : > { %v2527_v51 = vadd.f32 %v2525_v38, %v2497_v7  ;;  %v2543_v35 = vrot.slane %v2539_v21, 4  ;;  %v2563_v50 = vmul.f32 %v2562_v20, %v8940_v43  ;;  %v2566_v2 = vmul.f32 %v9433_v1, %v8940_v43 }
 0x32f   : > { %v2568_v39 = vstv %s9054_s24  ;;  %v9636_v48 = vrot.slane %v8788_v56, 4  ;;  %v2553_v45 = vrot.slane %v2549_v49, 4  ;;  %v9637_v58 = vrot.slane %v8959_v37, 1 }
 0x330   : > { %v2569_v7 = vmul.f32 %v2568_v39, %v8940_v43  ;;  %v9638_v17 = vrot.slane %v8956_v55, 1  ;;  %v9639_v60 = vrot.slane %v8801_v24, 4  ;;  %v9640_v1 = vrot.slane %v8965_v26, 1 }
 0x331   : > { %v2535_v42 = vsel %vm793_vm4, %v2533_v22, %v9636_v48  ;;  %v9641_v56 = vrot.slane %v8962_v40, 1  ;;  %v9642_v49 = vrot.slane %v8979_v4, 1  ;;  %v9643_v48 = vrot.slane %v8974_v28, 1 }
 0x332   : > { %v2578_v61 = vsel %vm700_vm1, %v9638_v17, %v9637_v58  ;;  %v2537_v38 = vadd.f32 %v2535_v42, %v2507_v34  ;;  %v2545_v21 = vsel %vm793_vm4, %v2543_v35, %v9639_v60  ;;  %v9644_v58 = vrot.slane %v8809_v47, 4 }
 0x333   : > { %v2588_v22 = vsel %vm700_vm1, %v9641_v56, %v9640_v1  ;;  %v2598_v37 = vsel %vm700_vm1, %v9643_v48, %v9642_v49  ;;  %v2547_v55 = vadd.f32 %v2545_v21, %v2517_v44  ;;  %v2606_v24 = vrot.slane %v8982_v46, 2 }
 0x334   : > { %v2555_v34 = vsel %vm793_vm4, %v2553_v45, %v9644_v58  ;;  %v2607_v35 = vrot.slane %v8988_v9, 2  ;;  %v2564_v42 = vadd.f32 %v2563_v50, %v2537_v38  ;;  %v2616_v40 = vrot.slane %v8991_v11, 2 }
 0x335   : > { %v2557_v26 = vadd.f32 %v2555_v34, %v2527_v51  ;;  %v2617_v1 = vrot.slane %v8996_v52, 2  ;;  %v2567_v4 = vadd.f32 %v2566_v2, %v2547_v55  ;;  %v2626_v17 = vrot.slane %v8999_v23, 2 }
 0x336   : > { %v2608_v28 = vsel %vm731_vm2, %v2606_v24, %v2607_v35  ;;  %v2627_v44 = vrot.slane %v9002_v3, 2  ;;  %v2580_v45 = vadd.f32 %v2578_v61, %v2564_v42  ;;  %v2632_v9 = vmul.f32 %v9005_v0, %v8940_v43 }
 0x337   : > { %v2570_v47 = vadd.f32 %v2569_v7, %v2557_v26  ;;  %v2618_v46 = vsel %vm731_vm2, %v2616_v40, %v2617_v1  ;;  %v2590_v11 = vadd.f32 %v2588_v22, %v2567_v4  ;;  %v2633_v51 = vmul.f32 %v9005_v0, %v8942_v57 }
 0x338   : > { %v2628_v52 = vsel %vm731_vm2, %v2626_v17, %v2627_v44  ;;  %v2642_v3 = vmul.f32 %v9008_v54, %v8940_v43  ;;  %v2610_v50 = vadd.f32 %v2608_v28, %v2580_v45  ;;  %v2636_v2 = vrot.slane %v2632_v9, 3 }
 0x339   : > { %v2600_v23 = vadd.f32 %v2598_v37, %v2570_v47  ;;  %v2643_v7 = vmul.f32 %v9008_v54, %v8942_v57  ;;  %v2620_v61 = vadd.f32 %v2618_v46, %v2590_v11  ;;  %v2637_v38 = vrot.slane %v2633_v51, 3 }
 0x33a   : > { %v2646_v60 = vrot.slane %v2642_v3, 3  ;;  %v2652_v21 = vmul.f32 %v9011_v10, %v8940_v43  ;;  %v2653_v49 = vmul.f32 %v9011_v10, %v8942_v57  ;;  %v2662_v48 = vmul.f32 %v9014_v41, %v8940_v43 }
 0x33b   : > { %v2630_v56 = vadd.f32 %v2628_v52, %v2600_v23  ;;  %v2647_v22 = vrot.slane %v2643_v7, 3  ;;  %v2638_v37 = vsel %vm762_vm3, %v2636_v2, %v2637_v38  ;;  %v2663_v58 = vmul.f32 %v9014_v41, %v8942_v57  ;;  %v9648_v38 = vld [vmem:[#allocation41_spill] sm:$0xff] }
 0x33c   : > { %v2656_v55 = vrot.slane %v2652_v21, 3  ;;  %v2672_v34 = vmul.f32 %v9017_v12, %v8940_v43  ;;  %v2640_v24 = vadd.f32 %v2638_v37, %v2610_v50  ;;  %v2657_v26 = vrot.slane %v2653_v49, 3  ;;  %v9649_v49 = vld [vmem:[#allocation53_spill] sm:$0xff] }
 0x33d   : > { %v2648_v35 = vsel %vm762_vm3, %v2646_v60, %v2647_v22  ;;  %v2666_v42 = vrot.slane %v2662_v48, 4  ;;  %v2667_v1 = vrot.slane %v2663_v58, 4  ;;  %v2673_v4 = vmul.f32 %v9017_v12, %v8942_v57  ;;  %v9650_v48 = vld [vmem:[#allocation54_spill] sm:$0xff] }
 0x33e   : > { %v2650_v40 = vadd.f32 %v2648_v35, %v2620_v61  ;;  %v2676_v28 = vrot.slane %v2672_v34, 4  ;;  %v2658_v17 = vsel %vm762_vm3, %v2656_v55, %v2657_v26  ;;  %v2682_v44 = vmul.f32 %v9022_v29, %v8940_v43  ;;  %v9647_v61 = vld [vmem:[#allocation59_spill] sm:$0xff]  ;;  %v9651_v58 = vld [vmem:[#allocation58_spill] sm:$0xff] }
 0x33f   : > { %v2683_v47 = vmul.f32 %v9022_v29, %v8942_v57  ;;  %v2691_v45 = vstv %s9151_s14  ;;  %v2660_v46 = vadd.f32 %v2658_v17, %v2630_v56  ;;  %v2668_v9 = vsel %vm793_vm4, %v2666_v42, %v2667_v1  ;;  %v9646_v57 = vld [vmem:[#allocation57_spill] sm:$0xff] }
 0x340   : > { %v2677_v11 = vrot.slane %v2673_v4, 4  ;;  %v2694_v52 = vstv %s9156_s12  ;;  %v2670_v51 = vadd.f32 %v2668_v9, %v2640_v24  ;;  %v2686_v3 = vrot.slane %v2682_v44, 4 }
 0x341   : > { %v2687_v23 = vrot.slane %v2683_v47, 4  ;;  %v2698_v50 = vstv %s9163_s16  ;;  %v4284_v43 = vadd.f32 %v8916_v63, %v8882_v33  ;;  %v4293_v7 = vadd.f32 %v9646_v57, %v8895_v19  ;;  %v9652_v33 = vld [vmem:[#allocation52_spill] sm:$0xff]  ;;  %v9660_v57 = vld [vmem:[#allocation38_spill] sm:$0xff] }
 0x342   : > { %v2678_v2 = vsel %vm793_vm4, %v2676_v28, %v2677_v11  ;;  %v4302_v60 = vadd.f32 %v9648_v38, %v9647_v61  ;;  %v2692_v22 = vadd.f32 %v2691_v45, %v2670_v51  ;;  %v4303_v37 = vmul.f32 %v9650_v48, %v9649_v49  ;;  %v9654_v28 = vld [vmem:[#allocation55_spill] sm:$0xff] }
 0x343   : > { %v2680_v21 = vadd.f32 %v2678_v2, %v2650_v40  ;;  %v2688_v56 = vsel %vm793_vm4, %v2686_v3, %v2687_v23  ;;  %v4312_v34 = vmul.f32 %v9650_v48, %v9651_v58  ;;  %v4321_v63 = vmul.f32 %v9650_v48, %v9652_v33  ;;  %v9658_v3 = vld [vmem:[#allocation37_spill] sm:$0xff] }
 0x344   : > { %v2690_v55 = vadd.f32 %v2688_v56, %v2660_v46  ;;  %v4330_v19 = vmul.f32 %v9650_v48, %v8784_v16  ;;  %2693 = vst [vmem:[%s9210_s18] sm:$0xff] %v2692_v22  ;;  %v4307_v35 = vrot.slane %v4303_v37, 3  ;;  %v4339_v26 = vmul.f32 %v9650_v48, %v8791_v30  ;;  %v9662_v22 = vld [vmem:[#allocation42_spill] sm:$0xff] }
 0x345   : > { %v2695_v24 = vadd.f32 %v2694_v52, %v2680_v21  ;;  %v4348_v42 = vmul.f32 %v9650_v48, %v8794_v36  ;;  %v4316_v1 = vrot.slane %v4312_v34, 3  ;;  %v4325_v16 = vrot.slane %v4321_v63, 3  ;;  %v9656_v36 = vld [vmem:[#allocation56_spill] sm:$0xff]  ;;  %v9664_v48 = vld [vmem:[#allocation43_spill] sm:$0xff] }
 0x346   : > { %v2699_v40 = vadd.f32 %v2698_v50, %v2690_v55  ;;  %v4334_v4 = vrot.slane %v4330_v19, 4  ;;  %v9655_v17 = vrot.slane %v9654_v28, 3  ;;  %v4343_v47 = vrot.slane %v4339_v26, 4 }
 0x347   : > { %4899 = vst [vmem:[%s9210_s18 + $0x10] sm:$0xff] %v2695_v24  ;;  %v4352_v46 = vrot.slane %v4348_v42, 4  ;;  %v4361_v30 = vmul.f32 %v8984_v5, %v2562_v20  ;;  %v9657_v11 = vrot.slane %v9656_v36, 3  ;;  %v9659_v23 = vrot.slane %v9658_v3, 3 }
 0x348   : > { %v4309_v44 = vsel %vm762_vm3, %v4307_v35, %v9655_v17  ;;  %4900 = vst [vmem:[%s9210_s18 + $0x20] sm:$0xff] %v2699_v40  ;;  %v9661_v61 = vrot.slane %v9660_v57, 4  ;;  %v9663_v49 = vrot.slane %v9662_v22, 4  ;;  %v9666_v58 = vstv %s9041_s30 }
 0x349   : > { %v4311_v9 = vadd.f32 %v4309_v44, %v4284_v43  ;;  %v4318_v51 = vsel %vm762_vm3, %v4316_v1, %v9657_v11  ;;  %v4327_v2 = vsel %vm762_vm3, %v4325_v16, %v9659_v23  ;;  %v9665_v43 = vrot.slane %v9664_v48, 4 }
 0x34a   : > { %v4336_v38 = vsel %vm793_vm4, %v4334_v4, %v9661_v61  ;;  %v4320_v21 = vadd.f32 %v4318_v51, %v4293_v7  ;;  %v4329_v56 = vadd.f32 %v4327_v2, %v4302_v60  ;;  %v4345_v20 = vsel %vm793_vm4, %v4343_v47, %v9663_v49 }
 0x34b   : > { %v4354_v37 = vsel %vm793_vm4, %v4352_v46, %v9665_v43  ;;  %v4338_v55 = vadd.f32 %v4336_v38, %v4311_v9  ;;  %v4363_v34 = vmul.f32 %v8984_v5, %v9666_v58  ;;  %v4365_v33 = vmul.f32 %v8984_v5, %v2568_v39 }
 0x34c   : > { %v4398_v63 = vrot.slane %v9028_v15, 2  ;;  %v4347_v19 = vadd.f32 %v4345_v20, %v4320_v21  ;;  %v4356_v7 = vadd.f32 %v4354_v37, %v4329_v56  ;;  %v4407_v60 = vrot.slane %v9037_v8, 2  ;;  %v9676_v21 = vld [vmem:[#allocation44_spill] sm:$0xff] }
 0x34d   : > { %v4416_v24 = vrot.slane %v9047_v18, 2  ;;  %v4362_v35 = vadd.f32 %v4361_v30, %v4338_v55  ;;  %v9667_v26 = vrot.slane %v9025_v59, 2  ;;  %v4421_v40 = vmul.f32 %v8984_v5, %v9005_v0 }
 0x34e   : > { %v4430_v1 = vmul.f32 %v8984_v5, %v9008_v54  ;;  %v4364_v39 = vadd.f32 %v4363_v34, %v4347_v19  ;;  %v4366_v16 = vadd.f32 %v4365_v33, %v4356_v7  ;;  %v9668_v15 = vrot.slane %v9039_v32, 2  ;;  %v9670_v54 = vld [vmem:[#allocation45_spill] sm:$0xff] }
 0x34f   : > { %v4400_v42 = vsel %vm731_vm2, %v4398_v63, %v9667_v26  ;;  %v9669_v8 = vrot.slane %v9049_v6, 2  ;;  %v4375_v59 = vadd.f32 %v9033_v62, %v4362_v35  ;;  %v4425_v28 = vrot.slane %v4421_v40, 3 }
 0x350   : > { %v4409_v4 = vsel %vm731_vm2, %v4407_v60, %v9668_v15  ;;  %v4434_v17 = vrot.slane %v4430_v1, 3  ;;  %v4439_v0 = vmul.f32 %v8984_v5, %v9011_v10  ;;  %v4384_v44 = vadd.f32 %v9044_v25, %v4364_v39 }
 0x351   : > { %v4418_v18 = vsel %vm731_vm2, %v4416_v24, %v9669_v8  ;;  %v4393_v47 = vadd.f32 %v9670_v54, %v4366_v16  ;;  %v4448_v32 = vmul.f32 %v8984_v5, %v9014_v41  ;;  %v4457_v46 = vmul.f32 %v8984_v5, %v9017_v12 }
 0x352   : > { %v4471_v6 = vrot.slane %v9077_v31, 4  ;;  %v4402_v30 = vadd.f32 %v4400_v42, %v4375_v59  ;;  %v9671_v62 = vrot.slane %v9052_v53, 3  ;;  %v4443_v36 = vrot.slane %v4439_v0, 3 }
 0x353   : > { %v4411_v10 = vadd.f32 %v4409_v4, %v4384_v44  ;;  %v4420_v11 = vadd.f32 %v4418_v18, %v4393_v47  ;;  %v4452_v25 = vrot.slane %v4448_v32, 4  ;;  %v4461_v51 = vrot.slane %v4457_v46, 4 }
 0x354   : > { %v4427_v9 = vsel %vm762_vm3, %v4425_v28, %v9671_v62  ;;  %v9673_v41 = vrot.slane %v9060_v13, 3  ;;  %v9674_v31 = vrot.slane %v9063_v27, 3  ;;  %v4466_v23 = vmul.f32 %v8984_v5, %v9022_v29 }
 0x355   : > { %v4429_v3 = vadd.f32 %v4427_v9, %v4402_v30  ;;  %v9675_v61 = vrot.slane %v9066_v14, 4  ;;  %v9677_v56 = vrot.slane %v9676_v21, 4 }
 0x356   : > { %v4436_v12 = vsel %vm762_vm3, %v4434_v17, %v9673_v41  ;;  %v4445_v53 = vsel %vm762_vm3, %v4443_v36, %v9674_v31  ;;  %v4470_v22 = vrot.slane %v4466_v23, 4 }
 0x357   : > { %v4438_v2 = vadd.f32 %v4436_v12, %v4411_v10  ;;  %v4447_v57 = vadd.f32 %v4445_v53, %v4420_v11  ;;  %v4454_v38 = vsel %vm793_vm4, %v4452_v25, %v9675_v61  ;;  %v4463_v27 = vsel %vm793_vm4, %v4461_v51, %v9677_v56 }
 0x358   : > { %v4456_v13 = vadd.f32 %v4454_v38, %v4429_v3  ;;  %v4472_v29 = vsel %vm793_vm4, %v4470_v22, %v4471_v6 }
 0x359   : > { %v4465_v49 = vadd.f32 %v4463_v27, %v4438_v2  ;;  %v4474_v20 = vadd.f32 %v4472_v29, %v4447_v57 }
 0x35a   : > { %v4475_v5 = vadd.f32 %v4456_v13, %v2691_v45 }
 0x35b   : > { %v4477_v14 = vadd.f32 %v4465_v49, %v2694_v52  ;;  %v4479_v48 = vadd.f32 %v4474_v20, %v2698_v50 }
 0x35c   : > { %4476 = vst [vmem:[%s9210_s18 + $0x8] sm:$0xff] %v4475_v5 }
 0x35d   : > { %4905 = vst [vmem:[%s9210_s18 + $0x18] sm:$0xff] %v4477_v14  ;;  %4906 = vst [vmem:[%s9210_s18 + $0x28] sm:$0xff] %v4479_v48 }
 0x35e   : > { %5120 = shalt.err (!%p5117_p11)
}
 0x35f   : > { %s5121_s29 = scalar_lea.hbm %s9304_s9, 768  ;;  %s5125_s10 = scalar_lea.hbm %s9679_s11, 1536 }
 0x360   : > { %p5122_p0 = scmp.ne.s32.totalorder %s9304_s9, %s5121_s29  ;;  %p5126_p6 = scmp.lt.s32.totalorder %s9304_s9, %s9679_s11 }
 0x361   : > { %p5127_p10 = scmp.lt.s32.totalorder %s5125_s10, %s5121_s29 }
 0x362   : > { %p5123_p4 = pnand %p5122_p0, %p9680_p13 }
 0x363   : > { %p5128_p12 = por %p5127_p10, %p5126_p6 }
 0x364   : > { %p5124_p2 = pneg %p5123_p4 }
 0x366   : > { %p5129_p1 = pnand %p5128_p12, %p5124_p2 }
 0x368   : > { %5132 = shalt.err (!%p5129_p1)
}
 0x369   : > { %s5219_s15 = smov 128   ;;  %s5220_s8 = smov 8  }
 0x36a   : > { %4939 = dma.vmem_to_hbm [thread:$0]  (%p9680_p13), %s9309_s23, 768, %s9304_s9, %s4482_s3, %s5219_s15, %s5219_s15, %s5220_s8  }
 0x36b PF: > { %s9681_s28 = sld [smem:[#allocation21_spill]] }
 0x36c   : > { %s9682_s4 = sld [smem:[#allocation30_spill]] }
 0x36d   : > { %s9683_s30 = sld [smem:[#allocation26_spill]] }
 0x371   : > { %s4512_s24 = sand.u32 1, %s9681_s28  }
 0x372   : > { %p9684_p3 = scmp.ne.s32.totalorder %s9682_s4, 0  ;;  %s4513_s14 = scalar_lea.sflag [#allocation4], %s4512_s24 }
 0x374   : > { %p4949_p7 = pnand %p4660_p9, %p9684_p3 }
 0x376   : > { %p4950_p5 = pneg %p4949_p7 }
 0x378   : > { %5174 = dma.done.wait (%p4950_p5), %s4513_s14, 768  }
 0x379   : > { %5176 = vsyncadd (%p4950_p5), %s4513_s14, 4294966528  ;;  %s26_s23 = sadd.s32 1, %s9683_s30   ;;  %s9685_s18 = sld [smem:[#allocation22_spill]] }
 0x37a   : > { %p23_p8 = scmp.ge.s32.totalorder %s26_s23, 4   ;;  %s9686_s19 = sld [smem:[#allocation23_spill]] }
 0x37b   : > { %s9687_s20 = sld [smem:[#allocation29_spill]] }
 0x37c   : > { %s9688_s21 = sld [smem:[#allocation25_spill]]  ;;  %25 = sbr.rel (!%p23_p8) target bundleno = 17 (0x11), region = 127 }
 0x37d   : > { %s9689_s22 = sld [smem:[#allocation27_spill]] }
 0x381   :  { %4518 = vsyncpa [#allocation3], 1 }
 0x382   :  { %4520 = vsyncpa [#allocation3 + $0x1], 1 }
 0x383   :  { %4521 = vsyncpa [#allocation7], 1 }
 0x384   :  { %4523 = vsyncpa [#allocation7 + $0x1], 1 }
 0x385   :  { %4524 = vsyncpa [#allocation4], 1 }
 0x386   :  { %4526 = vsyncpa [#allocation4 + $0x1], 1 }
 0x387   :  { %4527 = vsyncpa [#allocation5], 1 }
 0x388   :  { %4529 = vsyncpa [#allocation5 + $0x1], 1 }
 0x389   :  { %4530 = vsyncpa [#allocation11], 1 }

</bundles_post_ra>
